<compile_context>
chip_gen: v6e
topology: v6e:2x2x1
jax: 0.10.0
libtpu: 0.0.40
codegen_flags: <defaults>
</compile_context>

<pallas_src>
import jax
import jax.numpy as jnp
from jax.scipy.linalg import block_diag
from jax.experimental import pallas as pl
from jax.experimental.pallas import tpu as pltpu

# Use full-f32 matmul precision for both the reference and the kernel so the
# correctness check can be tight (~1e-4 instead of 2e-2).
jax.config.update("jax_default_matmul_precision", "highest")

# ----------------------------- configuration ------------------------------ #
GAZE_SEQ_SIZE = 16           # -> gazeSeqLength = 16 / 2 = 8
HEAD_SEQ_SIZE = 16           # -> headSeqLength = 16 / 2 = 8
OBJECT_SEQ_SIZE = 24         # present in the input vector but unused in forward
SALIENCY_WIDTH = 24
SALIENCY_NUM = 1
SALIENCY_SIZE = SALIENCY_NUM * SALIENCY_WIDTH * SALIENCY_WIDTH   # 576
CLUSTER_SIZE = 32
BATCH = 4
EPS = 1e-5

GAZE_LEN = GAZE_SEQ_SIZE // 2        # 8 time steps
HEAD_LEN = HEAD_SEQ_SIZE // 2        # 8 time steps
WG = GAZE_LEN // 2                   # 4 pooled time positions (MaxPool1d(2))
WH = HEAD_LEN // 2                   # 4
GC = 32                              # gaze conv out channels
HC = 64                              # head conv out channels
SC = 8                               # saliency conv out channels
SP = (SALIENCY_WIDTH // 2) ** 2      # 144 pooled spatial positions
FC1 = 128
D_GAZE = GC * WG                     # 128
D_HEAD = HC * WH                     # 256
D_GH = D_GAZE + D_HEAD               # 384
D_SAL = SC * SP                      # 1152
D_IN = D_GH + D_SAL                  # 1536
D_TOTAL = GAZE_SEQ_SIZE + HEAD_SEQ_SIZE + OBJECT_SEQ_SIZE + SALIENCY_SIZE  # 632


# ------------------------------- the kernel -------------------------------- #
def fixationnet_kernel(
    streams_ref,    # (3, B, 16) VMEM : [gaze|head] even steps, odd steps, cur-gaze (padded)
    salq_ref,       # (4, B, SP) VMEM : the 4 MaxPool2d(2) quadrant streams
    wbd_ref,        # (16, 384)  VMEM : block-diag folded Conv1d weights (gaze | head)
    bias_ref,       # (1, 544)   VMEM : [conv bias gaze+head (384) | fc1 bias (128) | fc2 bias (32)]
    w1_ref,         # (1536, 128) VMEM: BN-folded, row-reordered first FC weight
    ss_ref,         # (3, SC)    SMEM : saliency [w_pos, w_neg, bias] folded scalars
    w2_ref,         # (128, 32)  VMEM
    clu_ref,        # (32, 2)    VMEM
    out_ref,        # (B, 2)     VMEM
):
    hp = jax.lax.Precision.HIGHEST

    xe = streams_ref[0]                         # (B, 16) even time steps
    xo = streams_ref[1]                         # (B, 16) odd time steps
    cur = streams_ref[2][:, 0:2]                # (B, 2)  current gaze

    # ---- gaze + head branches: Conv1d(k=1)+BN(folded) -> ReLU -> MaxPool1d(2)
    # One block-diagonal matmul per stream covers all 4+4 pooling windows of
    # both branches at once; bias / ReLU / pool are single vector ops.
    wbd = wbd_ref[...]                          # (16, 384)
    bgh = bias_ref[:, 0:D_GH]                   # (1, 384)
    e = jnp.maximum(
        jnp.dot(xe, wbd, preferred_element_type=jnp.float32, precision=hp) + bgh, 0.0)
    o = jnp.maximum(
        jnp.dot(xo, wbd, preferred_element_type=jnp.float32, precision=hp) + bgh, 0.0)
    pooled_gh = jnp.maximum(e, o)               # (B, 384)

    # first FC contribution of gaze+head: one (B,384)@(384,128) dot
    h1 = jnp.dot(pooled_gh, w1_ref[0:D_GH, :],
                 preferred_element_type=jnp.float32, precision=hp)

    # ---- saliency branch: Conv2d(k=1,Cin=1)+BN(folded) -> ReLU -> MaxPool2d(2)
    # Quadrant max/min computed once; per channel c the pooled map is
    # relu(wpos_c*qmax + wneg_c*qmin + b_c) (valid because Cin == 1).
    q0 = salq_ref[0]
    q1 = salq_ref[1]
    q2 = salq_ref[2]
    q3 = salq_ref[3]
    qmax = jnp.maximum(jnp.maximum(q0, q1), jnp.maximum(q2, q3))   # (B, SP)
    qmin = jnp.minimum(jnp.minimum(q0, q1), jnp.minimum(q2, q3))   # (B, SP)
    for c in range(SC):
        act = jnp.maximum(
            ss_ref[0, c] * qmax + ss_ref[1, c] * qmin + ss_ref[2, c], 0.0)
        h1 = h1 + jnp.dot(act, w1_ref[D_GH + c * SP: D_GH + (c + 1) * SP, :],
                          preferred_element_type=jnp.float32, precision=hp)

    # ---- PrdFC head: (Linear+BN folded) -> ReLU -> Linear -> Softmax
    h1 = jnp.maximum(h1 + bias_ref[:, D_GH:D_GH + FC1], 0.0)
    logits = (jnp.dot(h1, w2_ref[...], preferred_element_type=jnp.float32, precision=hp)
              + bias_ref[:, D_GH + FC1:D_GH + FC1 + CLUSTER_SIZE])
    m = jnp.max(logits, axis=1, keepdims=True)
    ex = jnp.exp(logits - m)
    prob = ex / jnp.sum(ex, axis=1, keepdims=True)

    # ---- project onto clusters and add current gaze
    out_ref[...] = (
        jnp.dot(prob, clu_ref[...], preferred_element_type=jnp.float32, precision=hp)
        + cur
    )


# ------------------------------ JAX glue code ------------------------------ #
def init_params(key):
    ks = jax.random.split(key, 32)
    it = iter(range(32))
    rnd = lambda k, shape, s=0.1: jax.random.normal(k, shape, jnp.float32) * s
    p = {}
    # gaze Conv1d(2->32, k=1) + BatchNorm1d(32)
    p['wcg'] = rnd(ks[next(it)], (GC, 2))
    p['bcg'] = rnd(ks[next(it)], (GC,))
    p['g_gamma'] = 1.0 + rnd(ks[next(it)], (GC,))
    p['g_beta'] = rnd(ks[next(it)], (GC,))
    p['g_mean'] = rnd(ks[next(it)], (GC,))
    p['g_var'] = jnp.abs(rnd(ks[next(it)], (GC,))) + 0.5
    # head Conv1d(2->64, k=1) + BatchNorm1d(64)
    p['wch'] = rnd(ks[next(it)], (HC, 2))
    p['bch'] = rnd(ks[next(it)], (HC,))
    p['h_gamma'] = 1.0 + rnd(ks[next(it)], (HC,))
    p['h_beta'] = rnd(ks[next(it)], (HC,))
    p['h_mean'] = rnd(ks[next(it)], (HC,))
    p['h_var'] = jnp.abs(rnd(ks[next(it)], (HC,))) + 0.5
    # saliency Conv2d(saliencyNum->8, k=1) + BatchNorm2d(8)
    p['wcs'] = rnd(ks[next(it)], (SC, SALIENCY_NUM))
    p['bcs'] = rnd(ks[next(it)], (SC,))
    p['s_gamma'] = 1.0 + rnd(ks[next(it)], (SC,))
    p['s_beta'] = rnd(ks[next(it)], (SC,))
    p['s_mean'] = rnd(ks[next(it)], (SC,))
    p['s_var'] = jnp.abs(rnd(ks[next(it)], (SC,))) + 0.5
    # PrdFC: Linear(D_IN->128) + BatchNorm1d(128) + Linear(128->clusterSize)
    p['w1'] = rnd(ks[next(it)], (FC1, D_IN), 0.05)
    p['b1'] = rnd(ks[next(it)], (FC1,))
    p['bn1_gamma'] = 1.0 + rnd(ks[next(it)], (FC1,))
    p['bn1_beta'] = rnd(ks[next(it)], (FC1,))
    p['bn1_mean'] = rnd(ks[next(it)], (FC1,))
    p['bn1_var'] = jnp.abs(rnd(ks[next(it)], (FC1,))) + 0.5
    p['w2'] = rnd(ks[next(it)], (CLUSTER_SIZE, FC1), 0.05)
    p['b2'] = rnd(ks[next(it)], (CLUSTER_SIZE,))
    # synthetic cluster centers (replaces np.load(clusterPath))
    p['cluster'] = rnd(ks[next(it)], (CLUSTER_SIZE, 2), 1.0)
    return p


def prepare_kernel_params(p):
    """Fold BN into conv / FC weights, build the block-diagonal conv weight and
    the row-reordered first FC matrix, and consolidate everything into a small
    number of operands.  Pure JAX, runs once at setup."""
    assert SALIENCY_NUM == 1  # required by the qmax/qmin saliency-pool trick

    def fold(w, b, gamma, beta, mean, var):
        s = gamma / jnp.sqrt(var + EPS)
        return w * s[:, None], (b - mean) * s + beta

    wg, bg = fold(p['wcg'], p['bcg'], p['g_gamma'], p['g_beta'], p['g_mean'], p['g_var'])
    wh, bh = fold(p['wch'], p['bch'], p['h_gamma'], p['h_beta'], p['h_mean'], p['h_var'])
    ws, bs = fold(p['wcs'], p['bcs'], p['s_gamma'], p['s_beta'], p['s_mean'], p['s_var'])

    # Block-diagonal (16, 384) conv weight: rows 0..7 gaze (lane w*GC+c),
    # rows 8..15 head (lane 128 + w*HC + c).
    wbd = block_diag(*([wg.T] * WG + [wh.T] * WH)).astype(jnp.float32)    # (16, 384)
    bias_gh = jnp.concatenate([jnp.tile(bg, WG), jnp.tile(bh, WH)])       # (384,)

    # Fold BN1d(128) into the first FC layer.
    s1 = p['bn1_gamma'] / jnp.sqrt(p['bn1_var'] + EPS)
    w1_f = p['w1'] * s1[:, None]                                          # (FC1, D_IN)
    b1_f = (p['b1'] - p['bn1_mean']) * s1 + p['bn1_beta']                 # (FC1,)

    # Reorder first-FC rows so the in-kernel layouts (w*GC+c, w*HC+c, c*SP+p)
    # match PyTorch's channel-major flatten order (c*W+w for the 1-D convs).
    w1_g = (w1_f[:, :D_GAZE].reshape(FC1, GC, WG)
            .transpose(2, 1, 0).reshape(D_GAZE, FC1))
    w1_h = (w1_f[:, D_GAZE:D_GAZE + D_HEAD].reshape(FC1, HC, WH)
            .transpose(2, 1, 0).reshape(D_HEAD, FC1))
    w1_s = w1_f[:, D_GH:].T                                               # (D_SAL, FC1)
    w1_big = jnp.concatenate([w1_g, w1_h, w1_s], axis=0)                  # (1536, 128)

    biases = jnp.concatenate([bias_gh, b1_f, p['b2']]).reshape(1, D_GH + FC1 + CLUSTER_SIZE)

    wsc = ws[:, 0]                                                        # (SC,)
    sal_scalars = jnp.stack(
        [jnp.maximum(wsc, 0.0), jnp.minimum(wsc, 0.0), bs], axis=0)       # (3, SC)

    return {
        'wbd': wbd,
        'biases': biases,
        'w1': w1_big,
        'sal_scalars': sal_scalars,
        'w2t': p['w2'].T,            # (FC1, K)
        'cluster': p['cluster'],     # (K, 2)
    }


def prepare_inputs(x):
    """Slice the flat input vector exactly like forward1 (layout plumbing only):
    split even/odd time steps so MaxPool1d(2) is an elementwise max, and split
    the 2x2 spatial pooling windows into 4 quadrant streams."""
    B = x.shape[0]
    gr = x[:, :GAZE_SEQ_SIZE].reshape(B, GAZE_LEN, 2)
    hr = x[:, GAZE_SEQ_SIZE:GAZE_SEQ_SIZE + HEAD_SEQ_SIZE].reshape(B, HEAD_LEN, 2)
    xe = jnp.concatenate([gr[:, 0::2, :].reshape(B, 2 * WG),
                          hr[:, 0::2, :].reshape(B, 2 * WH)], axis=1)     # (B, 16)
    xo = jnp.concatenate([gr[:, 1::2, :].reshape(B, 2 * WG),
                          hr[:, 1::2, :].reshape(B, 2 * WH)], axis=1)     # (B, 16)
    cur_pad = jnp.pad(x[:, :2], ((0, 0), (0, 2 * (WG + WH) - 2)))         # (B, 16)
    streams = jnp.stack([xe, xo, cur_pad], axis=0)                        # (3, B, 16)

    off = GAZE_SEQ_SIZE + HEAD_SEQ_SIZE + OBJECT_SEQ_SIZE   # object branch unused
    sal = x[:, off:off + SALIENCY_SIZE].reshape(B, 12, 2, 12, 2)
    salq = sal.transpose(2, 4, 0, 1, 3).reshape(4, B, SP)                 # (4, B, 144)
    return streams, salq


@jax.jit
def fixationnet_forward(x, kp):
    streams, salq = prepare_inputs(x)
    vmem = pl.BlockSpec(memory_space=pltpu.MemorySpace.VMEM)
    smem = pl.BlockSpec(memory_space=pltpu.MemorySpace.SMEM)
    return pl.pallas_call(
        fixationnet_kernel,
        out_shape=jax.ShapeDtypeStruct((x.shape[0], 2), jnp.float32),
        in_specs=[vmem, vmem, vmem, vmem, vmem, smem, vmem, vmem],
        out_specs=pl.BlockSpec(memory_space=pltpu.MemorySpace.VMEM),
    )(streams, salq, kp['wbd'], kp['biases'], kp['w1'],
      kp['sal_scalars'], kp['w2t'], kp['cluster'])


# ---------------------- pure-JAX reference (PyTorch semantics) ------------- #
def reference_forward(x, p):
    B = x.shape[0]
    cur = x[:, :2]

    def branch1d(seq, L, w, b, gamma, beta, mean, var):
        s = seq.reshape(B, L, 2).transpose(0, 2, 1)                    # (B,2,L)
        conv = jnp.einsum('oc,bcl->bol', w, s) + b[None, :, None]
        bn = ((conv - mean[None, :, None]) / jnp.sqrt(var + EPS)[None, :, None]
              * gamma[None, :, None] + beta[None, :, None])
        r = jnp.maximum(bn, 0.0)
        pooled = r.reshape(B, w.shape[0], L // 2, 2).max(-1)
        return pooled.reshape(B, -1)

    gflat = branch1d(x[:, :GAZE_SEQ_SIZE], GAZE_LEN, p['wcg'], p['bcg'],
                     p['g_gamma'], p['g_beta'], p['g_mean'], p['g_var'])
    off = GAZE_SEQ_SIZE
    hflat = branch1d(x[:, off:off + HEAD_SEQ_SIZE], HEAD_LEN, p['wch'], p['bch'],
                     p['h_gamma'], p['h_beta'], p['h_mean'], p['h_var'])
    off = GAZE_SEQ_SIZE + HEAD_SEQ_SIZE + OBJECT_SEQ_SIZE
    sal = x[:, off:off + SALIENCY_SIZE].reshape(B, SALIENCY_NUM, 24, 24)
    conv = jnp.einsum('oc,bchw->bohw', p['wcs'], sal) + p['bcs'][None, :, None, None]
    bn = ((conv - p['s_mean'][None, :, None, None])
          / jnp.sqrt(p['s_var'] + EPS)[None, :, None, None]
          * p['s_gamma'][None, :, None, None] + p['s_beta'][None, :, None, None])
    r = jnp.maximum(bn, 0.0)
    sflat = r.reshape(B, SC, 12, 2, 12, 2).max(axis=(3, 5)).reshape(B, -1)

    prdin = jnp.concatenate([gflat, hflat, sflat], axis=1)
    h1 = prdin @ p['w1'].T + p['b1']
    h1 = ((h1 - p['bn1_mean']) / jnp.sqrt(p['bn1_var'] + EPS)
          * p['bn1_gamma'] + p['bn1_beta'])
    h1 = jnp.maximum(h1, 0.0)
    logits = h1 @ p['w2'].T + p['b2']
    prob = jax.nn.softmax(logits, axis=1)
    return prob @ p['cluster'] + cur


# ----------------------------------- main ---------------------------------- #
if __name__ == "__main__":
    key = jax.random.PRNGKey(0)
    pkey, xkey = jax.random.split(key)
    params = init_params(pkey)
    kparams = prepare_kernel_params(params)

    x = jax.random.normal(xkey, (BATCH, D_TOTAL), jnp.float32) * 0.5

    out = jax.block_until_ready(fixationnet_forward(x, kparams))
    ref = jax.block_until_ready(reference_forward(x, params))

    assert out.shape == (BATCH, 2), out.shape
    assert bool(jnp.all(jnp.isfinite(out)))
    assert jnp.allclose(out, ref, rtol=1e-4, atol=1e-5), (out, ref)

    print("KERNEL_OK")
</pallas_src>

<mosaic_0001>
module attributes {stable_mosaic.version = 11 : i64} {
  func.func @fixationnet_kernel(%arg0: memref<3x4x16xf32, #tpu.memory_space<vmem>>, %arg1: memref<4x4x144xf32, #tpu.memory_space<vmem>>, %arg2: memref<16x384xf32, #tpu.memory_space<vmem>>, %arg3: memref<1x544xf32, #tpu.memory_space<vmem>>, %arg4: memref<1536x128xf32, #tpu.memory_space<vmem>>, %arg5: memref<3x8xf32, #tpu.memory_space<smem>>, %arg6: memref<128x32xf32, #tpu.memory_space<vmem>>, %arg7: memref<32x2xf32, #tpu.memory_space<vmem>>, %arg8: memref<4x2xf32, #tpu.memory_space<vmem>>) attributes {dimension_semantics = [], scalar_prefetch = 0 : i64, scratch_operands = 0 : i64, tpu.core_type = #tpu.core_type<tc>} {
    %c0 = arith.constant 0 : index
    %c0_0 = arith.constant 0 : index
    %c0_1 = arith.constant 0 : index
    %0 = vector.load %arg0[%c0, %c0_0, %c0_1] : memref<3x4x16xf32, #tpu.memory_space<vmem>>, vector<1x4x16xf32>
    %1 = vector.shape_cast %0 : vector<1x4x16xf32> to vector<4x16xf32>
    %c1 = arith.constant 1 : index
    %c0_2 = arith.constant 0 : index
    %c0_3 = arith.constant 0 : index
    %2 = vector.load %arg0[%c1, %c0_2, %c0_3] : memref<3x4x16xf32, #tpu.memory_space<vmem>>, vector<1x4x16xf32>
    %3 = vector.shape_cast %2 : vector<1x4x16xf32> to vector<4x16xf32>
    %c2 = arith.constant 2 : index
    %c0_4 = arith.constant 0 : index
    %c0_5 = arith.constant 0 : index
    %4 = vector.load %arg0[%c2, %c0_4, %c0_5] : memref<3x4x16xf32, #tpu.memory_space<vmem>>, vector<1x4x16xf32>
    %5 = vector.shape_cast %4 : vector<1x4x16xf32> to vector<4x16xf32>
    %6 = vector.extract_strided_slice %5 {offsets = [0, 0], sizes = [4, 2], strides = [1, 1]} : vector<4x16xf32> to vector<4x2xf32>
    %c0_6 = arith.constant 0 : index
    %c0_7 = arith.constant 0 : index
    %7 = vector.load %arg2[%c0_6, %c0_7] : memref<16x384xf32, #tpu.memory_space<vmem>>, vector<16x384xf32>
    %c0_8 = arith.constant 0 : index
    %c0_9 = arith.constant 0 : index
    %8 = vector.load %arg3[%c0_8, %c0_9] : memref<1x544xf32, #tpu.memory_space<vmem>>, vector<1x384xf32>
    %cst = arith.constant dense<0.000000e+00> : vector<4x384xf32>
    %9 = tpu.matmul %1, %7, %cst {dimension_numbers = #tpu.dot_dimension_numbers<[1], [0], [0], [1], [0, 0, 1, 1], [], []>, precision = #tpu.contract_precision<fp32>} : vector<4x16xf32>, vector<16x384xf32>, vector<4x384xf32> -> vector<4x384xf32>
    %10 = vector.broadcast %8 : vector<1x384xf32> to vector<4x384xf32>
    %11 = arith.addf %9, %10 : vector<4x384xf32>
    %cst_10 = arith.constant 0.000000e+00 : f32
    %12 = vector.broadcast %cst_10 : f32 to vector<4x384xf32>
    %13 = arith.maximumf %11, %12 : vector<4x384xf32>
    %cst_11 = arith.constant dense<0.000000e+00> : vector<4x384xf32>
    %14 = tpu.matmul %3, %7, %cst_11 {dimension_numbers = #tpu.dot_dimension_numbers<[1], [0], [0], [1], [0, 0, 1, 1], [], []>, precision = #tpu.contract_precision<fp32>} : vector<4x16xf32>, vector<16x384xf32>, vector<4x384xf32> -> vector<4x384xf32>
    %15 = vector.broadcast %8 : vector<1x384xf32> to vector<4x384xf32>
    %16 = arith.addf %14, %15 : vector<4x384xf32>
    %cst_12 = arith.constant 0.000000e+00 : f32
    %17 = vector.broadcast %cst_12 : f32 to vector<4x384xf32>
    %18 = arith.maximumf %16, %17 : vector<4x384xf32>
    %19 = arith.maximumf %13, %18 : vector<4x384xf32>
    %c0_13 = arith.constant 0 : index
    %c0_14 = arith.constant 0 : index
    %20 = vector.load %arg4[%c0_13, %c0_14] : memref<1536x128xf32, #tpu.memory_space<vmem>>, vector<384x128xf32>
    %cst_15 = arith.constant dense<0.000000e+00> : vector<4x128xf32>
    %21 = tpu.matmul %19, %20, %cst_15 {dimension_numbers = #tpu.dot_dimension_numbers<[1], [0], [0], [1], [0, 0, 1, 1], [], []>, precision = #tpu.contract_precision<fp32>} : vector<4x384xf32>, vector<384x128xf32>, vector<4x128xf32> -> vector<4x128xf32>
    %c0_16 = arith.constant 0 : index
    %c0_17 = arith.constant 0 : index
    %c0_18 = arith.constant 0 : index
    %22 = vector.load %arg1[%c0_16, %c0_17, %c0_18] : memref<4x4x144xf32, #tpu.memory_space<vmem>>, vector<1x4x144xf32>
    %23 = vector.shape_cast %22 : vector<1x4x144xf32> to vector<4x144xf32>
    %c1_19 = arith.constant 1 : index
    %c0_20 = arith.constant 0 : index
    %c0_21 = arith.constant 0 : index
    %24 = vector.load %arg1[%c1_19, %c0_20, %c0_21] : memref<4x4x144xf32, #tpu.memory_space<vmem>>, vector<1x4x144xf32>
    %25 = vector.shape_cast %24 : vector<1x4x144xf32> to vector<4x144xf32>
    %c2_22 = arith.constant 2 : index
    %c0_23 = arith.constant 0 : index
    %c0_24 = arith.constant 0 : index
    %26 = vector.load %arg1[%c2_22, %c0_23, %c0_24] : memref<4x4x144xf32, #tpu.memory_space<vmem>>, vector<1x4x144xf32>
    %27 = vector.shape_cast %26 : vector<1x4x144xf32> to vector<4x144xf32>
    %c3 = arith.constant 3 : index
    %c0_25 = arith.constant 0 : index
    %c0_26 = arith.constant 0 : index
    %28 = vector.load %arg1[%c3, %c0_25, %c0_26] : memref<4x4x144xf32, #tpu.memory_space<vmem>>, vector<1x4x144xf32>
    %29 = vector.shape_cast %28 : vector<1x4x144xf32> to vector<4x144xf32>
    %30 = arith.maximumf %23, %25 : vector<4x144xf32>
    %31 = arith.maximumf %27, %29 : vector<4x144xf32>
    %32 = arith.maximumf %30, %31 : vector<4x144xf32>
    %33 = arith.minimumf %23, %25 : vector<4x144xf32>
    %34 = arith.minimumf %27, %29 : vector<4x144xf32>
    %35 = arith.minimumf %33, %34 : vector<4x144xf32>
    %c0_27 = arith.constant 0 : index
    %c0_28 = arith.constant 0 : index
    %36 = memref.load %arg5[%c0_27, %c0_28] : memref<3x8xf32, #tpu.memory_space<smem>>
    %37 = vector.broadcast %36 : f32 to vector<4x144xf32>
    %38 = arith.mulf %37, %32 : vector<4x144xf32>
    %c1_29 = arith.constant 1 : index
    %c0_30 = arith.constant 0 : index
    %39 = memref.load %arg5[%c1_29, %c0_30] : memref<3x8xf32, #tpu.memory_space<smem>>
    %40 = vector.broadcast %39 : f32 to vector<4x144xf32>
    %41 = arith.mulf %40, %35 : vector<4x144xf32>
    %42 = arith.addf %38, %41 : vector<4x144xf32>
    %c2_31 = arith.constant 2 : index
    %c0_32 = arith.constant 0 : index
    %43 = memref.load %arg5[%c2_31, %c0_32] : memref<3x8xf32, #tpu.memory_space<smem>>
    %44 = vector.broadcast %43 : f32 to vector<4x144xf32>
    %45 = arith.addf %42, %44 : vector<4x144xf32>
    %cst_33 = arith.constant 0.000000e+00 : f32
    %46 = vector.broadcast %cst_33 : f32 to vector<4x144xf32>
    %47 = arith.maximumf %45, %46 : vector<4x144xf32>
    %c384 = arith.constant 384 : index
    %c0_34 = arith.constant 0 : index
    %48 = vector.load %arg4[%c384, %c0_34] : memref<1536x128xf32, #tpu.memory_space<vmem>>, vector<144x128xf32>
    %cst_35 = arith.constant dense<0.000000e+00> : vector<4x128xf32>
    %49 = tpu.matmul %47, %48, %cst_35 {dimension_numbers = #tpu.dot_dimension_numbers<[1], [0], [0], [1], [0, 0, 1, 1], [], []>, precision = #tpu.contract_precision<fp32>} : vector<4x144xf32>, vector<144x128xf32>, vector<4x128xf32> -> vector<4x128xf32>
    %50 = arith.addf %21, %49 : vector<4x128xf32>
    %c0_36 = arith.constant 0 : index
    %c1_37 = arith.constant 1 : index
    %51 = memref.load %arg5[%c0_36, %c1_37] : memref<3x8xf32, #tpu.memory_space<smem>>
    %52 = vector.broadcast %51 : f32 to vector<4x144xf32>
    %53 = arith.mulf %52, %32 : vector<4x144xf32>
    %c1_38 = arith.constant 1 : index
    %c1_39 = arith.constant 1 : index
    %54 = memref.load %arg5[%c1_38, %c1_39] : memref<3x8xf32, #tpu.memory_space<smem>>
    %55 = vector.broadcast %54 : f32 to vector<4x144xf32>
    %56 = arith.mulf %55, %35 : vector<4x144xf32>
    %57 = arith.addf %53, %56 : vector<4x144xf32>
    %c2_40 = arith.constant 2 : index
    %c1_41 = arith.constant 1 : index
    %58 = memref.load %arg5[%c2_40, %c1_41] : memref<3x8xf32, #tpu.memory_space<smem>>
    %59 = vector.broadcast %58 : f32 to vector<4x144xf32>
    %60 = arith.addf %57, %59 : vector<4x144xf32>
    %cst_42 = arith.constant 0.000000e+00 : f32
    %61 = vector.broadcast %cst_42 : f32 to vector<4x144xf32>
    %62 = arith.maximumf %60, %61 : vector<4x144xf32>
    %c528 = arith.constant 528 : index
    %c0_43 = arith.constant 0 : index
    %63 = vector.load %arg4[%c528, %c0_43] : memref<1536x128xf32, #tpu.memory_space<vmem>>, vector<144x128xf32>
    %cst_44 = arith.constant dense<0.000000e+00> : vector<4x128xf32>
    %64 = tpu.matmul %62, %63, %cst_44 {dimension_numbers = #tpu.dot_dimension_numbers<[1], [0], [0], [1], [0, 0, 1, 1], [], []>, precision = #tpu.contract_precision<fp32>} : vector<4x144xf32>, vector<144x128xf32>, vector<4x128xf32> -> vector<4x128xf32>
    %65 = arith.addf %50, %64 : vector<4x128xf32>
    %c0_45 = arith.constant 0 : index
    %c2_46 = arith.constant 2 : index
    %66 = memref.load %arg5[%c0_45, %c2_46] : memref<3x8xf32, #tpu.memory_space<smem>>
    %67 = vector.broadcast %66 : f32 to vector<4x144xf32>
    %68 = arith.mulf %67, %32 : vector<4x144xf32>
    %c1_47 = arith.constant 1 : index
    %c2_48 = arith.constant 2 : index
    %69 = memref.load %arg5[%c1_47, %c2_48] : memref<3x8xf32, #tpu.memory_space<smem>>
    %70 = vector.broadcast %69 : f32 to vector<4x144xf32>
    %71 = arith.mulf %70, %35 : vector<4x144xf32>
    %72 = arith.addf %68, %71 : vector<4x144xf32>
    %c2_49 = arith.constant 2 : index
    %c2_50 = arith.constant 2 : index
    %73 = memref.load %arg5[%c2_49, %c2_50] : memref<3x8xf32, #tpu.memory_space<smem>>
    %74 = vector.broadcast %73 : f32 to vector<4x144xf32>
    %75 = arith.addf %72, %74 : vector<4x144xf32>
    %cst_51 = arith.constant 0.000000e+00 : f32
    %76 = vector.broadcast %cst_51 : f32 to vector<4x144xf32>
    %77 = arith.maximumf %75, %76 : vector<4x144xf32>
    %c672 = arith.constant 672 : index
    %c0_52 = arith.constant 0 : index
    %78 = vector.load %arg4[%c672, %c0_52] : memref<1536x128xf32, #tpu.memory_space<vmem>>, vector<144x128xf32>
    %cst_53 = arith.constant dense<0.000000e+00> : vector<4x128xf32>
    %79 = tpu.matmul %77, %78, %cst_53 {dimension_numbers = #tpu.dot_dimension_numbers<[1], [0], [0], [1], [0, 0, 1, 1], [], []>, precision = #tpu.contract_precision<fp32>} : vector<4x144xf32>, vector<144x128xf32>, vector<4x128xf32> -> vector<4x128xf32>
    %80 = arith.addf %65, %79 : vector<4x128xf32>
    %c0_54 = arith.constant 0 : index
    %c3_55 = arith.constant 3 : index
    %81 = memref.load %arg5[%c0_54, %c3_55] : memref<3x8xf32, #tpu.memory_space<smem>>
    %82 = vector.broadcast %81 : f32 to vector<4x144xf32>
    %83 = arith.mulf %82, %32 : vector<4x144xf32>
    %c1_56 = arith.constant 1 : index
    %c3_57 = arith.constant 3 : index
    %84 = memref.load %arg5[%c1_56, %c3_57] : memref<3x8xf32, #tpu.memory_space<smem>>
    %85 = vector.broadcast %84 : f32 to vector<4x144xf32>
    %86 = arith.mulf %85, %35 : vector<4x144xf32>
    %87 = arith.addf %83, %86 : vector<4x144xf32>
    %c2_58 = arith.constant 2 : index
    %c3_59 = arith.constant 3 : index
    %88 = memref.load %arg5[%c2_58, %c3_59] : memref<3x8xf32, #tpu.memory_space<smem>>
    %89 = vector.broadcast %88 : f32 to vector<4x144xf32>
    %90 = arith.addf %87, %89 : vector<4x144xf32>
    %cst_60 = arith.constant 0.000000e+00 : f32
    %91 = vector.broadcast %cst_60 : f32 to vector<4x144xf32>
    %92 = arith.maximumf %90, %91 : vector<4x144xf32>
    %c816 = arith.constant 816 : index
    %c0_61 = arith.constant 0 : index
    %93 = vector.load %arg4[%c816, %c0_61] : memref<1536x128xf32, #tpu.memory_space<vmem>>, vector<144x128xf32>
    %cst_62 = arith.constant dense<0.000000e+00> : vector<4x128xf32>
    %94 = tpu.matmul %92, %93, %cst_62 {dimension_numbers = #tpu.dot_dimension_numbers<[1], [0], [0], [1], [0, 0, 1, 1], [], []>, precision = #tpu.contract_precision<fp32>} : vector<4x144xf32>, vector<144x128xf32>, vector<4x128xf32> -> vector<4x128xf32>
    %95 = arith.addf %80, %94 : vector<4x128xf32>
    %c0_63 = arith.constant 0 : index
    %c4 = arith.constant 4 : index
    %96 = memref.load %arg5[%c0_63, %c4] : memref<3x8xf32, #tpu.memory_space<smem>>
    %97 = vector.broadcast %96 : f32 to vector<4x144xf32>
    %98 = arith.mulf %97, %32 : vector<4x144xf32>
    %c1_64 = arith.constant 1 : index
    %c4_65 = arith.constant 4 : index
    %99 = memref.load %arg5[%c1_64, %c4_65] : memref<3x8xf32, #tpu.memory_space<smem>>
    %100 = vector.broadcast %99 : f32 to vector<4x144xf32>
    %101 = arith.mulf %100, %35 : vector<4x144xf32>
    %102 = arith.addf %98, %101 : vector<4x144xf32>
    %c2_66 = arith.constant 2 : index
    %c4_67 = arith.constant 4 : index
    %103 = memref.load %arg5[%c2_66, %c4_67] : memref<3x8xf32, #tpu.memory_space<smem>>
    %104 = vector.broadcast %103 : f32 to vector<4x144xf32>
    %105 = arith.addf %102, %104 : vector<4x144xf32>
    %cst_68 = arith.constant 0.000000e+00 : f32
    %106 = vector.broadcast %cst_68 : f32 to vector<4x144xf32>
    %107 = arith.maximumf %105, %106 : vector<4x144xf32>
    %c960 = arith.constant 960 : index
    %c0_69 = arith.constant 0 : index
    %108 = vector.load %arg4[%c960, %c0_69] : memref<1536x128xf32, #tpu.memory_space<vmem>>, vector<144x128xf32>
    %cst_70 = arith.constant dense<0.000000e+00> : vector<4x128xf32>
    %109 = tpu.matmul %107, %108, %cst_70 {dimension_numbers = #tpu.dot_dimension_numbers<[1], [0], [0], [1], [0, 0, 1, 1], [], []>, precision = #tpu.contract_precision<fp32>} : vector<4x144xf32>, vector<144x128xf32>, vector<4x128xf32> -> vector<4x128xf32>
    %110 = arith.addf %95, %109 : vector<4x128xf32>
    %c0_71 = arith.constant 0 : index
    %c5 = arith.constant 5 : index
    %111 = memref.load %arg5[%c0_71, %c5] : memref<3x8xf32, #tpu.memory_space<smem>>
    %112 = vector.broadcast %111 : f32 to vector<4x144xf32>
    %113 = arith.mulf %112, %32 : vector<4x144xf32>
    %c1_72 = arith.constant 1 : index
    %c5_73 = arith.constant 5 : index
    %114 = memref.load %arg5[%c1_72, %c5_73] : memref<3x8xf32, #tpu.memory_space<smem>>
    %115 = vector.broadcast %114 : f32 to vector<4x144xf32>
    %116 = arith.mulf %115, %35 : vector<4x144xf32>
    %117 = arith.addf %113, %116 : vector<4x144xf32>
    %c2_74 = arith.constant 2 : index
    %c5_75 = arith.constant 5 : index
    %118 = memref.load %arg5[%c2_74, %c5_75] : memref<3x8xf32, #tpu.memory_space<smem>>
    %119 = vector.broadcast %118 : f32 to vector<4x144xf32>
    %120 = arith.addf %117, %119 : vector<4x144xf32>
    %cst_76 = arith.constant 0.000000e+00 : f32
    %121 = vector.broadcast %cst_76 : f32 to vector<4x144xf32>
    %122 = arith.maximumf %120, %121 : vector<4x144xf32>
    %c1104 = arith.constant 1104 : index
    %c0_77 = arith.constant 0 : index
    %123 = vector.load %arg4[%c1104, %c0_77] : memref<1536x128xf32, #tpu.memory_space<vmem>>, vector<144x128xf32>
    %cst_78 = arith.constant dense<0.000000e+00> : vector<4x128xf32>
    %124 = tpu.matmul %122, %123, %cst_78 {dimension_numbers = #tpu.dot_dimension_numbers<[1], [0], [0], [1], [0, 0, 1, 1], [], []>, precision = #tpu.contract_precision<fp32>} : vector<4x144xf32>, vector<144x128xf32>, vector<4x128xf32> -> vector<4x128xf32>
    %125 = arith.addf %110, %124 : vector<4x128xf32>
    %c0_79 = arith.constant 0 : index
    %c6 = arith.constant 6 : index
    %126 = memref.load %arg5[%c0_79, %c6] : memref<3x8xf32, #tpu.memory_space<smem>>
    %127 = vector.broadcast %126 : f32 to vector<4x144xf32>
    %128 = arith.mulf %127, %32 : vector<4x144xf32>
    %c1_80 = arith.constant 1 : index
    %c6_81 = arith.constant 6 : index
    %129 = memref.load %arg5[%c1_80, %c6_81] : memref<3x8xf32, #tpu.memory_space<smem>>
    %130 = vector.broadcast %129 : f32 to vector<4x144xf32>
    %131 = arith.mulf %130, %35 : vector<4x144xf32>
    %132 = arith.addf %128, %131 : vector<4x144xf32>
    %c2_82 = arith.constant 2 : index
    %c6_83 = arith.constant 6 : index
    %133 = memref.load %arg5[%c2_82, %c6_83] : memref<3x8xf32, #tpu.memory_space<smem>>
    %134 = vector.broadcast %133 : f32 to vector<4x144xf32>
    %135 = arith.addf %132, %134 : vector<4x144xf32>
    %cst_84 = arith.constant 0.000000e+00 : f32
    %136 = vector.broadcast %cst_84 : f32 to vector<4x144xf32>
    %137 = arith.maximumf %135, %136 : vector<4x144xf32>
    %c1248 = arith.constant 1248 : index
    %c0_85 = arith.constant 0 : index
    %138 = vector.load %arg4[%c1248, %c0_85] : memref<1536x128xf32, #tpu.memory_space<vmem>>, vector<144x128xf32>
    %cst_86 = arith.constant dense<0.000000e+00> : vector<4x128xf32>
    %139 = tpu.matmul %137, %138, %cst_86 {dimension_numbers = #tpu.dot_dimension_numbers<[1], [0], [0], [1], [0, 0, 1, 1], [], []>, precision = #tpu.contract_precision<fp32>} : vector<4x144xf32>, vector<144x128xf32>, vector<4x128xf32> -> vector<4x128xf32>
    %140 = arith.addf %125, %139 : vector<4x128xf32>
    %c0_87 = arith.constant 0 : index
    %c7 = arith.constant 7 : index
    %141 = memref.load %arg5[%c0_87, %c7] : memref<3x8xf32, #tpu.memory_space<smem>>
    %142 = vector.broadcast %141 : f32 to vector<4x144xf32>
    %143 = arith.mulf %142, %32 : vector<4x144xf32>
    %c1_88 = arith.constant 1 : index
    %c7_89 = arith.constant 7 : index
    %144 = memref.load %arg5[%c1_88, %c7_89] : memref<3x8xf32, #tpu.memory_space<smem>>
    %145 = vector.broadcast %144 : f32 to vector<4x144xf32>
    %146 = arith.mulf %145, %35 : vector<4x144xf32>
    %147 = arith.addf %143, %146 : vector<4x144xf32>
    %c2_90 = arith.constant 2 : index
    %c7_91 = arith.constant 7 : index
    %148 = memref.load %arg5[%c2_90, %c7_91] : memref<3x8xf32, #tpu.memory_space<smem>>
    %149 = vector.broadcast %148 : f32 to vector<4x144xf32>
    %150 = arith.addf %147, %149 : vector<4x144xf32>
    %cst_92 = arith.constant 0.000000e+00 : f32
    %151 = vector.broadcast %cst_92 : f32 to vector<4x144xf32>
    %152 = arith.maximumf %150, %151 : vector<4x144xf32>
    %c1392 = arith.constant 1392 : index
    %c0_93 = arith.constant 0 : index
    %153 = vector.load %arg4[%c1392, %c0_93] : memref<1536x128xf32, #tpu.memory_space<vmem>>, vector<144x128xf32>
    %cst_94 = arith.constant dense<0.000000e+00> : vector<4x128xf32>
    %154 = tpu.matmul %152, %153, %cst_94 {dimension_numbers = #tpu.dot_dimension_numbers<[1], [0], [0], [1], [0, 0, 1, 1], [], []>, precision = #tpu.contract_precision<fp32>} : vector<4x144xf32>, vector<144x128xf32>, vector<4x128xf32> -> vector<4x128xf32>
    %155 = arith.addf %140, %154 : vector<4x128xf32>
    %c0_95 = arith.constant 0 : index
    %c384_96 = arith.constant 384 : index
    %156 = vector.load %arg3[%c0_95, %c384_96] : memref<1x544xf32, #tpu.memory_space<vmem>>, vector<1x128xf32>
    %157 = vector.broadcast %156 : vector<1x128xf32> to vector<4x128xf32>
    %158 = arith.addf %155, %157 : vector<4x128xf32>
    %cst_97 = arith.constant 0.000000e+00 : f32
    %159 = vector.broadcast %cst_97 : f32 to vector<4x128xf32>
    %160 = arith.maximumf %158, %159 : vector<4x128xf32>
    %c0_98 = arith.constant 0 : index
    %c0_99 = arith.constant 0 : index
    %161 = vector.load %arg6[%c0_98, %c0_99] : memref<128x32xf32, #tpu.memory_space<vmem>>, vector<128x32xf32>
    %cst_100 = arith.constant dense<0.000000e+00> : vector<4x32xf32>
    %162 = tpu.matmul %160, %161, %cst_100 {dimension_numbers = #tpu.dot_dimension_numbers<[1], [0], [0], [1], [0, 0, 1, 1], [], []>, precision = #tpu.contract_precision<fp32>} : vector<4x128xf32>, vector<128x32xf32>, vector<4x32xf32> -> vector<4x32xf32>
    %c0_101 = arith.constant 0 : index
    %c512 = arith.constant 512 : index
    %163 = vector.load %arg3[%c0_101, %c512] : memref<1x544xf32, #tpu.memory_space<vmem>>, vector<1x32xf32>
    %164 = vector.broadcast %163 : vector<1x32xf32> to vector<4x32xf32>
    %165 = arith.addf %162, %164 : vector<4x32xf32>
    %cst_102 = arith.constant dense<0xFF800000> : vector<4xf32>
    %166 = vector.multi_reduction <maximumf>, %165, %cst_102 [1] : vector<4x32xf32> to vector<4xf32>
    %167 = vector.shape_cast %166 : vector<4xf32> to vector<4x1xf32>
    %168 = vector.broadcast %167 : vector<4x1xf32> to vector<4x32xf32>
    %169 = arith.subf %165, %168 : vector<4x32xf32>
    %170 = math.exp %169 : vector<4x32xf32>
    %cst_103 = arith.constant dense<0.000000e+00> : vector<4xf32>
    %171 = vector.multi_reduction <add>, %170, %cst_103 [1] : vector<4x32xf32> to vector<4xf32>
    %172 = vector.shape_cast %171 : vector<4xf32> to vector<4x1xf32>
    %173 = vector.broadcast %172 : vector<4x1xf32> to vector<4x32xf32>
    %174 = arith.divf %170, %173 : vector<4x32xf32>
    %c0_104 = arith.constant 0 : index
    %c0_105 = arith.constant 0 : index
    %175 = vector.load %arg7[%c0_104, %c0_105] : memref<32x2xf32, #tpu.memory_space<vmem>>, vector<32x2xf32>
    %cst_106 = arith.constant dense<0.000000e+00> : vector<4x2xf32>
    %176 = tpu.matmul %174, %175, %cst_106 {dimension_numbers = #tpu.dot_dimension_numbers<[1], [0], [0], [1], [0, 0, 1, 1], [], []>, precision = #tpu.contract_precision<fp32>} : vector<4x32xf32>, vector<32x2xf32>, vector<4x2xf32> -> vector<4x2xf32>
    %177 = arith.addf %176, %6 : vector<4x2xf32>
    %c0_107 = arith.constant 0 : index
    %c0_108 = arith.constant 0 : index
    %178 = vector.load %arg8[%c0_107, %c0_108] : memref<4x2xf32, #tpu.memory_space<vmem>>, vector<4x2xf32>
    tpu.vector_store %arg8[%c0_107, %c0_108], %177 {strides = array<i32>} : memref<4x2xf32, #tpu.memory_space<vmem>>, vector<4x2xf32>,
    return
  }
}

</mosaic_0001>

<bundles_post_ra>
// kernel: fixationnet_forward.1
= control target key start
LH: loop header
LB: loop body
LE: loop exit
PB: predicated region body
PF: predicated region fallthrough
CT: control target
= control target key end

     0   :  { %13 = vsyncpa [#allocation3], 0  ;;  %s17436_s0 = inlined_call_operand.vmem [shape: f32[3,4,16], index: 0, kind: input, shape index: {}]   ;;  %s17437_s1 = inlined_call_operand.vmem [shape: f32[4,4,144], index: 1, kind: input, shape index: {}]   ;;  %s17438_s2 = inlined_call_operand.vmem [shape: f32[16,384], index: 2, kind: input, shape index: {}]   ;;  %s17439_s3 = inlined_call_operand.vmem [shape: f32[1,544], index: 3, kind: input, shape index: {}]   ;;  %s17440_s4 = inlined_call_operand.vmem [shape: f32[1536,128], index: 4, kind: input, shape index: {}]   ;;  %s17441_s5 = inlined_call_operand.vmem [shape: f32[3,8], index: 5, kind: input, shape index: {}]   ;;  %s17442_s6 = inlined_call_operand.vmem [shape: f32[128,32], index: 6, kind: input, shape index: {}]   ;;  %s17443_s7 = inlined_call_operand.vmem [shape: f32[32,2], index: 7, kind: input, shape index: {}]   ;;  %s17444_s8 = inlined_call_operand.vmem [shape: f32[4,2], index: 8, kind: output, shape index: {}]  }
   0x1   :  { %s30_s29 = sshll.u32 %s17441_s5, 4  ;;  %s31_s29 = int_to_ptr.vmem [resolvable:$true] %s30_s29 }
   0x2   :  { %s11534_s30 = scalar_lea.vmem %s31_s29, 64  ;;  %p11539_p1 = scmp.lt.s32.totalorder %s31_s29, %s31_s29 }
   0x3   :  { %p11535_p0 = scmp.ne.s32.totalorder %s31_s29, %s11534_s30  ;;  %p11540_p2 = scmp.lt.s32.totalorder %s11534_s30, %s11534_s30 }
   0x5   :  { %p11541_p3 = por %p11540_p2, %p11539_p1 }
   0x7   :  { %p11542_p4 = pnand %p11541_p3, %p11535_p0 }
   0x9   :  { %11545 = shalt.err (!%p11542_p4)
}
   0xa   :  { %s11548_s9 = smov [#allocation2]  }
   0xb   :  { %33 = dma.vmem_to_smem %s31_s29, 64, %s11548_s9, [#allocation3]  }
   0xc   :  { %11546 = dma.done.wait [#allocation3], 64  }
   0xd   :  { %11547 = vsyncadd [#allocation3], 4294967232 }
   0xe   :  { %41 = sfence }
   0xf   :  { %v51_v0 = vld [vmem:[%s17438_s2 + $0x20] sm:$0xff]  ;;  %v50_v1 = vld [vmem:[%s17438_s2 + $0x18] sm:$0xff]  ;;  %v48_v2 = vld [vmem:[%s17438_s2 + $0x8] sm:$0xff]  ;;  %vm70_vm0 = vcmask 130048   ;;  %v17468_v7 = vmov 0.0   ;;  %vm11550_vm1 = vmmov 0  }
  0x10   :  { %v11608_v3 = vand.u32 4294901760, %v51_v0  ;;  %v11610_v4 = vand.u32 4294901760, %v50_v1  ;;  %v11612_v5 = vand.u32 4294901760, %v48_v2  ;;  %v47_v6 = vld [vmem:[%s17438_s2] sm:$0xff]  ;;  %142 = vmatprep.mubr.f32.mxu0 %v17468_v7  ;;  %238 = vmatprep.mubr.f32.mxu1 %v17468_v7  ;;  %v52_v25 = vld [vmem:[%s17438_s2 + $0x28] sm:$0xff]  ;;  %v49_v31 = vld [vmem:[%s17438_s2 + $0x10] sm:$0xff] }
  0x11   :  { %v42_v8 = vld [vmem:[%s17436_s0] sm:$0xf]  ;;  %v11622_v9 = vand.u32 4294901760, %v47_v6  ;;  %v11686_v33 = vand.u32 4294901760, %v52_v25  ;;  %v11690_v35 = vand.u32 4294901760, %v49_v31  ;;  %v10448_v52 = vld [vmem:[%s17437_s1 + $0x8] sm:$0xff] }
  0x12   :  { %v72_v10 = vsel %vm70_vm0, %v42_v8, 0  ;;  %103 = vmatprep.subr.mxu0 %v11608_v3  ;;  %v11627_v11 = vsub.f32 %v51_v0, %v11608_v3  ;;  %v11632_v13 = vsub.f32 %v50_v1, %v11610_v4  ;;  %v11635_v14 = vsub.f32 %v48_v2, %v11612_v5  ;;  %v10446_v41 = vld [vmem:[%s17436_s0 + $0x4] sm:$0xf]  ;;  %s11829_s28 = sld [smem:[#allocation2]]  ;;  %v10449_v53 = vld [vmem:[%s17437_s1 + $0x10] sm:$0xff]  ;;  %v10450_v54 = vld [vmem:[%s17437_s1 + $0x18] sm:$0xff] }
  0x13   :  { %v11629_v12 = vand.u32 4294901760, %v72_v10  ;;  %105 = vmatpush1.msra.mxu0 %v11610_v4  ;;  %v11639_v15 = vsub.f32 %v47_v6, %v11622_v9  ;;  %v11696_v36 = vsub.f32 %v52_v25, %v11686_v33  ;;  %v11703_v37 = vsub.f32 %v49_v31, %v11690_v35  ;;  %v2034_v51 = vld [vmem:[%s17437_s1] sm:$0xff]  ;;  %s11839_s11 = sld [smem:[#allocation2 + $0x80]]  ;;  %v2073_v55 = vld [vmem:[%s17440_s4 + $0x1f8] sm:$0xff]  ;;  %v2072_v57 = vld [vmem:[%s17440_s4 + $0x1f0] sm:$0xff] }
  0x14   :  { %107 = vmatprep.subr.mxu0 %v11612_v5  ;;  %v11643_v16 = vand.u32 4294901760, %v11627_v11  ;;  %v11649_v18 = vand.u32 4294901760, %v11632_v13  ;;  %v11652_v19 = vand.u32 4294901760, %v11635_v14  ;;  %v1028_v43 = vsel %vm70_vm0, %v10446_v41, 0  ;;  %v2071_v62 = vld [vmem:[%s17440_s4 + $0x1e8] sm:$0xff]  ;;  %v2070_v0 = vld [vmem:[%s17440_s4 + $0x1e0] sm:$0xff] }
  0x15   :  { %v11646_v17 = vsub.f32 %v72_v10, %v11629_v12  ;;  %109 = vmatpush1.msra.mxu0 %v11622_v9  ;;  %v11656_v20 = vand.u32 4294901760, %v11639_v15  ;;  %v11710_v38 = vand.u32 4294901760, %v11696_v36  ;;  %v11717_v39 = vand.u32 4294901760, %v11703_v37  ;;  %s11884_s18 = sld [smem:[#allocation2 + $0x100]]  ;;  %v2063_v41 = vld [vmem:[%s17440_s4 + $0x1a8] sm:$0xff] }
  0x16   :  { %v185_v21 = vsub.f32 %v11627_v11, %v11643_v16  ;;  %276 = vmatprep.subr.mxu0 %v11627_v11  ;;  %v191_v23 = vsub.f32 %v11632_v13, %v11649_v18  ;;  %v197_v24 = vsub.f32 %v11635_v14, %v11652_v19  ;;  %v11748_v46 = vand.u32 4294901760, %v1028_v43  ;;  %s13438_s25 = sld [smem:[#allocation2 + $0x1]] }
  0x17   :  { %v11662_v22 = vand.u32 4294901760, %v11646_v17  ;;  %v203_v26 = vsub.f32 %v11639_v15, %v11656_v20  ;;  %v674_v40 = vsub.f32 %v11696_v36, %v11710_v38  ;;  %v681_v42 = vsub.f32 %v11703_v37, %v11717_v39  ;;  %s13444_s26 = sld [smem:[#allocation2 + $0x81]] }
  0x18   :  { %v11673_v27 = vand.u32 4294901760, %v185_v21  ;;  %v11677_v29 = vand.u32 4294901760, %v191_v23  ;;  %v11679_v30 = vand.u32 4294901760, %v197_v24  ;;  %v11758_v47 = vsub.f32 %v1028_v43, %v11748_v46  ;;  %s13496_s13 = sld [smem:[#allocation2 + $0x101]] }
  0x19   :  { %v146_v28 = vsub.f32 %v11646_v17, %v11662_v22  ;;  %v11684_v32 = vand.u32 4294901760, %v203_v26  ;;  %v11739_v44 = vand.u32 4294901760, %v674_v40  ;;  %v11746_v45 = vand.u32 4294901760, %v681_v42  ;;  %s13935_s15 = sld [smem:[#allocation2 + $0x2]] }
  0x1a   :  { %187 = vmatprep.subr.mxu1 %v11673_v27  ;;  %v11771_v48 = vand.u32 4294901760, %v11758_v47  ;;  %v2041_v56 = vmax.f32 %v2034_v51, %v10448_v52  ;;  %v2042_v58 = vmax.f32 %v10449_v53, %v10450_v54  ;;  %v2044_v59 = vmin.f32 %v2034_v51, %v10448_v52  ;;  %s13940_s16 = sld [smem:[#allocation2 + $0x82]] }
  0x1b   :  { %v147_v34 = vand.u32 4294901760, %v146_v28  ;;  %193 = vmatpush1.msra.mxu1 %v11677_v29  ;;  %v2045_v60 = vmin.f32 %v10449_v53, %v10450_v54  ;;  %v11856_v61 = vand.u32 4294901760, %v2073_v55  ;;  %v11864_v63 = vand.u32 4294901760, %v2072_v57  ;;  %v2061_v54 = vld [vmem:[%s17440_s4 + $0x198] sm:$0xff]  ;;  %s13993_s24 = sld [smem:[#allocation2 + $0x102]] }
  0x1c   :  { %199 = vmatprep.subr.mxu1 %v11679_v30  ;;  %v1102_v49 = vsub.f32 %v11758_v47, %v11771_v48  ;;  %v11871_v1 = vmax.f32 %v2041_v56, %v2042_v58  ;;  %v2051_v6 = vstv %s11839_s11  ;;  %v11889_v8 = vand.u32 4294901760, %v2070_v0  ;;  %s14435_s29 = sld [smem:[#allocation2 + $0x83]] }
  0x1d   :  { %148 = vmatmul.mubr.f32.vlgmr.msra.gmra.mxu0 %v147_v34  ;;  %205 = vmatpush1.msra.mxu1 %v11684_v32  ;;  %v11873_v2 = vmin.f32 %v2044_v59, %v2045_v60  ;;  %v11898_v10 = vsub.f32 %v2072_v57, %v11864_v63  ;;  %v2055_v28 = vstv %s11884_s18  ;;  %v2060_v59 = vld [vmem:[%s17440_s4 + $0x190] sm:$0xff]  ;;  %s14485_s14 = sld [smem:[#allocation2 + $0x103]]  ;;  %vm9934_vm2 = vcmask 257024  }
  0x1e   :  { %279 = vmatpush1.msra.mxu0 %v11632_v13  ;;  %240 = vmatmul.mubr.f32.vlgmr.msra.gmra.mxu1 %v11629_v12  ;;  %v1103_v50 = vand.u32 4294901760, %v1102_v49  ;;  %17624 = vst [vmem:[#allocation5_spill] sm:$0xff] %v11871_v1  ;;  %s14924_s19 = sld [smem:[#allocation2 + $0x84]]  ;;  %vm9950_vm3 = vcmask 261120   ;;  %vm10439_vm4 = vcmask 11264  }
  0x1f   :  { %282 = vmatprep.subr.mxu0 %v11635_v14  ;;  %318 = vmatprep.mubr.f32.mxu0 %v17468_v7  ;;  %17625 = vst [vmem:[#allocation6_spill] sm:$0xff] %v11873_v2  ;;  %s14974_s27 = sld [smem:[#allocation2 + $0x104]] }
  0x20   :  { %285 = vmatpush1.msra.mxu0 %v11639_v15  ;;  %356 = vmatprep.subr.mxu1 %v11608_v3  ;;  %s15413_s10 = sld [smem:[#allocation2 + $0x85]] }
  0x21   :  { %436 = vmatprep.subr.mxu0 %v11643_v16  ;;  %321 = vmatmul.mubr.f32.vlgmr.msra.gmra.mxu0 %v11646_v17  ;;  %s15463_s17 = sld [smem:[#allocation2 + $0x105]] }
  0x22   :  { %358 = vmatpush1.msra.mxu1 %v11610_v4  ;;  %440 = vmatpush1.msra.mxu0 %v11649_v18  ;;  %s15902_s22 = sld [smem:[#allocation2 + $0x86]] }
  0x23   :  { %360 = vmatprep.subr.mxu1 %v11612_v5  ;;  %444 = vmatprep.subr.mxu0 %v11652_v19  ;;  %s15952_s30 = sld [smem:[#allocation2 + $0x106]] }
  0x24   :  { %362 = vmatpush1.msra.mxu1 %v11622_v9  ;;  %395 = vmatprep.mubr.f32.mxu1 %v17468_v7  ;;  %s16441_s20 = sld [smem:[#allocation2 + $0x107]] }
  0x25   :  { %448 = vmatpush1.msra.mxu0 %v11656_v20  ;;  %399 = vmatmul.mubr.f32.vlgmr.msra.gmra.mxu1 %v11662_v22 }
  0x26   :  { %481 = vmatprep.mubr.f32.mxu0 %v17468_v7  ;;  %518 = vmatprep.subr.mxu1 %v11608_v3 }
  0x27   :  { %10956 = vmatprep.subr.mxu0 %v17468_v7  ;;  %483 = vmatmul.mubr.f32.vlgmr.msra.gmra.mxu0 %v11629_v12 }
  0x28   :  { %520 = vmatpush1.msra.mxu1 %v11610_v4  ;;  %10957 = vmatpush3.msra.mxu0 %v11686_v33 }
  0x29   :  { %522 = vmatprep.subr.mxu1 %v11612_v5  ;;  %10958 = vmatprep.subr.mxu0 %v17468_v7 }
  0x2a   :  { %524 = vmatpush1.msra.mxu1 %v11622_v9  ;;  %557 = vmatprep.mubr.f32.mxu1 %v17468_v7 }
  0x2b   :  { %10959 = vmatpush3.msra.mxu0 %v11690_v35  ;;  %559 = vmatmul.mubr.f32.vlgmr.msra.gmra.mxu1 %v11629_v12 }
  0x2c   :  { %10960 = vmatprep.mubr.msk.f32.mxu0 %vm11550_vm1, %v17468_v7  ;;  %10963 = vmatprep.subr.mxu1 %v17468_v7 }
  0x2d   :  { %10970 = vmatprep.subr.mxu0 %v17468_v7  ;;  %10961 = vmatmul.mubr.f32.vlgmr.msra.gmra.mxu0 %v147_v34 }
  0x2e   :  { %10964 = vmatpush3.msra.mxu1 %v11739_v44  ;;  %10971 = vmatpush3.msra.mxu0 %v11696_v36 }
  0x2f   :  { %10965 = vmatprep.subr.mxu1 %v17468_v7  ;;  %10972 = vmatprep.subr.mxu0 %v17468_v7 }
  0x30   :  { %10966 = vmatpush3.msra.mxu1 %v11746_v45  ;;  %10967 = vmatprep.mubr.msk.f32.mxu1 %vm11550_vm1, %v17468_v7 }
  0x31   :  { %10973 = vmatpush3.msra.mxu0 %v11703_v37  ;;  %10968 = vmatmul.mubr.f32.vlgmr.msra.gmra.mxu1 %v11629_v12 }
  0x32   :  { %10974 = vmatprep.mubr.msk.f32.mxu0 %vm11550_vm1, %v17468_v7  ;;  %10977 = vmatprep.subr.mxu1 %v17468_v7 }
  0x33   :  { %10984 = vmatprep.subr.mxu0 %v17468_v7  ;;  %10975 = vmatmul.mubr.f32.vlgmr.msra.gmra.mxu0 %v11646_v17  ;;  %v2067_v17 = vld [vmem:[%s17440_s4 + $0x1c8] sm:$0xff] }
  0x34   :  { %10978 = vmatpush3.msra.mxu1 %v11686_v33  ;;  %10985 = vmatpush3.msra.mxu0 %v11710_v38  ;;  %v11931_v21 = vand.u32 4294901760, %v2067_v17 }
  0x35   :  { %10979 = vmatprep.subr.mxu1 %v17468_v7  ;;  %10986 = vmatprep.subr.mxu0 %v17468_v7 }
  0x36   :  { %10980 = vmatpush3.msra.mxu1 %v11690_v35  ;;  %10981 = vmatprep.mubr.msk.f32.mxu1 %vm11550_vm1, %v17468_v7 }
  0x37   :  { %10987 = vmatpush3.msra.mxu0 %v11717_v39  ;;  %10982 = vmatmul.mubr.f32.vlgmr.msra.gmra.mxu1 %v11662_v22  ;;  %v2066_v22 = vld [vmem:[%s17440_s4 + $0x1c0] sm:$0xff] }
  0x38   :  { %10988 = vmatprep.mubr.msk.f32.mxu0 %vm11550_vm1, %v17468_v7  ;;  %10991 = vmatprep.subr.mxu1 %v17468_v7 }
  0x39   :  { %1059 = vmatprep.subr.mxu0 %v11608_v3  ;;  %10989 = vmatmul.mubr.f32.vlgmr.msra.gmra.mxu0 %v11629_v12 }
  0x3a   :  { %10992 = vmatpush3.msra.mxu1 %v11686_v33  ;;  %1061 = vmatpush1.msra.mxu0 %v11610_v4 }
  0x3b   :  { %10993 = vmatprep.subr.mxu1 %v17468_v7  ;;  %1063 = vmatprep.subr.mxu0 %v11612_v5 }
  0x3c   :  { %10994 = vmatpush3.msra.mxu1 %v11690_v35  ;;  %10995 = vmatprep.mubr.msk.f32.mxu1 %vm11550_vm1, %v17468_v7 }
  0x3d   :  { %1065 = vmatpush1.msra.mxu0 %v11622_v9  ;;  %10996 = vmatmul.mubr.f32.vlgmr.msra.gmra.mxu1 %v11629_v12 }
  0x3e   :  { %1098 = vmatprep.mubr.f32.mxu0 %v17468_v7  ;;  %1143 = vmatprep.subr.mxu1 %v11673_v27  ;;  %v2065_v27 = vld [vmem:[%s17440_s4 + $0x1b8] sm:$0xff] }
  0x3f   :  { %1232 = vmatprep.subr.mxu0 %v11627_v11  ;;  %1104 = vmatmul.mubr.f32.vlgmr.msra.gmra.mxu0 %v1103_v50  ;;  %v2068_v11 = vld [vmem:[%s17440_s4 + $0x1d0] sm:$0xff]  ;;  %v11965_v34 = vand.u32 4294901760, %v2065_v27 }
  0x40   :  { %1149 = vmatpush1.msra.mxu1 %v11677_v29  ;;  %1235 = vmatpush1.msra.mxu0 %v11632_v13  ;;  %v2052_v13 = vmul.f32 %v2051_v6, %v11873_v2  ;;  %v2006_v2 = vld [vmem:[%s17440_s4 + $0xa0] sm:$0xff] }
  0x41   :  { %1155 = vmatprep.subr.mxu1 %v11679_v30  ;;  %1238 = vmatprep.subr.mxu0 %v11635_v14 }
  0x42   :  { %1161 = vmatpush1.msra.mxu1 %v11684_v32  ;;  %1194 = vmatprep.mubr.f32.mxu1 %v17468_v7  ;;  %v11961_v32 = vand.u32 4294901760, %v2066_v22 }
  0x43   :  { %1241 = vmatpush1.msra.mxu0 %v11639_v15  ;;  %1196 = vmatmul.mubr.f32.vlgmr.msra.gmra.mxu1 %v11748_v46 }
  0x44   :  { %1274 = vmatprep.mubr.f32.mxu0 %v17468_v7  ;;  %1312 = vmatprep.subr.mxu1 %v11608_v3  ;;  %v11991_v43 = vsub.f32 %v2066_v22, %v11961_v32 }
  0x45   :  { %1392 = vmatprep.subr.mxu0 %v11643_v16  ;;  %1277 = vmatmul.mubr.f32.vlgmr.msra.gmra.mxu0 %v11758_v47 }
  0x46   :  { %1314 = vmatpush1.msra.mxu1 %v11610_v4  ;;  %1396 = vmatpush1.msra.mxu0 %v11649_v18  ;;  %v11921_v18 = vsub.f32 %v2070_v0, %v11889_v8  ;;  %v17448_v58 = vand.u32 4294901760, %v11991_v43 }
  0x47   :  { %1316 = vmatprep.subr.mxu1 %v11612_v5  ;;  %1400 = vmatprep.subr.mxu0 %v11652_v19  ;;  %v2188_v19 = vand.u32 4294901760, %v11898_v10 }
  0x48   :  { %1318 = vmatpush1.msra.mxu1 %v11622_v9  ;;  %1351 = vmatprep.mubr.f32.mxu1 %v17468_v7  ;;  %v2202_v29 = vand.u32 4294901760, %v11921_v18 }
  0x49   :  { %1404 = vmatpush1.msra.mxu0 %v11656_v20  ;;  %1355 = vmatmul.mubr.f32.vlgmr.msra.gmra.mxu1 %v11771_v48  ;;  %v11926_v20 = vand.u32 4294901760, %v2068_v11  ;;  %v2189_v30 = vsub.f32 %v11898_v10, %v2188_v19 }
  0x4a   :  { %1437 = vmatprep.mubr.f32.mxu0 %v17468_v7  ;;  %1474 = vmatprep.subr.mxu1 %v11608_v3  ;;  %v11878_v3 = vsub.f32 %v2073_v55, %v11856_v61 }
  0x4b   :  { %10998 = vmatprep.subr.mxu0 %v17468_v7  ;;  %1439 = vmatmul.mubr.f32.vlgmr.msra.gmra.mxu0 %v11748_v46  ;;  %v11959_v31 = vsub.f32 %v2068_v11, %v11926_v20  ;;  %v2190_v42 = vand.u32 4294901760, %v2189_v30  ;;  %v2058_v30 = vld [vmem:[%s17440_s4 + $0x180] sm:$0xff] }
  0x4c   :  { %1476 = vmatpush1.msra.mxu1 %v11610_v4  ;;  %10999 = vmatpush3.msra.mxu0 %v11686_v33  ;;  %v11880_v4 = vand.u32 4294901760, %v2071_v62  ;;  %v2181_v15 = vand.u32 4294901760, %v11878_v3 }
  0x4d   :  { %1478 = vmatprep.subr.mxu1 %v11612_v5  ;;  %11000 = vmatprep.subr.mxu0 %v17468_v7  ;;  %v2048_v5 = vstv %s11829_s28 }
  0x4e   :  { %1480 = vmatpush1.msra.mxu1 %v11622_v9  ;;  %1513 = vmatprep.mubr.f32.mxu1 %v17468_v7  ;;  %v2069_v9 = vld [vmem:[%s17440_s4 + $0x1d8] sm:$0xff]  ;;  %v2049_v12 = vmul.f32 %v2048_v5, %v11871_v1  ;;  %v11910_v14 = vsub.f32 %v2071_v62, %v11880_v4  ;;  %v2182_v24 = vsub.f32 %v11878_v3, %v2181_v15 }
  0x4f   :  { %11001 = vmatpush3.msra.mxu0 %v11690_v35  ;;  %1515 = vmatmul.mubr.f32.vlgmr.msra.gmra.mxu1 %v11748_v46  ;;  %v11913_v16 = vand.u32 4294901760, %v2069_v9 }
  0x50   :  { %11002 = vmatprep.mubr.msk.f32.mxu0 %vm11550_vm1, %v17468_v7  ;;  %11005 = vmatprep.subr.mxu1 %v17468_v7  ;;  %v2053_v23 = vadd.f32 %v2052_v13, %v2049_v12  ;;  %v2195_v26 = vand.u32 4294901760, %v11910_v14  ;;  %v12050_v12 = vand.u32 4294901760, %v2060_v59  ;;  %v2059_v13 = vld [vmem:[%s17440_s4 + $0x188] sm:$0xff] }
  0x51   :  { %11012 = vmatprep.subr.mxu0 %v17468_v7  ;;  %11003 = vmatmul.mubr.f32.vlgmr.msra.gmra.mxu0 %v1103_v50  ;;  %v11943_v25 = vsub.f32 %v2069_v9, %v11913_v16  ;;  %v12043_v9 = vand.u32 4294901760, %v2061_v54 }
  0x52   :  { %11006 = vmatpush3.msra.mxu1 %v11739_v44  ;;  %11013 = vmatpush3.msra.mxu0 %v11696_v36  ;;  %v2064_v36 = vld [vmem:[%s17440_s4 + $0x1b0] sm:$0xff]  ;;  %v17455_v44 = vand.u32 4294901760, %v11959_v31 }
  0x53   :  { %11007 = vmatprep.subr.mxu1 %v17468_v7  ;;  %11014 = vmatprep.subr.mxu0 %v17468_v7  ;;  %v17457_v40 = vand.u32 4294901760, %v11943_v25 }
  0x54   :  { %11008 = vmatpush3.msra.mxu1 %v11746_v45  ;;  %11009 = vmatprep.mubr.msk.f32.mxu1 %vm11550_vm1, %v17468_v7  ;;  %v11994_v45 = vand.u32 4294901760, %v2064_v36  ;;  %v2217_v56 = vsub.f32 %v11959_v31, %v17455_v44 }
  0x55   :  { %11015 = vmatpush3.msra.mxu0 %v11703_v37  ;;  %11010 = vmatmul.mubr.f32.vlgmr.msra.gmra.mxu1 %v11748_v46  ;;  %v2183_v37 = vand.u32 4294901760, %v2182_v24  ;;  %v2210_v51 = vsub.f32 %v11943_v25, %v17457_v40 }
  0x56   :  { %11016 = vmatprep.mubr.msk.f32.mxu0 %vm11550_vm1, %v17468_v7  ;;  %11019 = vmatprep.subr.mxu1 %v17468_v7  ;;  %v12025_v57 = vsub.f32 %v2064_v36, %v11994_v45  ;;  %v2218_v22 = vand.u32 4294901760, %v2217_v56 }
  0x57   :  { %11026 = vmatprep.subr.mxu0 %v17468_v7  ;;  %11017 = vmatmul.mubr.f32.vlgmr.msra.gmra.mxu0 %v11758_v47  ;;  %v2062_v47 = vld [vmem:[%s17440_s4 + $0x1a0] sm:$0xff]  ;;  %v2211_v5 = vand.u32 4294901760, %v2210_v51 }
  0x58   :  { %11020 = vmatpush3.msra.mxu1 %v11686_v33  ;;  %11027 = vmatpush3.msra.mxu0 %v11710_v38  ;;  %v2196_v38 = vsub.f32 %v11910_v14, %v2195_v26  ;;  %v12015_v53 = vand.u32 4294901760, %v2062_v47  ;;  %v17446_v24 = vand.u32 4294901760, %v12025_v57 }
  0x59   :  { %11021 = vmatprep.subr.mxu1 %v17468_v7  ;;  %11028 = vmatprep.subr.mxu0 %v17468_v7 }
  0x5a   :  { %11022 = vmatpush3.msra.mxu1 %v11690_v35  ;;  %11023 = vmatprep.mubr.msk.f32.mxu1 %vm11550_vm1, %v17468_v7  ;;  %v2197_v50 = vand.u32 4294901760, %v2196_v38  ;;  %v12048_v11 = vsub.f32 %v2062_v47, %v12015_v53  ;;  %v12074_v38 = vand.u32 4294901760, %v2059_v13  ;;  %v2245_v51 = vsub.f32 %v12025_v57, %v17446_v24 }
  0x5b   :  { %11029 = vmatpush3.msra.mxu0 %v11717_v39  ;;  %11024 = vmatmul.mubr.f32.vlgmr.msra.gmra.mxu1 %v11771_v48  ;;  %v11976_v39 = vsub.f32 %v2067_v17, %v11931_v21  ;;  %v12004_v48 = vand.u32 4294901760, %v2063_v41  ;;  %v55_v17 = vlaneseq }
  0x5c   :  { %11030 = vmatprep.mubr.msk.f32.mxu0 %vm11550_vm1, %v17468_v7  ;;  %11033 = vmatprep.subr.mxu1 %v17468_v7  ;;  %v2246_v24 = vand.u32 4294901760, %v2245_v51 }
  0x5d   :  { %2080 = vmatprep.subr.mxu0 %v17468_v7  ;;  %11031 = vmatmul.mubr.f32.vlgmr.msra.gmra.mxu0 %v11748_v46  ;;  %v17449_v52 = vand.u32 4294901760, %v11976_v39  ;;  %v12034_v60 = vsub.f32 %v2063_v41, %v12004_v48  ;;  %v12079_v41 = vsub.f32 %v2060_v59, %v12050_v12  ;;  %v12085_v47 = vshrl.u32 %v55_v17, 7 }
  0x5e   :  { %11034 = vmatpush3.msra.mxu1 %v11686_v33  ;;  %2082 = vmatpush1.msra.mxu0 %v11856_v61  ;;  %v2056_v33 = vadd.f32 %v2055_v28, %v2053_v23  ;;  %v2231_v23 = vsub.f32 %v11991_v43, %v17448_v58 }
  0x5f   :  { %11035 = vmatprep.subr.mxu1 %v17468_v7  ;;  %2083 = vmatprep.subr.mxu0 %v17468_v7  ;;  %v2224_v6 = vsub.f32 %v11976_v39, %v17449_v52  ;;  %v17445_v28 = vand.u32 4294901760, %v12034_v60 }
  0x60   :  { %11036 = vmatpush3.msra.mxu1 %v11690_v35  ;;  %11037 = vmatprep.mubr.msk.f32.mxu1 %vm11550_vm1, %v17468_v7  ;;  %v2203_v35 = vsub.f32 %v11921_v18, %v2202_v29  ;;  %v12006_v49 = vmax.f32 %v2056_v33, 0.0 }
  0x61   :  { %2085 = vmatpush1.msra.mxu0 %v11864_v63  ;;  %11038 = vmatmul.mubr.f32.vlgmr.msra.gmra.mxu1 %v11748_v46  ;;  %v12002_v46 = vsub.f32 %v2065_v27, %v11965_v34  ;;  %v2225_v33 = vand.u32 4294901760, %v2224_v6  ;;  %v2252_v59 = vsub.f32 %v12034_v60, %v17445_v28  ;;  %v12106_v6 = vsub.f32 %v2059_v13, %v12074_v38 }
  0x62   :  { %2086 = vmatprep.subr.mxu0 %v17468_v7  ;;  %2178 = vmatprep.subr.mxu1 %v17468_v7  ;;  %v2204_v55 = vand.u32 4294901760, %v2203_v35  ;;  %v2077_v0 = vcombine.high %v12006_v49, %v12006_v49  ;;  %v17450_v35 = vand.u32 4294901760, %v12048_v11 }
  0x63   :  { %2088 = vmatpush1.msra.mxu0 %v11880_v4  ;;  %2184 = vmatpush1.msra.mxu1 %v2183_v37  ;;  %v17447_v62 = vand.u32 4294901760, %v12002_v46  ;;  %v12072_v37 = vsub.f32 %v2061_v54, %v12043_v9  ;;  %v12091_v54 = vand.u32 4294901760, %v2058_v30  ;;  %v17453_v51 = vand.u32 4294901760, %v12106_v6 }
  0x64   :  { %2089 = vmatprep.subr.mxu0 %v17468_v7  ;;  %2185 = vmatprep.subr.mxu1 %v17468_v7  ;;  %v2078_v36 = vsel %vm70_vm0, %v2077_v0, 0  ;;  %v2074_v0 = vld [vmem:[%s17440_s4 + $0x200] sm:$0xff]  ;;  %v2259_v13 = vsub.f32 %v12048_v11, %v17450_v35  ;;  %v2253_v35 = vand.u32 4294901760, %v2252_v59 }
  0x65   :  { %2091 = vmatpush1.msra.mxu0 %v11889_v8  ;;  %2191 = vmatpush1.msra.mxu1 %v2190_v42  ;;  %v2238_v27 = vsub.f32 %v12002_v46, %v17447_v62  ;;  %v2075_v42 = vld [vmem:[%s17440_s4 + $0x208] sm:$0xff]  ;;  %v17452_v17 = vand.u32 4294901760, %v12072_v37  ;;  %v12130_v62 = vsub.f32 %v2058_v30, %v12091_v54  ;;  %v12132_v58 = vand.u32 4294901760, %v2074_v0 }
  0x66   :  { %2092 = vmatprep.subr.mxu0 %v17468_v7  ;;  %2192 = vmatprep.subr.mxu1 %v17468_v7 }
  0x67   :  { %2094 = vmatpush1.msra.mxu0 %v11913_v16  ;;  %2198 = vmatpush1.msra.mxu1 %v2197_v50  ;;  %v2232_v50 = vand.u32 4294901760, %v2231_v23  ;;  %v2239_v56 = vand.u32 4294901760, %v2238_v27  ;;  %v12112_v23 = vand.u32 4294901760, %v12006_v49  ;;  %v12117_v27 = vld [vmem:[%s17439_s3] sm:$0x7] }
  0x68   :  { %2095 = vmatprep.subr.mxu0 %v17468_v7  ;;  %2199 = vmatprep.subr.mxu1 %v17468_v7 }
  0x69   :  { %2097 = vmatpush1.msra.mxu0 %v11926_v20  ;;  %2205 = vmatpush1.msra.mxu1 %v2204_v55  ;;  %v12093_v55 = vand.u32 4294901760, %v2078_v36 }
  0x6a   :  { %2098 = vmatprep.subr.mxu0 %v17468_v7  ;;  %2206 = vmatprep.subr.mxu1 %v17468_v7 }
  0x6b   :  { %2100 = vmatpush1.msra.mxu0 %v11931_v21  ;;  %2212 = vmatpush1.msra.mxu1 %v2211_v5  ;;  %v65_v5 = vsub.s32 2, %v12085_v47  ;;  %v12135_v52 = vsub.f32 %v2078_v36, %v12093_v55  ;;  %v12149_v36 = vsub.f32 %v12006_v49, %v12112_v23 }
  0x6c   :  { %2101 = vmatprep.subr.mxu0 %v17468_v7  ;;  %2213 = vmatprep.subr.mxu1 %v17468_v7 }
  0x6d   :  { %2103 = vmatpush1.msra.mxu0 %v11961_v32  ;;  %2219 = vmatpush1.msra.mxu1 %v2218_v22  ;;  %v12109_v22 = vand.u32 4294901760, %v2075_v42  ;;  %v12126_v28 = vrot.slane %v12117_v27, %v65_v5  ;;  %v17454_v5 = vand.u32 4294901760, %v12130_v62  ;;  %v2164_v49 = vand.u32 4294901760, %v12135_v52 }
  0x6e   :  { %2104 = vmatprep.subr.mxu0 %v17468_v7  ;;  %2220 = vmatprep.subr.mxu1 %v17468_v7 }
  0x6f   :  { %2106 = vmatpush1.msra.mxu0 %v11965_v34  ;;  %2226 = vmatpush1.msra.mxu1 %v2225_v33  ;;  %v17451_v33 = vand.u32 4294901760, %v12079_v41  ;;  %v12144_v30 = vsub.f32 %v2075_v42, %v12109_v22  ;;  %v12158_v42 = vsub.f32 %v2074_v0, %v12132_v58 }
  0x70   :  { %2107 = vmatprep.subr.mxu0 %v17468_v7  ;;  %2227 = vmatprep.subr.mxu1 %v17468_v7 }
  0x71   :  { %2109 = vmatpush1.msra.mxu0 %v11994_v45  ;;  %2233 = vmatpush1.msra.mxu1 %v2232_v50  ;;  %v2266_v50 = vsub.f32 %v12072_v37, %v17452_v17  ;;  %v2273_v59 = vsub.f32 %v12079_v41, %v17451_v33  ;;  %v2170_v33 = vand.u32 4294901760, %v12149_v36  ;;  %v17456_v0 = vand.u32 4294901760, %v12144_v30 }
  0x72   :  { %2110 = vmatprep.subr.mxu0 %v17468_v7  ;;  %2234 = vmatprep.subr.mxu1 %v17468_v7 }
  0x73   :  { %2112 = vmatpush1.msra.mxu0 %v12004_v48  ;;  %2240 = vmatpush1.msra.mxu1 %v2239_v56  ;;  %v2260_v56 = vand.u32 4294901760, %v2259_v13  ;;  %v2280_v13 = vsub.f32 %v12106_v6, %v17453_v51  ;;  %v2274_v17 = vand.u32 4294901760, %v2273_v59  ;;  %v2328_v51 = vand.u32 4294901760, %v12158_v42 }
  0x74   :  { %2113 = vmatprep.subr.mxu0 %v17468_v7  ;;  %2241 = vmatprep.subr.mxu1 %v17468_v7  ;;  %v2171_v59 = vsub.f32 %v12149_v36, %v2170_v33 }
  0x75   :  { %2115 = vmatpush1.msra.mxu0 %v12015_v53  ;;  %2247 = vmatpush1.msra.mxu1 %v2246_v24  ;;  %v2267_v24 = vand.u32 4294901760, %v2266_v50  ;;  %v2165_v50 = vsub.f32 %v12135_v52, %v2164_v49 }
  0x76   :  { %2116 = vmatprep.subr.mxu0 %v17468_v7  ;;  %2248 = vmatprep.subr.mxu1 %v17468_v7 }
  0x77   :  { %2118 = vmatpush1.msra.mxu0 %v12043_v9  ;;  %2254 = vmatpush1.msra.mxu1 %v2253_v35  ;;  %v2287_v35 = vsub.f32 %v12130_v62, %v17454_v5  ;;  %v2322_v5 = vsub.f32 %v12144_v30, %v17456_v0  ;;  %v2172_v0 = vand.u32 4294901760, %v2171_v59 }
  0x78   :  { %2119 = vmatprep.subr.mxu0 %v17468_v7  ;;  %2255 = vmatprep.subr.mxu1 %v17468_v7 }
  0x79   :  { %2121 = vmatpush1.msra.mxu0 %v12050_v12  ;;  %2261 = vmatpush1.msra.mxu1 %v2260_v56  ;;  %v2281_v56 = vand.u32 4294901760, %v2280_v13  ;;  %v2288_v44 = vand.u32 4294901760, %v2287_v35  ;;  %v2329_v13 = vsub.f32 %v12158_v42, %v2328_v51  ;;  %v2323_v40 = vand.u32 4294901760, %v2322_v5 }
  0x7a   :  { %2122 = vmatprep.subr.mxu0 %v17468_v7  ;;  %2262 = vmatprep.subr.mxu1 %v17468_v7 }
  0x7b   :  { %2124 = vmatpush1.msra.mxu0 %v12074_v38  ;;  %2268 = vmatpush1.msra.mxu1 %v2267_v24  ;;  %v2166_v24 = vand.u32 4294901760, %v2165_v50  ;;  %v1996_v50 = vld [vmem:[%s17440_s4 + $0x50] sm:$0xff] }
  0x7c   :  { %2125 = vmatprep.subr.mxu0 %v17468_v7  ;;  %2269 = vmatprep.subr.mxu1 %v17468_v7 }
  0x7d   :  { %2127 = vmatpush1.msra.mxu0 %v12091_v54  ;;  %2275 = vmatpush1.msra.mxu1 %v2274_v17  ;;  %v2330_v17 = vand.u32 4294901760, %v2329_v13  ;;  %v17641_v13 = vand.u32 4294901760, %v12079_v41 }
  0x7e   :  { %2156 = vmatprep.subr.mxu0 %v17468_v7  ;;  %2276 = vmatprep.subr.mxu1 %v17468_v7 }
  0x7f   :  { %2158 = vmatpush2.msra.mxu0 %v12109_v22  ;;  %2282 = vmatpush1.msra.mxu1 %v2281_v56 }
  0x80   :  { %2159 = vmatprep.subr.mxu0 %v17468_v7  ;;  %2283 = vmatprep.subr.mxu1 %v17468_v7 }
  0x81   :  { %2161 = vmatpush2.msra.mxu0 %v12132_v58  ;;  %2289 = vmatpush1.msra.mxu1 %v2288_v44 }
  0x82   :  { %2167 = vmatprep.mubr.f32.mxu0 %v2166_v24  ;;  %2318 = vmatprep.subr.mxu1 %v17468_v7  ;;  %v2011_v24 = vld [vmem:[%s17440_s4 + $0xc8] sm:$0xff] }
  0x83   :  { %2340 = vmatprep.subr.mxu0 %v17468_v7  ;;  %2173 = vmatmul.mubr.f32.vlgmr.msra.gmra.mxu0 %v2172_v0 }
  0x84   :  { %2324 = vmatpush2.msra.mxu1 %v2323_v40  ;;  %2343 = vmatpush1.msra.mxu0 %v11878_v3  ;;  %v17626_v3 = vand.u32 4294901760, %v11943_v25 }
  0x85   :  { %2325 = vmatprep.subr.mxu1 %v17468_v7  ;;  %2344 = vmatprep.subr.mxu0 %v17468_v7 }
  0x86   :  { %2331 = vmatpush2.msra.mxu1 %v2330_v17  ;;  %2347 = vmatpush1.msra.mxu0 %v11898_v10  ;;  %v17629_v10 = vand.u32 4294901760, %v11991_v43 }
  0x87   :  { %2333 = vmatprep.mubr.f32.mxu1 %v12093_v55  ;;  %2348 = vmatprep.subr.mxu0 %v17468_v7 }
  0x88   :  { %2450 = vmatprep.subr.mxu1 %v17468_v7  ;;  %2335 = vmatmul.mubr.f32.vlgmr.msra.gmra.mxu1 %v12112_v23 }
  0x89   :  { %2351 = vmatpush1.msra.mxu0 %v11910_v14  ;;  %2452 = vmatpush1.msra.mxu1 %v11856_v61  ;;  %v2016_v14 = vld [vmem:[%s17440_s4 + $0xf0] sm:$0xff] }
  0x8a   :  { %2352 = vmatprep.subr.mxu0 %v17468_v7  ;;  %2453 = vmatprep.subr.mxu1 %v17468_v7 }
  0x8b   :  { %2355 = vmatpush1.msra.mxu0 %v11921_v18  ;;  %2455 = vmatpush1.msra.mxu1 %v11864_v63  ;;  %v2000_v18 = vld [vmem:[%s17440_s4 + $0x70] sm:$0xff] }
  0x8c   :  { %2356 = vmatprep.subr.mxu0 %v17468_v7  ;;  %2456 = vmatprep.subr.mxu1 %v17468_v7 }
  0x8d   :  { %2359 = vmatpush1.msra.mxu0 %v11943_v25  ;;  %2458 = vmatpush1.msra.mxu1 %v11880_v4  ;;  %v17631_v25 = vand.u32 4294901760, %v12025_v57 }
  0x8e   :  { %2360 = vmatprep.subr.mxu0 %v17468_v7  ;;  %2459 = vmatprep.subr.mxu1 %v17468_v7 }
  0x8f   :  { %2363 = vmatpush1.msra.mxu0 %v11959_v31  ;;  %2461 = vmatpush1.msra.mxu1 %v11889_v8 }
  0x90   :  { %2364 = vmatprep.subr.mxu0 %v17468_v7  ;;  %2462 = vmatprep.subr.mxu1 %v17468_v7 }
  0x91   :  { %2367 = vmatpush1.msra.mxu0 %v11976_v39  ;;  %2464 = vmatpush1.msra.mxu1 %v11913_v16 }
  0x92   :  { %2368 = vmatprep.subr.mxu0 %v17468_v7  ;;  %2465 = vmatprep.subr.mxu1 %v17468_v7 }
  0x93   :  { %2371 = vmatpush1.msra.mxu0 %v11991_v43  ;;  %2467 = vmatpush1.msra.mxu1 %v11926_v20 }
  0x94   :  { %2372 = vmatprep.subr.mxu0 %v17468_v7  ;;  %2468 = vmatprep.subr.mxu1 %v17468_v7 }
  0x95   :  { %2375 = vmatpush1.msra.mxu0 %v12002_v46  ;;  %2470 = vmatpush1.msra.mxu1 %v11931_v21 }
  0x96   :  { %2376 = vmatprep.subr.mxu0 %v17468_v7  ;;  %2471 = vmatprep.subr.mxu1 %v17468_v7 }
  0x97   :  { %2379 = vmatpush1.msra.mxu0 %v12025_v57  ;;  %2473 = vmatpush1.msra.mxu1 %v11961_v32  ;;  %v17634_v57 = vand.u32 4294901760, %v12048_v11 }
  0x98   :  { %2380 = vmatprep.subr.mxu0 %v17468_v7  ;;  %2474 = vmatprep.subr.mxu1 %v17468_v7 }
  0x99   :  { %2383 = vmatpush1.msra.mxu0 %v12034_v60  ;;  %2476 = vmatpush1.msra.mxu1 %v11965_v34 }
  0x9a   :  { %2384 = vmatprep.subr.mxu0 %v17468_v7  ;;  %2477 = vmatprep.subr.mxu1 %v17468_v7 }
  0x9b   :  { %2387 = vmatpush1.msra.mxu0 %v12048_v11  ;;  %2479 = vmatpush1.msra.mxu1 %v11994_v45  ;;  %v2012_v11 = vld [vmem:[%s17440_s4 + $0xd0] sm:$0xff] }
  0x9c   :  { %2388 = vmatprep.subr.mxu0 %v17468_v7  ;;  %2480 = vmatprep.subr.mxu1 %v17468_v7 }
  0x9d   :  { %2391 = vmatpush1.msra.mxu0 %v12072_v37  ;;  %2482 = vmatpush1.msra.mxu1 %v12004_v48 }
  0x9e   :  { %2392 = vmatprep.subr.mxu0 %v17468_v7  ;;  %2483 = vmatprep.subr.mxu1 %v17468_v7 }
  0x9f   :  { %2395 = vmatpush1.msra.mxu0 %v12079_v41  ;;  %2485 = vmatpush1.msra.mxu1 %v12015_v53 }
  0xa0   :  { %2396 = vmatprep.subr.mxu0 %v17468_v7  ;;  %2486 = vmatprep.subr.mxu1 %v17468_v7 }
  0xa1   :  { %2399 = vmatpush1.msra.mxu0 %v12106_v6  ;;  %2488 = vmatpush1.msra.mxu1 %v12043_v9 }
  0xa2   :  { %2400 = vmatprep.subr.mxu0 %v17468_v7  ;;  %2489 = vmatprep.subr.mxu1 %v17468_v7 }
  0xa3   :  { %2403 = vmatpush1.msra.mxu0 %v12130_v62  ;;  %2491 = vmatpush1.msra.mxu1 %v12050_v12 }
  0xa4   :  { %2432 = vmatprep.subr.mxu0 %v17468_v7  ;;  %2492 = vmatprep.subr.mxu1 %v17468_v7 }
  0xa5   :  { %2435 = vmatpush2.msra.mxu0 %v12144_v30  ;;  %2494 = vmatpush1.msra.mxu1 %v12074_v38 }
  0xa6   :  { %2436 = vmatprep.subr.mxu0 %v17468_v7  ;;  %2495 = vmatprep.subr.mxu1 %v17468_v7 }
  0xa7   :  { %2439 = vmatpush2.msra.mxu0 %v12158_v42  ;;  %2497 = vmatpush1.msra.mxu1 %v12091_v54 }
  0xa8   :  { %2442 = vmatprep.mubr.f32.mxu0 %v12135_v52  ;;  %2526 = vmatprep.subr.mxu1 %v17468_v7  ;;  %v2013_v52 = vld [vmem:[%s17440_s4 + $0xd8] sm:$0xff] }
  0xa9   :  { %2544 = vmatprep.subr.mxu0 %v17468_v7  ;;  %2445 = vmatmul.mubr.f32.vlgmr.msra.gmra.mxu0 %v12149_v36  ;;  %v12407_v35 = vand.u32 4294901760, %v2013_v52 }
  0xaa   :  { %2528 = vmatpush2.msra.mxu1 %v12109_v22  ;;  %2548 = vmatpush1.msra.mxu0 %v2181_v15  ;;  %v17630_v15 = vand.u32 4294901760, %v12002_v46 }
  0xab   :  { %2529 = vmatprep.subr.mxu1 %v17468_v7  ;;  %2549 = vmatprep.subr.mxu0 %v17468_v7 }
  0xac   :  { %2531 = vmatpush2.msra.mxu1 %v12132_v58  ;;  %2553 = vmatpush1.msra.mxu0 %v2188_v19 }
  0xad   :  { %2535 = vmatprep.mubr.f32.mxu1 %v2164_v49  ;;  %2554 = vmatprep.subr.mxu0 %v17468_v7  ;;  %v17637_v49 = vand.u32 4294901760, %v12072_v37 }
  0xae   :  { %2670 = vmatprep.subr.mxu1 %v17468_v7  ;;  %2539 = vmatmul.mubr.f32.vlgmr.msra.gmra.mxu1 %v2170_v33  ;;  %v1997_v33 = vld [vmem:[%s17440_s4 + $0x58] sm:$0xff] }
  0xaf   :  { %2558 = vmatpush1.msra.mxu0 %v2195_v26  ;;  %2672 = vmatpush1.msra.mxu1 %v11856_v61  ;;  %v17627_v61 = vand.u32 4294901760, %v11959_v31  ;;  %v12346_v26 = vand.u32 4294901760, %v2016_v14  ;;  %v2014_v31 = vld [vmem:[%s17440_s4 + $0xe0] sm:$0xff]  ;;  %v12418_v59 = vand.u32 4294901760, %v1997_v33 }
  0xb0   :  { %2559 = vmatprep.subr.mxu0 %v17468_v7  ;;  %2673 = vmatprep.subr.mxu1 %v17468_v7 }
  0xb1   :  { %2563 = vmatpush1.msra.mxu0 %v2202_v29  ;;  %2675 = vmatpush1.msra.mxu1 %v11864_v63  ;;  %v17628_v63 = vand.u32 4294901760, %v11976_v39  ;;  %v1999_v29 = vld [vmem:[%s17440_s4 + $0x68] sm:$0xff]  ;;  %v17632_v39 = vand.u32 4294901760, %v12034_v60  ;;  %v12383_v60 = vsub.f32 %v2016_v14, %v12346_v26  ;;  %17640 = vst [vmem:[#allocation12_spill] sm:$0xff] %v12418_v59 }
  0xb2   :  { %2564 = vmatprep.subr.mxu0 %v17468_v7  ;;  %2676 = vmatprep.subr.mxu1 %v17468_v7  ;;  %v12374_v46 = vand.u32 4294901760, %v1999_v29 }
  0xb3   :  { %2568 = vmatpush1.msra.mxu0 %v17626_v3  ;;  %2678 = vmatpush1.msra.mxu1 %v11880_v4  ;;  %v2017_v4 = vld [vmem:[%s17440_s4 + $0xf8] sm:$0xff]  ;;  %17635 = vst [vmem:[#allocation8_spill] sm:$0xff] %v12383_v60  ;;  %v12430_v3 = vand.u32 4294901760, %v2012_v11 }
  0xb4   :  { %2569 = vmatprep.subr.mxu0 %v17468_v7  ;;  %2679 = vmatprep.subr.mxu1 %v17468_v7  ;;  %v12416_v37 = vsub.f32 %v1999_v29, %v12374_v46  ;;  %v12472_v29 = vsub.f32 %v1997_v33, %v12418_v59 }
  0xb5   :  { %2573 = vmatpush1.msra.mxu0 %v17627_v61  ;;  %2681 = vmatpush1.msra.mxu1 %v11889_v8  ;;  %v2001_v8 = vld [vmem:[%s17440_s4 + $0x78] sm:$0xff]  ;;  %17643 = vst [vmem:[#allocation14_spill] sm:$0xff] %v12430_v3  ;;  %v1995_v61 = vld [vmem:[%s17440_s4 + $0x48] sm:$0xff] }
  0xb6   :  { %2574 = vmatprep.subr.mxu0 %v17468_v7  ;;  %2682 = vmatprep.subr.mxu1 %v17468_v7  ;;  %v12338_v19 = vand.u32 4294901760, %v2001_v8  ;;  %17639 = vst [vmem:[#allocation11_spill] sm:$0xff] %v12416_v37  ;;  %17649 = vst [vmem:[#allocation19_spill] sm:$0xff] %v12472_v29 }
  0xb7   :  { %2578 = vmatpush1.msra.mxu0 %v17628_v63  ;;  %2684 = vmatpush1.msra.mxu1 %v11913_v16  ;;  %v12331_v16 = vand.u32 4294901760, %v2017_v4 }
  0xb8   :  { %2579 = vmatprep.subr.mxu0 %v17468_v7  ;;  %2685 = vmatprep.subr.mxu1 %v17468_v7  ;;  %v12372_v44 = vsub.f32 %v2001_v8, %v12338_v19  ;;  %v17646_v8 = vand.u32 4294901760, %v12106_v6 }
  0xb9   :  { %2583 = vmatpush1.msra.mxu0 %v17629_v10  ;;  %2687 = vmatpush1.msra.mxu1 %v11926_v20  ;;  %v2015_v20 = vld [vmem:[%s17440_s4 + $0xe8] sm:$0xff]  ;;  %v12362_v40 = vsub.f32 %v2017_v4, %v12331_v16  ;;  %v12441_v4 = vand.u32 4294901760, %v1996_v50  ;;  %v2010_v10 = vld [vmem:[%s17440_s4 + $0xc0] sm:$0xff] }
  0xba   :  { %2584 = vmatprep.subr.mxu0 %v17468_v7  ;;  %2688 = vmatprep.subr.mxu1 %v17468_v7  ;;  %v12364_v43 = vand.u32 4294901760, %v2015_v20  ;;  %v17464_v56 = vand.u32 4294901760, %v12372_v44 }
  0xbb   :  { %2588 = vmatpush1.msra.mxu0 %v17630_v15  ;;  %2690 = vmatpush1.msra.mxu1 %v11931_v21  ;;  %v12353_v21 = vand.u32 4294901760, %v2000_v18  ;;  %17633 = vst [vmem:[#allocation7_spill] sm:$0xff] %v12362_v40  ;;  %v17466_v0 = vand.u32 4294901760, %v12362_v40  ;;  %17645 = vst [vmem:[#allocation16_spill] sm:$0xff] %v12441_v4  ;;  %v12456_v15 = vsub.f32 %v2013_v52, %v12407_v35 }
  0xbc   :  { %2589 = vmatprep.subr.mxu0 %v17468_v7  ;;  %2691 = vmatprep.subr.mxu1 %v17468_v7  ;;  %v12468_v6 = vsub.f32 %v12372_v44, %v17464_v56  ;;  %v12486_v52 = vsub.f32 %v2012_v11, %v12430_v3  ;;  %v17653_v11 = vand.u32 4294901760, %v12144_v30 }
  0xbd   :  { %2593 = vmatpush1.msra.mxu0 %v17631_v25  ;;  %2693 = vmatpush1.msra.mxu1 %v11961_v32  ;;  %v1998_v32 = vld [vmem:[%s17440_s4 + $0x60] sm:$0xff]  ;;  %v12393_v36 = vsub.f32 %v2000_v18, %v12353_v21  ;;  %17647 = vst [vmem:[#allocation17_spill] sm:$0xff] %v12456_v15  ;;  %v12458_v18 = vand.u32 4294901760, %v2011_v24  ;;  %v17459_v25 = vand.u32 4294901760, %v12416_v37 }
  0xbe   :  { %2594 = vmatprep.subr.mxu0 %v17468_v7  ;;  %2694 = vmatprep.subr.mxu1 %v17468_v7  ;;  %v12395_v5 = vand.u32 4294901760, %v1998_v32  ;;  %17651 = vst [vmem:[#allocation20_spill] sm:$0xff] %v12486_v52 }
  0xbf   :  { %2598 = vmatpush1.msra.mxu0 %v17632_v39  ;;  %2696 = vmatpush1.msra.mxu1 %v11965_v34  ;;  %v12385_v34 = vand.u32 4294901760, %v2014_v31  ;;  %17636 = vst [vmem:[#allocation9_spill] sm:$0xff] %v12393_v36  ;;  %v17458_v63 = vand.u32 4294901760, %v12393_v36  ;;  %17648 = vst [vmem:[#allocation18_spill] sm:$0xff] %v12458_v18  ;;  %v17650_v39 = vand.u32 4294901760, %v12130_v62  ;;  %v12522_v30 = vsub.f32 %v12416_v37, %v17459_v25 }
  0xc0   :  { %2599 = vmatprep.subr.mxu0 %v17468_v7  ;;  %2697 = vmatprep.subr.mxu1 %v17468_v7  ;;  %v12439_v41 = vsub.f32 %v1998_v32, %v12395_v5  ;;  %v17470_v25 = vand.u32 4294901760, %v12486_v52 }
  0xc1   :  { %2603 = vmatpush1.msra.mxu0 %v17634_v57  ;;  %2699 = vmatpush1.msra.mxu1 %v11994_v45  ;;  %v12405_v45 = vsub.f32 %v2015_v20, %v12364_v43  ;;  %v12428_v17 = vsub.f32 %v2014_v31, %v12385_v34  ;;  %v1994_v20 = vld [vmem:[%s17440_s4 + $0x40] sm:$0xff]  ;;  %v12474_v31 = vand.u32 4294901760, %v1995_v61  ;;  %v12488_v57 = vand.u32 4294901760, %v2010_v10 }
  0xc2   :  { %2604 = vmatprep.subr.mxu0 %v17468_v7  ;;  %2700 = vmatprep.subr.mxu1 %v17468_v7  ;;  %17644 = vst [vmem:[#allocation15_spill] sm:$0xff] %v12439_v41  ;;  %v12495_v62 = vsub.f32 %v12393_v36, %v17458_v63  ;;  %v17462_v33 = vand.u32 4294901760, %v12439_v41  ;;  %v12514_v63 = vsub.f32 %v2011_v24, %v12458_v18  ;;  %v2009_v24 = vld [vmem:[%s17440_s4 + $0xb8] sm:$0xff]  ;;  %v2891_v56 = vand.u32 4294901760, %v12522_v30 }
  0xc3   :  { %2608 = vmatpush1.msra.mxu0 %v17637_v49  ;;  %17638 = vst [vmem:[#allocation10_spill] sm:$0xff] %v12405_v45  ;;  %2702 = vmatpush1.msra.mxu1 %v12004_v48  ;;  %v17463_v48 = vand.u32 4294901760, %v12383_v60  ;;  %17642 = vst [vmem:[#allocation13_spill] sm:$0xff] %v12428_v17  ;;  %v17460_v14 = vand.u32 4294901760, %v12405_v45  ;;  %v17461_v32 = vand.u32 4294901760, %v12428_v17  ;;  %v12499_v49 = vsub.f32 %v1996_v50, %v12441_v4 }
  0xc4   :  { %2609 = vmatprep.subr.mxu0 %v17468_v7  ;;  %2703 = vmatprep.subr.mxu1 %v17468_v7  ;;  %17654 = vst [vmem:[#allocation22_spill] sm:$0xff] %v12514_v63  ;;  %v2877_v50 = vand.u32 4294901760, %v12468_v6  ;;  %v12553_v42 = vsub.f32 %v12439_v41, %v17462_v33  ;;  %v2007_v33 = vld [vmem:[%s17440_s4 + $0xa8] sm:$0xff] }
  0xc5   :  { %2613 = vmatpush1.msra.mxu0 %v17641_v13  ;;  %2705 = vmatpush1.msra.mxu1 %v12015_v53  ;;  %v12452_v53 = vsub.f32 %v12362_v40, %v17466_v0  ;;  %17652 = vst [vmem:[#allocation21_spill] sm:$0xff] %v12499_v49  ;;  %v12501_v13 = vand.u32 4294901760, %v1994_v20  ;;  %v12538_v6 = vsub.f32 %v12428_v17, %v17461_v32  ;;  %v2008_v32 = vld [vmem:[%s17440_s4 + $0xb0] sm:$0xff] }
  0xc6   :  { %2614 = vmatprep.subr.mxu0 %v17468_v7  ;;  %2706 = vmatprep.subr.mxu1 %v17468_v7 }
  0xc7   :  { %2618 = vmatpush1.msra.mxu0 %v17646_v8  ;;  %2708 = vmatpush1.msra.mxu1 %v12043_v9  ;;  %v12482_v9 = vsub.f32 %v12383_v60, %v17463_v48  ;;  %v12510_v8 = vsub.f32 %v12405_v45, %v17460_v14  ;;  %v1993_v14 = vld [vmem:[%s17440_s4 + $0x38] sm:$0xff]  ;;  %v12571_v48 = vand.u32 4294901760, %v2009_v24  ;;  %v1986_v45 = vld [vmem:[%s17440_s4] sm:$0xff] }
  0xc8   :  { %2619 = vmatprep.subr.mxu0 %v17468_v7  ;;  %2709 = vmatprep.subr.mxu1 %v17468_v7  ;;  %v12585_v0 = vand.u32 4294901760, %v1993_v14 }
  0xc9   :  { %2623 = vmatpush1.msra.mxu0 %v17650_v39  ;;  %2711 = vmatpush1.msra.mxu1 %v12050_v12  ;;  %v2989_v12 = vand.u32 4294901760, %v12452_v53  ;;  %v17465_v39 = vand.u32 4294901760, %v12456_v15  ;;  %v17467_v53 = vand.u32 4294901760, %v12472_v29 }
  0xca   :  { %2652 = vmatprep.subr.mxu0 %v17468_v7  ;;  %2712 = vmatprep.subr.mxu1 %v17468_v7 }
  0xcb   :  { %2656 = vmatpush2.msra.mxu0 %v17653_v11  ;;  %2714 = vmatpush1.msra.mxu1 %v12074_v38  ;;  %v12526_v11 = vsub.f32 %v1995_v61, %v12474_v31  ;;  %v2996_v38 = vand.u32 4294901760, %v12482_v9  ;;  %v12542_v61 = vsub.f32 %v2010_v10, %v12488_v57  ;;  %v17475_v9 = vand.u32 4294901760, %v12499_v49 }
  0xcc   :  { %2657 = vmatprep.subr.mxu0 %v17468_v7  ;;  %2715 = vmatprep.subr.mxu1 %v17468_v7  ;;  %v12557_v10 = vsub.f32 %v1994_v20, %v12501_v13  ;;  %v1992_v20 = vld [vmem:[%s17440_s4 + $0x30] sm:$0xff] }
  0xcd   :  { %17655 = vst [vmem:[#allocation23_spill] sm:$0xff] %v12526_v11  ;;  %2661 = vmatpush2.msra.mxu0 %v2328_v51  ;;  %17656 = vst [vmem:[#allocation24_spill] sm:$0xff] %v12542_v61  ;;  %2663 = vmatprep.mubr.f32.mxu0 %v12093_v55  ;;  %v2884_v51 = vand.u32 4294901760, %v12495_v62  ;;  %v12568_v62 = vsub.f32 %v12456_v15, %v17465_v39  ;;  %v1991_v39 = vld [vmem:[%s17440_s4 + $0x28] sm:$0xff]  ;;  %v12613_v30 = vand.u32 4294901760, %v1992_v20 }
  0xce   :  { %2717 = vmatpush1.msra.mxu1 %v12091_v54  ;;  %17657 = vst [vmem:[#allocation25_spill] sm:$0xff] %v12557_v10  ;;  %2665 = vmatmul.mubr.f32.vlgmr.msra.gmra.mxu0 %v12112_v23  ;;  %v3003_v54 = vand.u32 4294901760, %v12510_v8  ;;  %v12582_v8 = vsub.f32 %v12472_v29, %v17467_v53  ;;  %v12599_v53 = vand.u32 4294901760, %v2008_v32 }
  0xcf   :  { %2746 = vmatprep.subr.mxu1 %v17468_v7  ;;  %2753 = vmatprep.mubr.f32.mxu1 %v12093_v55  ;;  %v12596_v55 = vsub.f32 %v12486_v52, %v17470_v25  ;;  %v12628_v25 = vand.u32 4294901760, %v2007_v33 }
  0xd0   :  { %2748 = vmatpush2.msra.mxu1 %v12109_v22  ;;  %v3010_v22 = vand.u32 4294901760, %v12538_v6  ;;  %10512 = vmatprep.subr.mxu0 %v12331_v16  ;;  %v12610_v6 = vsub.f32 %v12499_v49, %v17475_v9  ;;  %v12626_v9 = vsub.f32 %v2009_v24, %v12571_v48  ;;  %v1990_v49 = vld [vmem:[%s17440_s4 + $0x20] sm:$0xff]  ;;  %v12643_v24 = vand.u32 4294901760, %v1991_v39 }
  0xd1   :  { %2749 = vmatprep.subr.mxu1 %v17468_v7  ;;  %v2898_v7 = vand.u32 4294901760, %v12553_v42  ;;  %10513 = vmatpush3.msra.mxu0 %v12338_v19  ;;  %v17658_v42 = vand.u32 4294901760, %v12514_v63  ;;  %v12682_v15 = vsub.f32 %v2007_v33, %v12628_v25  ;;  %v2003_v33 = vld [vmem:[%s17440_s4 + $0x88] sm:$0xff] }
  0xd2   :  { %2751 = vmatpush2.msra.mxu1 %v12132_v58  ;;  %v3017_v58 = vand.u32 4294901760, %v12568_v62  ;;  %17659 = vst [vmem:[#allocation26_spill] sm:$0xff] %v12626_v9  ;;  %10514 = vmatprep.subr.mxu0 %v12346_v26  ;;  %v17669_v37 = vand.u32 4294901760, %v12626_v9 }
  0xd3   :  { %2755 = vmatmul.mubr.f32.vlgmr.msra.gmra.mxu1 %v12112_v23  ;;  %10547 = vmatprep.subr.mxu1 %v2989_v12  ;;  %v12623_v1 = vsub.f32 %v12514_v63, %v17658_v42  ;;  %v2905_v23 = vand.u32 4294901760, %v12582_v8  ;;  %v17660_v12 = vand.u32 4294901760, %v12526_v11  ;;  %v12641_v42 = vsub.f32 %v1993_v14, %v12585_v0  ;;  %v2005_v63 = vld [vmem:[%s17440_s4 + $0x98] sm:$0xff] }
  0xd4   :  { %10548 = vmatpush3.msra.mxu1 %v2877_v50  ;;  %v3024_v50 = vand.u32 4294901760, %v12596_v55  ;;  %10515 = vmatpush3.msra.mxu0 %v12353_v21  ;;  %v17662_v8 = vand.u32 4294901760, %v12542_v61  ;;  %v12658_v14 = vand.u32 4294901760, %v2006_v2  ;;  %v17664_v55 = vand.u32 4294901760, %v12557_v10 }
  0xd5   :  { %v12638_v62 = vsub.f32 %v12526_v11, %v17660_v12  ;;  %17661 = vst [vmem:[#allocation27_spill] sm:$0xff] %v12641_v42  ;;  %10549 = vmatprep.subr.mxu1 %v2996_v38  ;;  %v12656_v12 = vsub.f32 %v2008_v32, %v12599_v53  ;;  %v1989_v11 = vld [vmem:[%s17440_s4 + $0x18] sm:$0xff]  ;;  %v2912_v38 = vand.u32 4294901760, %v12610_v6  ;;  %10516 = vmatprep.subr.mxu0 %v12364_v43  ;;  %v12673_v32 = vand.u32 4294901760, %v1990_v49 }
  0xd6   :  { %v12653_v52 = vsub.f32 %v12542_v61, %v17662_v8  ;;  %10550 = vmatpush3.msra.mxu1 %v2884_v51  ;;  %v12668_v29 = vsub.f32 %v12557_v10, %v17664_v55  ;;  %v12671_v8 = vsub.f32 %v1992_v20, %v12613_v30  ;;  %v2004_v61 = vld [vmem:[%s17440_s4 + $0x90] sm:$0xff]  ;;  %v3031_v51 = vand.u32 4294901760, %v12623_v1  ;;  %10517 = vmatpush3.msra.mxu0 %v12374_v46 }
  0xd7   :  { %17663 = vst [vmem:[#allocation28_spill] sm:$0xff] %v12656_v12  ;;  %10551 = vmatprep.subr.mxu1 %v3003_v54  ;;  %v12684_v55 = vand.u32 4294901760, %v2005_v63  ;;  %v1988_v20 = vld [vmem:[%s17440_s4 + $0x10] sm:$0xff]  ;;  %v2919_v10 = vand.u32 4294901760, %v12638_v62  ;;  %10518 = vmatprep.subr.mxu0 %v12385_v34  ;;  %v12693_v54 = vsub.f32 %v1991_v39, %v12643_v24  ;;  %v12695_v6 = vand.u32 4294901760, %v1989_v11  ;;  %v1987_v39 = vld [vmem:[%s17440_s4 + $0x8] sm:$0xff] }
  0xd8   :  { %17665 = vst [vmem:[#allocation29_spill] sm:$0xff] %v12671_v8  ;;  %10552 = vmatpush3.msra.mxu1 %v2891_v56  ;;  %v3038_v41 = vand.u32 4294901760, %v12653_v52  ;;  %10519 = vmatpush3.msra.mxu0 %v12395_v5  ;;  %v12704_v62 = vsub.f32 %v2006_v2, %v12658_v14  ;;  %v12706_v1 = vand.u32 4294901760, %v2004_v61  ;;  %v2926_v17 = vand.u32 4294901760, %v12668_v29  ;;  %v2002_v2 = vld [vmem:[%s17440_s4 + $0x80] sm:$0xff] }
  0xd9   :  { %17666 = vst [vmem:[#allocation30_spill] sm:$0xff] %v12693_v54  ;;  %10553 = vmatprep.subr.mxu1 %v3010_v22  ;;  %10520 = vmatprep.subr.mxu0 %v12407_v35  ;;  %v12715_v22 = vsub.f32 %v1990_v49, %v12673_v32  ;;  %v12717_v56 = vand.u32 4294901760, %v1988_v20  ;;  %v12728_v52 = vsub.f32 %v2005_v63, %v12684_v55  ;;  %v12730_v49 = vand.u32 4294901760, %v2003_v33 }
  0xda   :  { %17667 = vst [vmem:[#allocation31_spill] sm:$0xff] %v12704_v62  ;;  %10554 = vmatpush3.msra.mxu1 %v2898_v7  ;;  %v3044_v7 = vsub.f32 %v12626_v9, %v17669_v37  ;;  %10521 = vmatpush3.msra.mxu0 %v12418_v59  ;;  %v12741_v29 = vsub.f32 %v1989_v11, %v12695_v6  ;;  %v12743_v63 = vand.u32 4294901760, %v1987_v39  ;;  %v17672_v60 = vand.u32 4294901760, %v12656_v12 }
  0xdb   :  { %17668 = vst [vmem:[#allocation32_spill] sm:$0xff] %v12715_v22  ;;  %10555 = vmatprep.subr.mxu1 %v3017_v58  ;;  %v17670_v58 = vand.u32 4294901760, %v12641_v42  ;;  %10522 = vmatprep.subr.mxu0 %v12430_v3  ;;  %v12755_v37 = vand.u32 4294901760, %v2002_v2  ;;  %v17674_v11 = vand.u32 4294901760, %v12671_v8 }
  0xdc   :  { %10556 = vmatpush3.msra.mxu1 %v2905_v23  ;;  %17671 = vst [vmem:[#allocation33_spill] sm:$0xff] %v12741_v29  ;;  %v3051_v23 = vsub.f32 %v12656_v12, %v17672_v60  ;;  %10523 = vmatpush3.msra.mxu0 %v12441_v4  ;;  %v12763_v60 = vsub.f32 %v1988_v20, %v12717_v56  ;;  %v12765_v12 = vand.u32 4294901760, %v1986_v45  ;;  %v3045_v4 = vand.u32 4294901760, %v3044_v7 }
  0xdd   :  { %v2932_v36 = vsub.f32 %v12641_v42, %v17670_v58  ;;  %v12745_v9 = vpop.f32.mrf.mxu0  ;;  %10557 = vmatprep.subr.mxu1 %v3024_v50  ;;  %v12753_v42 = vsub.f32 %v2004_v61, %v12706_v1  ;;  %v2939_v3 = vsub.f32 %v12671_v8, %v17674_v11  ;;  %10524 = vmatprep.subr.mxu0 %v12458_v18  ;;  %v17678_v8 = vand.u32 4294901760, %v12693_v54 }
  0xde   :  { %10558 = vmatpush3.msra.mxu1 %v2912_v38  ;;  %17675 = vst [vmem:[#allocation35_spill] sm:$0xff] %v12763_v60  ;;  %v12769_v61 = vpop.f32.mrf.mxu1  ;;  %v17676_v38 = vand.u32 4294901760, %v12682_v15  ;;  %10525 = vmatpush3.msra.mxu0 %v12474_v31  ;;  %v12777_v50 = vsub.f32 %v2003_v33, %v12730_v49  ;;  %v12785_v7 = vsub.f32 %v1987_v39, %v12743_v63  ;;  %v17680_v11 = vand.u32 4294901760, %v12704_v62 }
  0xdf   :  { %17673 = vst [vmem:[#allocation34_spill] sm:$0xff] %v12753_v42  ;;  %v12767_v58 = vpop.f32.mrf.mxu0  ;;  %10559 = vmatprep.subr.mxu1 %v3031_v51  ;;  %v2933_v20 = vand.u32 4294901760, %v2932_v36  ;;  %v2946_v18 = vsub.f32 %v12693_v54, %v17678_v8  ;;  %10526 = vmatprep.subr.mxu0 %v12488_v57  ;;  %v2940_v39 = vand.u32 4294901760, %v2939_v3  ;;  %v12805_v51 = vsub.f32 %v1986_v45, %v12765_v12 }
  0xe0   :  { %v3058_v59 = vsub.f32 %v12682_v15, %v17676_v38  ;;  %17677 = vst [vmem:[#allocation36_spill] sm:$0xff] %v12777_v50  ;;  %10560 = vmatpush3.msra.mxu1 %v2919_v10  ;;  %17679 = vst [vmem:[#allocation37_spill] sm:$0xff] %v12785_v7  ;;  %v3052_v38 = vand.u32 4294901760, %v3051_v23  ;;  %v3065_v33 = vsub.f32 %v12704_v62, %v17680_v11  ;;  %10527 = vmatpush3.msra.mxu0 %v12501_v13  ;;  %v12797_v54 = vpop.f32.mrf.mxu1 }
  0xe1   :  { %10561 = vmatprep.subr.mxu1 %v3038_v41  ;;  %v12793_v10 = vsub.f32 %v2002_v2, %v12755_v37  ;;  %v12795_v8 = vpop.f32.mrf.mxu0  ;;  %v17682_v41 = vand.u32 4294901760, %v12715_v22  ;;  %10528 = vmatprep.subr.mxu0 %v12571_v48  ;;  %17683 = vst [vmem:[#allocation39_spill] sm:$0xff] %v12805_v51  ;;  %v17684_v36 = vand.u32 4294901760, %v12728_v52 }
  0xe2   :  { %10562 = vmatpush3.msra.mxu1 %v2926_v17  ;;  %v3059_v2 = vand.u32 4294901760, %v3058_v59  ;;  %10529 = vmatpush3.msra.mxu0 %v12585_v0  ;;  %v3066_v59 = vand.u32 4294901760, %v3065_v33 }
  0xe3   :  { %17681 = vst [vmem:[#allocation38_spill] sm:$0xff] %v12793_v10  ;;  %v2953_v23 = vsub.f32 %v12715_v22, %v17682_v41  ;;  %10563 = vmatprep.subr.mxu1 %v3045_v4  ;;  %v3072_v62 = vsub.f32 %v12728_v52, %v17684_v36  ;;  %v12812_v3 = vpop.f32.mrf.mxu0  ;;  %v2947_v41 = vand.u32 4294901760, %v2946_v18  ;;  %v17685_v22 = vand.u32 4294901760, %v12741_v29  ;;  %10530 = vmatprep.subr.mxu0 %v12599_v53 }
  0xe4   :  { %10564 = vmatpush3.msra.mxu1 %v2933_v20  ;;  %v17686_v4 = vand.u32 4294901760, %v12753_v42  ;;  %10531 = vmatpush3.msra.mxu0 %v12613_v30 }
  0xe5   :  { %v2960_v11 = vsub.f32 %v12741_v29, %v17685_v22  ;;  %10565 = vmatprep.subr.mxu1 %v3052_v38  ;;  %v12824_v20 = vpop.f32.mrf.mxu1  ;;  %v2954_v18 = vand.u32 4294901760, %v2953_v23  ;;  %v17687_v22 = vand.u32 4294901760, %v12763_v60  ;;  %10532 = vmatprep.subr.mxu0 %v12628_v25  ;;  %v3073_v33 = vand.u32 4294901760, %v3072_v62 }
  0xe6   :  { %v3079_v36 = vsub.f32 %v12753_v42, %v17686_v4  ;;  %10566 = vmatpush3.msra.mxu1 %v2940_v39  ;;  %v17688_v4 = vand.u32 4294901760, %v12777_v50  ;;  %10533 = vmatpush3.msra.mxu0 %v12643_v24 }
  0xe7   :  { %v2967_v29 = vsub.f32 %v12763_v60, %v17687_v22  ;;  %10567 = vmatprep.subr.mxu1 %v3059_v2  ;;  %v12835_v17 = vpop.f32.mrf.mxu0  ;;  %v12837_v39 = vpop.f32.mrf.mxu1  ;;  %v2961_v23 = vand.u32 4294901760, %v2960_v11  ;;  %v17689_v22 = vand.u32 4294901760, %v12785_v7  ;;  %10534 = vmatprep.subr.mxu0 %v12658_v14  ;;  %v17690_v2 = vand.u32 4294901760, %v12793_v10 }
  0xe8   :  { %v3086_v45 = vsub.f32 %v12777_v50, %v17688_v4  ;;  %10568 = vmatpush3.msra.mxu1 %v2947_v41  ;;  %v3080_v62 = vand.u32 4294901760, %v3079_v36  ;;  %10535 = vmatpush3.msra.mxu0 %v12673_v32  ;;  %v17691_v11 = vand.u32 4294901760, %v12805_v51 }
  0xe9   :  { %v2974_v60 = vsub.f32 %v12785_v7, %v17689_v22  ;;  %10569 = vmatprep.subr.mxu1 %v3066_v59  ;;  %v3093_v4 = vsub.f32 %v12793_v10, %v17690_v2  ;;  %v12847_v38 = vpop.f32.mrf.mxu0  ;;  %v2968_v50 = vand.u32 4294901760, %v2967_v29  ;;  %10536 = vmatprep.subr.mxu0 %v12684_v55 }
  0xea   :  { %10570 = vmatpush3.msra.mxu1 %v2954_v18  ;;  %v2981_v41 = vsub.f32 %v12805_v51, %v17691_v11  ;;  %v3087_v22 = vand.u32 4294901760, %v3086_v45  ;;  %10537 = vmatpush3.msra.mxu0 %v12695_v6 }
  0xeb   :  { %10571 = vmatprep.subr.mxu1 %v3073_v33  ;;  %v12854_v59 = vpop.f32.mrf.mxu1  ;;  %v2975_v36 = vand.u32 4294901760, %v2974_v60  ;;  %10538 = vmatprep.subr.mxu0 %v12706_v1  ;;  %v3094_v2 = vand.u32 4294901760, %v3093_v4 }
  0xec   :  { %10572 = vmatpush3.msra.mxu1 %v2961_v23  ;;  %10539 = vmatpush3.msra.mxu0 %v12717_v56  ;;  %v2982_v11 = vand.u32 4294901760, %v2981_v41  ;;  %v61_v41 = vsub.s32 1, %v12085_v47 }
  0xed   :  { %10573 = vmatprep.subr.mxu1 %v3080_v62  ;;  %v638_v29 = vpop.f32.mrf.mxu0  ;;  %v12858_v18 = vpop.f32.mrf.mxu1  ;;  %10540 = vmatprep.subr.mxu0 %v12730_v49 }
  0xee   :  { %10574 = vmatpush3.msra.mxu1 %v2968_v50  ;;  %v639_v45 = vadd.f32 %v638_v29, %v12126_v28  ;;  %10541 = vmatpush3.msra.mxu0 %v12743_v63  ;;  %v57_v50 = vsub.s32 0, %v12085_v47 }
  0xef   :  { %10575 = vmatprep.subr.mxu1 %v3087_v22  ;;  %v10962_v33 = vpop.f32.mrf.mxu0  ;;  %10542 = vmatprep.subr.mxu0 %v12755_v37 }
  0xf0   :  { %10576 = vmatpush3.msra.mxu1 %v2975_v36  ;;  %10543 = vmatpush3.msra.mxu0 %v12765_v12  ;;  %v58_v29 = vrot.slane %v12117_v27, %v57_v50 }
  0xf1   :  { %10577 = vmatprep.subr.mxu1 %v3094_v2  ;;  %v719_v60 = vpop.f32.mrf.mxu1  ;;  %10582 = vmatprep.subr.mxu0 %v12362_v40 }
  0xf2   :  { %10578 = vmatpush3.msra.mxu1 %v2982_v11  ;;  %v720_v23 = vadd.f32 %v719_v60, %v639_v45  ;;  %v11533_v11 = vld [vmem:[%s17439_s3] sm:$0x7]  ;;  %v150_v45 = vadd.f32 %v12745_v9, %v58_v29 }
  0xf3   :  { %10617 = vmatprep.subr.mxu1 %v12331_v16  ;;  %v795_v62 = vpop.f32.mrf.mxu0  ;;  %v10969_v4 = vpop.f32.mrf.mxu1  ;;  %v62_v33 = vrot.slane %v11533_v11, %v61_v41 }
  0xf4   :  { %v796_v22 = vadd.f32 %v795_v62, %v720_v23  ;;  %v242_v23 = vadd.f32 %v12769_v61, %v150_v45 }
  0xf5   :  { %v10976_v36 = vpop.f32.mrf.mxu0  ;;  %v152_v4 = vadd.f32 %v12767_v58, %v62_v33 }
  0xf7   :  { %v870_v2 = vpop.f32.mrf.mxu1  ;;  %v244_v36 = vadd.f32 %v12797_v54, %v152_v4 }
  0xf8   :  { %v871_v40 = vadd.f32 %v870_v2, %v796_v22  ;;  %v323_v22 = vadd.f32 %v12795_v8, %v242_v23 }
  0xf9   :  { %v947_v51 = vpop.f32.mrf.mxu0  ;;  %v10983_v10 = vpop.f32.mrf.mxu1 }
  0xfa   :  { %v948_v60 = vadd.f32 %v947_v51, %v871_v40  ;;  %v325_v40 = vadd.f32 %v12812_v3, %v244_v36 }
  0xfb   :  { %v10990_v7 = vpop.f32.mrf.mxu0 }
  0xfc   :  { %v401_v7 = vadd.f32 %v12824_v20, %v323_v22 }
  0xfd   :  { %v1020_v47 = vpop.f32.mrf.mxu1 }
  0xfe   :  { %v12876_v62 = vadd.f32 %v1020_v47, %v948_v60  ;;  %v403_v60 = vadd.f32 %v12837_v39, %v325_v40 }
  0xff   :  { %v1105_v27 = vpop.f32.mrf.mxu0  ;;  %v10997_v50 = vpop.f32.mrf.mxu1 }
 0x100   :  { %v1106_v42 = vadd.f32 %v1105_v27, %v58_v29  ;;  %v485_v29 = vadd.f32 %v12835_v17, %v401_v7  ;;  %v487_v23 = vadd.f32 %v12847_v38, %v403_v60 }
 0x101   :  { %v1107_v41 = vpop.f32.mrf.mxu0 }
 0x102   :  { %v1108_v10 = vadd.f32 %v1107_v41, %v62_v33  ;;  %v561_v50 = vadd.f32 %v12854_v59, %v485_v29  ;;  %v563_v41 = vadd.f32 %v12858_v18, %v487_v23 }
 0x103   :  { %v1197_v2 = vpop.f32.mrf.mxu1 }
 0x104   :  { %v1198_v9 = vadd.f32 %v1197_v2, %v1106_v42  ;;  %v1024_v2 = vmax.f32 %v561_v50, 0.0 }
 0x105   :  { %v1278_v51 = vpop.f32.mrf.mxu0  ;;  %v1199_v58 = vpop.f32.mrf.mxu1 }
 0x106   :  { %v1279_v61 = vadd.f32 %v1278_v51, %v1198_v9  ;;  %v1200_v11 = vadd.f32 %v1199_v58, %v1108_v10  ;;  %v1025_v58 = vmax.f32 %v563_v41, 0.0 }
 0x107   :  { %v1280_v45 = vpop.f32.mrf.mxu0 }
 0x108   :  { %v1281_v47 = vadd.f32 %v1280_v45, %v1200_v11 }
 0x109   :  { %v1356_v54 = vpop.f32.mrf.mxu1 }
 0x10a   :  { %v1357_v4 = vadd.f32 %v1356_v54, %v1279_v61 }
 0x10b   :  { %v1440_v8 = vpop.f32.mrf.mxu0  ;;  %v1358_v33 = vpop.f32.mrf.mxu1 }
 0x10c   :  { %v1441_v3 = vadd.f32 %v1440_v8, %v1357_v4  ;;  %v1359_v42 = vadd.f32 %v1358_v33, %v1281_v47 }
 0x10d   :  { %v1442_v27 = vpop.f32.mrf.mxu0 }
 0x10e   :  { %v1443_v20 = vadd.f32 %v1442_v27, %v1359_v42 }
 0x10f   :  { %v1516_v36 = vpop.f32.mrf.mxu1 }
 0x110   :  { %v1517_v22 = vadd.f32 %v1516_v36, %v1441_v3 }
 0x111   :  { %v1518_v39 = vpop.f32.mrf.mxu1  ;;  %v1594_v10 = vpop.f32.mrf.mxu0 }
 0x112   :  { %v1980_v40 = vmax.f32 %v1517_v22, 0.0  ;;  %v1519_v17 = vadd.f32 %v1518_v39, %v1443_v20  ;;  %v1595_v9 = vadd.f32 %v1594_v10, %v12126_v28 }
 0x113   :  { %v11004_v51 = vpop.f32.mrf.mxu0 }
 0x114   :  { %v1983_v38 = vmax.f32 %v1024_v2, %v1980_v40  ;;  %v1981_v7 = vmax.f32 %v1519_v17, 0.0  ;;  %v1026_v17 = vmax.f32 %v12876_v62, 0.0  ;;  %v17692_v51 = vld [vmem:[#allocation12_spill] sm:$0xff]  ;;  %v17700_v62 = vld [vmem:[#allocation11_spill] sm:$0xff] }
 0x115   :  { %v1675_v61 = vpop.f32.mrf.mxu1 }
 0x116   :  { %v12888_v11 = vand.u32 4294901760, %v1983_v38  ;;  %v1984_v59 = vmax.f32 %v1025_v58, %v1981_v7  ;;  %v1676_v45 = vadd.f32 %v1675_v61, %v1595_v9  ;;  %v17693_v58 = vld [vmem:[#allocation8_spill] sm:$0xff]  ;;  %v17695_v7 = vld [vmem:[#allocation14_spill] sm:$0xff]  ;;  %v17696_v61 = vld [vmem:[#allocation9_spill] sm:$0xff] }
 0x117   :  { %v11011_v60 = vpop.f32.mrf.mxu1  ;;  %v1751_v47 = vpop.f32.mrf.mxu0 }
 0x118   :  { %v12891_v18 = vsub.f32 %v1983_v38, %v12888_v11  ;;  %v12893_v54 = vand.u32 4294901760, %v1984_v59  ;;  %v1752_v29 = vadd.f32 %v1751_v47, %v1676_v45  ;;  %v17698_v45 = vld [vmem:[#allocation10_spill] sm:$0xff]  ;;  %v17701_v47 = vld [vmem:[#allocation13_spill] sm:$0xff] }
 0x119   :  { %v11018_v4 = vpop.f32.mrf.mxu0  ;;  %v17699_v60 = vld [vmem:[#allocation18_spill] sm:$0xff] }
 0x11a   :  { %v2864_v28 = vand.u32 4294901760, %v12891_v18  ;;  %v2857_v8 = vsub.f32 %v1984_v59, %v12893_v54  ;;  %3097 = vmatprep.mubr.f32.mxu1 %v12893_v54  ;;  %v17697_v59 = vld [vmem:[#allocation16_spill] sm:$0xff]  ;;  %v17703_v4 = vld [vmem:[#allocation17_spill] sm:$0xff] }
 0x11b   :  { %v1826_v33 = vpop.f32.mrf.mxu1  ;;  %3099 = vmatmul.mubr.f32.vlgmr.msra.gmra.mxu1 %v12888_v11 }
 0x11c   :  { %v1827_v23 = vadd.f32 %v1826_v33, %v1752_v29  ;;  %10618 = vmatpush3.msra.mxu1 %v12338_v19  ;;  %v2858_v3 = vand.u32 4294901760, %v2857_v8  ;;  %v2865_v50 = vsub.f32 %v12891_v18, %v2864_v28  ;;  %v17702_v29 = vld [vmem:[#allocation15_spill] sm:$0xff]  ;;  %v17705_v33 = vld [vmem:[#allocation20_spill] sm:$0xff] }
 0x11d   :  { %v11025_v42 = vpop.f32.mrf.mxu1  ;;  %v1903_v27 = vpop.f32.mrf.mxu0  ;;  %10619 = vmatprep.subr.mxu1 %v12346_v26 }
 0x11e   :  { %v1904_v20 = vadd.f32 %v1903_v27, %v1827_v23  ;;  %10620 = vmatpush3.msra.mxu1 %v12353_v21  ;;  %3341 = vmatprep.mubr.f32.mxu1 %v2858_v3  ;;  %v2859_v36 = vsub.f32 %v2857_v8, %v2858_v3  ;;  %v2866_v10 = vand.u32 4294901760, %v2865_v50  ;;  %v17706_v23 = vld [vmem:[#allocation21_spill] sm:$0xff]  ;;  %v17707_v3 = vld [vmem:[#allocation22_spill] sm:$0xff]  ;;  %v17708_v42 = vld [vmem:[#allocation23_spill] sm:$0xff] }
 0x11f   :  { %10621 = vmatprep.subr.mxu1 %v12364_v43  ;;  %v11032_v41 = vpop.f32.mrf.mxu0  ;;  %v17709_v27 = vld [vmem:[#allocation24_spill] sm:$0xff]  ;;  %v17710_v50 = vld [vmem:[#allocation25_spill] sm:$0xff] }
 0x120   :  { %10622 = vmatpush3.msra.mxu1 %v12374_v46  ;;  %v2860_v22 = vand.u32 4294901760, %v2859_v36  ;;  %v17712_v36 = vld [vmem:[#allocation27_spill] sm:$0xff]  ;;  %v17713_v41 = vld [vmem:[#allocation28_spill] sm:$0xff] }
 0x121   :  { %v1976_v39 = vpop.f32.mrf.mxu1  ;;  %10623 = vmatprep.subr.mxu1 %v12385_v34 }
 0x122   :  { %v1977_v2 = vadd.f32 %v1976_v39, %v1904_v20  ;;  %10624 = vmatpush3.msra.mxu1 %v12395_v5  ;;  %2861 = vmatprep.mubr.f32.mxu0 %v2860_v22  ;;  %v17711_v20 = vld [vmem:[#allocation26_spill] sm:$0xff]  ;;  %v17714_v22 = vld [vmem:[#allocation29_spill] sm:$0xff] }
 0x123   :  { %10625 = vmatprep.subr.mxu1 %v12407_v35  ;;  %2867 = vmatmul.mubr.f32.vlgmr.msra.gmra.mxu0 %v2866_v10  ;;  %v11039_v40 = vpop.f32.mrf.mxu1  ;;  %v17715_v39 = vld [vmem:[#allocation30_spill] sm:$0xff]  ;;  %v17716_v10 = vld [vmem:[#allocation31_spill] sm:$0xff] }
 0x124   :  { %v1982_v9 = vmax.f32 %v1977_v2, 0.0  ;;  %10583 = vmatpush3.msra.mxu0 %v12372_v44  ;;  %10626 = vmatpush3.msra.mxu1 %v17692_v51  ;;  %v17717_v2 = vld [vmem:[#allocation32_spill] sm:$0xff]  ;;  %v17718_v40 = vld [vmem:[#allocation33_spill] sm:$0xff] }
 0x125   :  { %10584 = vmatprep.subr.mxu0 %v17693_v58  ;;  %3234 = vmatprep.mubr.f32.mxu0 %v2857_v8  ;;  %v17704_v8 = vld [vmem:[#allocation19_spill] sm:$0xff] }
 0x126   :  { %v12914_v38 = vmax.f32 %v1026_v17, %v1982_v9  ;;  %10627 = vmatprep.subr.mxu1 %v17695_v7  ;;  %10585 = vmatpush3.msra.mxu0 %v17696_v61  ;;  %v17719_v17 = vld [vmem:[#allocation34_spill] sm:$0xff]  ;;  %v17720_v9 = vld [vmem:[#allocation35_spill] sm:$0xff] }
 0x127   :  { %10628 = vmatpush3.msra.mxu1 %v17697_v59  ;;  %10586 = vmatprep.subr.mxu0 %v17698_v45 }
 0x128   :  { %17694 = vst [vmem:[#allocation12_spill] sm:$0xff] %v12914_v38  ;;  %10629 = vmatprep.subr.mxu1 %v17699_v60  ;;  %10587 = vmatpush3.msra.mxu0 %v17700_v62  ;;  %v17721_v38 = vld [vmem:[#allocation36_spill] sm:$0xff] }
 0x129   :  { %10630 = vmatpush3.msra.mxu1 %v12474_v31  ;;  %10588 = vmatprep.subr.mxu0 %v17701_v47 }
 0x12a   :  { %10631 = vmatprep.subr.mxu1 %v12488_v57  ;;  %10589 = vmatpush3.msra.mxu0 %v17702_v29 }
 0x12b   :  { %10632 = vmatpush3.msra.mxu1 %v12501_v13  ;;  %10590 = vmatprep.subr.mxu0 %v17703_v4 }
 0x12c   :  { %10633 = vmatprep.subr.mxu1 %v12571_v48  ;;  %10591 = vmatpush3.msra.mxu0 %v17704_v8 }
 0x12d   :  { %10634 = vmatpush3.msra.mxu1 %v12585_v0  ;;  %10592 = vmatprep.subr.mxu0 %v17705_v33 }
 0x12e   :  { %10635 = vmatprep.subr.mxu1 %v12599_v53  ;;  %10593 = vmatpush3.msra.mxu0 %v17706_v23 }
 0x12f   :  { %10636 = vmatpush3.msra.mxu1 %v12613_v30  ;;  %10594 = vmatprep.subr.mxu0 %v17707_v3 }
 0x130   :  { %10637 = vmatprep.subr.mxu1 %v12628_v25  ;;  %10595 = vmatpush3.msra.mxu0 %v17708_v42 }
 0x131   :  { %10638 = vmatpush3.msra.mxu1 %v12643_v24  ;;  %10596 = vmatprep.subr.mxu0 %v17709_v27 }
 0x132   :  { %10639 = vmatprep.subr.mxu1 %v12658_v14  ;;  %10597 = vmatpush3.msra.mxu0 %v17710_v50 }
 0x133   :  { %10640 = vmatpush3.msra.mxu1 %v12673_v32  ;;  %10598 = vmatprep.subr.mxu0 %v17711_v20 }
 0x134   :  { %10641 = vmatprep.subr.mxu1 %v12684_v55  ;;  %10599 = vmatpush3.msra.mxu0 %v17712_v36 }
 0x135   :  { %10642 = vmatpush3.msra.mxu1 %v12695_v6  ;;  %10600 = vmatprep.subr.mxu0 %v17713_v41 }
 0x136   :  { %10643 = vmatprep.subr.mxu1 %v12706_v1  ;;  %10601 = vmatpush3.msra.mxu0 %v17714_v22 }
 0x137   :  { %10644 = vmatpush3.msra.mxu1 %v12717_v56  ;;  %10602 = vmatprep.subr.mxu0 %v12682_v15 }
 0x138   :  { %10645 = vmatprep.subr.mxu1 %v12730_v49  ;;  %10603 = vmatpush3.msra.mxu0 %v17715_v39 }
 0x139   :  { %10646 = vmatpush3.msra.mxu1 %v12743_v63  ;;  %10604 = vmatprep.subr.mxu0 %v17716_v10 }
 0x13a   :  { %10647 = vmatprep.subr.mxu1 %v12755_v37  ;;  %10605 = vmatpush3.msra.mxu0 %v17717_v2 }
 0x13b   :  { %10648 = vmatpush3.msra.mxu1 %v12765_v12  ;;  %10606 = vmatprep.subr.mxu0 %v12728_v52 }
 0x13c   :  { %3345 = vmatmul.mubr.f32.vlgmr.msra.gmra.mxu1 %v2864_v28  ;;  %10687 = vmatprep.subr.mxu1 %v12331_v16  ;;  %v17722_v28 = vld [vmem:[#allocation37_spill] sm:$0xff]  ;;  %v17723_v16 = vld [vmem:[#allocation38_spill] sm:$0xff] }
 0x13d   :  { %10607 = vmatpush3.msra.mxu0 %v17718_v40  ;;  %10688 = vmatpush3.msra.mxu1 %v12338_v19  ;;  %v17724_v19 = vld [vmem:[#allocation39_spill] sm:$0xff] }
 0x13e   :  { %3615 = vmatprep.mubr.f32.mxu1 %v12893_v54  ;;  %10608 = vmatprep.subr.mxu0 %v17719_v17 }
 0x13f   :  { %10689 = vmatprep.subr.mxu1 %v12346_v26  ;;  %10609 = vmatpush3.msra.mxu0 %v17720_v9  ;;  %v17725_v26 = vld [vmem:[#allocation7_spill] sm:$0xff] }
 0x140   :  { %10690 = vmatpush3.msra.mxu1 %v12353_v21  ;;  %10610 = vmatprep.subr.mxu0 %v17721_v38  ;;  %v17726_v21 = vand.u32 4294901760, %v17725_v26 }
 0x141   :  { %10691 = vmatprep.subr.mxu1 %v12364_v43  ;;  %10611 = vmatpush3.msra.mxu0 %v17722_v28  ;;  %v17727_v28 = vand.u32 4294901760, %v12372_v44  ;;  %v17730_v44 = vand.u32 4294901760, %v17698_v45  ;;  %v2031_v45 = vld [vmem:[%s17440_s4 + $0x168] sm:$0xff] }
 0x142   :  { %10692 = vmatpush3.msra.mxu1 %v12374_v46  ;;  %10612 = vmatprep.subr.mxu0 %v17723_v16  ;;  %v17728_v46 = vand.u32 4294901760, %v17693_v58 }
 0x143   :  { %10693 = vmatprep.subr.mxu1 %v12385_v34  ;;  %10613 = vmatpush3.msra.mxu0 %v17724_v19  ;;  %v2174_v17 = vpop.f32.mrf.mxu0  ;;  %v17729_v34 = vand.u32 4294901760, %v17696_v61 }
 0x144   :  { %10694 = vmatpush3.msra.mxu1 %v12395_v5  ;;  %3237 = vmatmul.mubr.f32.vlgmr.msra.gmra.mxu0 %v12891_v18  ;;  %v2033_v5 = vld [vmem:[%s17440_s4 + $0x178] sm:$0xff] }
 0x145   :  { %10652 = vmatprep.subr.mxu0 %v17726_v21  ;;  %10695 = vmatprep.subr.mxu1 %v12407_v35  ;;  %v2176_v43 = vpop.f32.mrf.mxu0  ;;  %v13008_v61 = vand.u32 4294901760, %v2033_v5  ;;  %v2026_v21 = vld [vmem:[%s17440_s4 + $0x140] sm:$0xff] }
 0x146   :  { %10653 = vmatpush3.msra.mxu0 %v17727_v28  ;;  %3511 = vmatprep.mubr.f32.mxu0 %v12893_v54  ;;  %v17731_v54 = vand.u32 4294901760, %v17700_v62  ;;  %v17735_v62 = vand.u32 4294901760, %v17704_v8 }
 0x147   :  { %10696 = vmatpush3.msra.mxu1 %v17692_v51  ;;  %10654 = vmatprep.subr.mxu0 %v17728_v46  ;;  %v2032_v51 = vld [vmem:[%s17440_s4 + $0x170] sm:$0xff] }
 0x148   :  { %10697 = vmatprep.subr.mxu1 %v17695_v7  ;;  %10655 = vmatpush3.msra.mxu0 %v17729_v34  ;;  %v2336_v35 = vpop.f32.mrf.mxu1  ;;  %v17732_v7 = vand.u32 4294901760, %v17701_v47  ;;  %v17736_v47 = vand.u32 4294901760, %v17705_v33  ;;  %v2029_v33 = vld [vmem:[%s17440_s4 + $0x158] sm:$0xff] }
 0x149   :  { %10698 = vmatpush3.msra.mxu1 %v17697_v59  ;;  %10656 = vmatprep.subr.mxu0 %v17730_v44  ;;  %v12997_v18 = vadd.f32 %v2336_v35, %v2174_v17  ;;  %v17733_v59 = vand.u32 4294901760, %v17702_v29  ;;  %v13033_v29 = vand.u32 4294901760, %v2031_v45  ;;  %v2028_v17 = vld [vmem:[%s17440_s4 + $0x150] sm:$0xff]  ;;  %v17748_v35 = vand.u32 4294901760, %v17716_v10 }
 0x14a   :  { %10699 = vmatprep.subr.mxu1 %v17699_v60  ;;  %10657 = vmatpush3.msra.mxu0 %v17731_v54  ;;  %v2338_v58 = vpop.f32.mrf.mxu1  ;;  %v17734_v60 = vand.u32 4294901760, %v17703_v4  ;;  %v17738_v4 = vand.u32 4294901760, %v17707_v3  ;;  %v17749_v54 = vand.u32 4294901760, %v17717_v2  ;;  %v2023_v2 = vld [vmem:[%s17440_s4 + $0x128] sm:$0xff] }
 0x14b   :  { %10700 = vmatpush3.msra.mxu1 %v12474_v31  ;;  %10658 = vmatprep.subr.mxu0 %v17732_v7  ;;  %v13019_v31 = vand.u32 4294901760, %v2032_v51  ;;  %v13057_v3 = vsub.f32 %v2031_v45, %v13033_v29  ;;  %v17752_v45 = vand.u32 4294901760, %v17718_v40 }
 0x14c   :  { %10701 = vmatprep.subr.mxu1 %v12488_v57  ;;  %10659 = vmatpush3.msra.mxu0 %v17733_v59  ;;  %v2030_v57 = vld [vmem:[%s17440_s4 + $0x160] sm:$0xff] }
 0x14d   :  { %10702 = vmatpush3.msra.mxu1 %v12501_v13  ;;  %10660 = vmatprep.subr.mxu0 %v17734_v60  ;;  %v13031_v13 = vsub.f32 %v2033_v5, %v13008_v61  ;;  %v13044_v8 = vand.u32 4294901760, %v2030_v57  ;;  %v13107_v5 = vand.u32 4294901760, %v2026_v21 }
 0x14e   :  { %10703 = vmatprep.subr.mxu1 %v12571_v48  ;;  %10661 = vmatpush3.msra.mxu0 %v17735_v62  ;;  %v17737_v48 = vand.u32 4294901760, %v17706_v23 }
 0x14f   :  { %10704 = vmatpush3.msra.mxu1 %v12585_v0  ;;  %10662 = vmatprep.subr.mxu0 %v17736_v47  ;;  %v13042_v0 = vsub.f32 %v2032_v51, %v13019_v31  ;;  %v3716_v23 = vand.u32 4294901760, %v13031_v13  ;;  %v13075_v26 = vsub.f32 %v2030_v57, %v13044_v8  ;;  %v13143_v59 = vsub.f32 %v2026_v21, %v13107_v5  ;;  %v2022_v57 = vld [vmem:[%s17440_s4 + $0x120] sm:$0xff]  ;;  %v17753_v47 = vld [vmem:[#allocation34_spill] sm:$0xff] }
 0x150   :  { %10705 = vmatprep.subr.mxu1 %v12599_v53  ;;  %10663 = vmatpush3.msra.mxu0 %v17737_v48  ;;  %v17739_v53 = vand.u32 4294901760, %v17708_v42  ;;  %v13065_v42 = vand.u32 4294901760, %v2029_v33  ;;  %v17754_v48 = vand.u32 4294901760, %v17753_v47  ;;  %v17757_v21 = vld [vmem:[#allocation37_spill] sm:$0xff] }
 0x151   :  { %10706 = vmatpush3.msra.mxu1 %v12613_v30  ;;  %10664 = vmatprep.subr.mxu0 %v17738_v4  ;;  %v17740_v30 = vand.u32 4294901760, %v17709_v27  ;;  %v17742_v27 = vand.u32 4294901760, %v17711_v20  ;;  %v3723_v28 = vand.u32 4294901760, %v13042_v0  ;;  %v3717_v20 = vsub.f32 %v13031_v13, %v3716_v23 }
 0x152   :  { %10707 = vmatprep.subr.mxu1 %v12628_v25  ;;  %10665 = vmatpush3.msra.mxu0 %v17739_v53  ;;  %v17741_v25 = vand.u32 4294901760, %v17710_v50  ;;  %v13080_v50 = vand.u32 4294901760, %v2028_v17  ;;  %v13098_v46 = vsub.f32 %v2029_v33, %v13065_v42  ;;  %v3737_v34 = vand.u32 4294901760, %v13075_v26 }
 0x153   :  { %10708 = vmatpush3.msra.mxu1 %v12643_v24  ;;  %10666 = vmatprep.subr.mxu0 %v17740_v30  ;;  %v2027_v24 = vld [vmem:[%s17440_s4 + $0x148] sm:$0xff]  ;;  %v3718_v44 = vand.u32 4294901760, %v3717_v20  ;;  %v13168_v33 = vand.u32 4294901760, %v2023_v2  ;;  %v17755_v53 = vand.u32 4294901760, %v17720_v9 }
 0x154   :  { %10709 = vmatprep.subr.mxu1 %v12658_v14  ;;  %10667 = vmatpush3.msra.mxu0 %v17741_v25  ;;  %v17743_v14 = vand.u32 4294901760, %v17712_v36  ;;  %v13092_v43 = vand.u32 4294901760, %v2027_v24  ;;  %v17745_v36 = vand.u32 4294901760, %v17714_v22  ;;  %v17747_v22 = vand.u32 4294901760, %v17715_v39 }
 0x155   :  { %10710 = vmatpush3.msra.mxu1 %v12673_v32  ;;  %10668 = vmatprep.subr.mxu0 %v17742_v27  ;;  %v17744_v32 = vand.u32 4294901760, %v17713_v41  ;;  %v3724_v41 = vsub.f32 %v13042_v0, %v3723_v28  ;;  %v3744_v51 = vand.u32 4294901760, %v13098_v46  ;;  %v3738_v7 = vsub.f32 %v13075_v26, %v3737_v34 }
 0x156   :  { %10711 = vmatprep.subr.mxu1 %v12684_v55  ;;  %10669 = vmatpush3.msra.mxu0 %v17743_v14  ;;  %v3730_v55 = vand.u32 4294901760, %v13057_v3  ;;  %v13128_v39 = vsub.f32 %v2027_v24, %v13092_v43  ;;  %v2021_v24 = vld [vmem:[%s17440_s4 + $0x118] sm:$0xff]  ;;  %v17756_v27 = vand.u32 4294901760, %v17721_v38  ;;  %v13185_v14 = vand.u32 4294901760, %v2022_v57  ;;  %v2020_v38 = vld [vmem:[%s17440_s4 + $0x110] sm:$0xff] }
 0x157   :  { %10712 = vmatpush3.msra.mxu1 %v12695_v6  ;;  %10670 = vmatprep.subr.mxu0 %v17744_v32  ;;  %v17746_v6 = vand.u32 4294901760, %v12682_v15  ;;  %v13116_v15 = vsub.f32 %v2028_v17, %v13080_v50  ;;  %v3725_v10 = vand.u32 4294901760, %v3724_v41  ;;  %v3745_v4 = vsub.f32 %v13098_v46, %v3744_v51 }
 0x158   :  { %10713 = vmatprep.subr.mxu1 %v12706_v1  ;;  %10671 = vmatpush3.msra.mxu0 %v17745_v36  ;;  %v2025_v1 = vld [vmem:[%s17440_s4 + $0x138] sm:$0xff]  ;;  %v3758_v62 = vand.u32 4294901760, %v13128_v39  ;;  %v3739_v30 = vand.u32 4294901760, %v3738_v7  ;;  %v3765_v17 = vand.u32 4294901760, %v13143_v59  ;;  %v17758_v32 = vand.u32 4294901760, %v17757_v21 }
 0x159   :  { %10714 = vmatpush3.msra.mxu1 %v12717_v56  ;;  %10672 = vmatprep.subr.mxu0 %v17746_v6  ;;  %v2024_v56 = vld [vmem:[%s17440_s4 + $0x130] sm:$0xff]  ;;  %v13134_v58 = vand.u32 4294901760, %v2025_v1  ;;  %v17759_v36 = vand.u32 4294901760, %v17723_v16  ;;  %v3746_v6 = vand.u32 4294901760, %v3745_v4 }
 0x15a   :  { %10715 = vmatprep.subr.mxu1 %v12730_v49  ;;  %10673 = vmatpush3.msra.mxu0 %v17747_v22  ;;  %v3731_v49 = vsub.f32 %v13057_v3, %v3730_v55  ;;  %v3759_v20 = vsub.f32 %v13128_v39, %v3758_v62  ;;  %v13202_v22 = vand.u32 4294901760, %v2021_v24 }
 0x15b   :  { %10716 = vmatpush3.msra.mxu1 %v12743_v63  ;;  %10674 = vmatprep.subr.mxu0 %v17748_v35  ;;  %v17750_v63 = vand.u32 4294901760, %v12728_v52  ;;  %v3751_v52 = vand.u32 4294901760, %v13116_v15  ;;  %v13166_v40 = vsub.f32 %v2025_v1, %v13134_v58  ;;  %v13200_v1 = vsub.f32 %v2023_v2, %v13168_v33 }
 0x15c   :  { %10717 = vmatprep.subr.mxu1 %v12755_v37  ;;  %10675 = vmatpush3.msra.mxu0 %v17749_v54  ;;  %v13145_v37 = vand.u32 4294901760, %v2024_v56  ;;  %v3732_v60 = vand.u32 4294901760, %v3731_v49  ;;  %v3766_v35 = vsub.f32 %v13143_v59, %v3765_v17  ;;  %v13216_v54 = vsub.f32 %v2022_v57, %v13185_v14 }
 0x15d   :  { %10718 = vmatpush3.msra.mxu1 %v12765_v12  ;;  %10676 = vmatprep.subr.mxu0 %v17750_v63  ;;  %v17751_v12 = vmov 0.0   ;;  %v3752_v9 = vsub.f32 %v13116_v15, %v3751_v52  ;;  %v3772_v41 = vand.u32 4294901760, %v13166_v40  ;;  %v3760_v63 = vand.u32 4294901760, %v3759_v20 }
 0x15e   :  { %3617 = vmatmul.mubr.f32.vlgmr.msra.gmra.mxu1 %v12888_v11  ;;  %11075 = vmatprep.subr.mxu1 %v17751_v12  ;;  %v13174_v25 = vsub.f32 %v2024_v56, %v13145_v37  ;;  %v17760_v56 = vand.u32 4294901760, %v17724_v19  ;;  %v13218_v19 = vand.u32 4294901760, %v2020_v38  ;;  %v3786_v7 = vand.u32 4294901760, %v13200_v1 }
 0x15f   :  { %10677 = vmatpush3.msra.mxu0 %v17752_v45  ;;  %11076 = vmatpush3.msra.mxu1 %v3718_v44  ;;  %v2019_v44 = vld [vmem:[%s17440_s4 + $0x108] sm:$0xff]  ;;  %v3753_v49 = vand.u32 4294901760, %v3752_v9  ;;  %v13231_v2 = vsub.f32 %v2021_v24, %v13202_v22 }
 0x160   :  { %10678 = vmatprep.subr.mxu0 %v17754_v48  ;;  %11077 = vmatprep.subr.mxu1 %v17751_v12  ;;  %v3779_v16 = vand.u32 4294901760, %v13174_v25  ;;  %v13233_v45 = vand.u32 4294901760, %v2019_v44  ;;  %v3793_v48 = vand.u32 4294901760, %v13216_v54  ;;  %v13243_v4 = vsub.f32 %v2020_v38, %v13218_v19 }
 0x161   :  { %10679 = vmatpush3.msra.mxu0 %v17755_v53  ;;  %11078 = vmatpush3.msra.mxu1 %v3725_v10  ;;  %v2018_v10 = vld [vmem:[%s17440_s4 + $0x100] sm:$0xff]  ;;  %v3787_v9 = vsub.f32 %v13200_v1, %v3786_v7  ;;  %v3800_v21 = vand.u32 4294901760, %v13231_v2 }
 0x162   :  { %10680 = vmatprep.subr.mxu0 %v17756_v27  ;;  %11079 = vmatprep.subr.mxu1 %v17751_v12  ;;  %v3780_v57 = vsub.f32 %v13174_v25, %v3779_v16  ;;  %v13245_v53 = vand.u32 4294901760, %v2018_v10  ;;  %v3794_v20 = vsub.f32 %v13216_v54, %v3793_v48  ;;  %v3807_v38 = vand.u32 4294901760, %v13243_v4 }
 0x163   :  { %10681 = vmatpush3.msra.mxu0 %v17758_v32  ;;  %11080 = vmatpush3.msra.mxu1 %v3732_v60  ;;  %v3767_v60 = vand.u32 4294901760, %v3766_v35  ;;  %v13256_v32 = vsub.f32 %v2019_v44, %v13233_v45  ;;  %v3788_v35 = vand.u32 4294901760, %v3787_v9  ;;  %v3801_v44 = vsub.f32 %v13231_v2, %v3800_v21 }
 0x164   :  { %10682 = vmatprep.subr.mxu0 %v17759_v36  ;;  %11081 = vmatprep.subr.mxu1 %v17751_v12  ;;  %v13266_v36 = vsub.f32 %v2018_v10, %v13245_v53  ;;  %v3795_v10 = vand.u32 4294901760, %v3794_v20 }
 0x165   :  { %10683 = vmatpush3.msra.mxu0 %v17760_v56  ;;  %11082 = vmatpush3.msra.mxu1 %v3739_v30 }
 0x166   :  { %3513 = vmatmul.mubr.f32.vlgmr.msra.gmra.mxu0 %v12888_v11  ;;  %11040 = vmatprep.subr.mxu0 %v17751_v12  ;;  %v3773_v11 = vsub.f32 %v13166_v40, %v3772_v41 }
 0x167   :  { %11083 = vmatprep.subr.mxu1 %v17751_v12  ;;  %11041 = vmatpush3.msra.mxu0 %v13008_v61 }
 0x168   :  { %11084 = vmatpush3.msra.mxu1 %v3746_v6  ;;  %11042 = vmatprep.subr.mxu0 %v17751_v12  ;;  %v3774_v27 = vand.u32 4294901760, %v3773_v11  ;;  %v3808_v11 = vsub.f32 %v13243_v4, %v3807_v38 }
 0x169   :  { %11085 = vmatprep.subr.mxu1 %v17751_v12  ;;  %11043 = vmatpush3.msra.mxu0 %v13019_v31  ;;  %v2446_v47 = vpop.f32.mrf.mxu0 }
 0x16a   :  { %11086 = vmatpush3.msra.mxu1 %v3753_v49  ;;  %11044 = vmatprep.subr.mxu0 %v17751_v12  ;;  %v2447_v30 = vadd.f32 %v2446_v47, %v12997_v18  ;;  %v3781_v18 = vand.u32 4294901760, %v3780_v57  ;;  %v3814_v49 = vand.u32 4294901760, %v13256_v32  ;;  %v3802_v57 = vand.u32 4294901760, %v3801_v44 }
 0x16b   :  { %11087 = vmatprep.subr.mxu1 %v17751_v12  ;;  %11045 = vmatpush3.msra.mxu0 %v13033_v29  ;;  %v2448_v24 = vpop.f32.mrf.mxu0 }
 0x16c   :  { %11088 = vmatpush3.msra.mxu1 %v3760_v63  ;;  %11046 = vmatprep.subr.mxu0 %v17751_v12  ;;  %v3815_v47 = vsub.f32 %v13256_v32, %v3814_v49 }
 0x16d   :  { %11089 = vmatprep.subr.mxu1 %v17751_v12  ;;  %11047 = vmatpush3.msra.mxu0 %v13044_v8 }
 0x16e   :  { %11090 = vmatpush3.msra.mxu1 %v3767_v60  ;;  %11048 = vmatprep.subr.mxu0 %v17751_v12  ;;  %v2540_v6 = vpop.f32.mrf.mxu1  ;;  %v3821_v60 = vand.u32 4294901760, %v13266_v36 }
 0x16f   :  { %11091 = vmatprep.subr.mxu1 %v17751_v12  ;;  %11049 = vmatpush3.msra.mxu0 %v13065_v42  ;;  %v13270_v56 = vadd.f32 %v2540_v6, %v2447_v30  ;;  %v17761_v30 = vld [vmem:[#allocation12_spill] sm:$0xff] }
 0x170   :  { %11092 = vmatpush3.msra.mxu1 %v3774_v27  ;;  %11050 = vmatprep.subr.mxu0 %v17751_v12  ;;  %v2542_v63 = vpop.f32.mrf.mxu1  ;;  %v13293_v24 = vand.u32 4294901760, %v17761_v30  ;;  %v3809_v27 = vand.u32 4294901760, %v3808_v11  ;;  %v3822_v9 = vsub.f32 %v13266_v36, %v3821_v60 }
 0x171   :  { %11093 = vmatprep.subr.mxu1 %v17751_v12  ;;  %11051 = vmatpush3.msra.mxu0 %v13080_v50 }
 0x172   :  { %11094 = vmatpush3.msra.mxu1 %v3781_v18  ;;  %11052 = vmatprep.subr.mxu0 %v17751_v12  ;;  %v3816_v18 = vand.u32 4294901760, %v3815_v47  ;;  %v13306_v20 = vsub.f32 %v17761_v30, %v13293_v24  ;;  %v3823_v6 = vand.u32 4294901760, %v3822_v9  ;;  %v4271_v9 = vstv %s13496_s13  ;;  %s16391_s13 = sld [smem:[#allocation2 + $0x87]] }
 0x173   :  { %11095 = vmatprep.subr.mxu1 %v17751_v12  ;;  %11053 = vmatpush3.msra.mxu0 %v13092_v43 }
 0x174   :  { %11096 = vmatpush3.msra.mxu1 %v3788_v35  ;;  %11054 = vmatprep.subr.mxu0 %v17751_v12  ;;  %v3705_v35 = vand.u32 4294901760, %v13306_v20 }
 0x175   :  { %11097 = vmatprep.subr.mxu1 %v17751_v12  ;;  %11055 = vmatpush3.msra.mxu0 %v13107_v5 }
 0x176   :  { %11098 = vmatpush3.msra.mxu1 %v3795_v10  ;;  %11056 = vmatprep.subr.mxu0 %v17751_v12  ;;  %v3706_v44 = vsub.f32 %v13306_v20, %v3705_v35 }
 0x177   :  { %11099 = vmatprep.subr.mxu1 %v17751_v12  ;;  %11057 = vmatpush3.msra.mxu0 %v13134_v58 }
 0x178   :  { %11100 = vmatpush3.msra.mxu1 %v3802_v57  ;;  %11058 = vmatprep.subr.mxu0 %v17751_v12  ;;  %v3707_v63 = vand.u32 4294901760, %v3706_v44  ;;  %v4279_v44 = vld [vmem:[%s17440_s4 + $0x238] sm:$0xff] }
 0x179   :  { %11101 = vmatprep.subr.mxu1 %v17751_v12  ;;  %11059 = vmatpush3.msra.mxu0 %v13145_v37 }
 0x17a   :  { %11102 = vmatpush3.msra.mxu1 %v3809_v27  ;;  %11060 = vmatprep.subr.mxu0 %v17751_v12 }
 0x17b   :  { %11103 = vmatprep.subr.mxu1 %v17751_v12  ;;  %11061 = vmatpush3.msra.mxu0 %v13168_v33 }
 0x17c   :  { %11104 = vmatpush3.msra.mxu1 %v3816_v18  ;;  %11062 = vmatprep.subr.mxu0 %v17751_v12 }
 0x17d   :  { %11105 = vmatprep.subr.mxu1 %v17751_v12  ;;  %11063 = vmatpush3.msra.mxu0 %v13185_v14 }
 0x17e   :  { %11106 = vmatpush3.msra.mxu1 %v3823_v6  ;;  %11107 = vmatprep.mubr.msk.f32.mxu1 %vm11550_vm1, %v17751_v12 }
 0x17f   :  { %11064 = vmatprep.subr.mxu0 %v17751_v12  ;;  %11108 = vmatmul.mubr.f32.vlgmr.msra.gmra.mxu1 %v13293_v24 }
 0x180   :  { %11145 = vmatprep.subr.mxu1 %v17751_v12  ;;  %11065 = vmatpush3.msra.mxu0 %v13202_v22 }
 0x181   :  { %11146 = vmatpush3.msra.mxu1 %v13008_v61  ;;  %11066 = vmatprep.subr.mxu0 %v17751_v12 }
 0x182   :  { %11147 = vmatprep.subr.mxu1 %v17751_v12  ;;  %11067 = vmatpush3.msra.mxu0 %v13218_v19 }
 0x183   :  { %11148 = vmatpush3.msra.mxu1 %v13019_v31  ;;  %11068 = vmatprep.subr.mxu0 %v17751_v12 }
 0x184   :  { %11149 = vmatprep.subr.mxu1 %v17751_v12  ;;  %11069 = vmatpush3.msra.mxu0 %v13233_v45 }
 0x185   :  { %11150 = vmatpush3.msra.mxu1 %v13033_v29  ;;  %11070 = vmatprep.subr.mxu0 %v17751_v12 }
 0x186   :  { %11151 = vmatprep.subr.mxu1 %v17751_v12  ;;  %11071 = vmatpush3.msra.mxu0 %v13245_v53 }
 0x187   :  { %11072 = vmatprep.mubr.msk.f32.mxu0 %vm11550_vm1, %v17751_v12  ;;  %11152 = vmatpush3.msra.mxu1 %v13044_v8 }
 0x188   :  { %11073 = vmatmul.mubr.f32.vlgmr.msra.gmra.mxu0 %v3707_v63  ;;  %11110 = vmatprep.subr.mxu0 %v17751_v12 }
 0x189   :  { %11153 = vmatprep.subr.mxu1 %v17751_v12  ;;  %11111 = vmatpush3.msra.mxu0 %v13031_v13 }
 0x18a   :  { %11154 = vmatpush3.msra.mxu1 %v13065_v42  ;;  %11112 = vmatprep.subr.mxu0 %v17751_v12 }
 0x18b   :  { %11155 = vmatprep.subr.mxu1 %v17751_v12  ;;  %11113 = vmatpush3.msra.mxu0 %v13042_v0 }
 0x18c   :  { %11156 = vmatpush3.msra.mxu1 %v13080_v50  ;;  %11114 = vmatprep.subr.mxu0 %v17751_v12 }
 0x18d   :  { %11157 = vmatprep.subr.mxu1 %v17751_v12  ;;  %11115 = vmatpush3.msra.mxu0 %v13057_v3  ;;  %v4286_v3 = vld [vmem:[%s17440_s4 + $0x270] sm:$0xff] }
 0x18e   :  { %v2666_v10 = vpop.f32.mrf.mxu0  ;;  %11158 = vmatpush3.msra.mxu1 %v13092_v43  ;;  %11116 = vmatprep.subr.mxu0 %v17751_v12 }
 0x18f   :  { %v2667_v11 = vadd.f32 %v2666_v10, %v13270_v56  ;;  %11159 = vmatprep.subr.mxu1 %v17751_v12  ;;  %11117 = vmatpush3.msra.mxu0 %v13075_v26  ;;  %v13483_v26 = vand.u32 4294901760, %v4286_v3 }
 0x190   :  { %11160 = vmatpush3.msra.mxu1 %v13107_v5  ;;  %11118 = vmatprep.subr.mxu0 %v17751_v12  ;;  %v2668_v57 = vpop.f32.mrf.mxu0 }
 0x191   :  { %11161 = vmatprep.subr.mxu1 %v17751_v12  ;;  %11119 = vmatpush3.msra.mxu0 %v13098_v46  ;;  %v4264_v46 = vstv %s13438_s25  ;;  %v4278_v57 = vld [vmem:[%s17440_s4 + $0x230] sm:$0xff] }
 0x192   :  { %11162 = vmatpush3.msra.mxu1 %v13134_v58  ;;  %11120 = vmatprep.subr.mxu0 %v17751_v12 }
 0x193   :  { %v2756_v47 = vpop.f32.mrf.mxu1  ;;  %11163 = vmatprep.subr.mxu1 %v17751_v12  ;;  %11121 = vmatpush3.msra.mxu0 %v13116_v15 }
 0x194   :  { %v13361_v30 = vadd.f32 %v2756_v47, %v2667_v11  ;;  %11164 = vmatpush3.msra.mxu1 %v13145_v37  ;;  %11122 = vmatprep.subr.mxu0 %v17751_v12 }
 0x195   :  { %v2758_v56 = vpop.f32.mrf.mxu1  ;;  %11165 = vmatprep.subr.mxu1 %v17751_v12  ;;  %11123 = vmatpush3.msra.mxu0 %v13128_v39  ;;  %v4283_v39 = vld [vmem:[%s17440_s4 + $0x258] sm:$0xff] }
 0x196   :  { %11166 = vmatpush3.msra.mxu1 %v13168_v33  ;;  %11124 = vmatprep.subr.mxu0 %v17751_v12 }
 0x197   :  { %11167 = vmatprep.subr.mxu1 %v17751_v12  ;;  %11125 = vmatpush3.msra.mxu0 %v13143_v59  ;;  %v4282_v59 = vld [vmem:[%s17440_s4 + $0x250] sm:$0xff] }
 0x198   :  { %11168 = vmatpush3.msra.mxu1 %v13185_v14  ;;  %11126 = vmatprep.subr.mxu0 %v17751_v12 }
 0x199   :  { %11169 = vmatprep.subr.mxu1 %v17751_v12  ;;  %11127 = vmatpush3.msra.mxu0 %v13166_v40 }
 0x19a   :  { %11170 = vmatpush3.msra.mxu1 %v13202_v22  ;;  %11128 = vmatprep.subr.mxu0 %v17751_v12 }
 0x19b   :  { %11171 = vmatprep.subr.mxu1 %v17751_v12  ;;  %11129 = vmatpush3.msra.mxu0 %v13174_v25 }
 0x19c   :  { %11172 = vmatpush3.msra.mxu1 %v13218_v19  ;;  %11130 = vmatprep.subr.mxu0 %v17751_v12 }
 0x19d   :  { %11173 = vmatprep.subr.mxu1 %v17751_v12  ;;  %11131 = vmatpush3.msra.mxu0 %v13200_v1  ;;  %v13544_v1 = vand.u32 4294901760, %v4282_v59 }
 0x19e   :  { %11174 = vmatpush3.msra.mxu1 %v13233_v45  ;;  %11132 = vmatprep.subr.mxu0 %v17751_v12 }
 0x19f   :  { %11175 = vmatprep.subr.mxu1 %v17751_v12  ;;  %11133 = vmatpush3.msra.mxu0 %v13216_v54  ;;  %v13576_v6 = vsub.f32 %v4282_v59, %v13544_v1  ;;  %v4275_v59 = vld [vmem:[%s17440_s4 + $0x218] sm:$0xff] }
 0x1a0   :  { %11176 = vmatpush3.msra.mxu1 %v13245_v53  ;;  %11177 = vmatprep.mubr.msk.f32.mxu1 %vm11550_vm1, %v17751_v12 }
 0x1a1   :  { %11134 = vmatprep.subr.mxu0 %v17751_v12  ;;  %11178 = vmatmul.mubr.f32.vlgmr.msra.gmra.mxu1 %v3705_v35  ;;  %v17549_v56 = vand.u32 4294901760, %v13576_v6 }
 0x1a2   :  { %11215 = vmatprep.subr.mxu1 %v17751_v12  ;;  %11135 = vmatpush3.msra.mxu0 %v13231_v2 }
 0x1a3   :  { %11216 = vmatpush3.msra.mxu1 %v13008_v61  ;;  %11136 = vmatprep.subr.mxu0 %v17751_v12  ;;  %v4289_v61 = vld [vmem:[%s17440_s4 + $0x288] sm:$0xff] }
 0x1a4   :  { %11217 = vmatprep.subr.mxu1 %v17751_v12  ;;  %11137 = vmatpush3.msra.mxu0 %v13243_v4  ;;  %v13442_v13 = vand.u32 4294901760, %v4289_v61 }
 0x1a5   :  { %11218 = vmatpush3.msra.mxu1 %v13019_v31  ;;  %11138 = vmatprep.subr.mxu0 %v17751_v12  ;;  %v4288_v31 = vld [vmem:[%s17440_s4 + $0x280] sm:$0xff] }
 0x1a6   :  { %11219 = vmatprep.subr.mxu1 %v17751_v12  ;;  %11139 = vmatpush3.msra.mxu0 %v13256_v32  ;;  %v13454_v0 = vand.u32 4294901760, %v4288_v31 }
 0x1a7   :  { %11220 = vmatpush3.msra.mxu1 %v13033_v29  ;;  %11140 = vmatprep.subr.mxu0 %v17751_v12  ;;  %v4287_v29 = vld [vmem:[%s17440_s4 + $0x278] sm:$0xff] }
 0x1a8   :  { %11221 = vmatprep.subr.mxu1 %v17751_v12  ;;  %11141 = vmatpush3.msra.mxu0 %v13266_v36 }
 0x1a9   :  { %11142 = vmatprep.mubr.msk.f32.mxu0 %vm11550_vm1, %v17751_v12  ;;  %11222 = vmatpush3.msra.mxu1 %v13044_v8  ;;  %v13462_v8 = vsub.f32 %v4289_v61, %v13442_v13 }
 0x1aa   :  { %11143 = vmatmul.mubr.f32.vlgmr.msra.gmra.mxu0 %v13306_v20  ;;  %11180 = vmatprep.subr.mxu0 %v17751_v12 }
 0x1ab   :  { %11223 = vmatprep.subr.mxu1 %v17751_v12  ;;  %11181 = vmatpush3.msra.mxu0 %v3716_v23  ;;  %v13464_v23 = vand.u32 4294901760, %v4287_v29 }
 0x1ac   :  { %11224 = vmatpush3.msra.mxu1 %v13065_v42  ;;  %11182 = vmatprep.subr.mxu0 %v17751_v12  ;;  %v13475_v42 = vsub.f32 %v4288_v31, %v13454_v0  ;;  %v4277_v31 = vld [vmem:[%s17440_s4 + $0x228] sm:$0xff] }
 0x1ad   :  { %11225 = vmatprep.subr.mxu1 %v17751_v12  ;;  %11183 = vmatpush3.msra.mxu0 %v3723_v28  ;;  %v4285_v28 = vld [vmem:[%s17440_s4 + $0x268] sm:$0xff]  ;;  %v13637_v36 = vand.u32 4294901760, %v4277_v31 }
 0x1ae   :  { %11226 = vmatpush3.msra.mxu1 %v13080_v50  ;;  %11184 = vmatprep.subr.mxu0 %v17751_v12  ;;  %v4397_v50 = vand.u32 4294901760, %v13462_v8  ;;  %v4404_v15 = vand.u32 4294901760, %v13475_v42 }
 0x1af   :  { %11227 = vmatprep.subr.mxu1 %v17751_v12  ;;  %11185 = vmatpush3.msra.mxu0 %v3730_v55  ;;  %v13489_v55 = vsub.f32 %v4287_v29, %v13464_v23 }
 0x1b0   :  { %11228 = vmatpush3.msra.mxu1 %v13092_v43  ;;  %11186 = vmatprep.subr.mxu0 %v17751_v12  ;;  %v4284_v43 = vld [vmem:[%s17440_s4 + $0x260] sm:$0xff] }
 0x1b1   :  { %11229 = vmatprep.subr.mxu1 %v17751_v12  ;;  %11187 = vmatpush3.msra.mxu0 %v3737_v34  ;;  %v4267_v34 = vstv %s13444_s26  ;;  %s14427_s26 = sld [smem:[#allocation2 + $0x3]] }
 0x1b2   :  { %11230 = vmatpush3.msra.mxu1 %v13107_v5  ;;  %11188 = vmatprep.subr.mxu0 %v17751_v12  ;;  %v13501_v5 = vand.u32 4294901760, %v4285_v28 }
 0x1b3   :  { %11231 = vmatprep.subr.mxu1 %v17751_v12  ;;  %11189 = vmatpush3.msra.mxu0 %v3744_v51  ;;  %v13513_v51 = vsub.f32 %v4286_v3, %v13483_v26 }
 0x1b4   :  { %11232 = vmatpush3.msra.mxu1 %v13134_v58  ;;  %11190 = vmatprep.subr.mxu0 %v17751_v12  ;;  %v13515_v58 = vand.u32 4294901760, %v4284_v43  ;;  %v13532_v25 = vsub.f32 %v4285_v28, %v13501_v5 }
 0x1b5   :  { %11233 = vmatprep.subr.mxu1 %v17751_v12  ;;  %11191 = vmatpush3.msra.mxu0 %v3751_v52 }
 0x1b6   :  { %11234 = vmatpush3.msra.mxu1 %v13145_v37  ;;  %11192 = vmatprep.subr.mxu0 %v17751_v12  ;;  %v17762_v37 = vld [vmem:[#allocation5_spill] sm:$0xff]  ;;  %v4425_v18 = vand.u32 4294901760, %v13532_v25 }
 0x1b7   :  { %11235 = vmatprep.subr.mxu1 %v17751_v12  ;;  %11193 = vmatpush3.msra.mxu0 %v3758_v62  ;;  %v4265_v52 = vmul.f32 %v4264_v46, %v17762_v37  ;;  %v17763_v62 = vld [vmem:[#allocation6_spill] sm:$0xff] }
 0x1b8   :  { %11236 = vmatpush3.msra.mxu1 %v13168_v33  ;;  %11194 = vmatprep.subr.mxu0 %v17751_v12  ;;  %v4268_v40 = vmul.f32 %v4267_v34, %v17763_v62  ;;  %v4398_v33 = vsub.f32 %v13462_v8, %v4397_v50  ;;  %v4426_v47 = vsub.f32 %v13532_v25, %v4425_v18 }
 0x1b9   :  { %11237 = vmatprep.subr.mxu1 %v17751_v12  ;;  %11195 = vmatpush3.msra.mxu0 %v3765_v17  ;;  %v4411_v17 = vand.u32 4294901760, %v13489_v55 }
 0x1ba   :  { %11238 = vmatpush3.msra.mxu1 %v13185_v14  ;;  %11196 = vmatprep.subr.mxu0 %v17751_v12  ;;  %v13534_v14 = vand.u32 4294901760, %v4283_v39  ;;  %v4399_v27 = vand.u32 4294901760, %v4398_v33  ;;  %v4427_v46 = vand.u32 4294901760, %v4426_v47 }
 0x1bb   :  { %11239 = vmatprep.subr.mxu1 %v17751_v12  ;;  %11197 = vmatpush3.msra.mxu0 %v3772_v41  ;;  %v4281_v41 = vld [vmem:[%s17440_s4 + $0x248] sm:$0xff]  ;;  %v4412_v54 = vsub.f32 %v13489_v55, %v4411_v17 }
 0x1bc   :  { %11240 = vmatpush3.msra.mxu1 %v13202_v22  ;;  %11198 = vmatprep.subr.mxu0 %v17751_v12  ;;  %v4405_v22 = vsub.f32 %v13475_v42, %v4404_v15  ;;  %v13569_v20 = vsub.f32 %v4283_v39, %v13534_v14 }
 0x1bd   :  { %11241 = vmatprep.subr.mxu1 %v17751_v12  ;;  %11199 = vmatpush3.msra.mxu0 %v3779_v16  ;;  %v4418_v16 = vand.u32 4294901760, %v13513_v51  ;;  %v4413_v10 = vand.u32 4294901760, %v4412_v54  ;;  %v13667_v54 = vsub.f32 %v4277_v31, %v13637_v36 }
 0x1be   :  { %11242 = vmatpush3.msra.mxu1 %v13218_v19  ;;  %11200 = vmatprep.subr.mxu0 %v17751_v12  ;;  %v13551_v19 = vsub.f32 %v4284_v43, %v13515_v58  ;;  %v17550_v4 = vand.u32 4294901760, %v13569_v20  ;;  %v4276_v43 = vld [vmem:[%s17440_s4 + $0x220] sm:$0xff] }
 0x1bf   :  { %11243 = vmatprep.subr.mxu1 %v17751_v12  ;;  %11201 = vmatpush3.msra.mxu0 %v3786_v7  ;;  %v4280_v7 = vld [vmem:[%s17440_s4 + $0x240] sm:$0xff]  ;;  %v4419_v2 = vsub.f32 %v13513_v51, %v4418_v16  ;;  %v13652_v33 = vand.u32 4294901760, %v4276_v43 }
 0x1c0   :  { %11244 = vmatpush3.msra.mxu1 %v13233_v45  ;;  %11202 = vmatprep.subr.mxu0 %v17751_v12  ;;  %v4269_v45 = vadd.f32 %v4268_v40, %v4265_v52  ;;  %v13578_v35 = vand.u32 4294901760, %v4280_v7  ;;  %v4440_v34 = vsub.f32 %v13569_v20, %v17550_v4 }
 0x1c1   :  { %11245 = vmatprep.subr.mxu1 %v17751_v12  ;;  %11203 = vmatpush3.msra.mxu0 %v3793_v48  ;;  %v13562_v48 = vand.u32 4294901760, %v4281_v41  ;;  %v4420_v29 = vand.u32 4294901760, %v4419_v2  ;;  %v4291_v2 = vld [vmem:[%s17440_s4 + $0x298] sm:$0xff] }
 0x1c2   :  { %11246 = vmatpush3.msra.mxu1 %v13245_v53  ;;  %11247 = vmatprep.mubr.msk.f32.mxu1 %vm11550_vm1, %v17751_v12  ;;  %v4406_v53 = vand.u32 4294901760, %v4405_v22  ;;  %v4272_v63 = vadd.f32 %v4271_v9, %v4269_v45  ;;  %v13609_v61 = vsub.f32 %v4280_v7, %v13578_v35  ;;  %v4274_v7 = vld [vmem:[%s17440_s4 + $0x210] sm:$0xff]  ;;  %v4441_v45 = vand.u32 4294901760, %v4440_v34 }
 0x1c3   :  { %11204 = vmatprep.subr.mxu0 %v17751_v12  ;;  %11248 = vmatmul.mubr.f32.vlgmr.msra.gmra.mxu1 %v13293_v24  ;;  %v13592_v11 = vsub.f32 %v4281_v41, %v13562_v48  ;;  %v13669_v9 = vand.u32 4294901760, %v4275_v59  ;;  %v4290_v34 = vld [vmem:[%s17440_s4 + $0x290] sm:$0xff] }
 0x1c4   :  { %11205 = vmatpush3.msra.mxu0 %v3800_v21  ;;  %11212 = vmatprep.mubr.msk.f32.mxu0 %vm11550_vm1, %v17751_v12  ;;  %v4432_v21 = vand.u32 4294901760, %v13551_v19  ;;  %v13621_v3 = vmax.f32 %v4272_v63, 0.0 }
 0x1c5   :  { %11206 = vmatprep.subr.mxu0 %v17751_v12  ;;  %4394 = vmatprep.subr.mxu1 %v17751_v12  ;;  %v17548_v28 = vand.u32 4294901760, %v13592_v11 }
 0x1c6   :  { %11207 = vmatpush3.msra.mxu0 %v3807_v38  ;;  %4400 = vmatpush1.msra.mxu1 %v4399_v27  ;;  %v13603_v38 = vand.u32 4294901760, %v4279_v44  ;;  %v4433_v32 = vsub.f32 %v13551_v19, %v4432_v21  ;;  %v4293_v41 = vcombine.high %v13621_v3, %v13621_v3 }
 0x1c7   :  { %11208 = vmatprep.subr.mxu0 %v17751_v12  ;;  %4401 = vmatprep.subr.mxu1 %v17751_v12  ;;  %v4454_v22 = vsub.f32 %v13592_v11, %v17548_v28 }
 0x1c8   :  { %11209 = vmatpush3.msra.mxu0 %v3814_v49  ;;  %4407 = vmatpush1.msra.mxu1 %v4406_v53  ;;  %v13619_v49 = vand.u32 4294901760, %v4278_v57  ;;  %v13635_v39 = vsub.f32 %v4279_v44, %v13603_v38  ;;  %v4434_v52 = vand.u32 4294901760, %v4433_v32  ;;  %v4294_v47 = vsel %vm70_vm0, %v4293_v41, 0 }
 0x1c9   :  { %11210 = vmatprep.subr.mxu0 %v17751_v12  ;;  %4408 = vmatprep.subr.mxu1 %v17751_v12  ;;  %v4455_v31 = vand.u32 4294901760, %v4454_v22  ;;  %v17544_v32 = vand.u32 4294901760, %v13667_v54 }
 0x1ca   :  { %11211 = vmatpush3.msra.mxu0 %v3821_v60  ;;  %4414 = vmatpush1.msra.mxu1 %v4413_v10  ;;  %v4447_v60 = vsub.f32 %v13576_v6, %v17549_v56  ;;  %v13650_v40 = vsub.f32 %v4278_v57, %v13619_v49  ;;  %v17543_v27 = vand.u32 4294901760, %v13635_v39  ;;  %v13682_v10 = vsub.f32 %v4276_v43, %v13652_v33 }
 0x1cb   :  { %11213 = vmatmul.mubr.f32.vlgmr.msra.gmra.mxu0 %v13293_v24  ;;  %4296 = vmatprep.subr.mxu0 %v17751_v12  ;;  %v17545_v24 = vand.u32 4294901760, %v13609_v61  ;;  %v13684_v57 = vand.u32 4294901760, %v4274_v7  ;;  %v13695_v43 = vsub.f32 %v4275_v59, %v13669_v9 }
 0x1cc   :  { %4298 = vmatpush1.msra.mxu0 %v13442_v13  ;;  %4415 = vmatprep.subr.mxu1 %v17751_v12  ;;  %v4448_v53 = vand.u32 4294901760, %v4447_v60  ;;  %v17542_v63 = vand.u32 4294901760, %v13650_v40  ;;  %v13704_v60 = vand.u32 4294901760, %v4294_v47  ;;  %v17546_v41 = vand.u32 4294901760, %v13682_v10 }
 0x1cd   :  { %4299 = vmatprep.subr.mxu0 %v17751_v12  ;;  %4421 = vmatpush1.msra.mxu1 %v4420_v29  ;;  %v4461_v44 = vsub.f32 %v13609_v61, %v17545_v24  ;;  %v4468_v29 = vsub.f32 %v13635_v39, %v17543_v27  ;;  %v13712_v22 = vsub.f32 %v4274_v7, %v13684_v57 }
 0x1ce   :  { %4301 = vmatpush1.msra.mxu0 %v13454_v0  ;;  %4422 = vmatprep.subr.mxu1 %v17751_v12  ;;  %v4475_v59 = vsub.f32 %v13650_v40, %v17542_v63  ;;  %v17547_v63 = vand.u32 4294901760, %v13695_v43  ;;  %v13729_v7 = vsub.f32 %v4294_v47, %v13704_v60 }
 0x1cf   :  { %4302 = vmatprep.subr.mxu0 %v17751_v12  ;;  %4428 = vmatpush1.msra.mxu1 %v4427_v46  ;;  %v13697_v46 = vand.u32 4294901760, %v4291_v2 }
 0x1d0   :  { %4304 = vmatpush1.msra.mxu0 %v13464_v23  ;;  %4429 = vmatprep.subr.mxu1 %v17751_v12 }
 0x1d1   :  { %4305 = vmatprep.subr.mxu0 %v17751_v12  ;;  %4435 = vmatpush1.msra.mxu1 %v4434_v52  ;;  %v4462_v52 = vand.u32 4294901760, %v4461_v44  ;;  %v4482_v44 = vsub.f32 %v13667_v54, %v17544_v32  ;;  %v13724_v27 = vsub.f32 %v4291_v2, %v13697_v46  ;;  %v17553_v32 = vand.u32 4294901760, %v13712_v22 }
 0x1d2   :  { %4307 = vmatpush1.msra.mxu0 %v13483_v26  ;;  %4436 = vmatprep.subr.mxu1 %v17751_v12 }
 0x1d3   :  { %4308 = vmatprep.subr.mxu0 %v17751_v12  ;;  %4442 = vmatpush1.msra.mxu1 %v4441_v45  ;;  %v13716_v45 = vand.u32 4294901760, %v4290_v34  ;;  %v4483_v24 = vand.u32 4294901760, %v4482_v44 }
 0x1d4   :  { %4310 = vmatpush1.msra.mxu0 %v13501_v5  ;;  %4443 = vmatprep.subr.mxu1 %v17751_v12 }
 0x1d5   :  { %4311 = vmatprep.subr.mxu0 %v17751_v12  ;;  %4449 = vmatpush1.msra.mxu1 %v4448_v53  ;;  %v4469_v53 = vand.u32 4294901760, %v4468_v29  ;;  %v4489_v29 = vsub.f32 %v13682_v10, %v17546_v41  ;;  %v13739_v2 = vsub.f32 %v4290_v34, %v13716_v45  ;;  %v13747_v41 = vand.u32 4294901760, %v13621_v3 }
 0x1d6   :  { %4313 = vmatpush1.msra.mxu0 %v13515_v58  ;;  %4450 = vmatprep.subr.mxu1 %v17751_v12  ;;  %v4380_v34 = vand.u32 4294901760, %v13729_v7 }
 0x1d7   :  { %4314 = vmatprep.subr.mxu0 %v17751_v12  ;;  %4456 = vmatpush1.msra.mxu1 %v4455_v31  ;;  %v4476_v31 = vand.u32 4294901760, %v4475_v59  ;;  %v17551_v59 = vand.u32 4294901760, %v13724_v27  ;;  %v4490_v44 = vand.u32 4294901760, %v4489_v29  ;;  %v17552_v56 = vand.u32 4294901760, %v13739_v2 }
 0x1d8   :  { %4316 = vmatpush1.msra.mxu0 %v13534_v14  ;;  %4457 = vmatprep.subr.mxu1 %v17751_v12  ;;  %v13765_v29 = vsub.f32 %v13621_v3, %v13747_v41 }
 0x1d9   :  { %4317 = vmatprep.subr.mxu0 %v17751_v12  ;;  %4463 = vmatpush1.msra.mxu1 %v4462_v52  ;;  %v4496_v52 = vsub.f32 %v13695_v43, %v17547_v63  ;;  %v4503_v63 = vsub.f32 %v13712_v22, %v17553_v32  ;;  %v4545_v3 = vsub.f32 %v13739_v2, %v17552_v56 }
 0x1da   :  { %4319 = vmatpush1.msra.mxu0 %v13544_v1  ;;  %4464 = vmatprep.subr.mxu1 %v17751_v12 }
 0x1db   :  { %4320 = vmatprep.subr.mxu0 %v17751_v12  ;;  %4470 = vmatpush1.msra.mxu1 %v4469_v53  ;;  %v10579_v47 = vpop.f32.mrf.mxu1  ;;  %v4497_v4 = vand.u32 4294901760, %v4496_v52  ;;  %v4546_v32 = vand.u32 4294901760, %v4545_v3 }
 0x1dc   :  { %4322 = vmatpush1.msra.mxu0 %v13562_v48  ;;  %4471 = vmatprep.subr.mxu1 %v17751_v12 }
 0x1dd   :  { %4323 = vmatprep.subr.mxu0 %v17751_v12  ;;  %4477 = vmatpush1.msra.mxu1 %v4476_v31  ;;  %v10580_v53 = vpop.f32.mrf.mxu1  ;;  %v4538_v31 = vsub.f32 %v13724_v27, %v17551_v59  ;;  %v4386_v59 = vand.u32 4294901760, %v13765_v29 }
 0x1de   :  { %4325 = vmatpush1.msra.mxu0 %v13578_v35  ;;  %4478 = vmatprep.subr.mxu1 %v17751_v12  ;;  %v10581_v28 = vadd.f32 %v10580_v53, %v10579_v47  ;;  %v4381_v47 = vsub.f32 %v13729_v7, %v4380_v34 }
 0x1df   :  { %4326 = vmatprep.subr.mxu0 %v17751_v12  ;;  %4484 = vmatpush1.msra.mxu1 %v4483_v24  ;;  %v4504_v24 = vand.u32 4294901760, %v4503_v63  ;;  %v4539_v53 = vand.u32 4294901760, %v4538_v31 }
 0x1e0   :  { %4328 = vmatpush1.msra.mxu0 %v13603_v38  ;;  %4485 = vmatprep.subr.mxu1 %v17751_v12  ;;  %v4382_v63 = vand.u32 4294901760, %v4381_v47 }
 0x1e1   :  { %4329 = vmatprep.subr.mxu0 %v17751_v12  ;;  %4491 = vmatpush1.msra.mxu1 %v4490_v44 }
 0x1e2   :  { %4331 = vmatpush1.msra.mxu0 %v13619_v49  ;;  %4492 = vmatprep.subr.mxu1 %v17751_v12 }
 0x1e3   :  { %4332 = vmatprep.subr.mxu0 %v17751_v12  ;;  %4498 = vmatpush1.msra.mxu1 %v4497_v4  ;;  %v10544_v52 = vpop.f32.mrf.mxu0  ;;  %v4387_v4 = vsub.f32 %v13765_v29, %v4386_v59 }
 0x1e4   :  { %4334 = vmatpush1.msra.mxu0 %v13637_v36  ;;  %4499 = vmatprep.subr.mxu1 %v17751_v12 }
 0x1e5   :  { %4335 = vmatprep.subr.mxu0 %v17751_v12  ;;  %4505 = vmatpush1.msra.mxu1 %v4504_v24  ;;  %v10545_v44 = vpop.f32.mrf.mxu0  ;;  %v4388_v24 = vand.u32 4294901760, %v4387_v4 }
 0x1e6   :  { %4337 = vmatpush1.msra.mxu0 %v13652_v33  ;;  %4534 = vmatprep.subr.mxu1 %v17751_v12  ;;  %v10546_v56 = vadd.f32 %v10545_v44, %v10544_v52 }
 0x1e7   :  { %4338 = vmatprep.subr.mxu0 %v17751_v12  ;;  %4540 = vmatpush2.msra.mxu1 %v4539_v53 }
 0x1e8   :  { %4340 = vmatpush1.msra.mxu0 %v13669_v9  ;;  %v2869_v31 = vadd.f32 %v10546_v56, %v13361_v30  ;;  %4383 = vmatprep.mubr.f32.mxu0 %v4382_v63 }
 0x1e9   :  { %4341 = vmatprep.subr.mxu0 %v17751_v12  ;;  %4541 = vmatprep.subr.mxu1 %v17751_v12 }
 0x1ea   :  { %4343 = vmatpush1.msra.mxu0 %v13684_v57  ;;  %4547 = vmatpush2.msra.mxu1 %v4546_v32  ;;  %v13794_v47 = vadd.f32 %v10581_v28, %v2869_v31  ;;  %v17773_v31 = vand.u32 4294901760, %v13712_v22 }
 0x1eb   :  { %4372 = vmatprep.subr.mxu0 %v17751_v12  ;;  %4549 = vmatprep.mubr.f32.mxu1 %v13704_v60 }
 0x1ec   :  { %4374 = vmatpush2.msra.mxu0 %v13697_v46  ;;  %4666 = vmatprep.subr.mxu1 %v17751_v12 }
 0x1ed   :  { %4375 = vmatprep.subr.mxu0 %v17751_v12  ;;  %4551 = vmatmul.mubr.f32.vlgmr.msra.gmra.mxu1 %v13747_v41 }
 0x1ee   :  { %4377 = vmatpush2.msra.mxu0 %v13716_v45  ;;  %4668 = vmatpush1.msra.mxu1 %v13442_v13 }
 0x1ef   :  { %4389 = vmatmul.mubr.f32.vlgmr.msra.gmra.mxu0 %v4388_v24  ;;  %4556 = vmatprep.subr.mxu0 %v17751_v12 }
 0x1f0   :  { %4559 = vmatpush1.msra.mxu0 %v13462_v8  ;;  %4669 = vmatprep.subr.mxu1 %v17751_v12  ;;  %v17764_v8 = vand.u32 4294901760, %v13569_v20 }
 0x1f1   :  { %4560 = vmatprep.subr.mxu0 %v17751_v12  ;;  %4671 = vmatpush1.msra.mxu1 %v13454_v0 }
 0x1f2   :  { %4563 = vmatpush1.msra.mxu0 %v13475_v42  ;;  %4672 = vmatprep.subr.mxu1 %v17751_v12  ;;  %v17765_v42 = vand.u32 4294901760, %v13576_v6 }
 0x1f3   :  { %4564 = vmatprep.subr.mxu0 %v17751_v12  ;;  %4674 = vmatpush1.msra.mxu1 %v13464_v23 }
 0x1f4   :  { %4567 = vmatpush1.msra.mxu0 %v13489_v55  ;;  %4675 = vmatprep.subr.mxu1 %v17751_v12 }
 0x1f5   :  { %4568 = vmatprep.subr.mxu0 %v17751_v12  ;;  %4677 = vmatpush1.msra.mxu1 %v13483_v26 }
 0x1f6   :  { %4571 = vmatpush1.msra.mxu0 %v13513_v51  ;;  %4678 = vmatprep.subr.mxu1 %v17751_v12 }
 0x1f7   :  { %4572 = vmatprep.subr.mxu0 %v17751_v12  ;;  %4680 = vmatpush1.msra.mxu1 %v13501_v5 }
 0x1f8   :  { %4575 = vmatpush1.msra.mxu0 %v13532_v25  ;;  %4681 = vmatprep.subr.mxu1 %v17751_v12 }
 0x1f9   :  { %4576 = vmatprep.subr.mxu0 %v17751_v12  ;;  %4683 = vmatpush1.msra.mxu1 %v13515_v58 }
 0x1fa   :  { %4579 = vmatpush1.msra.mxu0 %v13551_v19  ;;  %4684 = vmatprep.subr.mxu1 %v17751_v12 }
 0x1fb   :  { %4580 = vmatprep.subr.mxu0 %v17751_v12  ;;  %4686 = vmatpush1.msra.mxu1 %v13534_v14 }
 0x1fc   :  { %4583 = vmatpush1.msra.mxu0 %v13569_v20  ;;  %4687 = vmatprep.subr.mxu1 %v17751_v12  ;;  %v10649_v30 = vpop.f32.mrf.mxu1 }
 0x1fd   :  { %4584 = vmatprep.subr.mxu0 %v17751_v12  ;;  %4689 = vmatpush1.msra.mxu1 %v13544_v1 }
 0x1fe   :  { %4587 = vmatpush1.msra.mxu0 %v13576_v6  ;;  %4690 = vmatprep.subr.mxu1 %v17751_v12  ;;  %v10650_v56 = vpop.f32.mrf.mxu1  ;;  %v17770_v6 = vand.u32 4294901760, %v13667_v54 }
 0x1ff   :  { %4588 = vmatprep.subr.mxu0 %v17751_v12  ;;  %4692 = vmatpush1.msra.mxu1 %v13562_v48  ;;  %v10651_v28 = vadd.f32 %v10650_v56, %v10649_v30  ;;  %v17774_v56 = vand.u32 4294901760, %v13724_v27 }
 0x200   :  { %4591 = vmatpush1.msra.mxu0 %v13592_v11  ;;  %4693 = vmatprep.subr.mxu1 %v17751_v12 }
 0x201   :  { %4592 = vmatprep.subr.mxu0 %v17751_v12  ;;  %4695 = vmatpush1.msra.mxu1 %v13578_v35 }
 0x202   :  { %4595 = vmatpush1.msra.mxu0 %v13609_v61  ;;  %4696 = vmatprep.subr.mxu1 %v17751_v12 }
 0x203   :  { %4596 = vmatprep.subr.mxu0 %v17751_v12  ;;  %4698 = vmatpush1.msra.mxu1 %v13603_v38 }
 0x204   :  { %4599 = vmatpush1.msra.mxu0 %v13635_v39  ;;  %4699 = vmatprep.subr.mxu1 %v17751_v12  ;;  %v10614_v32 = vpop.f32.mrf.mxu0 }
 0x205   :  { %4600 = vmatprep.subr.mxu0 %v17751_v12  ;;  %4701 = vmatpush1.msra.mxu1 %v13619_v49 }
 0x206   :  { %4603 = vmatpush1.msra.mxu0 %v13650_v40  ;;  %4702 = vmatprep.subr.mxu1 %v17751_v12  ;;  %v10615_v3 = vpop.f32.mrf.mxu0 }
 0x207   :  { %4604 = vmatprep.subr.mxu0 %v17751_v12  ;;  %4704 = vmatpush1.msra.mxu1 %v13637_v36  ;;  %v10616_v52 = vadd.f32 %v10615_v3, %v10614_v32 }
 0x208   :  { %4607 = vmatpush1.msra.mxu0 %v13667_v54  ;;  %4705 = vmatprep.subr.mxu1 %v17751_v12 }
 0x209   :  { %4608 = vmatprep.subr.mxu0 %v17751_v12  ;;  %4707 = vmatpush1.msra.mxu1 %v13652_v33  ;;  %v3239_v53 = vadd.f32 %v10616_v52, %v13794_v47 }
 0x20a   :  { %4611 = vmatpush1.msra.mxu0 %v13682_v10  ;;  %4708 = vmatprep.subr.mxu1 %v17751_v12 }
 0x20b   :  { %4612 = vmatprep.subr.mxu0 %v17751_v12  ;;  %4710 = vmatpush1.msra.mxu1 %v13669_v9  ;;  %v13862_v63 = vadd.f32 %v10651_v28, %v3239_v53  ;;  %v17775_v53 = vand.u32 4294901760, %v13739_v2 }
 0x20c   :  { %4615 = vmatpush1.msra.mxu0 %v13695_v43  ;;  %4711 = vmatprep.subr.mxu1 %v17751_v12 }
 0x20d   :  { %4616 = vmatprep.subr.mxu0 %v17751_v12  ;;  %4713 = vmatpush1.msra.mxu1 %v13684_v57 }
 0x20e   :  { %4619 = vmatpush1.msra.mxu0 %v13712_v22  ;;  %4742 = vmatprep.subr.mxu1 %v17751_v12  ;;  %v4995_v22 = vld [vmem:[%s17440_s4 + $0x2d8] sm:$0xff] }
 0x20f   :  { %4648 = vmatprep.subr.mxu0 %v17751_v12  ;;  %4744 = vmatpush2.msra.mxu1 %v13697_v46 }
 0x210   :  { %4651 = vmatpush2.msra.mxu0 %v13724_v27  ;;  %4658 = vmatprep.mubr.f32.mxu0 %v13729_v7  ;;  %v17772_v7 = vand.u32 4294901760, %v13695_v43  ;;  %v4996_v43 = vld [vmem:[%s17440_s4 + $0x2e0] sm:$0xff]  ;;  %v4994_v27 = vld [vmem:[%s17440_s4 + $0x2d0] sm:$0xff] }
 0x211   :  { %4652 = vmatprep.subr.mxu0 %v17751_v12  ;;  %4745 = vmatprep.subr.mxu1 %v17751_v12 }
 0x212   :  { %4655 = vmatpush2.msra.mxu0 %v13739_v2  ;;  %4747 = vmatpush2.msra.mxu1 %v13716_v45 }
 0x213   :  { %4661 = vmatmul.mubr.f32.vlgmr.msra.gmra.mxu0 %v13765_v29  ;;  %4760 = vmatprep.subr.mxu0 %v17751_v12 }
 0x214   :  { %4751 = vmatprep.mubr.f32.mxu1 %v4380_v34  ;;  %4764 = vmatpush1.msra.mxu0 %v4397_v50  ;;  %v5003_v50 = vld [vmem:[%s17440_s4 + $0x318] sm:$0xff]  ;;  %v4997_v34 = vld [vmem:[%s17440_s4 + $0x2e8] sm:$0xff] }
 0x215   :  { %4886 = vmatprep.subr.mxu1 %v17751_v12  ;;  %4755 = vmatmul.mubr.f32.vlgmr.msra.gmra.mxu1 %v4386_v59  ;;  %v14034_v30 = vand.u32 4294901760, %v4997_v34 }
 0x216   :  { %4765 = vmatprep.subr.mxu0 %v17751_v12  ;;  %4888 = vmatpush1.msra.mxu1 %v13442_v13 }
 0x217   :  { %4769 = vmatpush1.msra.mxu0 %v4404_v15  ;;  %4889 = vmatprep.subr.mxu1 %v17751_v12  ;;  %v17767_v15 = vand.u32 4294901760, %v13609_v61  ;;  %v17771_v61 = vand.u32 4294901760, %v13682_v10 }
 0x218   :  { %4770 = vmatprep.subr.mxu0 %v17751_v12  ;;  %4891 = vmatpush1.msra.mxu1 %v13454_v0 }
 0x219   :  { %4774 = vmatpush1.msra.mxu0 %v4411_v17  ;;  %4892 = vmatprep.subr.mxu1 %v17751_v12  ;;  %v17768_v17 = vand.u32 4294901760, %v13635_v39  ;;  %v4978_v39 = vstv %s13935_s15 }
 0x21a   :  { %4775 = vmatprep.subr.mxu0 %v17751_v12  ;;  %4894 = vmatpush1.msra.mxu1 %v13464_v23  ;;  %v4979_v44 = vmul.f32 %v4978_v39, %v17762_v37 }
 0x21b   :  { %4779 = vmatpush1.msra.mxu0 %v4418_v16  ;;  %4895 = vmatprep.subr.mxu1 %v17751_v12  ;;  %v17769_v16 = vand.u32 4294901760, %v13650_v40  ;;  %v4981_v40 = vstv %s13940_s16  ;;  %s14916_s16 = sld [smem:[#allocation2 + $0x4]] }
 0x21c   :  { %4780 = vmatprep.subr.mxu0 %v17751_v12  ;;  %4897 = vmatpush1.msra.mxu1 %v13483_v26  ;;  %v17766_v26 = vand.u32 4294901760, %v13592_v11  ;;  %v4982_v4 = vmul.f32 %v4981_v40, %v17763_v62  ;;  %v4990_v40 = vld [vmem:[%s17440_s4 + $0x2b0] sm:$0xff] }
 0x21d   :  { %4784 = vmatpush1.msra.mxu0 %v4425_v18  ;;  %4898 = vmatprep.subr.mxu1 %v17751_v12 }
 0x21e   :  { %4785 = vmatprep.subr.mxu0 %v17751_v12  ;;  %4900 = vmatpush1.msra.mxu1 %v13501_v5  ;;  %v10719_v13 = vpop.f32.mrf.mxu1  ;;  %v5002_v5 = vld [vmem:[%s17440_s4 + $0x310] sm:$0xff]  ;;  %v4983_v52 = vadd.f32 %v4982_v4, %v4979_v44 }
 0x21f   :  { %4789 = vmatpush1.msra.mxu0 %v4432_v21  ;;  %4901 = vmatprep.subr.mxu1 %v17751_v12  ;;  %v4999_v21 = vld [vmem:[%s17440_s4 + $0x2f8] sm:$0xff] }
 0x220   :  { %4790 = vmatprep.subr.mxu0 %v17751_v12  ;;  %4903 = vmatpush1.msra.mxu1 %v13515_v58  ;;  %v10720_v0 = vpop.f32.mrf.mxu1  ;;  %v13944_v58 = vand.u32 4294901760, %v5003_v50  ;;  %v14001_v10 = vand.u32 4294901760, %v4999_v21 }
 0x221   :  { %4794 = vmatpush1.msra.mxu0 %v17764_v8  ;;  %4904 = vmatprep.subr.mxu1 %v17751_v12  ;;  %v10721_v23 = vadd.f32 %v10720_v0, %v10719_v13 }
 0x222   :  { %4795 = vmatprep.subr.mxu0 %v17751_v12  ;;  %4906 = vmatpush1.msra.mxu1 %v13534_v14  ;;  %v13949_v14 = vand.u32 4294901760, %v5002_v5  ;;  %v13966_v18 = vsub.f32 %v5003_v50, %v13944_v58  ;;  %v14032_v24 = vsub.f32 %v4999_v21, %v14001_v10 }
 0x223   :  { %4799 = vmatpush1.msra.mxu0 %v17765_v42  ;;  %4907 = vmatprep.subr.mxu1 %v17751_v12  ;;  %v14076_v42 = vand.u32 4294901760, %v4994_v27 }
 0x224   :  { %4800 = vmatprep.subr.mxu0 %v17751_v12  ;;  %4909 = vmatpush1.msra.mxu1 %v13544_v1  ;;  %v5001_v1 = vld [vmem:[%s17440_s4 + $0x308] sm:$0xff]  ;;  %v5139_v8 = vand.u32 4294901760, %v14032_v24 }
 0x225   :  { %4804 = vmatpush1.msra.mxu0 %v17766_v26  ;;  %4910 = vmatprep.subr.mxu1 %v17751_v12  ;;  %v13968_v20 = vand.u32 4294901760, %v5001_v1  ;;  %v4993_v26 = vld [vmem:[%s17440_s4 + $0x2c8] sm:$0xff] }
 0x226   :  { %4805 = vmatprep.subr.mxu0 %v17751_v12  ;;  %4912 = vmatpush1.msra.mxu1 %v13562_v48  ;;  %v10684_v55 = vpop.f32.mrf.mxu0  ;;  %v5000_v48 = vld [vmem:[%s17440_s4 + $0x300] sm:$0xff] }
 0x227   :  { %4809 = vmatpush1.msra.mxu0 %v17767_v15  ;;  %4913 = vmatprep.subr.mxu1 %v17751_v12  ;;  %v13999_v54 = vsub.f32 %v5001_v1, %v13968_v20  ;;  %v14100_v1 = vand.u32 4294901760, %v4993_v26 }
 0x228   :  { %4810 = vmatprep.subr.mxu0 %v17751_v12  ;;  %4915 = vmatpush1.msra.mxu1 %v13578_v35  ;;  %v10685_v51 = vpop.f32.mrf.mxu0  ;;  %v13974_v35 = vsub.f32 %v5002_v5, %v13949_v14 }
 0x229   :  { %4814 = vmatpush1.msra.mxu0 %v17768_v17  ;;  %4916 = vmatprep.subr.mxu1 %v17751_v12  ;;  %v10686_v25 = vadd.f32 %v10685_v51, %v10684_v55  ;;  %v5125_v47 = vand.u32 4294901760, %v13999_v54  ;;  %v5140_v17 = vsub.f32 %v14032_v24, %v5139_v8 }
 0x22a   :  { %4815 = vmatprep.subr.mxu0 %v17751_v12  ;;  %4918 = vmatpush1.msra.mxu1 %v13603_v38  ;;  %v13983_v38 = vand.u32 4294901760, %v5000_v48  ;;  %v5118_v59 = vand.u32 4294901760, %v13974_v35 }
 0x22b   :  { %4819 = vmatpush1.msra.mxu0 %v17769_v16  ;;  %4919 = vmatprep.subr.mxu1 %v17751_v12  ;;  %v3515_v19 = vadd.f32 %v10686_v25, %v13862_v63  ;;  %v4985_v63 = vstv %s13993_s24  ;;  %v5126_v0 = vsub.f32 %v13999_v54, %v5125_v47  ;;  %v14106_v16 = vsub.f32 %v4994_v27, %v14076_v42 }
 0x22c   :  { %4820 = vmatprep.subr.mxu0 %v17751_v12  ;;  %4921 = vmatpush1.msra.mxu1 %v13619_v49  ;;  %v4998_v49 = vld [vmem:[%s17440_s4 + $0x2f0] sm:$0xff]  ;;  %v5119_v28 = vsub.f32 %v13974_v35, %v5118_v59  ;;  %v4986_v5 = vadd.f32 %v4985_v63, %v4983_v52  ;;  %v14149_v27 = vand.u32 4294901760, %v4990_v40  ;;  %v4988_v63 = vld [vmem:[%s17440_s4 + $0x2a0] sm:$0xff] }
 0x22d   :  { %4824 = vmatpush1.msra.mxu0 %v17770_v6  ;;  %4922 = vmatprep.subr.mxu1 %v17751_v12  ;;  %v13979_v11 = vadd.f32 %v10721_v23, %v3515_v19  ;;  %v14015_v29 = vand.u32 4294901760, %v4998_v49  ;;  %v14069_v23 = vsub.f32 %v4997_v34, %v14034_v30  ;;  %v5127_v51 = vand.u32 4294901760, %v5126_v0  ;;  %v4991_v19 = vld [vmem:[%s17440_s4 + $0x2b8] sm:$0xff] }
 0x22e   :  { %4825 = vmatprep.subr.mxu0 %v17751_v12  ;;  %4924 = vmatpush1.msra.mxu1 %v13637_v36  ;;  %v5111_v36 = vand.u32 4294901760, %v13966_v18  ;;  %v5120_v50 = vand.u32 4294901760, %v5119_v28  ;;  %v14134_v44 = vand.u32 4294901760, %v4991_v19 }
 0x22f   :  { %4829 = vmatpush1.msra.mxu0 %v17771_v61  ;;  %4925 = vmatprep.subr.mxu1 %v17751_v12  ;;  %v14051_v3 = vsub.f32 %v4998_v49, %v14015_v29  ;;  %v5153_v25 = vand.u32 4294901760, %v14069_v23  ;;  %v14117_v61 = vmax.f32 %v4986_v5, 0.0 }
 0x230   :  { %4830 = vmatprep.subr.mxu0 %v17751_v12  ;;  %4927 = vmatpush1.msra.mxu1 %v13652_v33  ;;  %v14013_v33 = vsub.f32 %v5000_v48, %v13983_v38 }
 0x231   :  { %4834 = vmatpush1.msra.mxu0 %v17772_v7  ;;  %4928 = vmatprep.subr.mxu1 %v17751_v12  ;;  %v5146_v55 = vand.u32 4294901760, %v14051_v3  ;;  %v5141_v7 = vand.u32 4294901760, %v5140_v17  ;;  %v5154_v34 = vsub.f32 %v14069_v23, %v5153_v25  ;;  %v5007_v52 = vcombine.high %v14117_v61, %v14117_v61 }
 0x232   :  { %4835 = vmatprep.subr.mxu0 %v17751_v12  ;;  %4930 = vmatpush1.msra.mxu1 %v13669_v9  ;;  %v5112_v9 = vsub.f32 %v13966_v18, %v5111_v36  ;;  %v5132_v32 = vand.u32 4294901760, %v14013_v33  ;;  %v14179_v17 = vsub.f32 %v4990_v40, %v14149_v27 }
 0x233   :  { %4839 = vmatpush1.msra.mxu0 %v17773_v31  ;;  %4931 = vmatprep.subr.mxu1 %v17751_v12  ;;  %v5147_v6 = vsub.f32 %v14051_v3, %v5146_v55 }
 0x234   :  { %4868 = vmatprep.subr.mxu0 %v17751_v12  ;;  %4933 = vmatpush1.msra.mxu1 %v13684_v57  ;;  %v14042_v57 = vand.u32 4294901760, %v4996_v43  ;;  %v5113_v13 = vand.u32 4294901760, %v5112_v9  ;;  %v17555_v9 = vand.u32 4294901760, %v14106_v16 }
 0x235   :  { %4872 = vmatpush2.msra.mxu0 %v17774_v56  ;;  %4962 = vmatprep.subr.mxu1 %v17751_v12  ;;  %v5148_v56 = vand.u32 4294901760, %v5147_v6 }
 0x236   :  { %4873 = vmatprep.subr.mxu0 %v17751_v12  ;;  %4964 = vmatpush2.msra.mxu1 %v13697_v46  ;;  %v14059_v46 = vand.u32 4294901760, %v4995_v22  ;;  %v14074_v2 = vsub.f32 %v4996_v43, %v14042_v57  ;;  %v14132_v43 = vsub.f32 %v4993_v26, %v14100_v1  ;;  %v14164_v26 = vsub.f32 %v4991_v19, %v14134_v44 }
 0x237   :  { %4877 = vmatpush2.msra.mxu0 %v17775_v53  ;;  %4879 = vmatprep.mubr.f32.mxu0 %v13704_v60  ;;  %v5175_v5 = vsub.f32 %v14106_v16, %v17555_v9  ;;  %v14181_v19 = vand.u32 4294901760, %v4988_v63  ;;  %v17558_v9 = vand.u32 4294901760, %v14179_v17 }
 0x238   :  { %4965 = vmatprep.subr.mxu1 %v17751_v12  ;;  %4881 = vmatmul.mubr.f32.vlgmr.msra.gmra.mxu0 %v13747_v41  ;;  %v14090_v15 = vsub.f32 %v4995_v22, %v14059_v46  ;;  %v4989_v22 = vld [vmem:[%s17440_s4 + $0x2a8] sm:$0xff]  ;;  %v17554_v0 = vand.u32 4294901760, %v14132_v43  ;;  %v17560_v40 = vand.u32 4294901760, %v14164_v26 }
 0x239   :  { %4967 = vmatpush2.msra.mxu1 %v13716_v45  ;;  %5010 = vmatprep.subr.mxu0 %v17751_v12  ;;  %v5133_v45 = vsub.f32 %v14013_v33, %v5132_v32 }
 0x23a   :  { %4969 = vmatprep.mubr.f32.mxu1 %v13704_v60  ;;  %5012 = vmatpush1.msra.mxu0 %v13944_v58  ;;  %v4992_v60 = vld [vmem:[%s17440_s4 + $0x2c0] sm:$0xff]  ;;  %v17556_v39 = vand.u32 4294901760, %v14090_v15 }
 0x23b   :  { %5108 = vmatprep.subr.mxu1 %v17751_v12  ;;  %4971 = vmatmul.mubr.f32.vlgmr.msra.gmra.mxu1 %v13747_v41  ;;  %v17557_v41 = vand.u32 4294901760, %v14074_v2  ;;  %v5134_v48 = vand.u32 4294901760, %v5133_v45  ;;  %v14115_v21 = vand.u32 4294901760, %v4992_v60 }
 0x23c   :  { %5013 = vmatprep.subr.mxu0 %v17751_v12  ;;  %5114 = vmatpush1.msra.mxu1 %v5113_v13  ;;  %v5168_v53 = vsub.f32 %v14090_v15, %v17556_v39  ;;  %v5155_v13 = vand.u32 4294901760, %v5154_v34  ;;  %v5182_v34 = vsub.f32 %v14132_v43, %v17554_v0  ;;  %v14210_v39 = vsub.f32 %v4988_v63, %v14181_v19 }
 0x23d   :  { %5015 = vmatpush1.msra.mxu0 %v13949_v14  ;;  %5115 = vmatprep.subr.mxu1 %v17751_v12  ;;  %v5161_v31 = vsub.f32 %v14074_v2, %v17557_v41  ;;  %v14147_v28 = vsub.f32 %v4992_v60, %v14115_v21  ;;  %v5005_v60 = vld [vmem:[%s17440_s4 + $0x328] sm:$0xff]  ;;  %v14213_v41 = vand.u32 4294901760, %v14117_v61  ;;  %v5196_v63 = vsub.f32 %v14164_v26, %v17560_v40 }
 0x23e   :  { %5016 = vmatprep.subr.mxu0 %v17751_v12  ;;  %5121 = vmatpush1.msra.mxu1 %v5120_v50  ;;  %v14166_v50 = vand.u32 4294901760, %v4989_v22  ;;  %v5169_v6 = vand.u32 4294901760, %v5168_v53  ;;  %v5176_v53 = vand.u32 4294901760, %v5175_v5  ;;  %v5183_v5 = vand.u32 4294901760, %v5182_v34 }
 0x23f   :  { %5018 = vmatpush1.msra.mxu0 %v13968_v20  ;;  %5122 = vmatprep.subr.mxu1 %v17751_v12  ;;  %v14121_v49 = vpop.f32.mrf.mxu1  ;;  %v5162_v45 = vand.u32 4294901760, %v5161_v31  ;;  %v14194_v31 = vand.u32 4294901760, %v5005_v60  ;;  %v5203_v34 = vsub.f32 %v14179_v17, %v17558_v9 }
 0x240   :  { %5019 = vmatprep.subr.mxu0 %v17751_v12  ;;  %5128 = vmatpush1.msra.mxu1 %v5127_v51  ;;  %v17563_v51 = vand.u32 4294901760, %v14147_v28 }
 0x241   :  { %5021 = vmatpush1.msra.mxu0 %v13983_v38  ;;  %5129 = vmatprep.subr.mxu1 %v17751_v12  ;;  %v11109_v4 = vpop.f32.mrf.mxu1 }
 0x242   :  { %5022 = vmatprep.subr.mxu0 %v17751_v12  ;;  %5135 = vmatpush1.msra.mxu1 %v5134_v48  ;;  %v5008_v48 = vsel %vm70_vm0, %v5007_v52, 0  ;;  %v14192_v4 = vsub.f32 %v4989_v22, %v14166_v50  ;;  %v5189_v0 = vsub.f32 %v14147_v28, %v17563_v51 }
 0x243   :  { %5024 = vmatpush1.msra.mxu0 %v14001_v10  ;;  %5136 = vmatprep.subr.mxu1 %v17751_v12 }
 0x244   :  { %5025 = vmatprep.subr.mxu0 %v17751_v12  ;;  %5142 = vmatpush1.msra.mxu1 %v5141_v7 }
 0x245   :  { %5027 = vmatpush1.msra.mxu0 %v14015_v29  ;;  %5143 = vmatprep.subr.mxu1 %v17751_v12 }
 0x246   :  { %5028 = vmatprep.subr.mxu0 %v17751_v12  ;;  %5149 = vmatpush1.msra.mxu1 %v5148_v56  ;;  %v5004_v56 = vld [vmem:[%s17440_s4 + $0x320] sm:$0xff] }
 0x247   :  { %5030 = vmatpush1.msra.mxu0 %v14034_v30  ;;  %5150 = vmatprep.subr.mxu1 %v17751_v12 }
 0x248   :  { %5031 = vmatprep.subr.mxu0 %v17751_v12  ;;  %5156 = vmatpush1.msra.mxu1 %v5155_v13  ;;  %v3709_v7 = vpop.f32.mrf.mxu0  ;;  %v14202_v13 = vand.u32 4294901760, %v5008_v48 }
 0x249   :  { %5033 = vmatpush1.msra.mxu0 %v14042_v57  ;;  %5157 = vmatprep.subr.mxu1 %v17751_v12  ;;  %v3710_v52 = vadd.f32 %v3709_v7, %v13979_v11  ;;  %v14217_v11 = vand.u32 4294901760, %v5004_v56  ;;  %v17559_v7 = vand.u32 4294901760, %v14192_v4 }
 0x24a   :  { %5034 = vmatprep.subr.mxu0 %v17751_v12  ;;  %5163 = vmatpush1.msra.mxu1 %v5162_v45  ;;  %v11074_v22 = vpop.f32.mrf.mxu0 }
 0x24b   :  { %5036 = vmatpush1.msra.mxu0 %v14059_v46  ;;  %5164 = vmatprep.subr.mxu1 %v17751_v12  ;;  %v14220_v45 = vadd.f32 %v14121_v49, %v3710_v52  ;;  %v14228_v22 = vsub.f32 %v5005_v60, %v14194_v31  ;;  %v14233_v49 = vsub.f32 %v5008_v48, %v14202_v13  ;;  %v17561_v52 = vand.u32 4294901760, %v14210_v39 }
 0x24c   :  { %5037 = vmatprep.subr.mxu0 %v17751_v12  ;;  %5170 = vmatpush1.msra.mxu1 %v5169_v6  ;;  %v5190_v6 = vand.u32 4294901760, %v5189_v0  ;;  %v14242_v60 = vsub.f32 %v14117_v61, %v14213_v41  ;;  %v14247_v48 = vsub.f32 %v5004_v56, %v14217_v11  ;;  %v5197_v0 = vand.u32 4294901760, %v5196_v63 }
 0x24d   :  { %5039 = vmatpush1.msra.mxu0 %v14076_v42  ;;  %5171 = vmatprep.subr.mxu1 %v17751_v12  ;;  %v17562_v9 = vand.u32 4294901760, %v14228_v22  ;;  %v5094_v61 = vand.u32 4294901760, %v14233_v49  ;;  %v5204_v56 = vand.u32 4294901760, %v5203_v34 }
 0x24e   :  { %5040 = vmatprep.subr.mxu0 %v17751_v12  ;;  %5177 = vmatpush1.msra.mxu1 %v5176_v53  ;;  %v5210_v53 = vsub.f32 %v14192_v4, %v17559_v7  ;;  %v5100_v63 = vand.u32 4294901760, %v14242_v60  ;;  %v5258_v7 = vand.u32 4294901760, %v14247_v48 }
 0x24f   :  { %5042 = vmatpush1.msra.mxu0 %v14100_v1  ;;  %5178 = vmatprep.subr.mxu1 %v17751_v12  ;;  %v5095_v34 = vsub.f32 %v14233_v49, %v5094_v61 }
 0x250   :  { %5043 = vmatprep.subr.mxu0 %v17751_v12  ;;  %5184 = vmatpush1.msra.mxu1 %v5183_v5  ;;  %v5217_v5 = vsub.f32 %v14210_v39, %v17561_v52  ;;  %v5211_v40 = vand.u32 4294901760, %v5210_v53  ;;  %v5259_v53 = vsub.f32 %v14247_v48, %v5258_v7 }
 0x251   :  { %5045 = vmatpush1.msra.mxu0 %v14115_v21  ;;  %5185 = vmatprep.subr.mxu1 %v17751_v12 }
 0x252   :  { %5046 = vmatprep.subr.mxu0 %v17751_v12  ;;  %5191 = vmatpush1.msra.mxu1 %v5190_v6  ;;  %v5252_v6 = vsub.f32 %v14228_v22, %v17562_v9  ;;  %v5218_v52 = vand.u32 4294901760, %v5217_v5  ;;  %v5260_v51 = vand.u32 4294901760, %v5259_v53  ;;  %v17785_v53 = vand.u32 4294901760, %v14228_v22 }
 0x253   :  { %5048 = vmatpush1.msra.mxu0 %v14134_v44  ;;  %5192 = vmatprep.subr.mxu1 %v17751_v12 }
 0x254   :  { %5049 = vmatprep.subr.mxu0 %v17751_v12  ;;  %5198 = vmatpush1.msra.mxu1 %v5197_v0  ;;  %v5101_v0 = vsub.f32 %v14242_v60, %v5100_v63  ;;  %v5253_v9 = vand.u32 4294901760, %v5252_v6 }
 0x255   :  { %5051 = vmatpush1.msra.mxu0 %v14149_v27  ;;  %5199 = vmatprep.subr.mxu1 %v17751_v12 }
 0x256   :  { %5052 = vmatprep.subr.mxu0 %v17751_v12  ;;  %5205 = vmatpush1.msra.mxu1 %v5204_v56  ;;  %v5096_v56 = vand.u32 4294901760, %v5095_v34  ;;  %v5102_v5 = vand.u32 4294901760, %v5101_v0 }
 0x257   :  { %5054 = vmatpush1.msra.mxu0 %v14166_v50  ;;  %5206 = vmatprep.subr.mxu1 %v17751_v12 }
 0x258   :  { %5055 = vmatprep.subr.mxu0 %v17751_v12  ;;  %5212 = vmatpush1.msra.mxu1 %v5211_v40 }
 0x259   :  { %5057 = vmatpush1.msra.mxu0 %v14181_v19  ;;  %5213 = vmatprep.subr.mxu1 %v17751_v12 }
 0x25a   :  { %5086 = vmatprep.subr.mxu0 %v17751_v12  ;;  %5219 = vmatpush1.msra.mxu1 %v5218_v52 }
 0x25b   :  { %5088 = vmatpush2.msra.mxu0 %v14194_v31  ;;  %5248 = vmatprep.subr.mxu1 %v17751_v12 }
 0x25c   :  { %5089 = vmatprep.subr.mxu0 %v17751_v12  ;;  %5254 = vmatpush2.msra.mxu1 %v5253_v9 }
 0x25d   :  { %5091 = vmatpush2.msra.mxu0 %v14217_v11  ;;  %5097 = vmatprep.mubr.f32.mxu0 %v5096_v56 }
 0x25e   :  { %5255 = vmatprep.subr.mxu1 %v17751_v12  ;;  %5103 = vmatmul.mubr.f32.vlgmr.msra.gmra.mxu0 %v5102_v5 }
 0x25f   :  { %5261 = vmatpush2.msra.mxu1 %v5260_v51  ;;  %5270 = vmatprep.subr.mxu0 %v17751_v12 }
 0x260   :  { %5263 = vmatprep.mubr.f32.mxu1 %v14202_v13  ;;  %5273 = vmatpush1.msra.mxu0 %v13966_v18 }
 0x261   :  { %5380 = vmatprep.subr.mxu1 %v17751_v12  ;;  %5265 = vmatmul.mubr.f32.vlgmr.msra.gmra.mxu1 %v14213_v41  ;;  %v4053_v40 = vpop.f32.mrf.mxu1 }
 0x262   :  { %5274 = vmatprep.subr.mxu0 %v17751_v12  ;;  %5382 = vmatpush1.msra.mxu1 %v13944_v58 }
 0x263   :  { %5277 = vmatpush1.msra.mxu0 %v13974_v35  ;;  %5383 = vmatprep.subr.mxu1 %v17751_v12  ;;  %v11179_v9 = vpop.f32.mrf.mxu1 }
 0x264   :  { %5278 = vmatprep.subr.mxu0 %v17751_v12  ;;  %5385 = vmatpush1.msra.mxu1 %v13949_v14 }
 0x265   :  { %5281 = vmatpush1.msra.mxu0 %v13999_v54  ;;  %5386 = vmatprep.subr.mxu1 %v17751_v12  ;;  %v17778_v54 = vand.u32 4294901760, %v14106_v16 }
 0x266   :  { %5282 = vmatprep.subr.mxu0 %v17751_v12  ;;  %5388 = vmatpush1.msra.mxu1 %v13968_v20 }
 0x267   :  { %5285 = vmatpush1.msra.mxu0 %v14013_v33  ;;  %5389 = vmatprep.subr.mxu1 %v17751_v12  ;;  %v17779_v33 = vand.u32 4294901760, %v14132_v43 }
 0x268   :  { %5286 = vmatprep.subr.mxu0 %v17751_v12  ;;  %5391 = vmatpush1.msra.mxu1 %v13983_v38 }
 0x269   :  { %5289 = vmatpush1.msra.mxu0 %v14032_v24  ;;  %5392 = vmatprep.subr.mxu1 %v17751_v12  ;;  %v5714_v24 = vld [vmem:[%s17440_s4 + $0x390] sm:$0xff] }
 0x26a   :  { %5290 = vmatprep.subr.mxu0 %v17751_v12  ;;  %5394 = vmatpush1.msra.mxu1 %v14001_v10  ;;  %v3964_v51 = vpop.f32.mrf.mxu0 }
 0x26b   :  { %5293 = vmatpush1.msra.mxu0 %v14051_v3  ;;  %5395 = vmatprep.subr.mxu1 %v17751_v12  ;;  %v3965_v52 = vadd.f32 %v3964_v51, %v14220_v45  ;;  %v17781_v3 = vand.u32 4294901760, %v14164_v26 }
 0x26c   :  { %5294 = vmatprep.subr.mxu0 %v17751_v12  ;;  %5397 = vmatpush1.msra.mxu1 %v14015_v29  ;;  %v11144_v6 = vpop.f32.mrf.mxu0 }
 0x26d   :  { %5297 = vmatpush1.msra.mxu0 %v14069_v23  ;;  %5398 = vmatprep.subr.mxu1 %v17751_v12  ;;  %v14322_v34 = vadd.f32 %v4053_v40, %v3965_v52 }
 0x26e   :  { %5298 = vmatprep.subr.mxu0 %v17751_v12  ;;  %5400 = vmatpush1.msra.mxu1 %v14034_v30 }
 0x26f   :  { %5301 = vmatpush1.msra.mxu0 %v14074_v2  ;;  %5401 = vmatprep.subr.mxu1 %v17751_v12 }
 0x270   :  { %5302 = vmatprep.subr.mxu0 %v17751_v12  ;;  %5403 = vmatpush1.msra.mxu1 %v14042_v57 }
 0x271   :  { %5305 = vmatpush1.msra.mxu0 %v14090_v15  ;;  %5404 = vmatprep.subr.mxu1 %v17751_v12 }
 0x272   :  { %5306 = vmatprep.subr.mxu0 %v17751_v12  ;;  %5406 = vmatpush1.msra.mxu1 %v14059_v46 }
 0x273   :  { %5309 = vmatpush1.msra.mxu0 %v14106_v16  ;;  %5407 = vmatprep.subr.mxu1 %v17751_v12 }
 0x274   :  { %5310 = vmatprep.subr.mxu0 %v17751_v12  ;;  %5409 = vmatpush1.msra.mxu1 %v14076_v42 }
 0x275   :  { %5313 = vmatpush1.msra.mxu0 %v14132_v43  ;;  %5410 = vmatprep.subr.mxu1 %v17751_v12 }
 0x276   :  { %5314 = vmatprep.subr.mxu0 %v17751_v12  ;;  %5412 = vmatpush1.msra.mxu1 %v14100_v1 }
 0x277   :  { %5317 = vmatpush1.msra.mxu0 %v14147_v28  ;;  %5413 = vmatprep.subr.mxu1 %v17751_v12 }
 0x278   :  { %5318 = vmatprep.subr.mxu0 %v17751_v12  ;;  %5415 = vmatpush1.msra.mxu1 %v14115_v21 }
 0x279   :  { %5321 = vmatpush1.msra.mxu0 %v14164_v26  ;;  %5416 = vmatprep.subr.mxu1 %v17751_v12  ;;  %v5710_v26 = vld [vmem:[%s17440_s4 + $0x370] sm:$0xff] }
 0x27a   :  { %5322 = vmatprep.subr.mxu0 %v17751_v12  ;;  %5418 = vmatpush1.msra.mxu1 %v14134_v44  ;;  %v14535_v56 = vand.u32 4294901760, %v5710_v26 }
 0x27b   :  { %5325 = vmatpush1.msra.mxu0 %v14179_v17  ;;  %5419 = vmatprep.subr.mxu1 %v17751_v12 }
 0x27c   :  { %5326 = vmatprep.subr.mxu0 %v17751_v12  ;;  %5421 = vmatpush1.msra.mxu1 %v14149_v27 }
 0x27d   :  { %5329 = vmatpush1.msra.mxu0 %v14192_v4  ;;  %5422 = vmatprep.subr.mxu1 %v17751_v12 }
 0x27e   :  { %5330 = vmatprep.subr.mxu0 %v17751_v12  ;;  %5424 = vmatpush1.msra.mxu1 %v14166_v50 }
 0x27f   :  { %5333 = vmatpush1.msra.mxu0 %v14210_v39  ;;  %5425 = vmatprep.subr.mxu1 %v17751_v12 }
 0x280   :  { %5362 = vmatprep.subr.mxu0 %v17751_v12  ;;  %5427 = vmatpush1.msra.mxu1 %v14181_v19 }
 0x281   :  { %5365 = vmatpush2.msra.mxu0 %v14228_v22  ;;  %5456 = vmatprep.subr.mxu1 %v17751_v12  ;;  %v5708_v22 = vld [vmem:[%s17440_s4 + $0x360] sm:$0xff] }
 0x282   :  { %5366 = vmatprep.subr.mxu0 %v17751_v12  ;;  %5458 = vmatpush2.msra.mxu1 %v14194_v31 }
 0x283   :  { %5369 = vmatpush2.msra.mxu0 %v14247_v48  ;;  %5372 = vmatprep.mubr.f32.mxu0 %v14233_v49  ;;  %v4259_v45 = vpop.f32.mrf.mxu1  ;;  %v17784_v49 = vand.u32 4294901760, %v14210_v39  ;;  %v5709_v39 = vld [vmem:[%s17440_s4 + $0x368] sm:$0xff]  ;;  %v14569_v48 = vsub.f32 %v5710_v26, %v14535_v56  ;;  %v5704_v26 = vld [vmem:[%s17440_s4 + $0x340] sm:$0xff] }
 0x284   :  { %5459 = vmatprep.subr.mxu1 %v17751_v12  ;;  %5375 = vmatmul.mubr.f32.vlgmr.msra.gmra.mxu0 %v14242_v60  ;;  %v14551_v51 = vand.u32 4294901760, %v5709_v39 }
 0x285   :  { %5461 = vmatpush2.msra.mxu1 %v14217_v11  ;;  %5474 = vmatprep.subr.mxu0 %v17751_v12  ;;  %v11249_v0 = vpop.f32.mrf.mxu1 }
 0x286   :  { %5465 = vmatprep.mubr.f32.mxu1 %v5094_v61  ;;  %5478 = vmatpush1.msra.mxu0 %v5111_v36  ;;  %v5717_v36 = vld [vmem:[%s17440_s4 + $0x3a8] sm:$0xff]  ;;  %v14571_v0 = vand.u32 4294901760, %v5708_v22 }
 0x287   :  { %5600 = vmatprep.subr.mxu1 %v17751_v12  ;;  %5469 = vmatmul.mubr.f32.vlgmr.msra.gmra.mxu1 %v5100_v63 }
 0x288   :  { %5479 = vmatprep.subr.mxu0 %v17751_v12  ;;  %5602 = vmatpush1.msra.mxu1 %v13944_v58 }
 0x289   :  { %5483 = vmatpush1.msra.mxu0 %v5118_v59  ;;  %5603 = vmatprep.subr.mxu1 %v17751_v12  ;;  %v14439_v59 = vand.u32 4294901760, %v5717_v36 }
 0x28a   :  { %5484 = vmatprep.subr.mxu0 %v17751_v12  ;;  %5605 = vmatpush1.msra.mxu1 %v13949_v14 }
 0x28b   :  { %5488 = vmatpush1.msra.mxu0 %v5125_v47  ;;  %5606 = vmatprep.subr.mxu1 %v17751_v12  ;;  %v4172_v18 = vpop.f32.mrf.mxu0 }
 0x28c   :  { %5489 = vmatprep.subr.mxu0 %v17751_v12  ;;  %5608 = vmatpush1.msra.mxu1 %v13968_v20  ;;  %v4173_v58 = vadd.f32 %v4172_v18, %v14322_v34  ;;  %v17776_v20 = vand.u32 4294901760, %v14074_v2  ;;  %v17782_v2 = vand.u32 4294901760, %v14179_v17  ;;  %v5707_v18 = vld [vmem:[%s17440_s4 + $0x358] sm:$0xff] }
 0x28d   :  { %5493 = vmatpush1.msra.mxu0 %v5132_v32  ;;  %5609 = vmatprep.subr.mxu1 %v17751_v12  ;;  %v11214_v35 = vpop.f32.mrf.mxu0 }
 0x28e   :  { %5494 = vmatprep.subr.mxu0 %v17751_v12  ;;  %5611 = vmatpush1.msra.mxu1 %v13983_v38  ;;  %v14397_v14 = vadd.f32 %v4259_v45, %v4173_v58  ;;  %v17777_v38 = vand.u32 4294901760, %v14090_v15  ;;  %v5695_v15 = vstv %s14435_s29  ;;  %s15405_s29 = sld [smem:[#allocation2 + $0x5]] }
 0x28f   :  { %5498 = vmatpush1.msra.mxu0 %v5139_v8  ;;  %5612 = vmatprep.subr.mxu1 %v17751_v12  ;;  %v5713_v8 = vld [vmem:[%s17440_s4 + $0x388] sm:$0xff] }
 0x290   :  { %5499 = vmatprep.subr.mxu0 %v17751_v12  ;;  %5614 = vmatpush1.msra.mxu1 %v14001_v10  ;;  %v5716_v10 = vld [vmem:[%s17440_s4 + $0x3a0] sm:$0xff]  ;;  %v14493_v16 = vand.u32 4294901760, %v5713_v8 }
 0x291   :  { %5503 = vmatpush1.msra.mxu0 %v5146_v55  ;;  %5615 = vmatprep.subr.mxu1 %v17751_v12  ;;  %v14449_v47 = vand.u32 4294901760, %v5716_v10  ;;  %v5692_v55 = vstv %s14427_s26 }
 0x292   :  { %5504 = vmatprep.subr.mxu0 %v17751_v12  ;;  %5617 = vmatpush1.msra.mxu1 %v14015_v29  ;;  %v5715_v29 = vld [vmem:[%s17440_s4 + $0x398] sm:$0xff]  ;;  %v5693_v17 = vmul.f32 %v5692_v55, %v17762_v37  ;;  %v14524_v61 = vsub.f32 %v5713_v8, %v14493_v16  ;;  %v5705_v8 = vld [vmem:[%s17440_s4 + $0x348] sm:$0xff] }
 0x293   :  { %5508 = vmatpush1.msra.mxu0 %v5153_v25  ;;  %5618 = vmatprep.subr.mxu1 %v17751_v12  ;;  %v14462_v32 = vand.u32 4294901760, %v5715_v29  ;;  %v14475_v23 = vsub.f32 %v5716_v10, %v14449_v47 }
 0x294   :  { %5509 = vmatprep.subr.mxu0 %v17751_v12  ;;  %5620 = vmatpush1.msra.mxu1 %v14034_v30  ;;  %v17780_v30 = vand.u32 4294901760, %v14147_v28  ;;  %v5853_v34 = vand.u32 4294901760, %v14524_v61 }
 0x295   :  { %5513 = vmatpush1.msra.mxu0 %v17776_v20  ;;  %5621 = vmatprep.subr.mxu1 %v17751_v12  ;;  %v5832_v28 = vand.u32 4294901760, %v14475_v23 }
 0x296   :  { %5514 = vmatprep.subr.mxu0 %v17751_v12  ;;  %5623 = vmatpush1.msra.mxu1 %v14042_v57  ;;  %v14460_v57 = vsub.f32 %v5717_v36, %v14439_v59  ;;  %v5706_v36 = vld [vmem:[%s17440_s4 + $0x350] sm:$0xff] }
 0x297   :  { %5518 = vmatpush1.msra.mxu0 %v17777_v38  ;;  %5624 = vmatprep.subr.mxu1 %v17751_v12  ;;  %v5833_v5 = vsub.f32 %v14475_v23, %v5832_v28  ;;  %v14582_v38 = vsub.f32 %v5709_v39, %v14551_v51  ;;  %v14609_v55 = vand.u32 4294901760, %v5706_v36 }
 0x298   :  { %5519 = vmatprep.subr.mxu0 %v17751_v12  ;;  %5626 = vmatpush1.msra.mxu1 %v14059_v46  ;;  %v14467_v46 = vand.u32 4294901760, %v5714_v24  ;;  %v5825_v25 = vand.u32 4294901760, %v14460_v57 }
 0x299   :  { %5523 = vmatpush1.msra.mxu0 %v17778_v54  ;;  %5627 = vmatprep.subr.mxu1 %v17751_v12  ;;  %v5854_v54 = vsub.f32 %v14524_v61, %v5853_v34 }
 0x29a   :  { %5524 = vmatprep.subr.mxu0 %v17751_v12  ;;  %5629 = vmatpush1.msra.mxu1 %v14076_v42  ;;  %v5712_v42 = vld [vmem:[%s17440_s4 + $0x380] sm:$0xff]  ;;  %v14499_v43 = vsub.f32 %v5714_v24, %v14467_v46 }
 0x29b   :  { %5528 = vmatpush1.msra.mxu0 %v17779_v33  ;;  %5630 = vmatprep.subr.mxu1 %v17751_v12  ;;  %v14592_v33 = vand.u32 4294901760, %v5707_v18 }
 0x29c   :  { %5529 = vmatprep.subr.mxu0 %v17751_v12  ;;  %5632 = vmatpush1.msra.mxu1 %v14100_v1  ;;  %v14491_v1 = vsub.f32 %v5715_v29, %v14462_v32 }
 0x29d   :  { %5533 = vmatpush1.msra.mxu0 %v17780_v30  ;;  %5633 = vmatprep.subr.mxu1 %v17751_v12  ;;  %v17571_v30 = vand.u32 4294901760, %v14569_v48 }
 0x29e   :  { %5534 = vmatprep.subr.mxu0 %v17751_v12  ;;  %5635 = vmatpush1.msra.mxu1 %v14115_v21  ;;  %v17783_v21 = vand.u32 4294901760, %v14192_v4  ;;  %v5696_v4 = vmul.f32 %v5695_v15, %v17763_v62  ;;  %v5839_v60 = vand.u32 4294901760, %v14491_v1 }
 0x29f   :  { %5538 = vmatpush1.msra.mxu0 %v17781_v3  ;;  %5636 = vmatprep.subr.mxu1 %v17751_v12  ;;  %v14598_v3 = vsub.f32 %v5708_v22, %v14571_v0  ;;  %v5875_v39 = vsub.f32 %v14569_v48, %v17571_v30 }
 0x2a0   :  { %5539 = vmatprep.subr.mxu0 %v17751_v12  ;;  %5638 = vmatpush1.msra.mxu1 %v14134_v44  ;;  %v5711_v44 = vld [vmem:[%s17440_s4 + $0x378] sm:$0xff]  ;;  %v5697_v9 = vadd.f32 %v5696_v4, %v5693_v17  ;;  %v5840_v6 = vsub.f32 %v14491_v1, %v5839_v60  ;;  %v5855_v17 = vand.u32 4294901760, %v5854_v54 }
 0x2a1   :  { %5543 = vmatpush1.msra.mxu0 %v17782_v2  ;;  %5639 = vmatprep.subr.mxu1 %v17751_v12  ;;  %v14526_v63 = vand.u32 4294901760, %v5711_v44  ;;  %v5719_v54 = vld [vmem:[%s17440_s4 + $0x3b8] sm:$0xff] }
 0x2a2   :  { %5544 = vmatprep.subr.mxu0 %v17751_v12  ;;  %5641 = vmatpush1.msra.mxu1 %v14149_v27  ;;  %v14507_v27 = vand.u32 4294901760, %v5712_v42 }
 0x2a3   :  { %5548 = vmatpush1.msra.mxu0 %v17783_v21  ;;  %5642 = vmatprep.subr.mxu1 %v17751_v12  ;;  %v14561_v45 = vsub.f32 %v5711_v44, %v14526_v63  ;;  %v17567_v44 = vand.u32 4294901760, %v14582_v38 }
 0x2a4   :  { %5549 = vmatprep.subr.mxu0 %v17751_v12  ;;  %5644 = vmatpush1.msra.mxu1 %v14166_v50  ;;  %v5826_v50 = vsub.f32 %v14460_v57, %v5825_v25  ;;  %v14543_v40 = vsub.f32 %v5712_v42, %v14507_v27 }
 0x2a5   :  { %5553 = vmatpush1.msra.mxu0 %v17784_v49  ;;  %5645 = vmatprep.subr.mxu1 %v17751_v12  ;;  %v17574_v10 = vand.u32 4294901760, %v14561_v45  ;;  %v14624_v49 = vsub.f32 %v5707_v18, %v14592_v33 }
 0x2a6   :  { %5582 = vmatprep.subr.mxu0 %v17751_v12  ;;  %5647 = vmatpush1.msra.mxu1 %v14181_v19  ;;  %v5846_v19 = vand.u32 4294901760, %v14499_v43  ;;  %v5827_v52 = vand.u32 4294901760, %v5826_v50  ;;  %v5860_v58 = vand.u32 4294901760, %v14543_v40  ;;  %v14626_v50 = vand.u32 4294901760, %v5705_v8 }
 0x2a7   :  { %5586 = vmatpush2.msra.mxu0 %v17785_v53  ;;  %5676 = vmatprep.subr.mxu1 %v17751_v12  ;;  %v5868_v4 = vsub.f32 %v14561_v45, %v17574_v10  ;;  %v17566_v53 = vand.u32 4294901760, %v14598_v3 }
 0x2a8   :  { %5587 = vmatprep.subr.mxu0 %v17751_v12  ;;  %5678 = vmatpush2.msra.mxu1 %v14194_v31  ;;  %v5699_v31 = vstv %s14485_s14  ;;  %v5861_v2 = vsub.f32 %v14543_v40, %v5860_v58 }
 0x2a9   :  { %5591 = vmatpush2.msra.mxu0 %v5258_v7  ;;  %5593 = vmatprep.mubr.f32.mxu0 %v14202_v13  ;;  %v5847_v7 = vsub.f32 %v14499_v43, %v5846_v19  ;;  %v5700_v35 = vadd.f32 %v5699_v31, %v5697_v9  ;;  %v14639_v9 = vsub.f32 %v5706_v36, %v14609_v55  ;;  %v14641_v31 = vand.u32 4294901760, %v5704_v26 }
 0x2aa   :  { %5679 = vmatprep.subr.mxu1 %v17751_v12  ;;  %5595 = vmatmul.mubr.f32.vlgmr.msra.gmra.mxu0 %v14213_v41  ;;  %v5862_v22 = vand.u32 4294901760, %v5861_v2  ;;  %v5869_v18 = vand.u32 4294901760, %v5868_v4  ;;  %v5876_v36 = vand.u32 4294901760, %v5875_v39  ;;  %v14686_v4 = vand.u32 4294901760, %v5719_v54  ;;  %v5718_v39 = vld [vmem:[%s17440_s4 + $0x3b0] sm:$0xff] }
 0x2ab   :  { %5681 = vmatpush2.msra.mxu1 %v14217_v11  ;;  %5724 = vmatprep.subr.mxu0 %v17751_v12  ;;  %v5834_v11 = vand.u32 4294901760, %v5833_v5  ;;  %v14611_v15 = vmax.f32 %v5700_v35, 0.0  ;;  %v5703_v5 = vld [vmem:[%s17440_s4 + $0x338] sm:$0xff]  ;;  %v14656_v35 = vsub.f32 %v5705_v8, %v14626_v50 }
 0x2ac   :  { %5683 = vmatprep.mubr.f32.mxu1 %v14202_v13  ;;  %5726 = vmatpush1.msra.mxu0 %v14439_v59  ;;  %v5841_v13 = vand.u32 4294901760, %v5840_v6  ;;  %v5882_v6 = vsub.f32 %v14582_v38, %v17567_v44 }
 0x2ad   :  { %5822 = vmatprep.subr.mxu1 %v17751_v12  ;;  %5685 = vmatmul.mubr.f32.vlgmr.msra.gmra.mxu1 %v14213_v41  ;;  %v4552_v20 = vpop.f32.mrf.mxu1  ;;  %v5848_v41 = vand.u32 4294901760, %v5847_v7  ;;  %v5702_v7 = vld [vmem:[%s17440_s4 + $0x330] sm:$0xff] }
 0x2ae   :  { %5727 = vmatprep.subr.mxu0 %v17751_v12  ;;  %5828 = vmatpush1.msra.mxu1 %v5827_v52  ;;  %v5721_v52 = vcombine.high %v14611_v15, %v14611_v15  ;;  %v5883_v2 = vand.u32 4294901760, %v5882_v6 }
 0x2af   :  { %5729 = vmatpush1.msra.mxu0 %v14449_v47  ;;  %5829 = vmatprep.subr.mxu1 %v17751_v12  ;;  %v4390_v29 = vpop.f32.mrf.mxu0  ;;  %v4554_v24 = vpop.f32.mrf.mxu1 }
 0x2b0   :  { %5730 = vmatprep.subr.mxu0 %v17751_v12  ;;  %5835 = vmatpush1.msra.mxu1 %v5834_v11  ;;  %v14607_v42 = vadd.f32 %v4552_v20, %v4390_v29  ;;  %v17564_v11 = vand.u32 4294901760, %v14624_v49  ;;  %v14658_v20 = vand.u32 4294901760, %v5703_v5  ;;  %v14671_v29 = vsub.f32 %v5704_v26, %v14641_v31 }
 0x2b1   :  { %5732 = vmatpush1.msra.mxu0 %v14462_v32  ;;  %5836 = vmatprep.subr.mxu1 %v17751_v12  ;;  %v4392_v21 = vpop.f32.mrf.mxu0  ;;  %v14673_v24 = vand.u32 4294901760, %v5702_v7  ;;  %v5722_v8 = vsel %vm70_vm0, %v5721_v52, 0 }
 0x2b2   :  { %5733 = vmatprep.subr.mxu0 %v17751_v12  ;;  %5842 = vmatpush1.msra.mxu1 %v5841_v13  ;;  %v5889_v13 = vsub.f32 %v14598_v3, %v17566_v53  ;;  %v5896_v21 = vsub.f32 %v14624_v49, %v17564_v11  ;;  %v14684_v26 = vsub.f32 %v5703_v5, %v14658_v20  ;;  %v14693_v52 = vand.u32 4294901760, %v5722_v8 }
 0x2b3   :  { %5735 = vmatpush1.msra.mxu0 %v14467_v46  ;;  %5843 = vmatprep.subr.mxu1 %v17751_v12  ;;  %v17569_v6 = vand.u32 4294901760, %v14671_v29  ;;  %v14704_v11 = vand.u32 4294901760, %v14611_v15  ;;  %v14716_v53 = vsub.f32 %v5719_v54, %v14686_v4 }
 0x2b4   :  { %5736 = vmatprep.subr.mxu0 %v17751_v12  ;;  %5849 = vmatpush1.msra.mxu1 %v5848_v41  ;;  %v17565_v41 = vand.u32 4294901760, %v14639_v9  ;;  %v14721_v44 = vsub.f32 %v5722_v8, %v14693_v52 }
 0x2b5   :  { %5738 = vmatpush1.msra.mxu0 %v14493_v16  ;;  %5850 = vmatprep.subr.mxu1 %v17751_v12  ;;  %v14730_v54 = vsub.f32 %v14611_v15, %v14704_v11 }
 0x2b6   :  { %5739 = vmatprep.subr.mxu0 %v17751_v12  ;;  %5856 = vmatpush1.msra.mxu1 %v5855_v17  ;;  %v17568_v17 = vand.u32 4294901760, %v14656_v35  ;;  %v5903_v5 = vsub.f32 %v14639_v9, %v17565_v41  ;;  %v5808_v15 = vand.u32 4294901760, %v14721_v44 }
 0x2b7   :  { %5741 = vmatpush1.msra.mxu0 %v14507_v27  ;;  %5857 = vmatprep.subr.mxu1 %v17751_v12 }
 0x2b8   :  { %5742 = vmatprep.subr.mxu0 %v17751_v12  ;;  %5863 = vmatpush1.msra.mxu1 %v5862_v22  ;;  %v5890_v22 = vand.u32 4294901760, %v5889_v13  ;;  %v14708_v13 = vand.u32 4294901760, %v5718_v39  ;;  %v5910_v41 = vsub.f32 %v14656_v35, %v17568_v17 }
 0x2b9   :  { %5744 = vmatpush1.msra.mxu0 %v14526_v63  ;;  %5864 = vmatprep.subr.mxu1 %v17751_v12 }
 0x2ba   :  { %5745 = vmatprep.subr.mxu0 %v17751_v12  ;;  %5870 = vmatpush1.msra.mxu1 %v5869_v18  ;;  %v14701_v18 = vsub.f32 %v5702_v7, %v14673_v24  ;;  %v17570_v7 = vand.u32 4294901760, %v14684_v26  ;;  %v14735_v8 = vsub.f32 %v5718_v39, %v14708_v13 }
 0x2bb   :  { %5747 = vmatpush1.msra.mxu0 %v14535_v56  ;;  %5871 = vmatprep.subr.mxu1 %v17751_v12 }
 0x2bc   :  { %5748 = vmatprep.subr.mxu0 %v17751_v12  ;;  %5877 = vmatpush1.msra.mxu1 %v5876_v36  ;;  %v5897_v36 = vand.u32 4294901760, %v5896_v21  ;;  %v5917_v21 = vsub.f32 %v14671_v29, %v17569_v6  ;;  %v17572_v17 = vand.u32 4294901760, %v14701_v18  ;;  %v17573_v6 = vand.u32 4294901760, %v14716_v53 }
 0x2bd   :  { %5750 = vmatpush1.msra.mxu0 %v14551_v51  ;;  %5878 = vmatprep.subr.mxu1 %v17751_v12 }
 0x2be   :  { %5751 = vmatprep.subr.mxu0 %v17751_v12  ;;  %5884 = vmatpush1.msra.mxu1 %v5883_v2  ;;  %v5904_v2 = vand.u32 4294901760, %v5903_v5  ;;  %v5924_v5 = vsub.f32 %v14684_v26, %v17570_v7  ;;  %v5918_v39 = vand.u32 4294901760, %v5917_v21  ;;  %v5972_v7 = vand.u32 4294901760, %v14735_v8 }
 0x2bf   :  { %5753 = vmatpush1.msra.mxu0 %v14571_v0  ;;  %5885 = vmatprep.subr.mxu1 %v17751_v12  ;;  %v5809_v21 = vsub.f32 %v14721_v44, %v5808_v15 }
 0x2c0   :  { %5754 = vmatprep.subr.mxu0 %v17751_v12  ;;  %5891 = vmatpush1.msra.mxu1 %v5890_v22  ;;  %v5911_v22 = vand.u32 4294901760, %v5910_v41  ;;  %v5931_v41 = vsub.f32 %v14701_v18, %v17572_v17  ;;  %v5925_v30 = vand.u32 4294901760, %v5924_v5  ;;  %v5973_v5 = vsub.f32 %v14735_v8, %v5972_v7 }
 0x2c1   :  { %5756 = vmatpush1.msra.mxu0 %v14592_v33  ;;  %5892 = vmatprep.subr.mxu1 %v17751_v12 }
 0x2c2   :  { %5757 = vmatprep.subr.mxu0 %v17751_v12  ;;  %5898 = vmatpush1.msra.mxu1 %v5897_v36  ;;  %v5814_v36 = vand.u32 4294901760, %v14730_v54  ;;  %v5932_v17 = vand.u32 4294901760, %v5931_v41  ;;  %v5974_v10 = vand.u32 4294901760, %v5973_v5 }
 0x2c3   :  { %5759 = vmatpush1.msra.mxu0 %v14609_v55  ;;  %5899 = vmatprep.subr.mxu1 %v17751_v12 }
 0x2c4   :  { %5760 = vmatprep.subr.mxu0 %v17751_v12  ;;  %5905 = vmatpush1.msra.mxu1 %v5904_v2  ;;  %v5966_v2 = vsub.f32 %v14716_v53, %v17573_v6 }
 0x2c5   :  { %5762 = vmatpush1.msra.mxu0 %v14626_v50  ;;  %5906 = vmatprep.subr.mxu1 %v17751_v12 }
 0x2c6   :  { %5763 = vmatprep.subr.mxu0 %v17751_v12  ;;  %5912 = vmatpush1.msra.mxu1 %v5911_v22  ;;  %v5815_v22 = vsub.f32 %v14730_v54, %v5814_v36  ;;  %v5967_v6 = vand.u32 4294901760, %v5966_v2 }
 0x2c7   :  { %5765 = vmatpush1.msra.mxu0 %v14641_v31  ;;  %5913 = vmatprep.subr.mxu1 %v17751_v12 }
 0x2c8   :  { %5766 = vmatprep.subr.mxu0 %v17751_v12  ;;  %5919 = vmatpush1.msra.mxu1 %v5918_v39  ;;  %v5810_v39 = vand.u32 4294901760, %v5809_v21  ;;  %v5816_v41 = vand.u32 4294901760, %v5815_v22 }
 0x2c9   :  { %5768 = vmatpush1.msra.mxu0 %v14658_v20  ;;  %5920 = vmatprep.subr.mxu1 %v17751_v12 }
 0x2ca   :  { %5769 = vmatprep.subr.mxu0 %v17751_v12  ;;  %5926 = vmatpush1.msra.mxu1 %v5925_v30 }
 0x2cb   :  { %5771 = vmatpush1.msra.mxu0 %v14673_v24  ;;  %5927 = vmatprep.subr.mxu1 %v17751_v12 }
 0x2cc   :  { %5800 = vmatprep.subr.mxu0 %v17751_v12  ;;  %5933 = vmatpush1.msra.mxu1 %v5932_v17 }
 0x2cd   :  { %5802 = vmatpush2.msra.mxu0 %v14686_v4  ;;  %5962 = vmatprep.subr.mxu1 %v17751_v12 }
 0x2ce   :  { %5803 = vmatprep.subr.mxu0 %v17751_v12  ;;  %5968 = vmatpush2.msra.mxu1 %v5967_v6 }
 0x2cf   :  { %5805 = vmatpush2.msra.mxu0 %v14708_v13  ;;  %5811 = vmatprep.mubr.f32.mxu0 %v5810_v39 }
 0x2d0   :  { %5969 = vmatprep.subr.mxu1 %v17751_v12  ;;  %5817 = vmatmul.mubr.f32.vlgmr.msra.gmra.mxu0 %v5816_v41  ;;  %v17796_v41 = vand.u32 4294901760, %v14716_v53 }
 0x2d1   :  { %5975 = vmatpush2.msra.mxu1 %v5974_v10  ;;  %5984 = vmatprep.subr.mxu0 %v17751_v12 }
 0x2d2   :  { %5977 = vmatprep.mubr.f32.mxu1 %v14693_v52  ;;  %5987 = vmatpush1.msra.mxu0 %v14460_v57 }
 0x2d3   :  { %6094 = vmatprep.subr.mxu1 %v17751_v12  ;;  %5979 = vmatmul.mubr.f32.vlgmr.msra.gmra.mxu1 %v14704_v11  ;;  %v4662_v30 = vpop.f32.mrf.mxu0 }
 0x2d4   :  { %5988 = vmatprep.subr.mxu0 %v17751_v12  ;;  %6096 = vmatpush1.msra.mxu1 %v14439_v59  ;;  %v4663_v17 = vadd.f32 %v4662_v30, %v14607_v42 }
 0x2d5   :  { %5991 = vmatpush1.msra.mxu0 %v14475_v23  ;;  %6097 = vmatprep.subr.mxu1 %v17751_v12  ;;  %v4664_v10 = vpop.f32.mrf.mxu0  ;;  %v4756_v6 = vpop.f32.mrf.mxu1  ;;  %v17789_v23 = vand.u32 4294901760, %v14598_v3 }
 0x2d6   :  { %5992 = vmatprep.subr.mxu0 %v17751_v12  ;;  %6099 = vmatpush1.msra.mxu1 %v14449_v47  ;;  %v14792_v2 = vadd.f32 %v4756_v6, %v4663_v17 }
 0x2d7   :  { %5995 = vmatpush1.msra.mxu0 %v14491_v1  ;;  %6100 = vmatprep.subr.mxu1 %v17751_v12  ;;  %v4758_v21 = vpop.f32.mrf.mxu1  ;;  %v6430_v1 = vld [vmem:[%s17440_s4 + $0x430] sm:$0xff] }
 0x2d8   :  { %5996 = vmatprep.subr.mxu0 %v17751_v12  ;;  %6102 = vmatpush1.msra.mxu1 %v14462_v32 }
 0x2d9   :  { %5999 = vmatpush1.msra.mxu0 %v14499_v43  ;;  %6103 = vmatprep.subr.mxu1 %v17751_v12  ;;  %v17790_v43 = vand.u32 4294901760, %v14624_v49 }
 0x2da   :  { %6000 = vmatprep.subr.mxu0 %v17751_v12  ;;  %6105 = vmatpush1.msra.mxu1 %v14467_v46 }
 0x2db   :  { %6003 = vmatpush1.msra.mxu0 %v14524_v61  ;;  %6106 = vmatprep.subr.mxu1 %v17751_v12  ;;  %v17791_v61 = vand.u32 4294901760, %v14639_v9 }
 0x2dc   :  { %6004 = vmatprep.subr.mxu0 %v17751_v12  ;;  %6108 = vmatpush1.msra.mxu1 %v14493_v16 }
 0x2dd   :  { %6007 = vmatpush1.msra.mxu0 %v14543_v40  ;;  %6109 = vmatprep.subr.mxu1 %v17751_v12 }
 0x2de   :  { %6008 = vmatprep.subr.mxu0 %v17751_v12  ;;  %6111 = vmatpush1.msra.mxu1 %v14507_v27 }
 0x2df   :  { %6011 = vmatpush1.msra.mxu0 %v14561_v45  ;;  %6112 = vmatprep.subr.mxu1 %v17751_v12 }
 0x2e0   :  { %6012 = vmatprep.subr.mxu0 %v17751_v12  ;;  %6114 = vmatpush1.msra.mxu1 %v14526_v63 }
 0x2e1   :  { %6015 = vmatpush1.msra.mxu0 %v14569_v48  ;;  %6115 = vmatprep.subr.mxu1 %v17751_v12 }
 0x2e2   :  { %6016 = vmatprep.subr.mxu0 %v17751_v12  ;;  %6117 = vmatpush1.msra.mxu1 %v14535_v56 }
 0x2e3   :  { %6019 = vmatpush1.msra.mxu0 %v14582_v38  ;;  %6118 = vmatprep.subr.mxu1 %v17751_v12 }
 0x2e4   :  { %6020 = vmatprep.subr.mxu0 %v17751_v12  ;;  %6120 = vmatpush1.msra.mxu1 %v14551_v51 }
 0x2e5   :  { %6023 = vmatpush1.msra.mxu0 %v14598_v3  ;;  %6121 = vmatprep.subr.mxu1 %v17751_v12 }
 0x2e6   :  { %6024 = vmatprep.subr.mxu0 %v17751_v12  ;;  %6123 = vmatpush1.msra.mxu1 %v14571_v0 }
 0x2e7   :  { %6027 = vmatpush1.msra.mxu0 %v14624_v49  ;;  %6124 = vmatprep.subr.mxu1 %v17751_v12 }
 0x2e8   :  { %6028 = vmatprep.subr.mxu0 %v17751_v12  ;;  %6126 = vmatpush1.msra.mxu1 %v14592_v33 }
 0x2e9   :  { %6031 = vmatpush1.msra.mxu0 %v14639_v9  ;;  %6127 = vmatprep.subr.mxu1 %v17751_v12 }
 0x2ea   :  { %6032 = vmatprep.subr.mxu0 %v17751_v12  ;;  %6129 = vmatpush1.msra.mxu1 %v14609_v55 }
 0x2eb   :  { %6035 = vmatpush1.msra.mxu0 %v14656_v35  ;;  %6130 = vmatprep.subr.mxu1 %v17751_v12 }
 0x2ec   :  { %6036 = vmatprep.subr.mxu0 %v17751_v12  ;;  %6132 = vmatpush1.msra.mxu1 %v14626_v50 }
 0x2ed   :  { %6039 = vmatpush1.msra.mxu0 %v14671_v29  ;;  %6133 = vmatprep.subr.mxu1 %v17751_v12 }
 0x2ee   :  { %6040 = vmatprep.subr.mxu0 %v17751_v12  ;;  %6135 = vmatpush1.msra.mxu1 %v14641_v31 }
 0x2ef   :  { %6043 = vmatpush1.msra.mxu0 %v14684_v26  ;;  %6136 = vmatprep.subr.mxu1 %v17751_v12 }
 0x2f0   :  { %6044 = vmatprep.subr.mxu0 %v17751_v12  ;;  %6138 = vmatpush1.msra.mxu1 %v14658_v20 }
 0x2f1   :  { %6047 = vmatpush1.msra.mxu0 %v14701_v18  ;;  %6139 = vmatprep.subr.mxu1 %v17751_v12 }
 0x2f2   :  { %6076 = vmatprep.subr.mxu0 %v17751_v12  ;;  %6141 = vmatpush1.msra.mxu1 %v14673_v24 }
 0x2f3   :  { %6079 = vmatpush2.msra.mxu0 %v14716_v53  ;;  %6170 = vmatprep.subr.mxu1 %v17751_v12  ;;  %v6422_v53 = vld [vmem:[%s17440_s4 + $0x3f0] sm:$0xff] }
 0x2f4   :  { %6080 = vmatprep.subr.mxu0 %v17751_v12  ;;  %6172 = vmatpush2.msra.mxu1 %v14686_v4 }
 0x2f5   :  { %6083 = vmatpush2.msra.mxu0 %v14735_v8  ;;  %6086 = vmatprep.mubr.f32.mxu0 %v14721_v44 }
 0x2f6   :  { %6173 = vmatprep.subr.mxu1 %v17751_v12  ;;  %6089 = vmatmul.mubr.f32.vlgmr.msra.gmra.mxu0 %v14730_v54  ;;  %v17795_v54 = vand.u32 4294901760, %v14701_v18  ;;  %v6423_v18 = vld [vmem:[%s17440_s4 + $0x3f8] sm:$0xff] }
 0x2f7   :  { %6175 = vmatpush2.msra.mxu1 %v14708_v13  ;;  %6188 = vmatprep.subr.mxu0 %v17751_v12 }
 0x2f8   :  { %6179 = vmatprep.mubr.f32.mxu1 %v5808_v15  ;;  %6192 = vmatpush1.msra.mxu0 %v5825_v25  ;;  %v4882_v42 = vpop.f32.mrf.mxu0 }
 0x2f9   :  { %6314 = vmatprep.subr.mxu1 %v17751_v12  ;;  %6183 = vmatmul.mubr.f32.vlgmr.msra.gmra.mxu1 %v5814_v36  ;;  %v4883_v22 = vadd.f32 %v4882_v42, %v14792_v2  ;;  %v15040_v2 = vand.u32 4294901760, %v6423_v18 }
 0x2fa   :  { %6193 = vmatprep.subr.mxu0 %v17751_v12  ;;  %6316 = vmatpush1.msra.mxu1 %v14439_v59  ;;  %v4884_v5 = vpop.f32.mrf.mxu0 }
 0x2fb   :  { %6197 = vmatpush1.msra.mxu0 %v5832_v28  ;;  %6317 = vmatprep.subr.mxu1 %v17751_v12  ;;  %v4972_v57 = vpop.f32.mrf.mxu1  ;;  %v6429_v28 = vld [vmem:[%s17440_s4 + $0x428] sm:$0xff] }
 0x2fc   :  { %6198 = vmatprep.subr.mxu0 %v17751_v12  ;;  %6319 = vmatpush1.msra.mxu1 %v14449_v47  ;;  %v4973_v25 = vadd.f32 %v4972_v57, %v4883_v22  ;;  %v17787_v47 = vand.u32 4294901760, %v14569_v48  ;;  %v6426_v48 = vld [vmem:[%s17440_s4 + $0x410] sm:$0xff]  ;;  %v15060_v57 = vand.u32 4294901760, %v6422_v53 }
 0x2fd   :  { %6202 = vmatpush1.msra.mxu0 %v5839_v60  ;;  %6320 = vmatprep.subr.mxu1 %v17751_v12  ;;  %v4974_v44 = vpop.f32.mrf.mxu1  ;;  %v6428_v60 = vld [vmem:[%s17440_s4 + $0x420] sm:$0xff] }
 0x2fe   :  { %6203 = vmatprep.subr.mxu0 %v17751_v12  ;;  %6322 = vmatpush1.msra.mxu1 %v14462_v32  ;;  %v14881_v59 = vadd.f32 %v4973_v25, %v14397_v14  ;;  %v17786_v14 = vand.u32 4294901760, %v14561_v45  ;;  %v17788_v32 = vand.u32 4294901760, %v14582_v38  ;;  %v14956_v40 = vand.u32 4294901760, %v6428_v60  ;;  %v6421_v25 = vld [vmem:[%s17440_s4 + $0x3e8] sm:$0xff] }
 0x2ff   :  { %6207 = vmatpush1.msra.mxu0 %v5846_v19  ;;  %6323 = vmatprep.subr.mxu1 %v17751_v12  ;;  %v14951_v19 = vand.u32 4294901760, %v6429_v28  ;;  %v17793_v45 = vand.u32 4294901760, %v14671_v29 }
 0x300   :  { %6208 = vmatprep.subr.mxu0 %v17751_v12  ;;  %6325 = vmatpush1.msra.mxu1 %v14467_v46  ;;  %v6431_v46 = vld [vmem:[%s17440_s4 + $0x438] sm:$0xff]  ;;  %v14988_v49 = vsub.f32 %v6428_v60, %v14956_v40 }
 0x301   :  { %6212 = vmatpush1.msra.mxu0 %v5853_v34  ;;  %6326 = vmatprep.subr.mxu1 %v17751_v12 }
 0x302   :  { %6213 = vmatprep.subr.mxu0 %v17751_v12  ;;  %6328 = vmatpush1.msra.mxu1 %v14493_v16  ;;  %v14928_v16 = vand.u32 4294901760, %v6431_v46 }
 0x303   :  { %6217 = vmatpush1.msra.mxu0 %v5860_v58  ;;  %6329 = vmatprep.subr.mxu1 %v17751_v12  ;;  %v6409_v58 = vstv %s14924_s19  ;;  %s15894_s19 = sld [smem:[#allocation2 + $0x6]] }
 0x304   :  { %6218 = vmatprep.subr.mxu0 %v17751_v12  ;;  %6331 = vmatpush1.msra.mxu1 %v14507_v27  ;;  %v14938_v27 = vand.u32 4294901760, %v6430_v1 }
 0x305   :  { %6222 = vmatpush1.msra.mxu0 %v17786_v14  ;;  %6332 = vmatprep.subr.mxu1 %v17751_v12 }
 0x306   :  { %6223 = vmatprep.subr.mxu0 %v17751_v12  ;;  %6334 = vmatpush1.msra.mxu1 %v14526_v63  ;;  %v14949_v63 = vsub.f32 %v6431_v46, %v14928_v16  ;;  %v14964_v34 = vsub.f32 %v6430_v1, %v14938_v27  ;;  %v6420_v46 = vld [vmem:[%s17440_s4 + $0x3e0] sm:$0xff] }
 0x307   :  { %6227 = vmatpush1.msra.mxu0 %v17787_v47  ;;  %6335 = vmatprep.subr.mxu1 %v17751_v12 }
 0x308   :  { %6228 = vmatprep.subr.mxu0 %v17751_v12  ;;  %6337 = vmatpush1.msra.mxu1 %v14535_v56  ;;  %v17792_v56 = vand.u32 4294901760, %v14656_v35  ;;  %v6539_v38 = vand.u32 4294901760, %v14949_v63  ;;  %v6546_v9 = vand.u32 4294901760, %v14964_v34  ;;  %v6424_v35 = vld [vmem:[%s17440_s4 + $0x400] sm:$0xff] }
 0x309   :  { %6232 = vmatpush1.msra.mxu0 %v17788_v32  ;;  %6338 = vmatprep.subr.mxu1 %v17751_v12  ;;  %v15024_v30 = vand.u32 4294901760, %v6424_v35  ;;  %v15071_v32 = vsub.f32 %v6423_v18, %v15040_v2 }
 0x30a   :  { %6233 = vmatprep.subr.mxu0 %v17751_v12  ;;  %6340 = vmatpush1.msra.mxu1 %v14551_v51  ;;  %v6427_v51 = vld [vmem:[%s17440_s4 + $0x418] sm:$0xff]  ;;  %v6547_v17 = vsub.f32 %v14964_v34, %v6546_v9 }
 0x30b   :  { %6237 = vmatpush1.msra.mxu0 %v17789_v23  ;;  %6341 = vmatprep.subr.mxu1 %v17751_v12  ;;  %v14982_v3 = vand.u32 4294901760, %v6427_v51  ;;  %v15058_v8 = vsub.f32 %v6424_v35, %v15024_v30  ;;  %v6418_v35 = vld [vmem:[%s17440_s4 + $0x3d0] sm:$0xff] }
 0x30c   :  { %6238 = vmatprep.subr.mxu0 %v17751_v12  ;;  %6343 = vmatpush1.msra.mxu1 %v14571_v0  ;;  %v6406_v0 = vstv %s14916_s16 }
 0x30d   :  { %6242 = vmatpush1.msra.mxu0 %v17790_v43  ;;  %6344 = vmatprep.subr.mxu1 %v17751_v12  ;;  %v6407_v29 = vmul.f32 %v6406_v0, %v17762_v37  ;;  %v15013_v36 = vsub.f32 %v6427_v51, %v14982_v3  ;;  %v6419_v51 = vld [vmem:[%s17440_s4 + $0x3d8] sm:$0xff]  ;;  %v15098_v0 = vand.u32 4294901760, %v6420_v46 }
 0x30e   :  { %6243 = vmatprep.subr.mxu0 %v17751_v12  ;;  %6346 = vmatpush1.msra.mxu1 %v14592_v33  ;;  %v14980_v33 = vsub.f32 %v6429_v28, %v14951_v19  ;;  %v15081_v28 = vand.u32 4294901760, %v6421_v25 }
 0x30f   :  { %6247 = vmatpush1.msra.mxu0 %v17791_v61  ;;  %6347 = vmatprep.subr.mxu1 %v17751_v12  ;;  %v6567_v22 = vand.u32 4294901760, %v15013_v36  ;;  %v17582_v61 = vand.u32 4294901760, %v15058_v8 }
 0x310   :  { %6248 = vmatprep.subr.mxu0 %v17751_v12  ;;  %6349 = vmatpush1.msra.mxu1 %v14609_v55  ;;  %v17794_v55 = vand.u32 4294901760, %v14684_v26  ;;  %v6410_v26 = vmul.f32 %v6409_v58, %v17763_v62  ;;  %v6553_v15 = vand.u32 4294901760, %v14980_v33 }
 0x311   :  { %6252 = vmatpush1.msra.mxu0 %v17792_v56  ;;  %6350 = vmatprep.subr.mxu1 %v17751_v12  ;;  %v6568_v23 = vsub.f32 %v15013_v36, %v6567_v22  ;;  %v15087_v56 = vsub.f32 %v6422_v53, %v15060_v57  ;;  %v6589_v18 = vsub.f32 %v15058_v8, %v17582_v61 }
 0x312   :  { %6253 = vmatprep.subr.mxu0 %v17751_v12  ;;  %6352 = vmatpush1.msra.mxu1 %v14626_v50  ;;  %v6425_v50 = vld [vmem:[%s17440_s4 + $0x408] sm:$0xff]  ;;  %v6411_v6 = vadd.f32 %v6410_v26, %v6407_v29  ;;  %v6554_v42 = vsub.f32 %v14980_v33, %v6553_v15 }
 0x313   :  { %6257 = vmatpush1.msra.mxu0 %v17793_v45  ;;  %6353 = vmatprep.subr.mxu1 %v17751_v12  ;;  %v15015_v39 = vand.u32 4294901760, %v6425_v50  ;;  %v6569_v29 = vand.u32 4294901760, %v6568_v23  ;;  %v6433_v23 = vld [vmem:[%s17440_s4 + $0x448] sm:$0xff] }
 0x314   :  { %6258 = vmatprep.subr.mxu0 %v17751_v12  ;;  %6355 = vmatpush1.msra.mxu1 %v14641_v31  ;;  %v14996_v31 = vand.u32 4294901760, %v6426_v48 }
 0x315   :  { %6262 = vmatpush1.msra.mxu0 %v17794_v55  ;;  %6356 = vmatprep.subr.mxu1 %v17751_v12  ;;  %v15050_v5 = vsub.f32 %v6425_v50, %v15015_v39  ;;  %v17578_v50 = vand.u32 4294901760, %v15071_v32 }
 0x316   :  { %6263 = vmatprep.subr.mxu0 %v17751_v12  ;;  %6358 = vmatpush1.msra.mxu1 %v14658_v20  ;;  %v6540_v20 = vsub.f32 %v14949_v63, %v6539_v38  ;;  %v15032_v10 = vsub.f32 %v6426_v48, %v14996_v31 }
 0x317   :  { %6267 = vmatpush1.msra.mxu0 %v17795_v54  ;;  %6359 = vmatprep.subr.mxu1 %v17751_v12  ;;  %v17585_v43 = vand.u32 4294901760, %v15050_v5  ;;  %v15113_v54 = vsub.f32 %v6421_v25, %v15081_v28 }
 0x318   :  { %6296 = vmatprep.subr.mxu0 %v17751_v12  ;;  %6361 = vmatpush1.msra.mxu1 %v14673_v24  ;;  %v6560_v24 = vand.u32 4294901760, %v14988_v49  ;;  %v6541_v21 = vand.u32 4294901760, %v6540_v20  ;;  %v6574_v14 = vand.u32 4294901760, %v15032_v10  ;;  %v15115_v20 = vand.u32 4294901760, %v6419_v51 }
 0x319   :  { %6300 = vmatpush2.msra.mxu0 %v17796_v41  ;;  %6390 = vmatprep.subr.mxu1 %v17751_v12  ;;  %v6582_v26 = vsub.f32 %v15050_v5, %v17585_v43  ;;  %v17577_v41 = vand.u32 4294901760, %v15087_v56 }
 0x31a   :  { %6301 = vmatprep.subr.mxu0 %v17751_v12  ;;  %6392 = vmatpush2.msra.mxu1 %v14686_v4  ;;  %v6413_v4 = vstv %s14974_s27  ;;  %v6575_v45 = vsub.f32 %v15032_v10, %v6574_v14 }
 0x31b   :  { %6305 = vmatpush2.msra.mxu0 %v5972_v7  ;;  %6307 = vmatprep.mubr.f32.mxu0 %v14693_v52  ;;  %v6561_v7 = vsub.f32 %v14988_v49, %v6560_v24  ;;  %v6414_v47 = vadd.f32 %v6413_v4, %v6411_v6  ;;  %v15128_v6 = vsub.f32 %v6420_v46, %v15098_v0  ;;  %v15130_v4 = vand.u32 4294901760, %v6418_v35 }
 0x31c   :  { %6393 = vmatprep.subr.mxu1 %v17751_v12  ;;  %6309 = vmatmul.mubr.f32.vlgmr.msra.gmra.mxu0 %v14704_v11  ;;  %v6576_v53 = vand.u32 4294901760, %v6575_v45  ;;  %v6583_v25 = vand.u32 4294901760, %v6582_v26  ;;  %v6590_v46 = vand.u32 4294901760, %v6589_v18  ;;  %v15175_v26 = vand.u32 4294901760, %v6433_v23  ;;  %v6432_v18 = vld [vmem:[%s17440_s4 + $0x440] sm:$0xff] }
 0x31d   :  { %6395 = vmatpush2.msra.mxu1 %v14708_v13  ;;  %6438 = vmatprep.subr.mxu0 %v17751_v12  ;;  %v6548_v13 = vand.u32 4294901760, %v6547_v17  ;;  %v15100_v58 = vmax.f32 %v6414_v47, 0.0  ;;  %v6417_v17 = vld [vmem:[%s17440_s4 + $0x3c8] sm:$0xff] }
 0x31e   :  { %6397 = vmatprep.mubr.f32.mxu1 %v14693_v52  ;;  %6440 = vmatpush1.msra.mxu0 %v14928_v16  ;;  %v5104_v44 = vpop.f32.mrf.mxu0  ;;  %v6555_v52 = vand.u32 4294901760, %v6554_v42  ;;  %v6596_v42 = vsub.f32 %v15071_v32, %v17578_v50  ;;  %v15147_v47 = vand.u32 4294901760, %v6417_v17 }
 0x31f   :  { %6536 = vmatprep.subr.mxu1 %v17751_v12  ;;  %6399 = vmatmul.mubr.f32.vlgmr.msra.gmra.mxu1 %v14704_v11  ;;  %v6562_v11 = vand.u32 4294901760, %v6561_v7  ;;  %v6416_v7 = vld [vmem:[%s17440_s4 + $0x3c0] sm:$0xff] }
 0x320   :  { %6441 = vmatprep.subr.mxu0 %v17751_v12  ;;  %6542 = vmatpush1.msra.mxu1 %v6541_v21  ;;  %v5106_v1 = vpop.f32.mrf.mxu0  ;;  %v6435_v21 = vcombine.high %v15100_v58, %v15100_v58  ;;  %v6597_v45 = vand.u32 4294901760, %v6596_v42 }
 0x321   :  { %6443 = vmatpush1.msra.mxu0 %v14938_v27  ;;  %6543 = vmatprep.subr.mxu1 %v17751_v12  ;;  %v5266_v60 = vpop.f32.mrf.mxu1  ;;  %v17576_v1 = vand.u32 4294901760, %v15128_v6 }
 0x322   :  { %6444 = vmatprep.subr.mxu0 %v17751_v12  ;;  %6549 = vmatpush1.msra.mxu1 %v6548_v13  ;;  %v15096_v48 = vadd.f32 %v5266_v60, %v5104_v44  ;;  %v17575_v13 = vand.u32 4294901760, %v15113_v54  ;;  %v15145_v44 = vsub.f32 %v6419_v51, %v15115_v20  ;;  %v15162_v60 = vand.u32 4294901760, %v6416_v7 }
 0x323   :  { %6446 = vmatpush1.msra.mxu0 %v14951_v19  ;;  %6550 = vmatprep.subr.mxu1 %v17751_v12  ;;  %v5268_v55 = vpop.f32.mrf.mxu1  ;;  %v6436_v51 = vsel %vm70_vm0, %v6435_v21, 0 }
 0x324   :  { %6447 = vmatprep.subr.mxu0 %v17751_v12  ;;  %6556 = vmatpush1.msra.mxu1 %v6555_v52  ;;  %v6603_v52 = vsub.f32 %v15087_v56, %v17577_v41  ;;  %v6610_v55 = vsub.f32 %v15113_v54, %v17575_v13  ;;  %v15182_v21 = vand.u32 4294901760, %v6436_v51  ;;  %v15193_v13 = vand.u32 4294901760, %v15100_v58 }
 0x325   :  { %6449 = vmatpush1.msra.mxu0 %v14956_v40  ;;  %6557 = vmatprep.subr.mxu1 %v17751_v12  ;;  %v15205_v41 = vsub.f32 %v6433_v23, %v15175_v26 }
 0x326   :  { %6450 = vmatprep.subr.mxu0 %v17751_v12  ;;  %6563 = vmatpush1.msra.mxu1 %v6562_v11  ;;  %v15160_v11 = vsub.f32 %v6418_v35, %v15130_v4  ;;  %v15173_v35 = vsub.f32 %v6417_v17, %v15147_v47  ;;  %v6617_v17 = vsub.f32 %v15128_v6, %v17576_v1 }
 0x327   :  { %6452 = vmatpush1.msra.mxu0 %v14982_v3  ;;  %6564 = vmatprep.subr.mxu1 %v17751_v12  ;;  %v15210_v50 = vsub.f32 %v6436_v51, %v15182_v21  ;;  %v15219_v23 = vsub.f32 %v15100_v58, %v15193_v13 }
 0x328   :  { %6453 = vmatprep.subr.mxu0 %v17751_v12  ;;  %6570 = vmatpush1.msra.mxu1 %v6569_v29  ;;  %v17579_v29 = vand.u32 4294901760, %v15145_v44  ;;  %v17580_v42 = vand.u32 4294901760, %v15160_v11 }
 0x329   :  { %6455 = vmatpush1.msra.mxu0 %v14996_v31  ;;  %6571 = vmatprep.subr.mxu1 %v17751_v12  ;;  %v6522_v58 = vand.u32 4294901760, %v15210_v50 }
 0x32a   :  { %6456 = vmatprep.subr.mxu0 %v17751_v12  ;;  %6577 = vmatpush1.msra.mxu1 %v6576_v53  ;;  %v6604_v53 = vand.u32 4294901760, %v6603_v52  ;;  %v15197_v52 = vand.u32 4294901760, %v6432_v18  ;;  %v6624_v1 = vsub.f32 %v15145_v44, %v17579_v29 }
 0x32b   :  { %6458 = vmatpush1.msra.mxu0 %v15015_v39  ;;  %6578 = vmatprep.subr.mxu1 %v17751_v12 }
 0x32c   :  { %6459 = vmatprep.subr.mxu0 %v17751_v12  ;;  %6584 = vmatpush1.msra.mxu1 %v6583_v25  ;;  %v15190_v25 = vsub.f32 %v6416_v7, %v15162_v60  ;;  %v17581_v7 = vand.u32 4294901760, %v15173_v35  ;;  %v15224_v51 = vsub.f32 %v6432_v18, %v15197_v52 }
 0x32d   :  { %6461 = vmatpush1.msra.mxu0 %v15024_v30  ;;  %6585 = vmatprep.subr.mxu1 %v17751_v12 }
 0x32e   :  { %6462 = vmatprep.subr.mxu0 %v17751_v12  ;;  %6591 = vmatpush1.msra.mxu1 %v6590_v46  ;;  %v6611_v46 = vand.u32 4294901760, %v6610_v55  ;;  %v6631_v55 = vsub.f32 %v15160_v11, %v17580_v42  ;;  %v17583_v29 = vand.u32 4294901760, %v15190_v25  ;;  %v17584_v42 = vand.u32 4294901760, %v15205_v41 }
 0x32f   :  { %6464 = vmatpush1.msra.mxu0 %v15040_v2  ;;  %6592 = vmatprep.subr.mxu1 %v17751_v12 }
 0x330   :  { %6465 = vmatprep.subr.mxu0 %v17751_v12  ;;  %6598 = vmatpush1.msra.mxu1 %v6597_v45  ;;  %v6618_v45 = vand.u32 4294901760, %v6617_v17  ;;  %v6638_v17 = vsub.f32 %v15173_v35, %v17581_v7  ;;  %v6632_v18 = vand.u32 4294901760, %v6631_v55  ;;  %v6686_v7 = vand.u32 4294901760, %v15224_v51 }
 0x331   :  { %6467 = vmatpush1.msra.mxu0 %v15060_v57  ;;  %6599 = vmatprep.subr.mxu1 %v17751_v12  ;;  %v6523_v55 = vsub.f32 %v15210_v50, %v6522_v58 }
 0x332   :  { %6468 = vmatprep.subr.mxu0 %v17751_v12  ;;  %6605 = vmatpush1.msra.mxu1 %v6604_v53  ;;  %v6625_v53 = vand.u32 4294901760, %v6624_v1  ;;  %v6645_v1 = vsub.f32 %v15190_v25, %v17583_v29  ;;  %v6639_v61 = vand.u32 4294901760, %v6638_v17  ;;  %v6687_v17 = vsub.f32 %v15224_v51, %v6686_v7 }
 0x333   :  { %6470 = vmatpush1.msra.mxu0 %v15081_v28  ;;  %6606 = vmatprep.subr.mxu1 %v17751_v12 }
 0x334   :  { %6471 = vmatprep.subr.mxu0 %v17751_v12  ;;  %6612 = vmatpush1.msra.mxu1 %v6611_v46  ;;  %v6528_v46 = vand.u32 4294901760, %v15219_v23  ;;  %v6646_v29 = vand.u32 4294901760, %v6645_v1  ;;  %v6688_v43 = vand.u32 4294901760, %v6687_v17 }
 0x335   :  { %6473 = vmatpush1.msra.mxu0 %v15098_v0  ;;  %6613 = vmatprep.subr.mxu1 %v17751_v12 }
 0x336   :  { %6474 = vmatprep.subr.mxu0 %v17751_v12  ;;  %6619 = vmatpush1.msra.mxu1 %v6618_v45  ;;  %v6680_v45 = vsub.f32 %v15205_v41, %v17584_v42 }
 0x337   :  { %6476 = vmatpush1.msra.mxu0 %v15115_v20  ;;  %6620 = vmatprep.subr.mxu1 %v17751_v12 }
 0x338   :  { %6477 = vmatprep.subr.mxu0 %v17751_v12  ;;  %6626 = vmatpush1.msra.mxu1 %v6625_v53  ;;  %v6529_v53 = vsub.f32 %v15219_v23, %v6528_v46  ;;  %v6681_v42 = vand.u32 4294901760, %v6680_v45 }
 0x339   :  { %6479 = vmatpush1.msra.mxu0 %v15130_v4  ;;  %6627 = vmatprep.subr.mxu1 %v17751_v12 }
 0x33a   :  { %6480 = vmatprep.subr.mxu0 %v17751_v12  ;;  %6633 = vmatpush1.msra.mxu1 %v6632_v18  ;;  %v6524_v18 = vand.u32 4294901760, %v6523_v55  ;;  %v6530_v1 = vand.u32 4294901760, %v6529_v53 }
 0x33b   :  { %6482 = vmatpush1.msra.mxu0 %v15147_v47  ;;  %6634 = vmatprep.subr.mxu1 %v17751_v12 }
 0x33c   :  { %6483 = vmatprep.subr.mxu0 %v17751_v12  ;;  %6640 = vmatpush1.msra.mxu1 %v6639_v61 }
 0x33d   :  { %6485 = vmatpush1.msra.mxu0 %v15162_v60  ;;  %6641 = vmatprep.subr.mxu1 %v17751_v12 }
 0x33e   :  { %6514 = vmatprep.subr.mxu0 %v17751_v12  ;;  %6647 = vmatpush1.msra.mxu1 %v6646_v29 }
 0x33f   :  { %6516 = vmatpush2.msra.mxu0 %v15175_v26  ;;  %6676 = vmatprep.subr.mxu1 %v17751_v12 }
 0x340   :  { %6517 = vmatprep.subr.mxu0 %v17751_v12  ;;  %6682 = vmatpush2.msra.mxu1 %v6681_v42 }
 0x341   :  { %6519 = vmatpush2.msra.mxu0 %v15197_v52  ;;  %6525 = vmatprep.mubr.f32.mxu0 %v6524_v18 }
 0x342   :  { %6683 = vmatprep.subr.mxu1 %v17751_v12  ;;  %6531 = vmatmul.mubr.f32.vlgmr.msra.gmra.mxu0 %v6530_v1  ;;  %v17807_v1 = vand.u32 4294901760, %v15205_v41 }
 0x343   :  { %6689 = vmatpush2.msra.mxu1 %v6688_v43  ;;  %6698 = vmatprep.subr.mxu0 %v17751_v12 }
 0x344   :  { %6691 = vmatprep.mubr.f32.mxu1 %v15182_v21  ;;  %6701 = vmatpush1.msra.mxu0 %v14949_v63  ;;  %v5376_v61 = vpop.f32.mrf.mxu0 }
 0x345   :  { %6808 = vmatprep.subr.mxu1 %v17751_v12  ;;  %6693 = vmatmul.mubr.f32.vlgmr.msra.gmra.mxu1 %v15193_v13  ;;  %v5377_v29 = vadd.f32 %v5376_v61, %v15096_v48 }
 0x346   :  { %6702 = vmatprep.subr.mxu0 %v17751_v12  ;;  %6810 = vmatpush1.msra.mxu1 %v14928_v16  ;;  %v5378_v42 = vpop.f32.mrf.mxu0 }
 0x347   :  { %6705 = vmatpush1.msra.mxu0 %v14964_v34  ;;  %6811 = vmatprep.subr.mxu1 %v17751_v12  ;;  %v5470_v43 = vpop.f32.mrf.mxu1  ;;  %v17800_v34 = vand.u32 4294901760, %v15087_v56 }
 0x348   :  { %6706 = vmatprep.subr.mxu0 %v17751_v12  ;;  %6813 = vmatpush1.msra.mxu1 %v14938_v27  ;;  %v15281_v45 = vadd.f32 %v5470_v43, %v5377_v29 }
 0x349   :  { %6709 = vmatpush1.msra.mxu0 %v14980_v33  ;;  %6814 = vmatprep.subr.mxu1 %v17751_v12  ;;  %v5472_v48 = vpop.f32.mrf.mxu1  ;;  %v7144_v33 = vld [vmem:[%s17440_s4 + $0x4c0] sm:$0xff] }
 0x34a   :  { %6710 = vmatprep.subr.mxu0 %v17751_v12  ;;  %6816 = vmatpush1.msra.mxu1 %v14951_v19 }
 0x34b   :  { %6713 = vmatpush1.msra.mxu0 %v14988_v49  ;;  %6817 = vmatprep.subr.mxu1 %v17751_v12  ;;  %v17801_v49 = vand.u32 4294901760, %v15113_v54 }
 0x34c   :  { %6714 = vmatprep.subr.mxu0 %v17751_v12  ;;  %6819 = vmatpush1.msra.mxu1 %v14956_v40 }
 0x34d   :  { %6717 = vmatpush1.msra.mxu0 %v15013_v36  ;;  %6820 = vmatprep.subr.mxu1 %v17751_v12  ;;  %v17802_v36 = vand.u32 4294901760, %v15128_v6 }
 0x34e   :  { %6718 = vmatprep.subr.mxu0 %v17751_v12  ;;  %6822 = vmatpush1.msra.mxu1 %v14982_v3 }
 0x34f   :  { %6721 = vmatpush1.msra.mxu0 %v15032_v10  ;;  %6823 = vmatprep.subr.mxu1 %v17751_v12 }
 0x350   :  { %6722 = vmatprep.subr.mxu0 %v17751_v12  ;;  %6825 = vmatpush1.msra.mxu1 %v14996_v31 }
 0x351   :  { %6725 = vmatpush1.msra.mxu0 %v15050_v5  ;;  %6826 = vmatprep.subr.mxu1 %v17751_v12 }
 0x352   :  { %6726 = vmatprep.subr.mxu0 %v17751_v12  ;;  %6828 = vmatpush1.msra.mxu1 %v15015_v39 }
 0x353   :  { %6729 = vmatpush1.msra.mxu0 %v15058_v8  ;;  %6829 = vmatprep.subr.mxu1 %v17751_v12 }
 0x354   :  { %6730 = vmatprep.subr.mxu0 %v17751_v12  ;;  %6831 = vmatpush1.msra.mxu1 %v15024_v30 }
 0x355   :  { %6733 = vmatpush1.msra.mxu0 %v15071_v32  ;;  %6832 = vmatprep.subr.mxu1 %v17751_v12 }
 0x356   :  { %6734 = vmatprep.subr.mxu0 %v17751_v12  ;;  %6834 = vmatpush1.msra.mxu1 %v15040_v2 }
 0x357   :  { %6737 = vmatpush1.msra.mxu0 %v15087_v56  ;;  %6835 = vmatprep.subr.mxu1 %v17751_v12 }
 0x358   :  { %6738 = vmatprep.subr.mxu0 %v17751_v12  ;;  %6837 = vmatpush1.msra.mxu1 %v15060_v57 }
 0x359   :  { %6741 = vmatpush1.msra.mxu0 %v15113_v54  ;;  %6838 = vmatprep.subr.mxu1 %v17751_v12 }
 0x35a   :  { %6742 = vmatprep.subr.mxu0 %v17751_v12  ;;  %6840 = vmatpush1.msra.mxu1 %v15081_v28 }
 0x35b   :  { %6745 = vmatpush1.msra.mxu0 %v15128_v6  ;;  %6841 = vmatprep.subr.mxu1 %v17751_v12 }
 0x35c   :  { %6746 = vmatprep.subr.mxu0 %v17751_v12  ;;  %6843 = vmatpush1.msra.mxu1 %v15098_v0 }
 0x35d   :  { %6749 = vmatpush1.msra.mxu0 %v15145_v44  ;;  %6844 = vmatprep.subr.mxu1 %v17751_v12 }
 0x35e   :  { %6750 = vmatprep.subr.mxu0 %v17751_v12  ;;  %6846 = vmatpush1.msra.mxu1 %v15115_v20 }
 0x35f   :  { %6753 = vmatpush1.msra.mxu0 %v15160_v11  ;;  %6847 = vmatprep.subr.mxu1 %v17751_v12 }
 0x360   :  { %6754 = vmatprep.subr.mxu0 %v17751_v12  ;;  %6849 = vmatpush1.msra.mxu1 %v15130_v4 }
 0x361   :  { %6757 = vmatpush1.msra.mxu0 %v15173_v35  ;;  %6850 = vmatprep.subr.mxu1 %v17751_v12 }
 0x362   :  { %6758 = vmatprep.subr.mxu0 %v17751_v12  ;;  %6852 = vmatpush1.msra.mxu1 %v15147_v47 }
 0x363   :  { %6761 = vmatpush1.msra.mxu0 %v15190_v25  ;;  %6853 = vmatprep.subr.mxu1 %v17751_v12 }
 0x364   :  { %6790 = vmatprep.subr.mxu0 %v17751_v12  ;;  %6855 = vmatpush1.msra.mxu1 %v15162_v60 }
 0x365   :  { %6793 = vmatpush2.msra.mxu0 %v15205_v41  ;;  %6884 = vmatprep.subr.mxu1 %v17751_v12  ;;  %v7136_v41 = vld [vmem:[%s17440_s4 + $0x480] sm:$0xff] }
 0x366   :  { %6794 = vmatprep.subr.mxu0 %v17751_v12  ;;  %6886 = vmatpush2.msra.mxu1 %v15175_v26 }
 0x367   :  { %6797 = vmatpush2.msra.mxu0 %v15224_v51  ;;  %6800 = vmatprep.mubr.f32.mxu0 %v15210_v50 }
 0x368   :  { %6887 = vmatprep.subr.mxu1 %v17751_v12  ;;  %6803 = vmatmul.mubr.f32.vlgmr.msra.gmra.mxu0 %v15219_v23  ;;  %v17806_v23 = vand.u32 4294901760, %v15190_v25  ;;  %v7137_v25 = vld [vmem:[%s17440_s4 + $0x488] sm:$0xff] }
 0x369   :  { %6889 = vmatpush2.msra.mxu1 %v15197_v52  ;;  %6902 = vmatprep.subr.mxu0 %v17751_v12 }
 0x36a   :  { %6893 = vmatprep.mubr.f32.mxu1 %v6522_v58  ;;  %6906 = vmatpush1.msra.mxu0 %v6539_v38  ;;  %v5596_v55 = vpop.f32.mrf.mxu0 }
 0x36b   :  { %7028 = vmatprep.subr.mxu1 %v17751_v12  ;;  %6897 = vmatmul.mubr.f32.vlgmr.msra.gmra.mxu1 %v6528_v46  ;;  %v5597_v53 = vadd.f32 %v5596_v55, %v15281_v45  ;;  %v15529_v45 = vand.u32 4294901760, %v7137_v25 }
 0x36c   :  { %6907 = vmatprep.subr.mxu0 %v17751_v12  ;;  %7030 = vmatpush1.msra.mxu1 %v14928_v16  ;;  %v5598_v17 = vpop.f32.mrf.mxu0 }
 0x36d   :  { %6911 = vmatpush1.msra.mxu0 %v6546_v9  ;;  %7031 = vmatprep.subr.mxu1 %v17751_v12  ;;  %v5686_v63 = vpop.f32.mrf.mxu1  ;;  %v7143_v9 = vld [vmem:[%s17440_s4 + $0x4b8] sm:$0xff] }
 0x36e   :  { %6912 = vmatprep.subr.mxu0 %v17751_v12  ;;  %7033 = vmatpush1.msra.mxu1 %v14938_v27  ;;  %v5687_v38 = vadd.f32 %v5686_v63, %v5597_v53  ;;  %v17798_v27 = vand.u32 4294901760, %v15058_v8  ;;  %v7140_v8 = vld [vmem:[%s17440_s4 + $0x4a0] sm:$0xff]  ;;  %v15549_v63 = vand.u32 4294901760, %v7136_v41 }
 0x36f   :  { %6916 = vmatpush1.msra.mxu0 %v6553_v15  ;;  %7034 = vmatprep.subr.mxu1 %v17751_v12  ;;  %v5688_v50 = vpop.f32.mrf.mxu1  ;;  %v7142_v15 = vld [vmem:[%s17440_s4 + $0x4b0] sm:$0xff] }
 0x370   :  { %6917 = vmatprep.subr.mxu0 %v17751_v12  ;;  %7036 = vmatpush1.msra.mxu1 %v14951_v19  ;;  %v15370_v16 = vadd.f32 %v5687_v38, %v14881_v59  ;;  %v17797_v59 = vand.u32 4294901760, %v15050_v5  ;;  %v17799_v19 = vand.u32 4294901760, %v15071_v32  ;;  %v15445_v10 = vand.u32 4294901760, %v7142_v15  ;;  %v7135_v38 = vld [vmem:[%s17440_s4 + $0x478] sm:$0xff] }
 0x371   :  { %6921 = vmatpush1.msra.mxu0 %v6560_v24  ;;  %7037 = vmatprep.subr.mxu1 %v17751_v12  ;;  %v15440_v24 = vand.u32 4294901760, %v7143_v9  ;;  %v17804_v5 = vand.u32 4294901760, %v15160_v11 }
 0x372   :  { %6922 = vmatprep.subr.mxu0 %v17751_v12  ;;  %7039 = vmatpush1.msra.mxu1 %v14956_v40  ;;  %v7145_v40 = vld [vmem:[%s17440_s4 + $0x4c8] sm:$0xff]  ;;  %v15477_v54 = vsub.f32 %v7142_v15, %v15445_v10 }
 0x373   :  { %6926 = vmatpush1.msra.mxu0 %v6567_v22  ;;  %7040 = vmatprep.subr.mxu1 %v17751_v12 }
 0x374   :  { %6927 = vmatprep.subr.mxu0 %v17751_v12  ;;  %7042 = vmatpush1.msra.mxu1 %v14982_v3  ;;  %v15417_v3 = vand.u32 4294901760, %v7145_v40 }
 0x375   :  { %6931 = vmatpush1.msra.mxu0 %v6574_v14  ;;  %7043 = vmatprep.subr.mxu1 %v17751_v12  ;;  %v7123_v14 = vstv %s15413_s10  ;;  %s16383_s10 = sld [smem:[#allocation2 + $0x7]] }
 0x376   :  { %6932 = vmatprep.subr.mxu0 %v17751_v12  ;;  %7045 = vmatpush1.msra.mxu1 %v14996_v31  ;;  %v15427_v31 = vand.u32 4294901760, %v7144_v33 }
 0x377   :  { %6936 = vmatpush1.msra.mxu0 %v17797_v59  ;;  %7046 = vmatprep.subr.mxu1 %v17751_v12 }
 0x378   :  { %6937 = vmatprep.subr.mxu0 %v17751_v12  ;;  %7048 = vmatpush1.msra.mxu1 %v15015_v39  ;;  %v15438_v39 = vsub.f32 %v7145_v40, %v15417_v3  ;;  %v15453_v22 = vsub.f32 %v7144_v33, %v15427_v31  ;;  %v7134_v40 = vld [vmem:[%s17440_s4 + $0x470] sm:$0xff] }
 0x379   :  { %6941 = vmatpush1.msra.mxu0 %v17798_v27  ;;  %7049 = vmatprep.subr.mxu1 %v17751_v12 }
 0x37a   :  { %6942 = vmatprep.subr.mxu0 %v17751_v12  ;;  %7051 = vmatpush1.msra.mxu1 %v15024_v30  ;;  %v17803_v30 = vand.u32 4294901760, %v15145_v44  ;;  %v7253_v32 = vand.u32 4294901760, %v15438_v39  ;;  %v7260_v6 = vand.u32 4294901760, %v15453_v22  ;;  %v7138_v44 = vld [vmem:[%s17440_s4 + $0x490] sm:$0xff] }
 0x37b   :  { %6946 = vmatpush1.msra.mxu0 %v17799_v19  ;;  %7052 = vmatprep.subr.mxu1 %v17751_v12  ;;  %v15513_v61 = vand.u32 4294901760, %v7138_v44  ;;  %v15560_v19 = vsub.f32 %v7137_v25, %v15529_v45 }
 0x37c   :  { %6947 = vmatprep.subr.mxu0 %v17751_v12  ;;  %7054 = vmatpush1.msra.mxu1 %v15040_v2  ;;  %v7141_v2 = vld [vmem:[%s17440_s4 + $0x4a8] sm:$0xff]  ;;  %v7261_v29 = vsub.f32 %v15453_v22, %v7260_v6 }
 0x37d   :  { %6951 = vmatpush1.msra.mxu0 %v17800_v34  ;;  %7055 = vmatprep.subr.mxu1 %v17751_v12  ;;  %v15471_v56 = vand.u32 4294901760, %v7141_v2  ;;  %v15547_v51 = vsub.f32 %v7138_v44, %v15513_v61  ;;  %v7132_v44 = vld [vmem:[%s17440_s4 + $0x460] sm:$0xff] }
 0x37e   :  { %6952 = vmatprep.subr.mxu0 %v17751_v12  ;;  %7057 = vmatpush1.msra.mxu1 %v15060_v57  ;;  %v7120_v57 = vstv %s15405_s29 }
 0x37f   :  { %6956 = vmatpush1.msra.mxu0 %v17801_v49  ;;  %7058 = vmatprep.subr.mxu1 %v17751_v12  ;;  %v7121_v11 = vmul.f32 %v7120_v57, %v17762_v37  ;;  %v15502_v46 = vsub.f32 %v7141_v2, %v15471_v56  ;;  %v7133_v2 = vld [vmem:[%s17440_s4 + $0x468] sm:$0xff]  ;;  %v15587_v57 = vand.u32 4294901760, %v7134_v40 }
 0x380   :  { %6957 = vmatprep.subr.mxu0 %v17751_v12  ;;  %7060 = vmatpush1.msra.mxu1 %v15081_v28  ;;  %v15469_v28 = vsub.f32 %v7143_v9, %v15440_v24  ;;  %v15570_v9 = vand.u32 4294901760, %v7135_v38 }
 0x381   :  { %6961 = vmatpush1.msra.mxu0 %v17802_v36  ;;  %7061 = vmatprep.subr.mxu1 %v17751_v12  ;;  %v7281_v53 = vand.u32 4294901760, %v15502_v46  ;;  %v17593_v36 = vand.u32 4294901760, %v15547_v51 }
 0x382   :  { %6962 = vmatprep.subr.mxu0 %v17751_v12  ;;  %7063 = vmatpush1.msra.mxu1 %v15098_v0  ;;  %v17805_v0 = vand.u32 4294901760, %v15173_v35  ;;  %v7124_v35 = vmul.f32 %v7123_v14, %v17763_v62  ;;  %v7267_v58 = vand.u32 4294901760, %v15469_v28 }
 0x383   :  { %6966 = vmatpush1.msra.mxu0 %v17803_v30  ;;  %7064 = vmatprep.subr.mxu1 %v17751_v12  ;;  %v7282_v34 = vsub.f32 %v15502_v46, %v7281_v53  ;;  %v15576_v30 = vsub.f32 %v7136_v41, %v15549_v63  ;;  %v7303_v25 = vsub.f32 %v15547_v51, %v17593_v36 }
 0x384   :  { %6967 = vmatprep.subr.mxu0 %v17751_v12  ;;  %7066 = vmatpush1.msra.mxu1 %v15115_v20  ;;  %v7139_v20 = vld [vmem:[%s17440_s4 + $0x498] sm:$0xff]  ;;  %v7125_v43 = vadd.f32 %v7124_v35, %v7121_v11  ;;  %v7268_v55 = vsub.f32 %v15469_v28, %v7267_v58 }
 0x385   :  { %6971 = vmatpush1.msra.mxu0 %v17804_v5  ;;  %7067 = vmatprep.subr.mxu1 %v17751_v12  ;;  %v15504_v18 = vand.u32 4294901760, %v7139_v20  ;;  %v7283_v11 = vand.u32 4294901760, %v7282_v34  ;;  %v7147_v34 = vld [vmem:[%s17440_s4 + $0x4d8] sm:$0xff] }
 0x386   :  { %6972 = vmatprep.subr.mxu0 %v17751_v12  ;;  %7069 = vmatpush1.msra.mxu1 %v15130_v4  ;;  %v15485_v4 = vand.u32 4294901760, %v7140_v8 }
 0x387   :  { %6976 = vmatpush1.msra.mxu0 %v17805_v0  ;;  %7070 = vmatprep.subr.mxu1 %v17751_v12  ;;  %v15539_v17 = vsub.f32 %v7139_v20, %v15504_v18  ;;  %v17589_v20 = vand.u32 4294901760, %v15560_v19 }
 0x388   :  { %6977 = vmatprep.subr.mxu0 %v17751_v12  ;;  %7072 = vmatpush1.msra.mxu1 %v15147_v47  ;;  %v7254_v47 = vsub.f32 %v15438_v39, %v7253_v32  ;;  %v15521_v42 = vsub.f32 %v7140_v8, %v15485_v4 }
 0x389   :  { %6981 = vmatpush1.msra.mxu0 %v17806_v23  ;;  %7073 = vmatprep.subr.mxu1 %v17751_v12  ;;  %v17596_v49 = vand.u32 4294901760, %v15539_v17  ;;  %v15602_v23 = vsub.f32 %v7135_v38, %v15570_v9 }
 0x38a   :  { %7010 = vmatprep.subr.mxu0 %v17751_v12  ;;  %7075 = vmatpush1.msra.mxu1 %v15162_v60  ;;  %v7274_v60 = vand.u32 4294901760, %v15477_v54  ;;  %v7255_v48 = vand.u32 4294901760, %v7254_v47  ;;  %v7288_v59 = vand.u32 4294901760, %v15521_v42  ;;  %v15604_v47 = vand.u32 4294901760, %v7133_v2 }
 0x38b   :  { %7014 = vmatpush2.msra.mxu0 %v17807_v1  ;;  %7104 = vmatprep.subr.mxu1 %v17751_v12  ;;  %v7296_v35 = vsub.f32 %v15539_v17, %v17596_v49  ;;  %v17588_v1 = vand.u32 4294901760, %v15576_v30 }
 0x38c   :  { %7015 = vmatprep.subr.mxu0 %v17751_v12  ;;  %7106 = vmatpush2.msra.mxu1 %v15175_v26  ;;  %v7127_v26 = vstv %s15463_s17  ;;  %v7289_v5 = vsub.f32 %v15521_v42, %v7288_v59 }
 0x38d   :  { %7019 = vmatpush2.msra.mxu0 %v6686_v7  ;;  %7021 = vmatprep.mubr.f32.mxu0 %v15182_v21  ;;  %v7275_v7 = vsub.f32 %v15477_v54, %v7274_v60  ;;  %v7128_v27 = vadd.f32 %v7127_v26, %v7125_v43  ;;  %v15617_v43 = vsub.f32 %v7134_v40, %v15587_v57  ;;  %v15619_v26 = vand.u32 4294901760, %v7132_v44 }
 0x38e   :  { %7107 = vmatprep.subr.mxu1 %v17751_v12  ;;  %7023 = vmatmul.mubr.f32.vlgmr.msra.gmra.mxu0 %v15193_v13  ;;  %v7290_v41 = vand.u32 4294901760, %v7289_v5  ;;  %v7297_v38 = vand.u32 4294901760, %v7296_v35  ;;  %v7304_v40 = vand.u32 4294901760, %v7303_v25  ;;  %v15664_v35 = vand.u32 4294901760, %v7147_v34  ;;  %v7146_v25 = vld [vmem:[%s17440_s4 + $0x4d0] sm:$0xff] }
 0x38f   :  { %7109 = vmatpush2.msra.mxu1 %v15197_v52  ;;  %7152 = vmatprep.subr.mxu0 %v17751_v12  ;;  %v7262_v52 = vand.u32 4294901760, %v7261_v29  ;;  %v15589_v14 = vmax.f32 %v7128_v27, 0.0  ;;  %v7131_v29 = vld [vmem:[%s17440_s4 + $0x458] sm:$0xff] }
 0x390   :  { %7111 = vmatprep.mubr.f32.mxu1 %v15182_v21  ;;  %7154 = vmatpush1.msra.mxu0 %v15417_v3  ;;  %v5818_v50 = vpop.f32.mrf.mxu0  ;;  %v7269_v21 = vand.u32 4294901760, %v7268_v55  ;;  %v7310_v55 = vsub.f32 %v15560_v19, %v17589_v20  ;;  %v15636_v27 = vand.u32 4294901760, %v7131_v29 }
 0x391   :  { %7250 = vmatprep.subr.mxu1 %v17751_v12  ;;  %7113 = vmatmul.mubr.f32.vlgmr.msra.gmra.mxu1 %v15193_v13  ;;  %v7276_v13 = vand.u32 4294901760, %v7275_v7  ;;  %v7130_v7 = vld [vmem:[%s17440_s4 + $0x450] sm:$0xff] }
 0x392   :  { %7155 = vmatprep.subr.mxu0 %v17751_v12  ;;  %7256 = vmatpush1.msra.mxu1 %v7255_v48  ;;  %v5820_v33 = vpop.f32.mrf.mxu0  ;;  %v7149_v48 = vcombine.high %v15589_v14, %v15589_v14  ;;  %v7311_v5 = vand.u32 4294901760, %v7310_v55 }
 0x393   :  { %7157 = vmatpush1.msra.mxu0 %v15427_v31  ;;  %7257 = vmatprep.subr.mxu1 %v17751_v12  ;;  %v5980_v15 = vpop.f32.mrf.mxu1  ;;  %v17587_v33 = vand.u32 4294901760, %v15617_v43 }
 0x394   :  { %7158 = vmatprep.subr.mxu0 %v17751_v12  ;;  %7263 = vmatpush1.msra.mxu1 %v7262_v52  ;;  %v15585_v8 = vadd.f32 %v5980_v15, %v5818_v50  ;;  %v17586_v52 = vand.u32 4294901760, %v15602_v23  ;;  %v15634_v50 = vsub.f32 %v7133_v2, %v15604_v47  ;;  %v15651_v15 = vand.u32 4294901760, %v7130_v7 }
 0x395   :  { %7160 = vmatpush1.msra.mxu0 %v15440_v24  ;;  %7264 = vmatprep.subr.mxu1 %v17751_v12  ;;  %v5982_v0 = vpop.f32.mrf.mxu1  ;;  %v7150_v2 = vsel %vm70_vm0, %v7149_v48, 0 }
 0x396   :  { %7161 = vmatprep.subr.mxu0 %v17751_v12  ;;  %7270 = vmatpush1.msra.mxu1 %v7269_v21  ;;  %v7317_v21 = vsub.f32 %v15576_v30, %v17588_v1  ;;  %v7324_v0 = vsub.f32 %v15602_v23, %v17586_v52  ;;  %v15671_v48 = vand.u32 4294901760, %v7150_v2  ;;  %v15682_v52 = vand.u32 4294901760, %v15589_v14 }
 0x397   :  { %7163 = vmatpush1.msra.mxu0 %v15445_v10  ;;  %7271 = vmatprep.subr.mxu1 %v17751_v12  ;;  %v15694_v1 = vsub.f32 %v7147_v34, %v15664_v35 }
 0x398   :  { %7164 = vmatprep.subr.mxu0 %v17751_v12  ;;  %7277 = vmatpush1.msra.mxu1 %v7276_v13  ;;  %v15649_v13 = vsub.f32 %v7132_v44, %v15619_v26  ;;  %v15662_v44 = vsub.f32 %v7131_v29, %v15636_v27  ;;  %v7331_v29 = vsub.f32 %v15617_v43, %v17587_v33 }
 0x399   :  { %7166 = vmatpush1.msra.mxu0 %v15471_v56  ;;  %7278 = vmatprep.subr.mxu1 %v17751_v12  ;;  %v15699_v20 = vsub.f32 %v7150_v2, %v15671_v48  ;;  %v15708_v34 = vsub.f32 %v15589_v14, %v15682_v52 }
 0x39a   :  { %7167 = vmatprep.subr.mxu0 %v17751_v12  ;;  %7284 = vmatpush1.msra.mxu1 %v7283_v11  ;;  %v17590_v11 = vand.u32 4294901760, %v15634_v50  ;;  %v17591_v55 = vand.u32 4294901760, %v15649_v13 }
 0x39b   :  { %7169 = vmatpush1.msra.mxu0 %v15485_v4  ;;  %7285 = vmatprep.subr.mxu1 %v17751_v12  ;;  %v7236_v14 = vand.u32 4294901760, %v15699_v20 }
 0x39c   :  { %7170 = vmatprep.subr.mxu0 %v17751_v12  ;;  %7291 = vmatpush1.msra.mxu1 %v7290_v41  ;;  %v7318_v41 = vand.u32 4294901760, %v7317_v21  ;;  %v15686_v21 = vand.u32 4294901760, %v7146_v25  ;;  %v7338_v33 = vsub.f32 %v15634_v50, %v17590_v11 }
 0x39d   :  { %7172 = vmatpush1.msra.mxu0 %v15504_v18  ;;  %7292 = vmatprep.subr.mxu1 %v17751_v12 }
 0x39e   :  { %7173 = vmatprep.subr.mxu0 %v17751_v12  ;;  %7298 = vmatpush1.msra.mxu1 %v7297_v38  ;;  %v15679_v38 = vsub.f32 %v7130_v7, %v15651_v15  ;;  %v17592_v7 = vand.u32 4294901760, %v15662_v44  ;;  %v15713_v2 = vsub.f32 %v7146_v25, %v15686_v21 }
 0x39f   :  { %7175 = vmatpush1.msra.mxu0 %v15513_v61  ;;  %7299 = vmatprep.subr.mxu1 %v17751_v12 }
 0x3a0   :  { %7176 = vmatprep.subr.mxu0 %v17751_v12  ;;  %7305 = vmatpush1.msra.mxu1 %v7304_v40  ;;  %v7325_v40 = vand.u32 4294901760, %v7324_v0  ;;  %v7345_v0 = vsub.f32 %v15649_v13, %v17591_v55  ;;  %v17594_v11 = vand.u32 4294901760, %v15679_v38  ;;  %v17595_v55 = vand.u32 4294901760, %v15694_v1 }
 0x3a1   :  { %7178 = vmatpush1.msra.mxu0 %v15529_v45  ;;  %7306 = vmatprep.subr.mxu1 %v17751_v12 }
 0x3a2   :  { %7179 = vmatprep.subr.mxu0 %v17751_v12  ;;  %7312 = vmatpush1.msra.mxu1 %v7311_v5  ;;  %v7332_v5 = vand.u32 4294901760, %v7331_v29  ;;  %v7352_v29 = vsub.f32 %v15662_v44, %v17592_v7  ;;  %v7346_v25 = vand.u32 4294901760, %v7345_v0  ;;  %v7400_v7 = vand.u32 4294901760, %v15713_v2 }
 0x3a3   :  { %7181 = vmatpush1.msra.mxu0 %v15549_v63  ;;  %7313 = vmatprep.subr.mxu1 %v17751_v12  ;;  %v7237_v0 = vsub.f32 %v15699_v20, %v7236_v14 }
 0x3a4   :  { %7182 = vmatprep.subr.mxu0 %v17751_v12  ;;  %7319 = vmatpush1.msra.mxu1 %v7318_v41  ;;  %v7339_v41 = vand.u32 4294901760, %v7338_v33  ;;  %v7359_v33 = vsub.f32 %v15679_v38, %v17594_v11  ;;  %v7353_v36 = vand.u32 4294901760, %v7352_v29  ;;  %v7401_v29 = vsub.f32 %v15713_v2, %v7400_v7 }
 0x3a5   :  { %7184 = vmatpush1.msra.mxu0 %v15570_v9  ;;  %7320 = vmatprep.subr.mxu1 %v17751_v12 }
 0x3a6   :  { %7185 = vmatprep.subr.mxu0 %v17751_v12  ;;  %7326 = vmatpush1.msra.mxu1 %v7325_v40  ;;  %v7242_v40 = vand.u32 4294901760, %v15708_v34  ;;  %v7360_v11 = vand.u32 4294901760, %v7359_v33  ;;  %v7402_v49 = vand.u32 4294901760, %v7401_v29 }
 0x3a7   :  { %7187 = vmatpush1.msra.mxu0 %v15587_v57  ;;  %7327 = vmatprep.subr.mxu1 %v17751_v12 }
 0x3a8   :  { %7188 = vmatprep.subr.mxu0 %v17751_v12  ;;  %7333 = vmatpush1.msra.mxu1 %v7332_v5  ;;  %v7394_v5 = vsub.f32 %v15694_v1, %v17595_v55 }
 0x3a9   :  { %7190 = vmatpush1.msra.mxu0 %v15604_v47  ;;  %7334 = vmatprep.subr.mxu1 %v17751_v12 }
 0x3aa   :  { %7191 = vmatprep.subr.mxu0 %v17751_v12  ;;  %7340 = vmatpush1.msra.mxu1 %v7339_v41  ;;  %v7243_v41 = vsub.f32 %v15708_v34, %v7242_v40  ;;  %v7395_v55 = vand.u32 4294901760, %v7394_v5 }
 0x3ab   :  { %7193 = vmatpush1.msra.mxu0 %v15619_v26  ;;  %7341 = vmatprep.subr.mxu1 %v17751_v12 }
 0x3ac   :  { %7194 = vmatprep.subr.mxu0 %v17751_v12  ;;  %7347 = vmatpush1.msra.mxu1 %v7346_v25  ;;  %v7238_v25 = vand.u32 4294901760, %v7237_v0  ;;  %v7244_v33 = vand.u32 4294901760, %v7243_v41 }
 0x3ad   :  { %7196 = vmatpush1.msra.mxu0 %v15636_v27  ;;  %7348 = vmatprep.subr.mxu1 %v17751_v12 }
 0x3ae   :  { %7197 = vmatprep.subr.mxu0 %v17751_v12  ;;  %7354 = vmatpush1.msra.mxu1 %v7353_v36 }
 0x3af   :  { %7199 = vmatpush1.msra.mxu0 %v15651_v15  ;;  %7355 = vmatprep.subr.mxu1 %v17751_v12 }
 0x3b0   :  { %7228 = vmatprep.subr.mxu0 %v17751_v12  ;;  %7361 = vmatpush1.msra.mxu1 %v7360_v11 }
 0x3b1   :  { %7230 = vmatpush2.msra.mxu0 %v15664_v35  ;;  %7390 = vmatprep.subr.mxu1 %v17751_v12 }
 0x3b2   :  { %7231 = vmatprep.subr.mxu0 %v17751_v12  ;;  %7396 = vmatpush2.msra.mxu1 %v7395_v55 }
 0x3b3   :  { %7233 = vmatpush2.msra.mxu0 %v15686_v21  ;;  %7239 = vmatprep.mubr.f32.mxu0 %v7238_v25 }
 0x3b4   :  { %7397 = vmatprep.subr.mxu1 %v17751_v12  ;;  %7245 = vmatmul.mubr.f32.vlgmr.msra.gmra.mxu0 %v7244_v33  ;;  %v17818_v33 = vand.u32 4294901760, %v15694_v1 }
 0x3b5   :  { %7403 = vmatpush2.msra.mxu1 %v7402_v49  ;;  %7412 = vmatprep.subr.mxu0 %v17751_v12 }
 0x3b6   :  { %7405 = vmatprep.mubr.f32.mxu1 %v15671_v48  ;;  %7415 = vmatpush1.msra.mxu0 %v15438_v39  ;;  %v6090_v36 = vpop.f32.mrf.mxu0 }
 0x3b7   :  { %7522 = vmatprep.subr.mxu1 %v17751_v12  ;;  %7407 = vmatmul.mubr.f32.vlgmr.msra.gmra.mxu1 %v15682_v52  ;;  %v6091_v11 = vadd.f32 %v6090_v36, %v15585_v8 }
 0x3b8   :  { %7416 = vmatprep.subr.mxu0 %v17751_v12  ;;  %7524 = vmatpush1.msra.mxu1 %v15417_v3  ;;  %v6092_v55 = vpop.f32.mrf.mxu0 }
 0x3b9   :  { %7419 = vmatpush1.msra.mxu0 %v15453_v22  ;;  %7525 = vmatprep.subr.mxu1 %v17751_v12  ;;  %v6184_v49 = vpop.f32.mrf.mxu1  ;;  %v17811_v22 = vand.u32 4294901760, %v15576_v30 }
 0x3ba   :  { %7420 = vmatprep.subr.mxu0 %v17751_v12  ;;  %7527 = vmatpush1.msra.mxu1 %v15427_v31  ;;  %v15770_v5 = vadd.f32 %v6184_v49, %v6091_v11 }
 0x3bb   :  { %7423 = vmatpush1.msra.mxu0 %v15469_v28  ;;  %7528 = vmatprep.subr.mxu1 %v17751_v12  ;;  %v6186_v8 = vpop.f32.mrf.mxu1  ;;  %v7858_v28 = vld [vmem:[%s17440_s4 + $0x550] sm:$0xff] }
 0x3bc   :  { %7424 = vmatprep.subr.mxu0 %v17751_v12  ;;  %7530 = vmatpush1.msra.mxu1 %v15440_v24 }
 0x3bd   :  { %7427 = vmatpush1.msra.mxu0 %v15477_v54  ;;  %7531 = vmatprep.subr.mxu1 %v17751_v12  ;;  %v17812_v54 = vand.u32 4294901760, %v15602_v23 }
 0x3be   :  { %7428 = vmatprep.subr.mxu0 %v17751_v12  ;;  %7533 = vmatpush1.msra.mxu1 %v15445_v10 }
 0x3bf   :  { %7431 = vmatpush1.msra.mxu0 %v15502_v46  ;;  %7534 = vmatprep.subr.mxu1 %v17751_v12  ;;  %v17813_v46 = vand.u32 4294901760, %v15617_v43 }
 0x3c0   :  { %7432 = vmatprep.subr.mxu0 %v17751_v12  ;;  %7536 = vmatpush1.msra.mxu1 %v15471_v56 }
 0x3c1   :  { %7435 = vmatpush1.msra.mxu0 %v15521_v42  ;;  %7537 = vmatprep.subr.mxu1 %v17751_v12 }
 0x3c2   :  { %7436 = vmatprep.subr.mxu0 %v17751_v12  ;;  %7539 = vmatpush1.msra.mxu1 %v15485_v4 }
 0x3c3   :  { %7439 = vmatpush1.msra.mxu0 %v15539_v17  ;;  %7540 = vmatprep.subr.mxu1 %v17751_v12 }
 0x3c4   :  { %7440 = vmatprep.subr.mxu0 %v17751_v12  ;;  %7542 = vmatpush1.msra.mxu1 %v15504_v18 }
 0x3c5   :  { %7443 = vmatpush1.msra.mxu0 %v15547_v51  ;;  %7543 = vmatprep.subr.mxu1 %v17751_v12 }
 0x3c6   :  { %7444 = vmatprep.subr.mxu0 %v17751_v12  ;;  %7545 = vmatpush1.msra.mxu1 %v15513_v61 }
 0x3c7   :  { %7447 = vmatpush1.msra.mxu0 %v15560_v19  ;;  %7546 = vmatprep.subr.mxu1 %v17751_v12 }
 0x3c8   :  { %7448 = vmatprep.subr.mxu0 %v17751_v12  ;;  %7548 = vmatpush1.msra.mxu1 %v15529_v45 }
 0x3c9   :  { %7451 = vmatpush1.msra.mxu0 %v15576_v30  ;;  %7549 = vmatprep.subr.mxu1 %v17751_v12 }
 0x3ca   :  { %7452 = vmatprep.subr.mxu0 %v17751_v12  ;;  %7551 = vmatpush1.msra.mxu1 %v15549_v63 }
 0x3cb   :  { %7455 = vmatpush1.msra.mxu0 %v15602_v23  ;;  %7552 = vmatprep.subr.mxu1 %v17751_v12 }
 0x3cc   :  { %7456 = vmatprep.subr.mxu0 %v17751_v12  ;;  %7554 = vmatpush1.msra.mxu1 %v15570_v9 }
 0x3cd   :  { %7459 = vmatpush1.msra.mxu0 %v15617_v43  ;;  %7555 = vmatprep.subr.mxu1 %v17751_v12 }
 0x3ce   :  { %7460 = vmatprep.subr.mxu0 %v17751_v12  ;;  %7557 = vmatpush1.msra.mxu1 %v15587_v57 }
 0x3cf   :  { %7463 = vmatpush1.msra.mxu0 %v15634_v50  ;;  %7558 = vmatprep.subr.mxu1 %v17751_v12 }
 0x3d0   :  { %7464 = vmatprep.subr.mxu0 %v17751_v12  ;;  %7560 = vmatpush1.msra.mxu1 %v15604_v47 }
 0x3d1   :  { %7467 = vmatpush1.msra.mxu0 %v15649_v13  ;;  %7561 = vmatprep.subr.mxu1 %v17751_v12 }
 0x3d2   :  { %7468 = vmatprep.subr.mxu0 %v17751_v12  ;;  %7563 = vmatpush1.msra.mxu1 %v15619_v26 }
 0x3d3   :  { %7471 = vmatpush1.msra.mxu0 %v15662_v44  ;;  %7564 = vmatprep.subr.mxu1 %v17751_v12 }
 0x3d4   :  { %7472 = vmatprep.subr.mxu0 %v17751_v12  ;;  %7566 = vmatpush1.msra.mxu1 %v15636_v27 }
 0x3d5   :  { %7475 = vmatpush1.msra.mxu0 %v15679_v38  ;;  %7567 = vmatprep.subr.mxu1 %v17751_v12 }
 0x3d6   :  { %7504 = vmatprep.subr.mxu0 %v17751_v12  ;;  %7569 = vmatpush1.msra.mxu1 %v15651_v15 }
 0x3d7   :  { %7507 = vmatpush2.msra.mxu0 %v15694_v1  ;;  %7598 = vmatprep.subr.mxu1 %v17751_v12  ;;  %v7850_v1 = vld [vmem:[%s17440_s4 + $0x510] sm:$0xff] }
 0x3d8   :  { %7508 = vmatprep.subr.mxu0 %v17751_v12  ;;  %7600 = vmatpush2.msra.mxu1 %v15664_v35 }
 0x3d9   :  { %7511 = vmatpush2.msra.mxu0 %v15713_v2  ;;  %7514 = vmatprep.mubr.f32.mxu0 %v15699_v20 }
 0x3da   :  { %7601 = vmatprep.subr.mxu1 %v17751_v12  ;;  %7517 = vmatmul.mubr.f32.vlgmr.msra.gmra.mxu0 %v15708_v34  ;;  %v17817_v34 = vand.u32 4294901760, %v15679_v38  ;;  %v7851_v38 = vld [vmem:[%s17440_s4 + $0x518] sm:$0xff] }
 0x3db   :  { %7603 = vmatpush2.msra.mxu1 %v15686_v21  ;;  %7616 = vmatprep.subr.mxu0 %v17751_v12 }
 0x3dc   :  { %7607 = vmatprep.mubr.f32.mxu1 %v7236_v14  ;;  %7620 = vmatpush1.msra.mxu0 %v7253_v32  ;;  %v6310_v0 = vpop.f32.mrf.mxu0 }
 0x3dd   :  { %7742 = vmatprep.subr.mxu1 %v17751_v12  ;;  %7611 = vmatmul.mubr.f32.vlgmr.msra.gmra.mxu1 %v7242_v40  ;;  %v6311_v41 = vadd.f32 %v6310_v0, %v15770_v5  ;;  %v16018_v5 = vand.u32 4294901760, %v7851_v38 }
 0x3de   :  { %7621 = vmatprep.subr.mxu0 %v17751_v12  ;;  %7744 = vmatpush1.msra.mxu1 %v15417_v3  ;;  %v6312_v29 = vpop.f32.mrf.mxu0 }
 0x3df   :  { %7625 = vmatpush1.msra.mxu0 %v7260_v6  ;;  %7745 = vmatprep.subr.mxu1 %v17751_v12  ;;  %v6400_v39 = vpop.f32.mrf.mxu1  ;;  %v7857_v6 = vld [vmem:[%s17440_s4 + $0x548] sm:$0xff] }
 0x3e0   :  { %7626 = vmatprep.subr.mxu0 %v17751_v12  ;;  %7747 = vmatpush1.msra.mxu1 %v15427_v31  ;;  %v6401_v32 = vadd.f32 %v6400_v39, %v6311_v41  ;;  %v17809_v31 = vand.u32 4294901760, %v15547_v51  ;;  %v7854_v51 = vld [vmem:[%s17440_s4 + $0x530] sm:$0xff]  ;;  %v16038_v39 = vand.u32 4294901760, %v7850_v1 }
 0x3e1   :  { %7630 = vmatpush1.msra.mxu0 %v7267_v58  ;;  %7748 = vmatprep.subr.mxu1 %v17751_v12  ;;  %v6402_v20 = vpop.f32.mrf.mxu1  ;;  %v7856_v58 = vld [vmem:[%s17440_s4 + $0x540] sm:$0xff] }
 0x3e2   :  { %7631 = vmatprep.subr.mxu0 %v17751_v12  ;;  %7750 = vmatpush1.msra.mxu1 %v15440_v24  ;;  %v15859_v3 = vadd.f32 %v6401_v32, %v15370_v16  ;;  %v17808_v16 = vand.u32 4294901760, %v15539_v17  ;;  %v17810_v24 = vand.u32 4294901760, %v15560_v19  ;;  %v15934_v42 = vand.u32 4294901760, %v7856_v58  ;;  %v7849_v32 = vld [vmem:[%s17440_s4 + $0x508] sm:$0xff] }
 0x3e3   :  { %7635 = vmatpush1.msra.mxu0 %v7274_v60  ;;  %7751 = vmatprep.subr.mxu1 %v17751_v12  ;;  %v15929_v60 = vand.u32 4294901760, %v7857_v6  ;;  %v17815_v17 = vand.u32 4294901760, %v15649_v13 }
 0x3e4   :  { %7636 = vmatprep.subr.mxu0 %v17751_v12  ;;  %7753 = vmatpush1.msra.mxu1 %v15445_v10  ;;  %v7859_v10 = vld [vmem:[%s17440_s4 + $0x558] sm:$0xff]  ;;  %v15966_v23 = vsub.f32 %v7856_v58, %v15934_v42 }
 0x3e5   :  { %7640 = vmatpush1.msra.mxu0 %v7281_v53  ;;  %7754 = vmatprep.subr.mxu1 %v17751_v12 }
 0x3e6   :  { %7641 = vmatprep.subr.mxu0 %v17751_v12  ;;  %7756 = vmatpush1.msra.mxu1 %v15471_v56  ;;  %v15906_v56 = vand.u32 4294901760, %v7859_v10 }
 0x3e7   :  { %7645 = vmatpush1.msra.mxu0 %v7288_v59  ;;  %7757 = vmatprep.subr.mxu1 %v17751_v12  ;;  %v7837_v59 = vstv %s15902_s22 }
 0x3e8   :  { %7646 = vmatprep.subr.mxu0 %v17751_v12  ;;  %7759 = vmatpush1.msra.mxu1 %v15485_v4  ;;  %v15916_v4 = vand.u32 4294901760, %v7858_v28 }
 0x3e9   :  { %7650 = vmatpush1.msra.mxu0 %v17808_v16  ;;  %7760 = vmatprep.subr.mxu1 %v17751_v12 }
 0x3ea   :  { %7651 = vmatprep.subr.mxu0 %v17751_v12  ;;  %7762 = vmatpush1.msra.mxu1 %v15504_v18  ;;  %v15927_v18 = vsub.f32 %v7859_v10, %v15906_v56  ;;  %v15942_v53 = vsub.f32 %v7858_v28, %v15916_v4  ;;  %v7848_v10 = vld [vmem:[%s17440_s4 + $0x500] sm:$0xff] }
 0x3eb   :  { %7655 = vmatpush1.msra.mxu0 %v17809_v31  ;;  %7763 = vmatprep.subr.mxu1 %v17751_v12 }
 0x3ec   :  { %7656 = vmatprep.subr.mxu0 %v17751_v12  ;;  %7765 = vmatpush1.msra.mxu1 %v15513_v61  ;;  %v17814_v61 = vand.u32 4294901760, %v15634_v50  ;;  %v7967_v19 = vand.u32 4294901760, %v15927_v18  ;;  %v7974_v43 = vand.u32 4294901760, %v15942_v53  ;;  %v7852_v50 = vld [vmem:[%s17440_s4 + $0x520] sm:$0xff] }
 0x3ed   :  { %7660 = vmatpush1.msra.mxu0 %v17810_v24  ;;  %7766 = vmatprep.subr.mxu1 %v17751_v12  ;;  %v16002_v36 = vand.u32 4294901760, %v7852_v50  ;;  %v16049_v24 = vsub.f32 %v7851_v38, %v16018_v5 }
 0x3ee   :  { %7661 = vmatprep.subr.mxu0 %v17751_v12  ;;  %7768 = vmatpush1.msra.mxu1 %v15529_v45  ;;  %v7855_v45 = vld [vmem:[%s17440_s4 + $0x538] sm:$0xff]  ;;  %v7975_v11 = vsub.f32 %v15942_v53, %v7974_v43 }
 0x3ef   :  { %7665 = vmatpush1.msra.mxu0 %v17811_v22  ;;  %7769 = vmatprep.subr.mxu1 %v17751_v12  ;;  %v15960_v30 = vand.u32 4294901760, %v7855_v45  ;;  %v16036_v2 = vsub.f32 %v7852_v50, %v16002_v36  ;;  %v7846_v50 = vld [vmem:[%s17440_s4 + $0x4f0] sm:$0xff] }
 0x3f0   :  { %7666 = vmatprep.subr.mxu0 %v17751_v12  ;;  %7771 = vmatpush1.msra.mxu1 %v15549_v63  ;;  %v7834_v63 = vstv %s15894_s19 }
 0x3f1   :  { %7670 = vmatpush1.msra.mxu0 %v17812_v54  ;;  %7772 = vmatprep.subr.mxu1 %v17751_v12  ;;  %v7835_v13 = vmul.f32 %v7834_v63, %v17762_v37  ;;  %v15991_v40 = vsub.f32 %v7855_v45, %v15960_v30  ;;  %v7847_v45 = vld [vmem:[%s17440_s4 + $0x4f8] sm:$0xff]  ;;  %v16076_v63 = vand.u32 4294901760, %v7848_v10 }
 0x3f2   :  { %7671 = vmatprep.subr.mxu0 %v17751_v12  ;;  %7774 = vmatpush1.msra.mxu1 %v15570_v9  ;;  %v15958_v9 = vsub.f32 %v7857_v6, %v15929_v60  ;;  %v16059_v6 = vand.u32 4294901760, %v7849_v32 }
 0x3f3   :  { %7675 = vmatpush1.msra.mxu0 %v17813_v46  ;;  %7775 = vmatprep.subr.mxu1 %v17751_v12  ;;  %v7995_v41 = vand.u32 4294901760, %v15991_v40  ;;  %v17604_v46 = vand.u32 4294901760, %v16036_v2 }
 0x3f4   :  { %7676 = vmatprep.subr.mxu0 %v17751_v12  ;;  %7777 = vmatpush1.msra.mxu1 %v15587_v57  ;;  %v17816_v57 = vand.u32 4294901760, %v15662_v44  ;;  %v7838_v44 = vmul.f32 %v7837_v59, %v17763_v62  ;;  %v7981_v14 = vand.u32 4294901760, %v15958_v9 }
 0x3f5   :  { %7680 = vmatpush1.msra.mxu0 %v17814_v61  ;;  %7778 = vmatprep.subr.mxu1 %v17751_v12  ;;  %v7996_v22 = vsub.f32 %v15991_v40, %v7995_v41  ;;  %v16065_v61 = vsub.f32 %v7850_v1, %v16038_v39  ;;  %v8017_v38 = vsub.f32 %v16036_v2, %v17604_v46 }
 0x3f6   :  { %7681 = vmatprep.subr.mxu0 %v17751_v12  ;;  %7780 = vmatpush1.msra.mxu1 %v15604_v47  ;;  %v7853_v47 = vld [vmem:[%s17440_s4 + $0x528] sm:$0xff]  ;;  %v7839_v49 = vadd.f32 %v7838_v44, %v7835_v13  ;;  %v7982_v0 = vsub.f32 %v15958_v9, %v7981_v14 }
 0x3f7   :  { %7685 = vmatpush1.msra.mxu0 %v17815_v17  ;;  %7781 = vmatprep.subr.mxu1 %v17751_v12  ;;  %v15993_v25 = vand.u32 4294901760, %v7853_v47  ;;  %v7997_v13 = vand.u32 4294901760, %v7996_v22  ;;  %v7861_v22 = vld [vmem:[%s17440_s4 + $0x568] sm:$0xff] }
 0x3f8   :  { %7686 = vmatprep.subr.mxu0 %v17751_v12  ;;  %7783 = vmatpush1.msra.mxu1 %v15619_v26  ;;  %v15974_v26 = vand.u32 4294901760, %v7854_v51 }
 0x3f9   :  { %7690 = vmatpush1.msra.mxu0 %v17816_v57  ;;  %7784 = vmatprep.subr.mxu1 %v17751_v12  ;;  %v16028_v29 = vsub.f32 %v7853_v47, %v15993_v25  ;;  %v17600_v47 = vand.u32 4294901760, %v16049_v24 }
 0x3fa   :  { %7691 = vmatprep.subr.mxu0 %v17751_v12  ;;  %7786 = vmatpush1.msra.mxu1 %v15636_v27  ;;  %v7968_v27 = vsub.f32 %v15927_v18, %v7967_v19  ;;  %v16010_v55 = vsub.f32 %v7854_v51, %v15974_v26 }
 0x3fb   :  { %7695 = vmatpush1.msra.mxu0 %v17817_v34  ;;  %7787 = vmatprep.subr.mxu1 %v17751_v12  ;;  %v17607_v54 = vand.u32 4294901760, %v16028_v29  ;;  %v16091_v34 = vsub.f32 %v7849_v32, %v16059_v6 }
 0x3fc   :  { %7724 = vmatprep.subr.mxu0 %v17751_v12  ;;  %7789 = vmatpush1.msra.mxu1 %v15651_v15  ;;  %v7988_v15 = vand.u32 4294901760, %v15966_v23  ;;  %v7969_v8 = vand.u32 4294901760, %v7968_v27  ;;  %v8002_v16 = vand.u32 4294901760, %v16010_v55  ;;  %v16093_v27 = vand.u32 4294901760, %v7847_v45 }
 0x3fd   :  { %7728 = vmatpush2.msra.mxu0 %v17818_v33  ;;  %7818 = vmatprep.subr.mxu1 %v17751_v12  ;;  %v8010_v44 = vsub.f32 %v16028_v29, %v17607_v54  ;;  %v17599_v33 = vand.u32 4294901760, %v16065_v61 }
 0x3fe   :  { %7729 = vmatprep.subr.mxu0 %v17751_v12  ;;  %7820 = vmatpush2.msra.mxu1 %v15664_v35  ;;  %v7841_v35 = vstv %s15952_s30  ;;  %v8003_v17 = vsub.f32 %v16010_v55, %v8002_v16 }
 0x3ff   :  { %7733 = vmatpush2.msra.mxu0 %v7400_v7  ;;  %7735 = vmatprep.mubr.f32.mxu0 %v15671_v48  ;;  %v7989_v7 = vsub.f32 %v15966_v23, %v7988_v15  ;;  %v7842_v31 = vadd.f32 %v7841_v35, %v7839_v49  ;;  %v16106_v49 = vsub.f32 %v7848_v10, %v16076_v63  ;;  %v16108_v35 = vand.u32 4294901760, %v7846_v50 }
 0x400   :  { %7821 = vmatprep.subr.mxu1 %v17751_v12  ;;  %7737 = vmatmul.mubr.f32.vlgmr.msra.gmra.mxu0 %v15682_v52  ;;  %v8004_v1 = vand.u32 4294901760, %v8003_v17  ;;  %v8011_v32 = vand.u32 4294901760, %v8010_v44  ;;  %v8018_v10 = vand.u32 4294901760, %v8017_v38  ;;  %v16153_v44 = vand.u32 4294901760, %v7861_v22  ;;  %v7860_v38 = vld [vmem:[%s17440_s4 + $0x560] sm:$0xff] }
 0x401   :  { %7823 = vmatpush2.msra.mxu1 %v15686_v21  ;;  %7866 = vmatprep.subr.mxu0 %v17751_v12  ;;  %v7976_v21 = vand.u32 4294901760, %v7975_v11  ;;  %v16078_v59 = vmax.f32 %v7842_v31, 0.0  ;;  %v7845_v11 = vld [vmem:[%s17440_s4 + $0x4e8] sm:$0xff] }
 0x402   :  { %7825 = vmatprep.mubr.f32.mxu1 %v15671_v48  ;;  %7868 = vmatpush1.msra.mxu0 %v15906_v56  ;;  %v6532_v20 = vpop.f32.mrf.mxu0  ;;  %v7983_v48 = vand.u32 4294901760, %v7982_v0  ;;  %v8024_v0 = vsub.f32 %v16049_v24, %v17600_v47  ;;  %v16125_v31 = vand.u32 4294901760, %v7845_v11 }
 0x403   :  { %7964 = vmatprep.subr.mxu1 %v17751_v12  ;;  %7827 = vmatmul.mubr.f32.vlgmr.msra.gmra.mxu1 %v15682_v52  ;;  %v7990_v52 = vand.u32 4294901760, %v7989_v7  ;;  %v7844_v7 = vld [vmem:[%s17440_s4 + $0x4e0] sm:$0xff] }
 0x404   :  { %7869 = vmatprep.subr.mxu0 %v17751_v12  ;;  %7970 = vmatpush1.msra.mxu1 %v7969_v8  ;;  %v6534_v28 = vpop.f32.mrf.mxu0  ;;  %v7863_v8 = vcombine.high %v16078_v59, %v16078_v59  ;;  %v8025_v17 = vand.u32 4294901760, %v8024_v0 }
 0x405   :  { %7871 = vmatpush1.msra.mxu0 %v15916_v4  ;;  %7971 = vmatprep.subr.mxu1 %v17751_v12  ;;  %v6694_v58 = vpop.f32.mrf.mxu1  ;;  %v17598_v28 = vand.u32 4294901760, %v16106_v49 }
 0x406   :  { %7872 = vmatprep.subr.mxu0 %v17751_v12  ;;  %7977 = vmatpush1.msra.mxu1 %v7976_v21  ;;  %v16074_v51 = vadd.f32 %v6694_v58, %v6532_v20  ;;  %v17597_v21 = vand.u32 4294901760, %v16091_v34  ;;  %v16123_v20 = vsub.f32 %v7847_v45, %v16093_v27  ;;  %v16140_v58 = vand.u32 4294901760, %v7844_v7 }
 0x407   :  { %7874 = vmatpush1.msra.mxu0 %v15929_v60  ;;  %7978 = vmatprep.subr.mxu1 %v17751_v12  ;;  %v6696_v57 = vpop.f32.mrf.mxu1  ;;  %v7864_v45 = vsel %vm70_vm0, %v7863_v8, 0 }
 0x408   :  { %7875 = vmatprep.subr.mxu0 %v17751_v12  ;;  %7984 = vmatpush1.msra.mxu1 %v7983_v48  ;;  %v8031_v48 = vsub.f32 %v16065_v61, %v17599_v33  ;;  %v8038_v57 = vsub.f32 %v16091_v34, %v17597_v21  ;;  %v16160_v8 = vand.u32 4294901760, %v7864_v45  ;;  %v16171_v21 = vand.u32 4294901760, %v16078_v59 }
 0x409   :  { %7877 = vmatpush1.msra.mxu0 %v15934_v42  ;;  %7985 = vmatprep.subr.mxu1 %v17751_v12  ;;  %v16183_v33 = vsub.f32 %v7861_v22, %v16153_v44 }
 0x40a   :  { %7878 = vmatprep.subr.mxu0 %v17751_v12  ;;  %7991 = vmatpush1.msra.mxu1 %v7990_v52  ;;  %v16138_v52 = vsub.f32 %v7846_v50, %v16108_v35  ;;  %v16151_v50 = vsub.f32 %v7845_v11, %v16125_v31  ;;  %v8045_v11 = vsub.f32 %v16106_v49, %v17598_v28 }
 0x40b   :  { %7880 = vmatpush1.msra.mxu0 %v15960_v30  ;;  %7992 = vmatprep.subr.mxu1 %v17751_v12  ;;  %v16188_v47 = vsub.f32 %v7864_v45, %v16160_v8  ;;  %v16197_v22 = vsub.f32 %v16078_v59, %v16171_v21 }
 0x40c   :  { %7881 = vmatprep.subr.mxu0 %v17751_v12  ;;  %7998 = vmatpush1.msra.mxu1 %v7997_v13  ;;  %v17601_v13 = vand.u32 4294901760, %v16123_v20  ;;  %v17602_v0 = vand.u32 4294901760, %v16138_v52 }
 0x40d   :  { %7883 = vmatpush1.msra.mxu0 %v15974_v26  ;;  %7999 = vmatprep.subr.mxu1 %v17751_v12  ;;  %v7950_v59 = vand.u32 4294901760, %v16188_v47 }
 0x40e   :  { %7884 = vmatprep.subr.mxu0 %v17751_v12  ;;  %8005 = vmatpush1.msra.mxu1 %v8004_v1  ;;  %v8032_v1 = vand.u32 4294901760, %v8031_v48  ;;  %v16175_v48 = vand.u32 4294901760, %v7860_v38  ;;  %v8052_v28 = vsub.f32 %v16123_v20, %v17601_v13 }
 0x40f   :  { %7886 = vmatpush1.msra.mxu0 %v15993_v25  ;;  %8006 = vmatprep.subr.mxu1 %v17751_v12 }
 0x410   :  { %7887 = vmatprep.subr.mxu0 %v17751_v12  ;;  %8012 = vmatpush1.msra.mxu1 %v8011_v32  ;;  %v16168_v32 = vsub.f32 %v7844_v7, %v16140_v58  ;;  %v17603_v7 = vand.u32 4294901760, %v16151_v50  ;;  %v16202_v45 = vsub.f32 %v7860_v38, %v16175_v48 }
 0x411   :  { %7889 = vmatpush1.msra.mxu0 %v16002_v36  ;;  %8013 = vmatprep.subr.mxu1 %v17751_v12 }
 0x412   :  { %7890 = vmatprep.subr.mxu0 %v17751_v12  ;;  %8019 = vmatpush1.msra.mxu1 %v8018_v10  ;;  %v8039_v10 = vand.u32 4294901760, %v8038_v57  ;;  %v8059_v57 = vsub.f32 %v16138_v52, %v17602_v0  ;;  %v17605_v13 = vand.u32 4294901760, %v16168_v32  ;;  %v17606_v0 = vand.u32 4294901760, %v16183_v33 }
 0x413   :  { %7892 = vmatpush1.msra.mxu0 %v16018_v5  ;;  %8020 = vmatprep.subr.mxu1 %v17751_v12 }
 0x414   :  { %7893 = vmatprep.subr.mxu0 %v17751_v12  ;;  %8026 = vmatpush1.msra.mxu1 %v8025_v17  ;;  %v8046_v17 = vand.u32 4294901760, %v8045_v11  ;;  %v8066_v11 = vsub.f32 %v16151_v50, %v17603_v7  ;;  %v8060_v38 = vand.u32 4294901760, %v8059_v57  ;;  %v8114_v7 = vand.u32 4294901760, %v16202_v45 }
 0x415   :  { %7895 = vmatpush1.msra.mxu0 %v16038_v39  ;;  %8027 = vmatprep.subr.mxu1 %v17751_v12  ;;  %v7951_v57 = vsub.f32 %v16188_v47, %v7950_v59 }
 0x416   :  { %7896 = vmatprep.subr.mxu0 %v17751_v12  ;;  %8033 = vmatpush1.msra.mxu1 %v8032_v1  ;;  %v8053_v1 = vand.u32 4294901760, %v8052_v28  ;;  %v8073_v28 = vsub.f32 %v16168_v32, %v17605_v13  ;;  %v8067_v46 = vand.u32 4294901760, %v8066_v11  ;;  %v8115_v11 = vsub.f32 %v16202_v45, %v8114_v7 }
 0x417   :  { %7898 = vmatpush1.msra.mxu0 %v16059_v6  ;;  %8034 = vmatprep.subr.mxu1 %v17751_v12 }
 0x418   :  { %7899 = vmatprep.subr.mxu0 %v17751_v12  ;;  %8040 = vmatpush1.msra.mxu1 %v8039_v10  ;;  %v7956_v10 = vand.u32 4294901760, %v16197_v22  ;;  %v8074_v13 = vand.u32 4294901760, %v8073_v28  ;;  %v8116_v54 = vand.u32 4294901760, %v8115_v11 }
 0x419   :  { %7901 = vmatpush1.msra.mxu0 %v16076_v63  ;;  %8041 = vmatprep.subr.mxu1 %v17751_v12 }
 0x41a   :  { %7902 = vmatprep.subr.mxu0 %v17751_v12  ;;  %8047 = vmatpush1.msra.mxu1 %v8046_v17  ;;  %v8108_v17 = vsub.f32 %v16183_v33, %v17606_v0 }
 0x41b   :  { %7904 = vmatpush1.msra.mxu0 %v16093_v27  ;;  %8048 = vmatprep.subr.mxu1 %v17751_v12 }
 0x41c   :  { %7905 = vmatprep.subr.mxu0 %v17751_v12  ;;  %8054 = vmatpush1.msra.mxu1 %v8053_v1  ;;  %v7957_v1 = vsub.f32 %v16197_v22, %v7956_v10  ;;  %v8109_v0 = vand.u32 4294901760, %v8108_v17 }
 0x41d   :  { %7907 = vmatpush1.msra.mxu0 %v16108_v35  ;;  %8055 = vmatprep.subr.mxu1 %v17751_v12 }
 0x41e   :  { %7908 = vmatprep.subr.mxu0 %v17751_v12  ;;  %8061 = vmatpush1.msra.mxu1 %v8060_v38  ;;  %v7952_v38 = vand.u32 4294901760, %v7951_v57  ;;  %v7958_v28 = vand.u32 4294901760, %v7957_v1 }
 0x41f   :  { %7910 = vmatpush1.msra.mxu0 %v16125_v31  ;;  %8062 = vmatprep.subr.mxu1 %v17751_v12 }
 0x420   :  { %7911 = vmatprep.subr.mxu0 %v17751_v12  ;;  %8068 = vmatpush1.msra.mxu1 %v8067_v46 }
 0x421   :  { %7913 = vmatpush1.msra.mxu0 %v16140_v58  ;;  %8069 = vmatprep.subr.mxu1 %v17751_v12 }
 0x422   :  { %7942 = vmatprep.subr.mxu0 %v17751_v12  ;;  %8075 = vmatpush1.msra.mxu1 %v8074_v13 }
 0x423   :  { %7944 = vmatpush2.msra.mxu0 %v16153_v44  ;;  %8104 = vmatprep.subr.mxu1 %v17751_v12 }
 0x424   :  { %7945 = vmatprep.subr.mxu0 %v17751_v12  ;;  %8110 = vmatpush2.msra.mxu1 %v8109_v0 }
 0x425   :  { %7947 = vmatpush2.msra.mxu0 %v16175_v48  ;;  %7953 = vmatprep.mubr.f32.mxu0 %v7952_v38 }
 0x426   :  { %8111 = vmatprep.subr.mxu1 %v17751_v12  ;;  %7959 = vmatmul.mubr.f32.vlgmr.msra.gmra.mxu0 %v7958_v28 }
 0x427   :  { %8117 = vmatpush2.msra.mxu1 %v8116_v54  ;;  %8126 = vmatprep.subr.mxu0 %v17751_v12 }
 0x428   :  { %8119 = vmatprep.mubr.f32.mxu1 %v16160_v8  ;;  %8129 = vmatpush1.msra.mxu0 %v15927_v18  ;;  %v6804_v46 = vpop.f32.mrf.mxu0 }
 0x429   :  { %8236 = vmatprep.subr.mxu1 %v17751_v12  ;;  %8121 = vmatmul.mubr.f32.vlgmr.msra.gmra.mxu1 %v16171_v21  ;;  %v6805_v13 = vadd.f32 %v6804_v46, %v16074_v51 }
 0x42a   :  { %8130 = vmatprep.subr.mxu0 %v17751_v12  ;;  %8238 = vmatpush1.msra.mxu1 %v15906_v56  ;;  %v6806_v0 = vpop.f32.mrf.mxu0 }
 0x42b   :  { %8133 = vmatpush1.msra.mxu0 %v15942_v53  ;;  %8239 = vmatprep.subr.mxu1 %v17751_v12  ;;  %v6898_v54 = vpop.f32.mrf.mxu1  ;;  %v17822_v53 = vand.u32 4294901760, %v16065_v61 }
 0x42c   :  { %8134 = vmatprep.subr.mxu0 %v17751_v12  ;;  %8241 = vmatpush1.msra.mxu1 %v15916_v4  ;;  %v16259_v17 = vadd.f32 %v6898_v54, %v6805_v13 }
 0x42d   :  { %8137 = vmatpush1.msra.mxu0 %v15958_v9  ;;  %8242 = vmatprep.subr.mxu1 %v17751_v12  ;;  %v6900_v51 = vpop.f32.mrf.mxu1  ;;  %v8572_v9 = vld [vmem:[%s17440_s4 + $0x5e0] sm:$0xff] }
 0x42e   :  { %8138 = vmatprep.subr.mxu0 %v17751_v12  ;;  %8244 = vmatpush1.msra.mxu1 %v15929_v60 }
 0x42f   :  { %8141 = vmatpush1.msra.mxu0 %v15966_v23  ;;  %8245 = vmatprep.subr.mxu1 %v17751_v12  ;;  %v17823_v23 = vand.u32 4294901760, %v16091_v34 }
 0x430   :  { %8142 = vmatprep.subr.mxu0 %v17751_v12  ;;  %8247 = vmatpush1.msra.mxu1 %v15934_v42 }
 0x431   :  { %8145 = vmatpush1.msra.mxu0 %v15991_v40  ;;  %8248 = vmatprep.subr.mxu1 %v17751_v12  ;;  %v17824_v40 = vand.u32 4294901760, %v16106_v49 }
 0x432   :  { %8146 = vmatprep.subr.mxu0 %v17751_v12  ;;  %8250 = vmatpush1.msra.mxu1 %v15960_v30 }
 0x433   :  { %8149 = vmatpush1.msra.mxu0 %v16010_v55  ;;  %8251 = vmatprep.subr.mxu1 %v17751_v12 }
 0x434   :  { %8150 = vmatprep.subr.mxu0 %v17751_v12  ;;  %8253 = vmatpush1.msra.mxu1 %v15974_v26 }
 0x435   :  { %8153 = vmatpush1.msra.mxu0 %v16028_v29  ;;  %8254 = vmatprep.subr.mxu1 %v17751_v12 }
 0x436   :  { %8154 = vmatprep.subr.mxu0 %v17751_v12  ;;  %8256 = vmatpush1.msra.mxu1 %v15993_v25 }
 0x437   :  { %8157 = vmatpush1.msra.mxu0 %v16036_v2  ;;  %8257 = vmatprep.subr.mxu1 %v17751_v12 }
 0x438   :  { %8158 = vmatprep.subr.mxu0 %v17751_v12  ;;  %8259 = vmatpush1.msra.mxu1 %v16002_v36 }
 0x439   :  { %8161 = vmatpush1.msra.mxu0 %v16049_v24  ;;  %8260 = vmatprep.subr.mxu1 %v17751_v12 }
 0x43a   :  { %8162 = vmatprep.subr.mxu0 %v17751_v12  ;;  %8262 = vmatpush1.msra.mxu1 %v16018_v5 }
 0x43b   :  { %8165 = vmatpush1.msra.mxu0 %v16065_v61  ;;  %8263 = vmatprep.subr.mxu1 %v17751_v12 }
 0x43c   :  { %8166 = vmatprep.subr.mxu0 %v17751_v12  ;;  %8265 = vmatpush1.msra.mxu1 %v16038_v39 }
 0x43d   :  { %8169 = vmatpush1.msra.mxu0 %v16091_v34  ;;  %8266 = vmatprep.subr.mxu1 %v17751_v12 }
 0x43e   :  { %8170 = vmatprep.subr.mxu0 %v17751_v12  ;;  %8268 = vmatpush1.msra.mxu1 %v16059_v6 }
 0x43f   :  { %8173 = vmatpush1.msra.mxu0 %v16106_v49  ;;  %8269 = vmatprep.subr.mxu1 %v17751_v12 }
 0x440   :  { %8174 = vmatprep.subr.mxu0 %v17751_v12  ;;  %8271 = vmatpush1.msra.mxu1 %v16076_v63 }
 0x441   :  { %8177 = vmatpush1.msra.mxu0 %v16123_v20  ;;  %8272 = vmatprep.subr.mxu1 %v17751_v12 }
 0x442   :  { %8178 = vmatprep.subr.mxu0 %v17751_v12  ;;  %8274 = vmatpush1.msra.mxu1 %v16093_v27 }
 0x443   :  { %8181 = vmatpush1.msra.mxu0 %v16138_v52  ;;  %8275 = vmatprep.subr.mxu1 %v17751_v12 }
 0x444   :  { %8182 = vmatprep.subr.mxu0 %v17751_v12  ;;  %8277 = vmatpush1.msra.mxu1 %v16108_v35 }
 0x445   :  { %8185 = vmatpush1.msra.mxu0 %v16151_v50  ;;  %8278 = vmatprep.subr.mxu1 %v17751_v12 }
 0x446   :  { %8186 = vmatprep.subr.mxu0 %v17751_v12  ;;  %8280 = vmatpush1.msra.mxu1 %v16125_v31 }
 0x447   :  { %8189 = vmatpush1.msra.mxu0 %v16168_v32  ;;  %8281 = vmatprep.subr.mxu1 %v17751_v12 }
 0x448   :  { %8218 = vmatprep.subr.mxu0 %v17751_v12  ;;  %8283 = vmatpush1.msra.mxu1 %v16140_v58 }
 0x449   :  { %8221 = vmatpush2.msra.mxu0 %v16183_v33  ;;  %8312 = vmatprep.subr.mxu1 %v17751_v12 }
 0x44a   :  { %8222 = vmatprep.subr.mxu0 %v17751_v12  ;;  %8314 = vmatpush2.msra.mxu1 %v16153_v44 }
 0x44b   :  { %8225 = vmatpush2.msra.mxu0 %v16202_v45  ;;  %8228 = vmatprep.mubr.f32.mxu0 %v16188_v47 }
 0x44c   :  { %8315 = vmatprep.subr.mxu1 %v17751_v12  ;;  %8231 = vmatmul.mubr.f32.vlgmr.msra.gmra.mxu0 %v16197_v22  ;;  %v17828_v22 = vand.u32 4294901760, %v16168_v32  ;;  %v17829_v32 = vand.u32 4294901760, %v16183_v33  ;;  %v8564_v33 = vld [vmem:[%s17440_s4 + $0x5a0] sm:$0xff] }
 0x44d   :  { %8317 = vmatpush2.msra.mxu1 %v16175_v48  ;;  %8330 = vmatprep.subr.mxu0 %v17751_v12 }
 0x44e   :  { %8321 = vmatprep.mubr.f32.mxu1 %v7950_v59  ;;  %8334 = vmatpush1.msra.mxu0 %v7967_v19  ;;  %v7024_v57 = vpop.f32.mrf.mxu0 }
 0x44f   :  { %8456 = vmatprep.subr.mxu1 %v17751_v12  ;;  %8325 = vmatmul.mubr.f32.vlgmr.msra.gmra.mxu1 %v7956_v10  ;;  %v7025_v1 = vadd.f32 %v7024_v57, %v16259_v17 }
 0x450   :  { %8335 = vmatprep.subr.mxu0 %v17751_v12  ;;  %8458 = vmatpush1.msra.mxu1 %v15906_v56  ;;  %v7026_v11 = vpop.f32.mrf.mxu0 }
 0x451   :  { %8339 = vmatpush1.msra.mxu0 %v7974_v43  ;;  %8459 = vmatprep.subr.mxu1 %v17751_v12  ;;  %v7114_v18 = vpop.f32.mrf.mxu1  ;;  %v8571_v43 = vld [vmem:[%s17440_s4 + $0x5d8] sm:$0xff] }
 0x452   :  { %8340 = vmatprep.subr.mxu0 %v17751_v12  ;;  %8461 = vmatpush1.msra.mxu1 %v15916_v4  ;;  %v7115_v19 = vadd.f32 %v7114_v18, %v7025_v1  ;;  %v17820_v4 = vand.u32 4294901760, %v16036_v2  ;;  %v8568_v2 = vld [vmem:[%s17440_s4 + $0x5c0] sm:$0xff]  ;;  %v16527_v1 = vand.u32 4294901760, %v8564_v33  ;;  %v8563_v11 = vld [vmem:[%s17440_s4 + $0x598] sm:$0xff] }
 0x453   :  { %8344 = vmatpush1.msra.mxu0 %v7981_v14  ;;  %8462 = vmatprep.subr.mxu1 %v17751_v12  ;;  %v7116_v47 = vpop.f32.mrf.mxu1  ;;  %v8570_v14 = vld [vmem:[%s17440_s4 + $0x5d0] sm:$0xff] }
 0x454   :  { %8345 = vmatprep.subr.mxu0 %v17751_v12  ;;  %8464 = vmatpush1.msra.mxu1 %v15929_v60  ;;  %v16348_v56 = vadd.f32 %v7115_v19, %v15859_v3  ;;  %v17819_v3 = vand.u32 4294901760, %v16028_v29  ;;  %v17821_v60 = vand.u32 4294901760, %v16049_v24  ;;  %v16423_v55 = vand.u32 4294901760, %v8570_v14 }
 0x455   :  { %8349 = vmatpush1.msra.mxu0 %v7988_v15  ;;  %8465 = vmatprep.subr.mxu1 %v17751_v12  ;;  %v16418_v15 = vand.u32 4294901760, %v8571_v43  ;;  %v17826_v29 = vand.u32 4294901760, %v16138_v52 }
 0x456   :  { %8350 = vmatprep.subr.mxu0 %v17751_v12  ;;  %8467 = vmatpush1.msra.mxu1 %v15934_v42  ;;  %v8573_v42 = vld [vmem:[%s17440_s4 + $0x5e8] sm:$0xff]  ;;  %v16455_v34 = vsub.f32 %v8570_v14, %v16423_v55  ;;  %v16554_v14 = vsub.f32 %v8564_v33, %v16527_v1 }
 0x457   :  { %8354 = vmatpush1.msra.mxu0 %v7995_v41  ;;  %8468 = vmatprep.subr.mxu1 %v17751_v12 }
 0x458   :  { %8355 = vmatprep.subr.mxu0 %v17751_v12  ;;  %8470 = vmatpush1.msra.mxu1 %v15960_v30  ;;  %v16395_v30 = vand.u32 4294901760, %v8573_v42 }
 0x459   :  { %8359 = vmatpush1.msra.mxu0 %v8002_v16  ;;  %8471 = vmatprep.subr.mxu1 %v17751_v12  ;;  %v8551_v16 = vstv %s16391_s13 }
 0x45a   :  { %8360 = vmatprep.subr.mxu0 %v17751_v12  ;;  %8473 = vmatpush1.msra.mxu1 %v15974_v26  ;;  %v16405_v26 = vand.u32 4294901760, %v8572_v9 }
 0x45b   :  { %8364 = vmatpush1.msra.mxu0 %v17819_v3  ;;  %8474 = vmatprep.subr.mxu1 %v17751_v12 }
 0x45c   :  { %8365 = vmatprep.subr.mxu0 %v17751_v12  ;;  %8476 = vmatpush1.msra.mxu1 %v15993_v25  ;;  %v16416_v25 = vsub.f32 %v8573_v42, %v16395_v30  ;;  %v16431_v41 = vsub.f32 %v8572_v9, %v16405_v26  ;;  %v16548_v9 = vand.u32 4294901760, %v8563_v11 }
 0x45d   :  { %8369 = vmatpush1.msra.mxu0 %v17820_v4  ;;  %8477 = vmatprep.subr.mxu1 %v17751_v12  ;;  %v8562_v4 = vld [vmem:[%s17440_s4 + $0x590] sm:$0xff] }
 0x45e   :  { %8370 = vmatprep.subr.mxu0 %v17751_v12  ;;  %8479 = vmatpush1.msra.mxu1 %v16002_v36  ;;  %v17825_v36 = vand.u32 4294901760, %v16123_v20  ;;  %v8681_v24 = vand.u32 4294901760, %v16416_v25  ;;  %v8688_v49 = vand.u32 4294901760, %v16431_v41  ;;  %v8566_v20 = vld [vmem:[%s17440_s4 + $0x5b0] sm:$0xff] }
 0x45f   :  { %8374 = vmatpush1.msra.mxu0 %v17821_v60  ;;  %8480 = vmatprep.subr.mxu1 %v17751_v12  ;;  %v16491_v38 = vand.u32 4294901760, %v8566_v20 }
 0x460   :  { %8375 = vmatprep.subr.mxu0 %v17751_v12  ;;  %8482 = vmatpush1.msra.mxu1 %v16018_v5  ;;  %v8569_v5 = vld [vmem:[%s17440_s4 + $0x5c8] sm:$0xff]  ;;  %v8689_v28 = vsub.f32 %v16431_v41, %v8688_v49 }
 0x461   :  { %8379 = vmatpush1.msra.mxu0 %v17822_v53  ;;  %8483 = vmatprep.subr.mxu1 %v17751_v12  ;;  %v16449_v61 = vand.u32 4294901760, %v8569_v5  ;;  %v16525_v45 = vsub.f32 %v8566_v20, %v16491_v38 }
 0x462   :  { %8380 = vmatprep.subr.mxu0 %v17751_v12  ;;  %8485 = vmatpush1.msra.mxu1 %v16038_v39  ;;  %v8548_v39 = vstv %s16383_s10 }
 0x463   :  { %8384 = vmatpush1.msra.mxu0 %v17823_v23  ;;  %8486 = vmatprep.subr.mxu1 %v17751_v12  ;;  %v8549_v52 = vmul.f32 %v8548_v39, %v17762_v37  ;;  %v16480_v10 = vsub.f32 %v8569_v5, %v16449_v61 }
 0x464   :  { %8385 = vmatprep.subr.mxu0 %v17751_v12  ;;  %8488 = vmatpush1.msra.mxu1 %v16059_v6  ;;  %v16447_v6 = vsub.f32 %v8571_v43, %v16418_v15  ;;  %v8730_v43 = vand.u32 4294901760, %v16525_v45 }
 0x465   :  { %8389 = vmatpush1.msra.mxu0 %v17824_v40  ;;  %8489 = vmatprep.subr.mxu1 %v17751_v12  ;;  %v8709_v51 = vand.u32 4294901760, %v16480_v10  ;;  %v8561_v40 = vld [vmem:[%s17440_s4 + $0x588] sm:$0xff] }
 0x466   :  { %8390 = vmatprep.subr.mxu0 %v17751_v12  ;;  %8491 = vmatpush1.msra.mxu1 %v16076_v63  ;;  %v17827_v63 = vand.u32 4294901760, %v16151_v50  ;;  %v8552_v50 = vmul.f32 %v8551_v16, %v17763_v62  ;;  %v8695_v59 = vand.u32 4294901760, %v16447_v6  ;;  %v8565_v62 = vld [vmem:[%s17440_s4 + $0x5a8] sm:$0xff] }
 0x467   :  { %8394 = vmatpush1.msra.mxu0 %v17825_v36  ;;  %8492 = vmatprep.subr.mxu1 %v17751_v12  ;;  %v16507_v0 = vand.u32 4294901760, %v8565_v62  ;;  %v8710_v60 = vsub.f32 %v16480_v10, %v8709_v51 }
 0x468   :  { %8395 = vmatprep.subr.mxu0 %v17751_v12  ;;  %8494 = vmatpush1.msra.mxu1 %v16093_v27  ;;  %v8567_v27 = vld [vmem:[%s17440_s4 + $0x5b8] sm:$0xff]  ;;  %v8553_v13 = vadd.f32 %v8552_v50, %v8549_v52  ;;  %v8696_v17 = vsub.f32 %v16447_v6, %v8695_v59  ;;  %v16580_v52 = vsub.f32 %v8563_v11, %v16548_v9  ;;  %v16582_v50 = vand.u32 4294901760, %v8561_v40 }
 0x469   :  { %8399 = vmatpush1.msra.mxu0 %v17826_v29  ;;  %8495 = vmatprep.subr.mxu1 %v17751_v12  ;;  %v16482_v37 = vand.u32 4294901760, %v8567_v27  ;;  %v16538_v3 = vsub.f32 %v8565_v62, %v16507_v0  ;;  %v16565_v29 = vand.u32 4294901760, %v8562_v4  ;;  %v8559_v62 = vld [vmem:[%s17440_s4 + $0x578] sm:$0xff] }
 0x46a   :  { %8400 = vmatprep.subr.mxu0 %v17751_v12  ;;  %8497 = vmatpush1.msra.mxu1 %v16108_v35  ;;  %v16463_v35 = vand.u32 4294901760, %v8568_v2  ;;  %v16612_v11 = vsub.f32 %v8561_v40, %v16582_v50 }
 0x46b   :  { %8404 = vmatpush1.msra.mxu0 %v17827_v63  ;;  %8498 = vmatprep.subr.mxu1 %v17751_v12  ;;  %v16517_v57 = vsub.f32 %v8567_v27, %v16482_v37  ;;  %v17616_v16 = vand.u32 4294901760, %v16538_v3  ;;  %v8560_v63 = vld [vmem:[%s17440_s4 + $0x580] sm:$0xff]  ;;  %v8711_v27 = vand.u32 4294901760, %v8710_v60 }
 0x46c   :  { %8405 = vmatprep.subr.mxu0 %v17751_v12  ;;  %8500 = vmatpush1.msra.mxu1 %v16125_v31  ;;  %v8682_v31 = vsub.f32 %v16416_v25, %v8681_v24  ;;  %v16499_v46 = vsub.f32 %v8568_v2, %v16463_v35  ;;  %v16597_v33 = vand.u32 4294901760, %v8560_v63 }
 0x46d   :  { %8409 = vmatpush1.msra.mxu0 %v17828_v22  ;;  %8501 = vmatprep.subr.mxu1 %v17751_v12  ;;  %v8723_v53 = vand.u32 4294901760, %v16517_v57  ;;  %v8731_v22 = vsub.f32 %v16525_v45, %v8730_v43 }
 0x46e   :  { %8438 = vmatprep.subr.mxu0 %v17751_v12  ;;  %8503 = vmatpush1.msra.mxu1 %v16140_v58  ;;  %v8702_v58 = vand.u32 4294901760, %v16455_v34  ;;  %v8683_v54 = vand.u32 4294901760, %v8682_v31  ;;  %v8716_v19 = vand.u32 4294901760, %v16499_v46  ;;  %v17613_v31 = vand.u32 4294901760, %v16554_v14 }
 0x46f   :  { %8442 = vmatpush2.msra.mxu0 %v17829_v32  ;;  %8532 = vmatprep.subr.mxu1 %v17751_v12  ;;  %v8724_v20 = vsub.f32 %v16517_v57, %v8723_v53  ;;  %v16627_v60 = vsub.f32 %v8560_v63, %v16597_v33 }
 0x470   :  { %8443 = vmatprep.subr.mxu0 %v17751_v12  ;;  %8534 = vmatpush2.msra.mxu1 %v16153_v44  ;;  %v8555_v44 = vstv %s16441_s20  ;;  %v8717_v36 = vsub.f32 %v16499_v46, %v8716_v19 }
 0x471   :  { %8447 = vmatpush2.msra.mxu0 %v8114_v7  ;;  %8449 = vmatprep.mubr.f32.mxu0 %v16160_v8  ;;  %v8703_v7 = vsub.f32 %v16455_v34, %v8702_v58  ;;  %v8556_v47 = vadd.f32 %v8555_v44, %v8553_v13  ;;  %v8738_v44 = vsub.f32 %v16538_v3, %v17616_v16 }
 0x472   :  { %8535 = vmatprep.subr.mxu1 %v17751_v12  ;;  %8451 = vmatmul.mubr.f32.vlgmr.msra.gmra.mxu0 %v16171_v21  ;;  %v8718_v32 = vand.u32 4294901760, %v8717_v36  ;;  %v17610_v36 = vand.u32 4294901760, %v16612_v11 }
 0x473   :  { %8537 = vmatpush2.msra.mxu1 %v16175_v48  ;;  %8580 = vmatprep.subr.mxu0 %v17751_v12  ;;  %v8690_v48 = vand.u32 4294901760, %v8689_v28  ;;  %v16567_v2 = vmax.f32 %v8556_v47, 0.0  ;;  %v16595_v28 = vsub.f32 %v8562_v4, %v16565_v29  ;;  %v8745_v47 = vsub.f32 %v16554_v14, %v17613_v31  ;;  %v8575_v4 = vld [vmem:[%s17440_s4 + $0x5f8] sm:$0xff] }
 0x474   :  { %8539 = vmatprep.mubr.f32.mxu1 %v16160_v8  ;;  %8582 = vmatpush1.msra.mxu0 %v16395_v30  ;;  %v7246_v18 = vpop.f32.mrf.mxu0  ;;  %v8697_v8 = vand.u32 4294901760, %v8696_v17  ;;  %v8725_v17 = vand.u32 4294901760, %v8724_v20  ;;  %v16642_v63 = vand.u32 4294901760, %v8575_v4 }
 0x475   :  { %8678 = vmatprep.subr.mxu1 %v17751_v12  ;;  %8541 = vmatmul.mubr.f32.vlgmr.msra.gmra.mxu1 %v16171_v21  ;;  %v8704_v21 = vand.u32 4294901760, %v8703_v7  ;;  %v8577_v13 = vcombine.high %v16567_v2, %v16567_v2  ;;  %v17609_v7 = vand.u32 4294901760, %v16580_v52  ;;  %v8746_v20 = vand.u32 4294901760, %v8745_v47 }
 0x476   :  { %8583 = vmatprep.subr.mxu0 %v17751_v12  ;;  %8684 = vmatpush1.msra.mxu1 %v8683_v54  ;;  %v7248_v42 = vpop.f32.mrf.mxu0  ;;  %v8558_v54 = vld [vmem:[%s17440_s4 + $0x570] sm:$0xff]  ;;  %v8766_v47 = vsub.f32 %v16612_v11, %v17610_v36 }
 0x477   :  { %8585 = vmatpush1.msra.mxu0 %v16405_v26  ;;  %8685 = vmatprep.subr.mxu1 %v17751_v12  ;;  %v7408_v23 = vpop.f32.mrf.mxu1  ;;  %v16629_v42 = vand.u32 4294901760, %v8558_v54  ;;  %v8752_v40 = vsub.f32 %v16580_v52, %v17609_v7 }
 0x478   :  { %8586 = vmatprep.subr.mxu0 %v17751_v12  ;;  %8691 = vmatpush1.msra.mxu1 %v8690_v48  ;;  %v16563_v5 = vadd.f32 %v7408_v23, %v7246_v18  ;;  %v16614_v48 = vand.u32 4294901760, %v8559_v62  ;;  %v8732_v18 = vand.u32 4294901760, %v8731_v22  ;;  %v8739_v23 = vand.u32 4294901760, %v8738_v44 }
 0x479   :  { %8588 = vmatpush1.msra.mxu0 %v16418_v15  ;;  %8692 = vmatprep.subr.mxu1 %v17751_v12  ;;  %v7410_v39 = vpop.f32.mrf.mxu1  ;;  %v16660_v44 = vand.u32 4294901760, %v16567_v2 }
 0x47a   :  { %8589 = vmatprep.subr.mxu0 %v17751_v12  ;;  %8698 = vmatpush1.msra.mxu1 %v8697_v8  ;;  %v17608_v8 = vand.u32 4294901760, %v16595_v28  ;;  %v16640_v39 = vsub.f32 %v8559_v62, %v16614_v48 }
 0x47b   :  { %8591 = vmatpush1.msra.mxu0 %v16423_v55  ;;  %8699 = vmatprep.subr.mxu1 %v17751_v12 }
 0x47c   :  { %8592 = vmatprep.subr.mxu0 %v17751_v12  ;;  %8705 = vmatpush1.msra.mxu1 %v8704_v21  ;;  %v8578_v21 = vsel %vm70_vm0, %v8577_v13, 0  ;;  %v8759_v62 = vsub.f32 %v16595_v28, %v17608_v8  ;;  %v16657_v13 = vsub.f32 %v8558_v54, %v16629_v42  ;;  %v17612_v54 = vand.u32 4294901760, %v16640_v39 }
 0x47d   :  { %8594 = vmatpush1.msra.mxu0 %v16449_v61  ;;  %8706 = vmatprep.subr.mxu1 %v17751_v12  ;;  %v16649_v22 = vand.u32 4294901760, %v8578_v21  ;;  %v16672_v8 = vsub.f32 %v8575_v4, %v16642_v63  ;;  %v16686_v4 = vsub.f32 %v16567_v2, %v16660_v44 }
 0x47e   :  { %8595 = vmatprep.subr.mxu0 %v17751_v12  ;;  %8712 = vmatpush1.msra.mxu1 %v8711_v27  ;;  %v8574_v27 = vld [vmem:[%s17440_s4 + $0x5f0] sm:$0xff]  ;;  %v17614_v36 = vand.u32 4294901760, %v16657_v13 }
 0x47f   :  { %8597 = vmatpush1.msra.mxu0 %v16463_v35  ;;  %8713 = vmatprep.subr.mxu1 %v17751_v12  ;;  %v16677_v7 = vsub.f32 %v8578_v21, %v16649_v22 }
 0x480   :  { %8598 = vmatprep.subr.mxu0 %v17751_v12  ;;  %8719 = vmatpush1.msra.mxu1 %v8718_v32  ;;  %v17611_v32 = vand.u32 4294901760, %v16627_v60 }
 0x481   :  { %8600 = vmatpush1.msra.mxu0 %v16482_v37  ;;  %8720 = vmatprep.subr.mxu1 %v17751_v12  ;;  %v8664_v2 = vand.u32 4294901760, %v16677_v7 }
 0x482   :  { %8601 = vmatprep.subr.mxu0 %v17751_v12  ;;  %8726 = vmatpush1.msra.mxu1 %v8725_v17  ;;  %v16664_v17 = vand.u32 4294901760, %v8574_v27 }
 0x483   :  { %8603 = vmatpush1.msra.mxu0 %v16491_v38  ;;  %8727 = vmatprep.subr.mxu1 %v17751_v12 }
 0x484   :  { %8604 = vmatprep.subr.mxu0 %v17751_v12  ;;  %8733 = vmatpush1.msra.mxu1 %v8732_v18  ;;  %v8753_v18 = vand.u32 4294901760, %v8752_v40  ;;  %v8773_v40 = vsub.f32 %v16627_v60, %v17611_v32  ;;  %v16691_v21 = vsub.f32 %v8574_v27, %v16664_v17  ;;  %v17615_v32 = vand.u32 4294901760, %v16672_v8 }
 0x485   :  { %8606 = vmatpush1.msra.mxu0 %v16507_v0  ;;  %8734 = vmatprep.subr.mxu1 %v17751_v12 }
 0x486   :  { %8607 = vmatprep.subr.mxu0 %v17751_v12  ;;  %8740 = vmatpush1.msra.mxu1 %v8739_v23  ;;  %v8760_v23 = vand.u32 4294901760, %v8759_v62  ;;  %v8780_v62 = vsub.f32 %v16640_v39, %v17612_v54  ;;  %v8774_v27 = vand.u32 4294901760, %v8773_v40  ;;  %v8828_v54 = vand.u32 4294901760, %v16691_v21 }
 0x487   :  { %8609 = vmatpush1.msra.mxu0 %v16527_v1  ;;  %8741 = vmatprep.subr.mxu1 %v17751_v12  ;;  %v8665_v40 = vsub.f32 %v16677_v7, %v8664_v2 }
 0x488   :  { %8610 = vmatprep.subr.mxu0 %v17751_v12  ;;  %8747 = vmatpush1.msra.mxu1 %v8746_v20  ;;  %v8767_v20 = vand.u32 4294901760, %v8766_v47  ;;  %v8670_v47 = vand.u32 4294901760, %v16686_v4  ;;  %v8781_v31 = vand.u32 4294901760, %v8780_v62  ;;  %v8829_v62 = vsub.f32 %v16691_v21, %v8828_v54 }
 0x489   :  { %8612 = vmatpush1.msra.mxu0 %v16548_v9  ;;  %8748 = vmatprep.subr.mxu1 %v17751_v12 }
 0x48a   :  { %8613 = vmatprep.subr.mxu0 %v17751_v12  ;;  %8754 = vmatpush1.msra.mxu1 %v8753_v18  ;;  %v8787_v18 = vsub.f32 %v16657_v13, %v17614_v36  ;;  %v8830_v16 = vand.u32 4294901760, %v8829_v62 }
 0x48b   :  { %8615 = vmatpush1.msra.mxu0 %v16565_v29  ;;  %8755 = vmatprep.subr.mxu1 %v17751_v12 }
 0x48c   :  { %8616 = vmatprep.subr.mxu0 %v17751_v12  ;;  %8761 = vmatpush1.msra.mxu1 %v8760_v23  ;;  %v8822_v23 = vsub.f32 %v16672_v8, %v17615_v32  ;;  %v8788_v36 = vand.u32 4294901760, %v8787_v18 }
 0x48d   :  { %8618 = vmatpush1.msra.mxu0 %v16582_v50  ;;  %8762 = vmatprep.subr.mxu1 %v17751_v12 }
 0x48e   :  { %8619 = vmatprep.subr.mxu0 %v17751_v12  ;;  %8768 = vmatpush1.msra.mxu1 %v8767_v20  ;;  %v8671_v20 = vsub.f32 %v16686_v4, %v8670_v47  ;;  %v8823_v32 = vand.u32 4294901760, %v8822_v23 }
 0x48f   :  { %8621 = vmatpush1.msra.mxu0 %v16597_v33  ;;  %8769 = vmatprep.subr.mxu1 %v17751_v12 }
 0x490   :  { %8622 = vmatprep.subr.mxu0 %v17751_v12  ;;  %8775 = vmatpush1.msra.mxu1 %v8774_v27  ;;  %v8666_v27 = vand.u32 4294901760, %v8665_v40  ;;  %v8672_v18 = vand.u32 4294901760, %v8671_v20 }
 0x491   :  { %8624 = vmatpush1.msra.mxu0 %v16614_v48  ;;  %8776 = vmatprep.subr.mxu1 %v17751_v12 }
 0x492   :  { %8625 = vmatprep.subr.mxu0 %v17751_v12  ;;  %8782 = vmatpush1.msra.mxu1 %v8781_v31 }
 0x493   :  { %8627 = vmatpush1.msra.mxu0 %v16629_v42  ;;  %8783 = vmatprep.subr.mxu1 %v17751_v12 }
 0x494   :  { %8656 = vmatprep.subr.mxu0 %v17751_v12  ;;  %8789 = vmatpush1.msra.mxu1 %v8788_v36 }
 0x495   :  { %8658 = vmatpush2.msra.mxu0 %v16642_v63  ;;  %8818 = vmatprep.subr.mxu1 %v17751_v12 }
 0x496   :  { %8659 = vmatprep.subr.mxu0 %v17751_v12  ;;  %8824 = vmatpush2.msra.mxu1 %v8823_v32 }
 0x497   :  { %8661 = vmatpush2.msra.mxu0 %v16664_v17  ;;  %8667 = vmatprep.mubr.f32.mxu0 %v8666_v27  ;;  %v9276_v27 = vld [vmem:[%s17442_s6 + $0x30] sm:$0xff] }
 0x498   :  { %8825 = vmatprep.subr.mxu1 %v17751_v12  ;;  %8673 = vmatmul.mubr.f32.vlgmr.msra.gmra.mxu0 %v8672_v18 }
 0x499   :  { %8831 = vmatpush2.msra.mxu1 %v8830_v16  ;;  %8840 = vmatprep.subr.mxu0 %v17751_v12 }
 0x49a   :  { %8833 = vmatprep.mubr.f32.mxu1 %v16649_v22  ;;  %8843 = vmatpush1.msra.mxu0 %v16416_v25  ;;  %v7518_v31 = vpop.f32.mrf.mxu0 }
 0x49b   :  { %8950 = vmatprep.subr.mxu1 %v17751_v12  ;;  %8835 = vmatmul.mubr.f32.vlgmr.msra.gmra.mxu1 %v16660_v44  ;;  %v7519_v36 = vadd.f32 %v7518_v31, %v16563_v5 }
 0x49c   :  { %8844 = vmatprep.subr.mxu0 %v17751_v12  ;;  %8952 = vmatpush1.msra.mxu1 %v16395_v30  ;;  %v7520_v32 = vpop.f32.mrf.mxu0 }
 0x49d   :  { %8847 = vmatpush1.msra.mxu0 %v16431_v41  ;;  %8953 = vmatprep.subr.mxu1 %v17751_v12  ;;  %v7612_v16 = vpop.f32.mrf.mxu1  ;;  %v17834_v41 = vand.u32 4294901760, %v16612_v11 }
 0x49e   :  { %8848 = vmatprep.subr.mxu0 %v17751_v12  ;;  %8955 = vmatpush1.msra.mxu1 %v16405_v26  ;;  %v16748_v23 = vadd.f32 %v7612_v16, %v7519_v36 }
 0x49f   :  { %8851 = vmatpush1.msra.mxu0 %v16447_v6  ;;  %8956 = vmatprep.subr.mxu1 %v17751_v12  ;;  %v7614_v5 = vpop.f32.mrf.mxu1  ;;  %v17835_v6 = vand.u32 4294901760, %v16627_v60 }
 0x4a0   :  { %8852 = vmatprep.subr.mxu0 %v17751_v12  ;;  %8958 = vmatpush1.msra.mxu1 %v16418_v15 }
 0x4a1   :  { %8855 = vmatpush1.msra.mxu0 %v16455_v34  ;;  %8959 = vmatprep.subr.mxu1 %v17751_v12  ;;  %v17837_v34 = vand.u32 4294901760, %v16657_v13 }
 0x4a2   :  { %8856 = vmatprep.subr.mxu0 %v17751_v12  ;;  %8961 = vmatpush1.msra.mxu1 %v16423_v55 }
 0x4a3   :  { %8859 = vmatpush1.msra.mxu0 %v16480_v10  ;;  %8962 = vmatprep.subr.mxu1 %v17751_v12 }
 0x4a4   :  { %8860 = vmatprep.subr.mxu0 %v17751_v12  ;;  %8964 = vmatpush1.msra.mxu1 %v16449_v61 }
 0x4a5   :  { %8863 = vmatpush1.msra.mxu0 %v16499_v46  ;;  %8965 = vmatprep.subr.mxu1 %v17751_v12  ;;  %v9284_v46 = vld [vmem:[%s17442_s6 + $0x70] sm:$0xff] }
 0x4a6   :  { %8864 = vmatprep.subr.mxu0 %v17751_v12  ;;  %8967 = vmatpush1.msra.mxu1 %v16463_v35 }
 0x4a7   :  { %8867 = vmatpush1.msra.mxu0 %v16517_v57  ;;  %8968 = vmatprep.subr.mxu1 %v17751_v12  ;;  %v16934_v57 = vand.u32 4294901760, %v9284_v46 }
 0x4a8   :  { %8868 = vmatprep.subr.mxu0 %v17751_v12  ;;  %8970 = vmatpush1.msra.mxu1 %v16482_v37 }
 0x4a9   :  { %8871 = vmatpush1.msra.mxu0 %v16525_v45  ;;  %8971 = vmatprep.subr.mxu1 %v17751_v12 }
 0x4aa   :  { %8872 = vmatprep.subr.mxu0 %v17751_v12  ;;  %8973 = vmatpush1.msra.mxu1 %v16491_v38 }
 0x4ab   :  { %8875 = vmatpush1.msra.mxu0 %v16538_v3  ;;  %8974 = vmatprep.subr.mxu1 %v17751_v12 }
 0x4ac   :  { %8876 = vmatprep.subr.mxu0 %v17751_v12  ;;  %8976 = vmatpush1.msra.mxu1 %v16507_v0 }
 0x4ad   :  { %8879 = vmatpush1.msra.mxu0 %v16554_v14  ;;  %8977 = vmatprep.subr.mxu1 %v17751_v12 }
 0x4ae   :  { %8880 = vmatprep.subr.mxu0 %v17751_v12  ;;  %8979 = vmatpush1.msra.mxu1 %v16527_v1 }
 0x4af   :  { %8883 = vmatpush1.msra.mxu0 %v16580_v52  ;;  %8980 = vmatprep.subr.mxu1 %v17751_v12 }
 0x4b0   :  { %8884 = vmatprep.subr.mxu0 %v17751_v12  ;;  %8982 = vmatpush1.msra.mxu1 %v16548_v9 }
 0x4b1   :  { %8887 = vmatpush1.msra.mxu0 %v16595_v28  ;;  %8983 = vmatprep.subr.mxu1 %v17751_v12 }
 0x4b2   :  { %8888 = vmatprep.subr.mxu0 %v17751_v12  ;;  %8985 = vmatpush1.msra.mxu1 %v16565_v29 }
 0x4b3   :  { %8891 = vmatpush1.msra.mxu0 %v16612_v11  ;;  %8986 = vmatprep.subr.mxu1 %v17751_v12 }
 0x4b4   :  { %8892 = vmatprep.subr.mxu0 %v17751_v12  ;;  %8988 = vmatpush1.msra.mxu1 %v16582_v50 }
 0x4b5   :  { %8895 = vmatpush1.msra.mxu0 %v16627_v60  ;;  %8989 = vmatprep.subr.mxu1 %v17751_v12 }
 0x4b6   :  { %8896 = vmatprep.subr.mxu0 %v17751_v12  ;;  %8991 = vmatpush1.msra.mxu1 %v16597_v33 }
 0x4b7   :  { %8899 = vmatpush1.msra.mxu0 %v16640_v39  ;;  %8992 = vmatprep.subr.mxu1 %v17751_v12 }
 0x4b8   :  { %8900 = vmatprep.subr.mxu0 %v17751_v12  ;;  %8994 = vmatpush1.msra.mxu1 %v16614_v48 }
 0x4b9   :  { %8903 = vmatpush1.msra.mxu0 %v16657_v13  ;;  %8995 = vmatprep.subr.mxu1 %v17751_v12 }
 0x4ba   :  { %8932 = vmatprep.subr.mxu0 %v17751_v12  ;;  %8997 = vmatpush1.msra.mxu1 %v16629_v42 }
 0x4bb   :  { %8935 = vmatpush2.msra.mxu0 %v16672_v8  ;;  %9026 = vmatprep.subr.mxu1 %v17751_v12 }
 0x4bc   :  { %8936 = vmatprep.subr.mxu0 %v17751_v12  ;;  %9028 = vmatpush2.msra.mxu1 %v16642_v63 }
 0x4bd   :  { %8939 = vmatpush2.msra.mxu0 %v16691_v21  ;;  %8942 = vmatprep.mubr.f32.mxu0 %v16677_v7 }
 0x4be   :  { %9029 = vmatprep.subr.mxu1 %v17751_v12  ;;  %8945 = vmatmul.mubr.f32.vlgmr.msra.gmra.mxu0 %v16686_v4 }
 0x4bf   :  { %9031 = vmatpush2.msra.mxu1 %v16664_v17  ;;  %9044 = vmatprep.subr.mxu0 %v17751_v12 }
 0x4c0   :  { %9035 = vmatprep.mubr.f32.mxu1 %v8664_v2  ;;  %9048 = vmatpush1.msra.mxu0 %v8681_v24  ;;  %v7738_v40 = vpop.f32.mrf.mxu0 }
 0x4c1   :  { %9170 = vmatprep.subr.mxu1 %v17751_v12  ;;  %9039 = vmatmul.mubr.f32.vlgmr.msra.gmra.mxu1 %v8670_v47  ;;  %v7739_v20 = vadd.f32 %v7738_v40, %v16748_v23  ;;  %v9277_v47 = vld [vmem:[%s17442_s6 + $0x38] sm:$0xff] }
 0x4c2   :  { %9049 = vmatprep.subr.mxu0 %v17751_v12  ;;  %9172 = vmatpush1.msra.mxu1 %v16395_v30  ;;  %v7740_v62 = vpop.f32.mrf.mxu0 }
 0x4c3   :  { %9053 = vmatpush1.msra.mxu0 %v8688_v49  ;;  %9173 = vmatprep.subr.mxu1 %v17751_v12  ;;  %v7828_v25 = vpop.f32.mrf.mxu1  ;;  %v17838_v49 = vand.u32 4294901760, %v16672_v8  ;;  %v17024_v62 = vand.u32 4294901760, %v9277_v47 }
 0x4c4   :  { %9054 = vmatprep.subr.mxu0 %v17751_v12  ;;  %9175 = vmatpush1.msra.mxu1 %v16405_v26  ;;  %v7829_v24 = vadd.f32 %v7828_v25, %v7739_v20  ;;  %v17831_v26 = vand.u32 4294901760, %v16554_v14  ;;  %v9279_v14 = vld [vmem:[%s17442_s6 + $0x48] sm:$0xff]  ;;  %v17026_v25 = vand.u32 4294901760, %v9276_v27 }
 0x4c5   :  { %9058 = vmatpush1.msra.mxu0 %v8695_v59  ;;  %9176 = vmatprep.subr.mxu1 %v17751_v12  ;;  %v7830_v7 = vpop.f32.mrf.mxu1 }
 0x4c6   :  { %9059 = vmatprep.subr.mxu0 %v17751_v12  ;;  %9178 = vmatpush1.msra.mxu1 %v16418_v15  ;;  %v16837_v30 = vadd.f32 %v7829_v24, %v16348_v56  ;;  %v17830_v56 = vand.u32 4294901760, %v16538_v3  ;;  %v17832_v15 = vand.u32 4294901760, %v16580_v52  ;;  %v9280_v3 = vld [vmem:[%s17442_s6 + $0x50] sm:$0xff] }
 0x4c7   :  { %9063 = vmatpush1.msra.mxu0 %v8702_v58  ;;  %9179 = vmatprep.subr.mxu1 %v17751_v12 }
 0x4c8   :  { %9064 = vmatprep.subr.mxu0 %v17751_v12  ;;  %9181 = vmatpush1.msra.mxu1 %v16423_v55  ;;  %v17833_v55 = vand.u32 4294901760, %v16595_v28 }
 0x4c9   :  { %9068 = vmatpush1.msra.mxu0 %v8709_v51  ;;  %9182 = vmatprep.subr.mxu1 %v17751_v12 }
 0x4ca   :  { %9069 = vmatprep.subr.mxu0 %v17751_v12  ;;  %9184 = vmatpush1.msra.mxu1 %v16449_v61  ;;  %v17836_v61 = vand.u32 4294901760, %v16640_v39 }
 0x4cb   :  { %9073 = vmatpush1.msra.mxu0 %v8716_v19  ;;  %9185 = vmatprep.subr.mxu1 %v17751_v12  ;;  %v9281_v19 = vld [vmem:[%s17442_s6 + $0x58] sm:$0xff] }
 0x4cc   :  { %9074 = vmatprep.subr.mxu0 %v17751_v12  ;;  %9187 = vmatpush1.msra.mxu1 %v16463_v35 }
 0x4cd   :  { %9078 = vmatpush1.msra.mxu0 %v8723_v53  ;;  %9188 = vmatprep.subr.mxu1 %v17751_v12 }
 0x4ce   :  { %9079 = vmatprep.subr.mxu0 %v17751_v12  ;;  %9190 = vmatpush1.msra.mxu1 %v16482_v37 }
 0x4cf   :  { %9083 = vmatpush1.msra.mxu0 %v8730_v43  ;;  %9191 = vmatprep.subr.mxu1 %v17751_v12  ;;  %v16951_v43 = vand.u32 4294901760, %v9280_v3 }
 0x4d0   :  { %9084 = vmatprep.subr.mxu0 %v17751_v12  ;;  %9193 = vmatpush1.msra.mxu1 %v16491_v38  ;;  %v9285_v38 = vld [vmem:[%s17442_s6 + $0x78] sm:$0xff] }
 0x4d1   :  { %9088 = vmatpush1.msra.mxu0 %v17830_v56  ;;  %9194 = vmatprep.subr.mxu1 %v17751_v12  ;;  %v16932_v51 = vand.u32 4294901760, %v9285_v38  ;;  %v16979_v8 = vsub.f32 %v9280_v3, %v16951_v43 }
 0x4d2   :  { %9089 = vmatprep.subr.mxu0 %v17751_v12  ;;  %9196 = vmatpush1.msra.mxu1 %v16507_v0  ;;  %v9283_v0 = vld [vmem:[%s17442_s6 + $0x68] sm:$0xff] }
 0x4d3   :  { %9093 = vmatpush1.msra.mxu0 %v17831_v26  ;;  %9197 = vmatprep.subr.mxu1 %v17751_v12  ;;  %v16936_v45 = vand.u32 4294901760, %v9283_v0  ;;  %v16960_v52 = vsub.f32 %v9285_v38, %v16932_v51  ;;  %v9422_v21 = vand.u32 4294901760, %v16979_v8 }
 0x4d4   :  { %9094 = vmatprep.subr.mxu0 %v17751_v12  ;;  %9199 = vmatpush1.msra.mxu1 %v16527_v1  ;;  %v9282_v1 = vld [vmem:[%s17442_s6 + $0x60] sm:$0xff] }
 0x4d5   :  { %9098 = vmatpush1.msra.mxu0 %v17832_v15  ;;  %9200 = vmatprep.subr.mxu1 %v17751_v12  ;;  %v16947_v53 = vand.u32 4294901760, %v9282_v1  ;;  %v16966_v28 = vsub.f32 %v9283_v0, %v16936_v45  ;;  %v9423_v7 = vsub.f32 %v16979_v8, %v9422_v21 }
 0x4d6   :  { %9099 = vmatprep.subr.mxu0 %v17751_v12  ;;  %9202 = vmatpush1.msra.mxu1 %v16548_v9  ;;  %v16949_v9 = vand.u32 4294901760, %v9281_v19 }
 0x4d7   :  { %9103 = vmatpush1.msra.mxu0 %v17833_v55  ;;  %9203 = vmatprep.subr.mxu1 %v17751_v12  ;;  %v16972_v11 = vsub.f32 %v9282_v1, %v16947_v53  ;;  %v17037_v55 = vsub.f32 %v9277_v47, %v17024_v62 }
 0x4d8   :  { %9104 = vmatprep.subr.mxu0 %v17751_v12  ;;  %9205 = vmatpush1.msra.mxu1 %v16565_v29  ;;  %v9278_v29 = vld [vmem:[%s17442_s6 + $0x40] sm:$0xff] }
 0x4d9   :  { %9108 = vmatpush1.msra.mxu0 %v17834_v41  ;;  %9206 = vmatprep.subr.mxu1 %v17751_v12  ;;  %v16981_v60 = vand.u32 4294901760, %v9278_v29  ;;  %v17041_v41 = vsub.f32 %v9276_v27, %v17026_v25 }
 0x4da   :  { %9109 = vmatprep.subr.mxu0 %v17751_v12  ;;  %9208 = vmatpush1.msra.mxu1 %v16582_v50  ;;  %v16963_v50 = vsub.f32 %v9284_v46, %v16934_v57 }
 0x4db   :  { %9113 = vmatpush1.msra.mxu0 %v17835_v6  ;;  %9209 = vmatprep.subr.mxu1 %v17751_v12  ;;  %v17006_v2 = vsub.f32 %v9278_v29, %v16981_v60 }
 0x4dc   :  { %9114 = vmatprep.subr.mxu0 %v17751_v12  ;;  %9211 = vmatpush1.msra.mxu1 %v16597_v33  ;;  %v16969_v33 = vand.u32 4294901760, %v9279_v14  ;;  %v9394_v39 = vand.u32 4294901760, %v16963_v50 }
 0x4dd   :  { %9118 = vmatpush1.msra.mxu0 %v17836_v61  ;;  %9212 = vmatprep.subr.mxu1 %v17751_v12  ;;  %v9436_v56 = vand.u32 4294901760, %v17006_v2 }
 0x4de   :  { %9119 = vmatprep.subr.mxu0 %v17751_v12  ;;  %9214 = vmatpush1.msra.mxu1 %v16614_v48  ;;  %v16975_v48 = vsub.f32 %v9281_v19, %v16949_v9  ;;  %v16990_v13 = vsub.f32 %v9279_v14, %v16969_v33  ;;  %v9275_v19 = vld [vmem:[%s17442_s6 + $0x28] sm:$0xff]  ;;  %v9274_v14 = vld [vmem:[%s17442_s6 + $0x20] sm:$0xff] }
 0x4df   :  { %9123 = vmatpush1.msra.mxu0 %v17837_v34  ;;  %9215 = vmatprep.subr.mxu1 %v17751_v12  ;;  %v17076_v3 = vand.u32 4294901760, %v9275_v19 }
 0x4e0   :  { %9152 = vmatprep.subr.mxu0 %v17751_v12  ;;  %9217 = vmatpush1.msra.mxu1 %v16629_v42  ;;  %v9387_v42 = vand.u32 4294901760, %v16960_v52  ;;  %v9415_v4 = vand.u32 4294901760, %v16975_v48  ;;  %v9429_v23 = vand.u32 4294901760, %v16990_v13 }
 0x4e1   :  { %9156 = vmatpush2.msra.mxu0 %v17838_v49  ;;  %9246 = vmatprep.subr.mxu1 %v17751_v12  ;;  %v9443_v49 = vand.u32 4294901760, %v17037_v55  ;;  %v17083_v29 = vsub.f32 %v9275_v19, %v17076_v3 }
 0x4e2   :  { %9157 = vmatprep.subr.mxu0 %v17751_v12  ;;  %9248 = vmatpush2.msra.mxu1 %v16642_v63  ;;  %v9401_v63 = vand.u32 4294901760, %v16966_v28  ;;  %v9416_v20 = vsub.f32 %v16975_v48, %v9415_v4  ;;  %v9430_v34 = vsub.f32 %v16990_v13, %v9429_v23 }
 0x4e3   :  { %9161 = vmatpush2.msra.mxu0 %v8828_v54  ;;  %9163 = vmatprep.mubr.f32.mxu0 %v16649_v22 }
 0x4e4   :  { %9249 = vmatprep.subr.mxu1 %v17751_v12  ;;  %9165 = vmatmul.mubr.f32.vlgmr.msra.gmra.mxu0 %v16660_v44  ;;  %v9402_v54 = vsub.f32 %v16966_v28, %v9401_v63  ;;  %v9417_v61 = vand.u32 4294901760, %v9416_v20 }
 0x4e5   :  { %9251 = vmatpush2.msra.mxu1 %v16664_v17  ;;  %9253 = vmatprep.mubr.f32.mxu1 %v16649_v22  ;;  %v9408_v22 = vand.u32 4294901760, %v16972_v11  ;;  %v9395_v17 = vsub.f32 %v16963_v50, %v9394_v39 }
 0x4e6   :  { %9255 = vmatmul.mubr.f32.vlgmr.msra.gmra.mxu1 %v16660_v44  ;;  %v7960_v35 = vpop.f32.mrf.mxu0  ;;  %11285 = vmatprep.subr.mxu1 %v17751_v12  ;;  %v9388_v44 = vsub.f32 %v16960_v52, %v9387_v42  ;;  %v9403_v40 = vand.u32 4294901760, %v9402_v54  ;;  %v17622_v54 = vand.u32 4294901760, %v17083_v29 }
 0x4e7   :  { %11250 = vmatprep.subr.mxu0 %v17751_v12  ;;  %11317 = vmatprep.mubr.msk.f32.mxu1 %vm11550_vm1, %v17751_v12  ;;  %v9396_v36 = vand.u32 4294901760, %v9395_v17  ;;  %v9409_v32 = vsub.f32 %v16972_v11, %v9408_v22  ;;  %v9273_v17 = vld [vmem:[%s17442_s6 + $0x18] sm:$0xff] }
 0x4e8   :  { %v7962_v59 = vpop.f32.mrf.mxu0  ;;  %11282 = vmatprep.mubr.msk.f32.mxu0 %vm11550_vm1, %v17751_v12  ;;  %11251 = vmatpush3.msra.mxu0 %v16932_v51  ;;  %v9389_v31 = vand.u32 4294901760, %v9388_v44  ;;  %v17085_v44 = vand.u32 4294901760, %v9274_v14  ;;  %v17097_v27 = vand.u32 4294901760, %v9273_v17 }
 0x4e9   :  { %v8122_v10 = vpop.f32.mrf.mxu1  ;;  %11252 = vmatprep.subr.mxu0 %v17751_v12  ;;  %v9410_v15 = vand.u32 4294901760, %v9409_v32  ;;  %v9437_v59 = vsub.f32 %v17006_v2, %v9436_v56 }
 0x4ea   :  { %v8123_v37 = vadd.f32 %v8122_v10, %v7960_v35  ;;  %11253 = vmatpush3.msra.mxu0 %v16934_v57  ;;  %11286 = vmatpush3.msra.mxu1 %v9389_v31  ;;  %v9424_v35 = vand.u32 4294901760, %v9423_v7  ;;  %v17623_v10 = vand.u32 4294901760, %v17041_v41  ;;  %v17095_v47 = vsub.f32 %v9274_v14, %v17085_v44 }
 0x4eb   :  { %v8124_v58 = vpop.f32.mrf.mxu1  ;;  %11254 = vmatprep.subr.mxu0 %v17751_v12  ;;  %11287 = vmatprep.subr.mxu1 %v17751_v12  ;;  %v9438_v38 = vand.u32 4294901760, %v9437_v59  ;;  %v9458_v31 = vsub.f32 %v17083_v29, %v17622_v54  ;;  %v17109_v32 = vsub.f32 %v9273_v17, %v17097_v27 }
 0x4ec   :  { %11255 = vmatpush3.msra.mxu0 %v16936_v45  ;;  %11288 = vmatpush3.msra.mxu1 %v9396_v36  ;;  %v9444_v58 = vsub.f32 %v17037_v55, %v9443_v49  ;;  %v9451_v46 = vsub.f32 %v17041_v41, %v17623_v10  ;;  %v17621_v36 = vand.u32 4294901760, %v17095_v47 }
 0x4ed   :  { %11256 = vmatprep.subr.mxu0 %v17751_v12  ;;  %11289 = vmatprep.subr.mxu1 %v17751_v12 }
 0x4ee   :  { %11257 = vmatpush3.msra.mxu0 %v16947_v53  ;;  %11290 = vmatpush3.msra.mxu1 %v9403_v40  ;;  %v9445_v0 = vand.u32 4294901760, %v9444_v58  ;;  %v9452_v1 = vand.u32 4294901760, %v9451_v46  ;;  %v9459_v40 = vand.u32 4294901760, %v9458_v31  ;;  %v9465_v20 = vsub.f32 %v17095_v47, %v17621_v36 }
 0x4ef   :  { %11258 = vmatprep.subr.mxu0 %v17751_v12  ;;  %11291 = vmatprep.subr.mxu1 %v17751_v12 }
 0x4f0   :  { %11259 = vmatpush3.msra.mxu0 %v16949_v9  ;;  %11292 = vmatpush3.msra.mxu1 %v9410_v15 }
 0x4f1   :  { %11260 = vmatprep.subr.mxu0 %v17751_v12  ;;  %11293 = vmatprep.subr.mxu1 %v17751_v12 }
 0x4f2   :  { %11261 = vmatpush3.msra.mxu0 %v16951_v43  ;;  %11294 = vmatpush3.msra.mxu1 %v9417_v61  ;;  %v9466_v61 = vand.u32 4294901760, %v9465_v20 }
 0x4f3   :  { %11262 = vmatprep.subr.mxu0 %v17751_v12  ;;  %11295 = vmatprep.subr.mxu1 %v17751_v12 }
 0x4f4   :  { %11263 = vmatpush3.msra.mxu0 %v16969_v33  ;;  %11296 = vmatpush3.msra.mxu1 %v9424_v35 }
 0x4f5   :  { %11264 = vmatprep.subr.mxu0 %v17751_v12  ;;  %11297 = vmatprep.subr.mxu1 %v17751_v12 }
 0x4f6   :  { %11265 = vmatpush3.msra.mxu0 %v16981_v60 }
 0x4f7   :  { %11266 = vmatprep.subr.mxu0 %v17751_v12 }
 0x4f8   :  { %11267 = vmatpush3.msra.mxu0 %v17024_v62 }
 0x4f9   :  { %11268 = vmatprep.subr.mxu0 %v17751_v12 }
 0x4fa   :  { %11269 = vmatpush3.msra.mxu0 %v17026_v25 }
 0x4fb   :  { %11270 = vmatprep.subr.mxu0 %v17751_v12 }
 0x4fc   :  { %11271 = vmatpush3.msra.mxu0 %v17076_v3 }
 0x4fd   :  { %11272 = vmatprep.subr.mxu0 %v17751_v12 }
 0x4fe   :  { %11273 = vmatpush3.msra.mxu0 %v17085_v44 }
 0x4ff   :  { %11274 = vmatprep.subr.mxu0 %v17751_v12 }
 0x500   :  { %11275 = vmatpush3.msra.mxu0 %v17097_v27 }
 0x501   :  { %11276 = vmatprep.subr.mxu0 %v17751_v12 }
 0x50c   :  { %v8232_v18 = vpop.f32.mrf.mxu0 }
 0x50d   :  { %v8233_v16 = vadd.f32 %v8232_v18, %v8123_v37  ;;  %v9431_v37 = vand.u32 4294901760, %v9430_v34  ;;  %v9272_v18 = vld [vmem:[%s17442_s6 + $0x10] sm:$0xff] }
 0x50e   :  { %v8234_v5 = vpop.f32.mrf.mxu0 }
 0x50f   :  { %v8326_v24 = vpop.f32.mrf.mxu1  ;;  %11298 = vmatpush3.msra.mxu1 %v9431_v37  ;;  %v9271_v5 = vld [vmem:[%s17442_s6 + $0x8] sm:$0xff] }
 0x510   :  { %v17034_v26 = vadd.f32 %v8326_v24, %v8233_v16  ;;  %11299 = vmatprep.subr.mxu1 %v17751_v12  ;;  %v17111_v16 = vand.u32 4294901760, %v9272_v18  ;;  %v17620_v24 = vand.u32 4294901760, %v17109_v32  ;;  %v17126_v15 = vand.u32 4294901760, %v9271_v5 }
 0x511   :  { %v8328_v6 = vpop.f32.mrf.mxu1  ;;  %11300 = vmatpush3.msra.mxu1 %v9438_v38 }
 0x512   :  { %11301 = vmatprep.subr.mxu1 %v17751_v12  ;;  %v17123_v7 = vsub.f32 %v9272_v18, %v17111_v16  ;;  %11277 = vmatpush3.msra.mxu0 %v17111_v16  ;;  %v9270_v6 = vld [vmem:[%s17442_s6] sm:$0xff]  ;;  %v9472_v34 = vsub.f32 %v17109_v32, %v17620_v24  ;;  %v17140_v37 = vsub.f32 %v9271_v5, %v17126_v15 }
 0x513   :  { %11302 = vmatpush3.msra.mxu1 %v9445_v0  ;;  %11278 = vmatprep.subr.mxu0 %v17751_v12  ;;  %v17136_v59 = vand.u32 4294901760, %v9270_v6 }
 0x514   :  { %11303 = vmatprep.subr.mxu1 %v17751_v12  ;;  %v17619_v35 = vand.u32 4294901760, %v17123_v7  ;;  %11279 = vmatpush3.msra.mxu0 %v17126_v15  ;;  %v9473_v58 = vand.u32 4294901760, %v9472_v34  ;;  %v17618_v0 = vand.u32 4294901760, %v17140_v37 }
 0x515   :  { %11304 = vmatpush3.msra.mxu1 %v9452_v1  ;;  %v17147_v46 = vsub.f32 %v9270_v6, %v17136_v59  ;;  %11280 = vmatprep.subr.mxu0 %v17751_v12 }
 0x516   :  { %11305 = vmatprep.subr.mxu1 %v17751_v12  ;;  %v9479_v38 = vsub.f32 %v17123_v7, %v17619_v35  ;;  %11281 = vmatpush3.msra.mxu0 %v17136_v59  ;;  %v9486_v14 = vsub.f32 %v17140_v37, %v17618_v0 }
 0x517   :  { %11306 = vmatpush3.msra.mxu1 %v9459_v40  ;;  %v17617_v19 = vand.u32 4294901760, %v17147_v46  ;;  %11320 = vmatprep.subr.mxu0 %v17751_v12 }
 0x518   :  { %11307 = vmatprep.subr.mxu1 %v17751_v12  ;;  %v9480_v1 = vand.u32 4294901760, %v9479_v38  ;;  %v9487_v18 = vand.u32 4294901760, %v9486_v14 }
 0x519   :  { %11308 = vmatpush3.msra.mxu1 %v9466_v61  ;;  %v9493_v17 = vsub.f32 %v17147_v46, %v17617_v19 }
 0x51a   :  { %11309 = vmatprep.subr.mxu1 %v17751_v12 }
 0x51b   :  { %11310 = vmatpush3.msra.mxu1 %v9473_v58  ;;  %v9494_v31 = vand.u32 4294901760, %v9493_v17 }
 0x51c   :  { %11311 = vmatprep.subr.mxu1 %v17751_v12 }
 0x51d   :  { %11312 = vmatpush3.msra.mxu1 %v9480_v1 }
 0x51e   :  { %11313 = vmatprep.subr.mxu1 %v17751_v12 }
 0x51f   :  { %11314 = vmatpush3.msra.mxu1 %v9487_v18 }
 0x520   :  { %11315 = vmatprep.subr.mxu1 %v17751_v12 }
 0x521   :  { %11316 = vmatpush3.msra.mxu1 %v9494_v31 }
 0x522   :  { %11355 = vmatprep.subr.mxu1 %v17751_v12 }
 0x532   :  { %v8452_v5 = vpop.f32.mrf.mxu0 }
 0x533   :  { %v8453_v40 = vadd.f32 %v8452_v5, %v17034_v26 }
 0x534   :  { %v8454_v20 = vpop.f32.mrf.mxu0 }
 0x535   :  { %v8542_v6 = vpop.f32.mrf.mxu1 }
 0x536   :  { %v8543_v61 = vadd.f32 %v8542_v6, %v8453_v40 }
 0x537   :  { %v8544_v34 = vpop.f32.mrf.mxu1 }
 0x538   :  { %v8546_v58 = vadd.f32 %v8543_v61, %v16837_v30  ;;  %v10474_v30 = vld [vmem:[%s17439_s3 + $0x3] ss:$0 sm:$0xff] }
 0x558   :  { %v8674_v38 = vpop.f32.mrf.mxu0 }
 0x55a   :  { %v8676_v1 = vpop.f32.mrf.mxu0 }
 0x55b   :  { %v8836_v19 = vpop.f32.mrf.mxu1 }
 0x55c   :  { %v8837_v14 = vadd.f32 %v8836_v19, %v8674_v38 }
 0x55d   :  { %v8838_v17 = vpop.f32.mrf.mxu1 }
 0x57e   :  { %v8946_v18 = vpop.f32.mrf.mxu0 }
 0x57f   :  { %v8947_v31 = vadd.f32 %v8946_v18, %v8837_v14 }
 0x580   :  { %v8948_v0 = vpop.f32.mrf.mxu0 }
 0x581   :  { %v9040_v35 = vpop.f32.mrf.mxu1 }
 0x582   :  { %v9041_v36 = vadd.f32 %v9040_v35, %v8947_v31 }
 0x583   :  { %v9042_v24 = vpop.f32.mrf.mxu1 }
 0x5a4   :  { %v9166_v26 = vpop.f32.mrf.mxu0 }
 0x5a5   :  { %v9167_v5 = vadd.f32 %v9166_v26, %v9041_v36 }
 0x5a6   :  { %v9256_v54 = vpop.f32.mrf.mxu1  ;;  %v9168_v20 = vpop.f32.mrf.mxu0 }
 0x5a7   :  { %v9257_v10 = vadd.f32 %v9256_v54, %v9167_v5 }
 0x5a8   :  { %v9258_v40 = vpop.f32.mrf.mxu1 }
 0x5a9   :  { %v9260_v6 = vadd.f32 %v9257_v10, %v8546_v58 }
 0x5ab   :  { %v9268_v61 = vadd.f32 %v10474_v30, %v9260_v6 }
 0x5ad   :  { %v9269_v19 = vmax.f32 %v9268_v61, 0.0 }
 0x5af   :  { %v17170_v34 = vand.u32 4294901760, %v9269_v19 }
 0x5b1   :  { %v17173_v0 = vsub.f32 %v9269_v19, %v17170_v34  ;;  %11318 = vmatmul.mubr.f32.vlgmr.msra.gmra.mxu1 %v17170_v34 }
 0x5b2   :  { %11356 = vmatpush3.msra.mxu1 %v16932_v51  ;;  %11387 = vmatprep.mubr.msk.f32.mxu1 %vm11550_vm1, %v17751_v12 }
 0x5b3   :  { %11357 = vmatprep.subr.mxu1 %v17751_v12  ;;  %v9376_v54 = vand.u32 4294901760, %v17173_v0 }
 0x5b4   :  { %11358 = vmatpush3.msra.mxu1 %v16934_v57 }
 0x5b5   :  { %11359 = vmatprep.subr.mxu1 %v17751_v12  ;;  %v9377_v10 = vsub.f32 %v17173_v0, %v9376_v54 }
 0x5b6   :  { %11360 = vmatpush3.msra.mxu1 %v16936_v45 }
 0x5b7   :  { %11361 = vmatprep.subr.mxu1 %v17751_v12  ;;  %v9378_v36 = vand.u32 4294901760, %v9377_v10 }
 0x5b8   :  { %11362 = vmatpush3.msra.mxu1 %v16947_v53 }
 0x5b9   :  { %11363 = vmatprep.subr.mxu1 %v17751_v12  ;;  %11283 = vmatmul.mubr.f32.vlgmr.msra.gmra.mxu0 %v9378_v36 }
 0x5ba   :  { %11321 = vmatpush3.msra.mxu0 %v16960_v52  ;;  %11364 = vmatpush3.msra.mxu1 %v16949_v9  ;;  %v17845_v52 = vand.u32 4294901760, %v17147_v46 }
 0x5bb   :  { %11322 = vmatprep.subr.mxu0 %v17751_v12  ;;  %11365 = vmatprep.subr.mxu1 %v17751_v12 }
 0x5bc   :  { %11323 = vmatpush3.msra.mxu0 %v16963_v50  ;;  %11366 = vmatpush3.msra.mxu1 %v16951_v43 }
 0x5bd   :  { %11324 = vmatprep.subr.mxu0 %v17751_v12  ;;  %11367 = vmatprep.subr.mxu1 %v17751_v12 }
 0x5be   :  { %11325 = vmatpush3.msra.mxu0 %v16966_v28  ;;  %11368 = vmatpush3.msra.mxu1 %v16969_v33 }
 0x5bf   :  { %11326 = vmatprep.subr.mxu0 %v17751_v12  ;;  %11369 = vmatprep.subr.mxu1 %v17751_v12 }
 0x5c0   :  { %11327 = vmatpush3.msra.mxu0 %v16972_v11  ;;  %11370 = vmatpush3.msra.mxu1 %v16981_v60 }
 0x5c1   :  { %11328 = vmatprep.subr.mxu0 %v17751_v12  ;;  %11371 = vmatprep.subr.mxu1 %v17751_v12 }
 0x5c2   :  { %11329 = vmatpush3.msra.mxu0 %v16975_v48  ;;  %11372 = vmatpush3.msra.mxu1 %v17024_v62 }
 0x5c3   :  { %11330 = vmatprep.subr.mxu0 %v17751_v12  ;;  %11373 = vmatprep.subr.mxu1 %v17751_v12 }
 0x5c4   :  { %11331 = vmatpush3.msra.mxu0 %v16979_v8  ;;  %11374 = vmatpush3.msra.mxu1 %v17026_v25 }
 0x5c5   :  { %11332 = vmatprep.subr.mxu0 %v17751_v12  ;;  %11375 = vmatprep.subr.mxu1 %v17751_v12 }
 0x5c6   :  { %11333 = vmatpush3.msra.mxu0 %v16990_v13  ;;  %11376 = vmatpush3.msra.mxu1 %v17076_v3 }
 0x5c7   :  { %11334 = vmatprep.subr.mxu0 %v17751_v12  ;;  %11377 = vmatprep.subr.mxu1 %v17751_v12 }
 0x5c8   :  { %11335 = vmatpush3.msra.mxu0 %v17006_v2  ;;  %11378 = vmatpush3.msra.mxu1 %v17085_v44 }
 0x5c9   :  { %11336 = vmatprep.subr.mxu0 %v17751_v12  ;;  %11379 = vmatprep.subr.mxu1 %v17751_v12 }
 0x5ca   :  { %11337 = vmatpush3.msra.mxu0 %v17037_v55  ;;  %11380 = vmatpush3.msra.mxu1 %v17097_v27 }
 0x5cb   :  { %11338 = vmatprep.subr.mxu0 %v17751_v12  ;;  %11381 = vmatprep.subr.mxu1 %v17751_v12 }
 0x5cc   :  { %11339 = vmatpush3.msra.mxu0 %v17041_v41  ;;  %11382 = vmatpush3.msra.mxu1 %v17111_v16 }
 0x5cd   :  { %11340 = vmatprep.subr.mxu0 %v17751_v12  ;;  %11383 = vmatprep.subr.mxu1 %v17751_v12 }
 0x5ce   :  { %11341 = vmatpush3.msra.mxu0 %v17083_v29  ;;  %11384 = vmatpush3.msra.mxu1 %v17126_v15 }
 0x5cf   :  { %11342 = vmatprep.subr.mxu0 %v17751_v12  ;;  %11385 = vmatprep.subr.mxu1 %v17751_v12 }
 0x5d0   :  { %11343 = vmatpush3.msra.mxu0 %v17095_v47  ;;  %11386 = vmatpush3.msra.mxu1 %v17136_v59 }
 0x5d1   :  { %11344 = vmatprep.subr.mxu0 %v17751_v12  ;;  %11388 = vmatmul.mubr.f32.vlgmr.msra.gmra.mxu1 %v9376_v54 }
 0x5d2   :  { %11425 = vmatprep.subr.mxu1 %v17751_v12  ;;  %11345 = vmatpush3.msra.mxu0 %v17109_v32 }
 0x5d3   :  { %11426 = vmatpush3.msra.mxu1 %v16932_v51  ;;  %11346 = vmatprep.subr.mxu0 %v17751_v12  ;;  %v17839_v51 = vand.u32 4294901760, %v17041_v41 }
 0x5d4   :  { %11427 = vmatprep.subr.mxu1 %v17751_v12  ;;  %11347 = vmatpush3.msra.mxu0 %v17123_v7 }
 0x5d5   :  { %11428 = vmatpush3.msra.mxu1 %v16934_v57  ;;  %11348 = vmatprep.subr.mxu0 %v17751_v12  ;;  %v17840_v57 = vand.u32 4294901760, %v17083_v29 }
 0x5d6   :  { %11429 = vmatprep.subr.mxu1 %v17751_v12  ;;  %11349 = vmatpush3.msra.mxu0 %v17140_v37 }
 0x5d7   :  { %11430 = vmatpush3.msra.mxu1 %v16936_v45  ;;  %11350 = vmatprep.subr.mxu0 %v17751_v12  ;;  %v17841_v45 = vand.u32 4294901760, %v17095_v47  ;;  %v9949_v47 = vld [vmem:[%s17443_s7 + $0x18] sm:$0xff] }
 0x5d8   :  { %11431 = vmatprep.subr.mxu1 %v17751_v12  ;;  %11351 = vmatpush3.msra.mxu0 %v17147_v46 }
 0x5d9   :  { %11352 = vmatprep.mubr.msk.f32.mxu0 %vm11550_vm1, %v17751_v12  ;;  %11432 = vmatpush3.msra.mxu1 %v16947_v53  ;;  %v17842_v53 = vand.u32 4294901760, %v17109_v32  ;;  %v9947_v32 = vld [vmem:[%s17443_s7 + $0x8] sm:$0xff] }
 0x5da   :  { %11353 = vmatmul.mubr.f32.vlgmr.msra.gmra.mxu0 %v17173_v0  ;;  %11390 = vmatprep.subr.mxu0 %v17751_v12 }
 0x5db   :  { %11433 = vmatprep.subr.mxu1 %v17751_v12  ;;  %11391 = vmatpush3.msra.mxu0 %v9387_v42 }
 0x5dc   :  { %11434 = vmatpush3.msra.mxu1 %v16949_v9  ;;  %11392 = vmatprep.subr.mxu0 %v17751_v12  ;;  %v17843_v9 = vand.u32 4294901760, %v17123_v7  ;;  %v17349_v7 = vand.u32 4294901760, %v9947_v32 }
 0x5dd   :  { %11435 = vmatprep.subr.mxu1 %v17751_v12  ;;  %11393 = vmatpush3.msra.mxu0 %v9394_v39  ;;  %v10475_v39 = vld [vmem:[%s17439_s3 + $0x4] ss:$0 sm:$0xff] }
 0x5de   :  { %11436 = vmatpush3.msra.mxu1 %v16951_v43  ;;  %11394 = vmatprep.subr.mxu0 %v17751_v12  ;;  %v17844_v43 = vand.u32 4294901760, %v17140_v37  ;;  %v17361_v46 = vsub.f32 %v9947_v32, %v17349_v7 }
 0x5df   :  { %11437 = vmatprep.subr.mxu1 %v17751_v12  ;;  %11395 = vmatpush3.msra.mxu0 %v9401_v63 }
 0x5e0   :  { %11438 = vmatpush3.msra.mxu1 %v16969_v33  ;;  %11396 = vmatprep.subr.mxu0 %v17751_v12  ;;  %v10074_v14 = vand.u32 4294901760, %v17361_v46 }
 0x5e1   :  { %11439 = vmatprep.subr.mxu1 %v17751_v12  ;;  %11397 = vmatpush3.msra.mxu0 %v9408_v22 }
 0x5e2   :  { %11440 = vmatpush3.msra.mxu1 %v16981_v60  ;;  %11398 = vmatprep.subr.mxu0 %v17751_v12  ;;  %v10075_v26 = vsub.f32 %v17361_v46, %v10074_v14 }
 0x5e3   :  { %11441 = vmatprep.subr.mxu1 %v17751_v12  ;;  %11399 = vmatpush3.msra.mxu0 %v9415_v4 }
 0x5e4   :  { %11442 = vmatpush3.msra.mxu1 %v17024_v62  ;;  %11400 = vmatprep.subr.mxu0 %v17751_v12  ;;  %v10076_v40 = vand.u32 4294901760, %v10075_v26 }
 0x5e5   :  { %11443 = vmatprep.subr.mxu1 %v17751_v12  ;;  %11401 = vmatpush3.msra.mxu0 %v9422_v21 }
 0x5e6   :  { %11444 = vmatpush3.msra.mxu1 %v17026_v25  ;;  %11402 = vmatprep.subr.mxu0 %v17751_v12 }
 0x5e7   :  { %11445 = vmatprep.subr.mxu1 %v17751_v12  ;;  %11403 = vmatpush3.msra.mxu0 %v9429_v23 }
 0x5e8   :  { %11446 = vmatpush3.msra.mxu1 %v17076_v3  ;;  %11404 = vmatprep.subr.mxu0 %v17751_v12 }
 0x5e9   :  { %11447 = vmatprep.subr.mxu1 %v17751_v12  ;;  %11405 = vmatpush3.msra.mxu0 %v9436_v56 }
 0x5ea   :  { %11448 = vmatpush3.msra.mxu1 %v17085_v44  ;;  %11406 = vmatprep.subr.mxu0 %v17751_v12 }
 0x5eb   :  { %11449 = vmatprep.subr.mxu1 %v17751_v12  ;;  %11407 = vmatpush3.msra.mxu0 %v9443_v49 }
 0x5ec   :  { %11450 = vmatpush3.msra.mxu1 %v17097_v27  ;;  %11408 = vmatprep.subr.mxu0 %v17751_v12  ;;  %v9948_v27 = vld [vmem:[%s17443_s7 + $0x10] sm:$0xff] }
 0x5ed   :  { %11451 = vmatprep.subr.mxu1 %v17751_v12  ;;  %11409 = vmatpush3.msra.mxu0 %v17839_v51  ;;  %v9982_v24 = vand.u32 4294901760, %v9948_v27 }
 0x5ee   :  { %11452 = vmatpush3.msra.mxu1 %v17111_v16  ;;  %11410 = vmatprep.subr.mxu0 %v17751_v12  ;;  %v9979_v16 = vand.u32 4294901760, %v9949_v47 }
 0x5ef   :  { %11453 = vmatprep.subr.mxu1 %v17751_v12  ;;  %11411 = vmatpush3.msra.mxu0 %v17840_v57  ;;  %v17358_v37 = vsub.f32 %v9948_v27, %v9982_v24 }
 0x5f0   :  { %11454 = vmatpush3.msra.mxu1 %v17126_v15  ;;  %11412 = vmatprep.subr.mxu0 %v17751_v12  ;;  %v9946_v15 = vld [vmem:[%s17443_s7] sm:$0xff] }
 0x5f1   :  { %11455 = vmatprep.subr.mxu1 %v17751_v12  ;;  %11413 = vmatpush3.msra.mxu0 %v17841_v45  ;;  %v17354_v35 = vand.u32 4294901760, %v9946_v15  ;;  %v10067_v1 = vand.u32 4294901760, %v17358_v37 }
 0x5f2   :  { %11456 = vmatpush3.msra.mxu1 %v17136_v59  ;;  %11457 = vmatprep.mubr.msk.f32.mxu1 %vm11550_vm1, %v17751_v12  ;;  %v17356_v59 = vsub.f32 %v9949_v47, %v9979_v16 }
 0x5f3   :  { %11414 = vmatprep.subr.mxu0 %v17751_v12  ;;  %11458 = vmatmul.mubr.f32.vlgmr.msra.gmra.mxu1 %v17170_v34  ;;  %v17364_v58 = vsub.f32 %v9946_v15, %v17354_v35  ;;  %v10068_v31 = vsub.f32 %v17358_v37, %v10067_v1 }
 0x5f4   :  { %11415 = vmatpush3.msra.mxu0 %v17842_v53  ;;  %11422 = vmatprep.mubr.msk.f32.mxu0 %vm11550_vm1, %v17751_v12  ;;  %v10060_v38 = vand.u32 4294901760, %v17356_v59 }
 0x5f5   :  { %11416 = vmatprep.subr.mxu0 %v17751_v12  ;;  %11471 = vmatprep.subr.mxu1 %v17751_v12  ;;  %v10081_v17 = vand.u32 4294901760, %v17364_v58  ;;  %v10069_v20 = vand.u32 4294901760, %v10068_v31 }
 0x5f6   :  { %11417 = vmatpush3.msra.mxu0 %v17843_v9  ;;  %11479 = vmatprep.mubr.msk.f32.mxu1 %vm11550_vm1, %v17751_v12  ;;  %v10061_v18 = vsub.f32 %v17356_v59, %v10060_v38 }
 0x5f7   :  { %11418 = vmatprep.subr.mxu0 %v17751_v12  ;;  %v10082_v30 = vsub.f32 %v17364_v58, %v10081_v17 }
 0x5f8   :  { %11419 = vmatpush3.msra.mxu0 %v17844_v43  ;;  %v10062_v5 = vand.u32 4294901760, %v10061_v18 }
 0x5f9   :  { %11420 = vmatprep.subr.mxu0 %v17751_v12  ;;  %v10083_v6 = vand.u32 4294901760, %v10082_v30 }
 0x5fa   :  { %11421 = vmatpush3.msra.mxu0 %v17845_v52  ;;  %11472 = vmatpush3.msra.mxu1 %v10062_v5 }
 0x5fb   :  { %11423 = vmatmul.mubr.f32.vlgmr.msra.gmra.mxu0 %v17170_v34  ;;  %11460 = vmatprep.subr.mxu0 %v17751_v12 }
 0x5fc   :  { %11468 = vmatprep.mubr.msk.f32.mxu0 %vm11550_vm1, %v17751_v12  ;;  %11461 = vmatpush3.msra.mxu0 %v9979_v16 }
 0x5fd   :  { %11462 = vmatprep.subr.mxu0 %v17751_v12  ;;  %11473 = vmatprep.subr.mxu1 %v17751_v12 }
 0x5fe   :  { %11463 = vmatpush3.msra.mxu0 %v9982_v24  ;;  %11474 = vmatpush3.msra.mxu1 %v10069_v20 }
 0x5ff   :  { %11464 = vmatprep.subr.mxu0 %v17751_v12  ;;  %11475 = vmatprep.subr.mxu1 %v17751_v12 }
 0x600   :  { %11465 = vmatpush3.msra.mxu0 %v17349_v7  ;;  %11476 = vmatpush3.msra.mxu1 %v10076_v40 }
 0x601   :  { %11466 = vmatprep.subr.mxu0 %v17751_v12  ;;  %11477 = vmatprep.subr.mxu1 %v17751_v12 }
 0x602   :  { %11467 = vmatpush3.msra.mxu0 %v17354_v35  ;;  %11478 = vmatpush3.msra.mxu1 %v10083_v6 }
 0x603   :  { %11482 = vmatprep.subr.mxu0 %v17751_v12  ;;  %11493 = vmatprep.subr.mxu1 %v17751_v12 }
 0x671   :  { %v9531_v50 = vpop.f32.mrf.mxu1 }
 0x673   :  { %v11319_v28 = vpop.f32.mrf.mxu1 }
 0x674   :  { %v10447_v28 = vld [vmem:[%s17436_s0 + $0x8] sm:$0xf] }
 0x679   :  { %v9380_v33 = vpop.f32.mrf.mxu0 }
 0x67a   :  { %v9381_v63 = vadd.f32 %v10475_v39, %v9380_v33 }
 0x67b   :  { %v11284_v11 = vpop.f32.mrf.mxu0 }
 0x67c   :  { %v9532_v13 = vadd.f32 %v9531_v50, %v9381_v63 }
 0x691   :  { %v9724_v48 = vpop.f32.mrf.mxu1 }
 0x693   :  { %v11389_v8 = vpop.f32.mrf.mxu1 }
 0x69a   :  { %v9635_v60 = vpop.f32.mrf.mxu0 }
 0x69b   :  { %v9636_v21 = vadd.f32 %v9635_v60, %v9532_v13 }
 0x69c   :  { %v11354_v42 = vpop.f32.mrf.mxu0 }
 0x69d   :  { %v9725_v2 = vadd.f32 %v9724_v48, %v9636_v21 }
 0x6b3   :  { %v9930_v22 = vpop.f32.mrf.mxu1 }
 0x6b5   :  { %v11459_v4 = vpop.f32.mrf.mxu1 }
 0x6bb   :  { %v9843_v23 = vpop.f32.mrf.mxu0 }
 0x6bc   :  { %v9844_v62 = vadd.f32 %v9843_v23, %v9725_v2 }
 0x6bd   :  { %v11424_v25 = vpop.f32.mrf.mxu0 }
 0x6be   :  { %v9931_v56 = vadd.f32 %v9930_v22, %v9844_v62 }
 0x6c0   :  { %v9935_v55 = vsel %vm9934_vm2, %v9931_v56, -inf }
 0x6c1   :  { %9936 = vmax.xlane.f32.xlu0 %v9935_v55 }
 0x74a   :  { %v9937_v41 = vpop.xlane.xlu0 %9936 }
 0x74b   :  { %v9938_v49 = vsub.f32 %v9931_v56, %v9937_v41 }
 0x74d   :  { %v9939_v3 = vmul.f32 1.442695, %v9938_v49 }
 0x74f   :  { %11529 = vpow2.f32 %v9939_v3 }
 0x75c   :  { %v11530_v29 = vpop.eup %11529 }
 0x75d   :  { %v9941_v44 = vsel %vm9934_vm2, %v11530_v29, 0.0 }
 0x75e   :  { %9942 = vadd.xlane.f32.xlu0 %v9941_v44 }
 0x7e7   :  { %v9943_v61 = vpop.xlane.xlu0 %9942 }
 0x7e8   :  { %11531 = vrcp.f32 %v9943_v61 }
 0x7f5   :  { %v11532_v19 = vpop.eup %11531 }
 0x7f6   :  { %v9945_v34 = vmul.f32 %v11532_v19, %v11530_v29 }
 0x7f8   :  { %v9952_v0 = vsel %vm9950_vm3, %v9945_v34, 0 }
 0x7f9   :  { %v10023_v54 = vand.u32 4294901760, %v9952_v0 }
 0x7fb   :  { %v10024_v10 = vsub.f32 %v9952_v0, %v10023_v54  ;;  %11480 = vmatmul.mubr.f32.vlgmr.msra.gmra.mxu1 %v10023_v54 }
 0x7fc   :  { %11494 = vmatpush3.msra.mxu1 %v9979_v16  ;;  %11501 = vmatprep.mubr.msk.f32.mxu1 %vm11550_vm1, %v17751_v12 }
 0x7fd   :  { %11495 = vmatprep.subr.mxu1 %v17751_v12  ;;  %v10025_v36 = vand.u32 4294901760, %v10024_v10 }
 0x7fe   :  { %11496 = vmatpush3.msra.mxu1 %v9982_v24 }
 0x7ff   :  { %11497 = vmatprep.subr.mxu1 %v17751_v12  ;;  %v10026_v51 = vsub.f32 %v10024_v10, %v10025_v36 }
 0x800   :  { %11498 = vmatpush3.msra.mxu1 %v17349_v7 }
 0x801   :  { %11499 = vmatprep.subr.mxu1 %v17751_v12  ;;  %v10027_v57 = vand.u32 4294901760, %v10026_v51 }
 0x802   :  { %11500 = vmatpush3.msra.mxu1 %v17354_v35 }
 0x803   :  { %11502 = vmatmul.mubr.f32.vlgmr.msra.gmra.mxu1 %v10025_v36  ;;  %11515 = vmatprep.subr.mxu1 %v17751_v12 }
 0x804   :  { %11469 = vmatmul.mubr.f32.vlgmr.msra.gmra.mxu0 %v10027_v57  ;;  %11516 = vmatpush3.msra.mxu1 %v9979_v16 }
 0x805   :  { %11483 = vmatpush3.msra.mxu0 %v17356_v59  ;;  %11517 = vmatprep.subr.mxu1 %v17751_v12 }
 0x806   :  { %11484 = vmatprep.subr.mxu0 %v17751_v12  ;;  %11518 = vmatpush3.msra.mxu1 %v9982_v24 }
 0x807   :  { %11485 = vmatpush3.msra.mxu0 %v17358_v37  ;;  %11519 = vmatprep.subr.mxu1 %v17751_v12 }
 0x808   :  { %11486 = vmatprep.subr.mxu0 %v17751_v12  ;;  %11520 = vmatpush3.msra.mxu1 %v17349_v7 }
 0x809   :  { %11487 = vmatpush3.msra.mxu0 %v17361_v46  ;;  %11521 = vmatprep.subr.mxu1 %v17751_v12 }
 0x80a   :  { %11488 = vmatprep.subr.mxu0 %v17751_v12  ;;  %11490 = vmatprep.mubr.msk.f32.mxu0 %vm11550_vm1, %v17751_v12 }
 0x80b   :  { %11489 = vmatpush3.msra.mxu0 %v17364_v58  ;;  %11522 = vmatpush3.msra.mxu1 %v17354_v35 }
 0x80c   :  { %11523 = vmatprep.mubr.msk.f32.mxu1 %vm11550_vm1, %v17751_v12  ;;  %11491 = vmatmul.mubr.f32.vlgmr.msra.gmra.mxu0 %v10024_v10 }
 0x80d   :  { %11504 = vmatprep.subr.mxu0 %v17751_v12  ;;  %11524 = vmatmul.mubr.f32.vlgmr.msra.gmra.mxu1 %v10023_v54 }
 0x80e   :  { %11505 = vmatpush3.msra.mxu0 %v10060_v38  ;;  %11512 = vmatprep.mubr.msk.f32.mxu0 %vm11550_vm1, %v17751_v12 }
 0x80f   :  { %11506 = vmatprep.subr.mxu0 %v17751_v12 }
 0x810   :  { %11507 = vmatpush3.msra.mxu0 %v10067_v1 }
 0x811   :  { %11508 = vmatprep.subr.mxu0 %v17751_v12 }
 0x812   :  { %11509 = vmatpush3.msra.mxu0 %v10074_v14 }
 0x813   :  { %11510 = vmatprep.subr.mxu0 %v17751_v12 }
 0x814   :  { %11511 = vmatpush3.msra.mxu0 %v10081_v17 }
 0x815   :  { %11513 = vmatmul.mubr.f32.vlgmr.msra.gmra.mxu0 %v10023_v54 }
 0x8bb   :  { %v10120_v45 = vpop.f32.mrf.mxu1 }
 0x8bd   :  { %v11481_v53 = vpop.f32.mrf.mxu1 }
 0x8c3   :  { %v10277_v9 = vpop.f32.mrf.mxu1 }
 0x8c4   :  { %v10029_v43 = vpop.f32.mrf.mxu0 }
 0x8c5   :  { %v11503_v52 = vpop.f32.mrf.mxu1  ;;  %v10030_v33 = vadd.f32 %v10447_v28, %v10029_v43 }
 0x8c6   :  { %v11470_v50 = vpop.f32.mrf.mxu0 }
 0x8c7   :  { %v10121_v8 = vadd.f32 %v10120_v45, %v10030_v33 }
 0x8cc   :  { %v10200_v11 = vpop.f32.mrf.mxu0 }
 0x8cd   :  { %v10435_v48 = vpop.f32.mrf.mxu1  ;;  %v10201_v42 = vadd.f32 %v10200_v11, %v10121_v8 }
 0x8ce   :  { %v11492_v60 = vpop.f32.mrf.mxu0 }
 0x8cf   :  { %v11525_v12 = vpop.f32.mrf.mxu1  ;;  %v10278_v39 = vadd.f32 %v10277_v9, %v10201_v42 }
 0x8d5   :  { %v10360_v63 = vpop.f32.mrf.mxu0 }
 0x8d6   :  { %v10361_v22 = vadd.f32 %v10360_v63, %v10278_v39 }
 0x8d7   :  { %v11514_v13 = vpop.f32.mrf.mxu0 }
 0x8d8   :  { %v10436_v4 = vadd.f32 %v10435_v48, %v10361_v22 }
 0x8da   :  { %10440 = vst.msk [vmem:[%s17444_s8] sm:$0xf] %vm10439_vm4, %v10436_v4 }
 0x8db   :  { %10445 = vsyncpa [#allocation3], 1 }

</bundles_post_ra>
